<compile_context>
chip_gen: v7x
topology: tpu7x:2x2x1
jax: 0.10.0
libtpu: 0.0.40
codegen_flags: <defaults>
</compile_context>

<pallas_src>
import functools
import math

import jax
import jax.numpy as jnp
from jax.experimental import pallas as pl
from jax.experimental.pallas import tpu as pltpu


# ---------------------------------------------------------------------------
# Fused whole-model Pallas kernel
# ---------------------------------------------------------------------------

def _fused_transformer_kernel(x_ref, bias_ref, sel_ref, *refs, treedef, H, D):
    """x_ref: (M, E) embedded tokens (M = batch*seq, batch-major rows).
    bias_ref: (M, M) additive attention mask (0 same-batch, -1e30 cross-batch).
    sel_ref: (B, M) one-hot selector of the last-token row per batch element.
    refs[:-1]: flattened parameter pytree (all pre-transposed, all 2D).
    refs[-1]: (B, num_classes) output logits.
    """
    out_ref = refs[-1]
    p = jax.tree_util.tree_unflatten(treedef, list(refs[:-1]))

    E = H * D
    scale = 1.0 / math.sqrt(D)
    eps = 1e-5
    f32 = jnp.float32

    x = x_ref[...]
    attn_bias = bias_ref[...]
    last_sel = sel_ref[...]

    def dot(a, b):
        return jnp.dot(a, b, preferred_element_type=f32)

    def ln(y, g_ref, b_ref):
        # PyTorch LayerNorm: biased variance, eps=1e-5.
        mu = jnp.mean(y, axis=-1, keepdims=True)
        d = y - mu
        var = jnp.mean(d * d, axis=-1, keepdims=True)
        return d * jax.lax.rsqrt(var + eps) * g_ref[...] + b_ref[...]

    def gelu(y):
        # Exact (erf-based) GELU to match activation='gelu'; erf via the
        # Abramowitz & Stegun 7.1.26 polynomial (|err| < 1.5e-7), which lowers
        # to plain VPU/EUP ops (abs/exp/div) inside the kernel.
        z = y * 0.7071067811865476
        az = jnp.abs(z)
        t = 1.0 / (1.0 + 0.3275911 * az)
        poly = ((((1.061405429 * t - 1.453152027) * t + 1.421413741) * t
                 - 0.284496736) * t + 0.254829592) * t
        erf_abs = 1.0 - poly * jnp.exp(-az * az)
        erf_z = jnp.where(z < 0.0, -erf_abs, erf_abs)
        return 0.5 * y * (1.0 + erf_z)

    def mha_core(q, k, v, pa):
        # Per-head attention with the output projection folded into the head
        # loop: rows h*D:(h+1)*D of out_w correspond to head h of the concat,
        # so summing per-head contributions avoids any concat/transpose.
        ow = pa["out_w"][...]
        acc = None
        for h in range(H):
            sl = slice(h * D, (h + 1) * D)
            s = jax.lax.dot_general(
                q[:, sl] * scale, k[:, sl],
                (((1,), (1,)), ((), ())),
                preferred_element_type=f32)                 # (M, M)
            s = s + attn_bias
            m = jnp.max(s, axis=-1, keepdims=True)
            e = jnp.exp(s - m)
            prob = e / jnp.sum(e, axis=-1, keepdims=True)
            oh = dot(prob, v[:, sl])                        # (M, D)
            c = dot(oh, ow[sl, :])                          # (M, E)
            acc = c if acc is None else acc + c
        return acc + pa["out_b"][...]

    def self_attn(y, pa):
        # Fused QKV projection: one (M,E) x (E,3E) matmul.
        qkv = dot(y, pa["qkv_w"][...]) + pa["qkv_b"][...]
        return mha_core(qkv[:, :E], qkv[:, E:2 * E], qkv[:, 2 * E:], pa)

    def cross_attn(y, mem, pa):
        w = pa["qkv_w"][...]
        b = pa["qkv_b"][...]
        q = dot(y, w[:, :E]) + b[:, :E]
        kv = dot(mem, w[:, E:]) + b[:, E:]                  # fused K,V projection
        return mha_core(q, kv[:, :E], kv[:, E:], pa)

    def ffn(y, lp):
        h = gelu(dot(y, lp["ff1_w"][...]) + lp["ff1_b"][...])
        return dot(h, lp["ff2_w"][...]) + lp["ff2_b"][...]

    # ---- encoder (post-norm; dropout = identity) ----
    mem = x
    for lp in p["enc_layers"]:
        mem = ln(mem + self_attn(mem, lp["sa"]), lp["ln1_w"], lp["ln1_b"])
        mem = ln(mem + ffn(mem, lp), lp["ln2_w"], lp["ln2_b"])
    mem = ln(mem, p["enc_norm_w"], p["enc_norm_b"])

    # ---- decoder (no causal mask: reference calls transformer(x, x) unmasked) ----
    y = x
    for lp in p["dec_layers"]:
        y = ln(y + self_attn(y, lp["sa"]), lp["ln1_w"], lp["ln1_b"])
        y = ln(y + cross_attn(y, mem, lp["ca"]), lp["ln2_w"], lp["ln2_b"])
        y = ln(y + ffn(y, lp), lp["ln3_w"], lp["ln3_b"])
    y = ln(y, p["dec_norm_w"], p["dec_norm_b"])

    # ---- last-token gather (one-hot matmul) + classifier head ----
    last = dot(last_sel, y)                                 # (B, E)
    out_ref[...] = dot(last, p["fc_w"][...]) + p["fc_b"][...]


# ---------------------------------------------------------------------------
# Wrapper: embedding lookup + constant masks + single pallas_call
# ---------------------------------------------------------------------------

def transformer_model_forward(prepared, tokens, *, num_heads):
    """tokens: (batch, seq) int32 -> logits (batch, num_classes)."""
    B, S = tokens.shape
    emb_tab = prepared["embedding"]
    E = emb_tab.shape[1]
    H = num_heads
    assert E % H == 0
    D = E // H
    body = prepared["body"]
    C = body["fc_w"].shape[1]
    M = B * S

    # nn.Embedding lookup; the two permute(1,0,2) of the PyTorch model are
    # absorbed by the flat batch-major (B*S, E) layout (attention only mixes
    # rows of the same batch element via the block mask below).
    # TODO(synk): the data-dependent embedding gather stays in XLA; an in-kernel
    # DMA gather adds nothing at this size.
    x2d = jnp.take(emb_tab, tokens.reshape(-1).astype(jnp.int32), axis=0)

    # Compile-time-constant attention block mask and last-token selector.
    bid = jnp.arange(M, dtype=jnp.int32) // S
    attn_bias = jnp.where(bid[:, None] == bid[None, :], 0.0, -1e30)
    attn_bias = attn_bias.astype(jnp.float32)                      # (M, M)
    last_idx = jnp.arange(B, dtype=jnp.int32) * S + (S - 1)
    last_sel = (last_idx[:, None] ==
                jnp.arange(M, dtype=jnp.int32)[None, :]).astype(jnp.float32)  # (B, M)

    leaves, treedef = jax.tree_util.tree_flatten(body)
    kernel = functools.partial(_fused_transformer_kernel,
                               treedef=treedef, H=H, D=D)

    n_inputs = 3 + len(leaves)
    return pl.pallas_call(
        kernel,
        out_shape=jax.ShapeDtypeStruct((B, C), jnp.float32),
        in_specs=[pl.BlockSpec(memory_space=pltpu.MemorySpace.VMEM)] * n_inputs,
        out_specs=pl.BlockSpec(memory_space=pltpu.MemorySpace.VMEM),
    )(x2d, attn_bias, last_sel, *leaves)


# ---------------------------------------------------------------------------
# Parameters: PyTorch-layout init + one-time kernel-layout preparation
# ---------------------------------------------------------------------------

def init_params(key, input_size, hidden_size, num_classes, num_layers):
    """Deterministic params with the same shapes as the PyTorch module."""
    ffn = hidden_size * 4
    keys = iter(jax.random.split(key, 512))

    def w(shape, scale=0.02):
        return jax.random.normal(next(keys), shape, jnp.float32) * scale

    def mha_params():
        return dict(
            in_proj_weight=w((3 * hidden_size, hidden_size)),
            in_proj_bias=w((3 * hidden_size,)),
            out_proj_weight=w((hidden_size, hidden_size)),
            out_proj_bias=w((hidden_size,)),
        )

    def enc_layer():
        return dict(
            self_attn=mha_params(),
            linear1_w=w((ffn, hidden_size)), linear1_b=w((ffn,)),
            linear2_w=w((hidden_size, ffn)), linear2_b=w((hidden_size,)),
            norm1_w=jnp.ones((hidden_size,), jnp.float32),
            norm1_b=jnp.zeros((hidden_size,), jnp.float32),
            norm2_w=jnp.ones((hidden_size,), jnp.float32),
            norm2_b=jnp.zeros((hidden_size,), jnp.float32),
        )

    def dec_layer():
        d = enc_layer()
        d["cross_attn"] = mha_params()
        d["norm3_w"] = jnp.ones((hidden_size,), jnp.float32)
        d["norm3_b"] = jnp.zeros((hidden_size,), jnp.float32)
        return d

    return dict(
        embedding=w((input_size, hidden_size), scale=1.0),
        encoder_layers=[enc_layer() for _ in range(num_layers)],
        decoder_layers=[dec_layer() for _ in range(num_layers)],
        encoder_norm_w=jnp.ones((hidden_size,), jnp.float32),
        encoder_norm_b=jnp.zeros((hidden_size,), jnp.float32),
        decoder_norm_w=jnp.ones((hidden_size,), jnp.float32),
        decoder_norm_b=jnp.zeros((hidden_size,), jnp.float32),
        fc_w=w((num_classes, hidden_size)),
        fc_b=w((num_classes,)),
    )


def prepare_params(params):
    """One-time relayout: transpose all Linear weights (x @ W.T -> x @ Wt),
    make every bias/LN param 2D so everything is a clean VMEM operand."""
    f32 = jnp.float32

    def row(v):
        return jnp.asarray(v, f32).reshape(1, -1)

    def prep_mha(p):
        return dict(
            qkv_w=jnp.asarray(p["in_proj_weight"], f32).T,     # (E, 3E)
            qkv_b=row(p["in_proj_bias"]),                      # (1, 3E)
            out_w=jnp.asarray(p["out_proj_weight"], f32).T,    # (E, E)
            out_b=row(p["out_proj_bias"]),                     # (1, E)
        )

    def prep_common(lp):
        return dict(
            sa=prep_mha(lp["self_attn"]),
            ff1_w=jnp.asarray(lp["linear1_w"], f32).T,         # (E, 4E)
            ff1_b=row(lp["linear1_b"]),
            ff2_w=jnp.asarray(lp["linear2_w"], f32).T,         # (4E, E)
            ff2_b=row(lp["linear2_b"]),
            ln1_w=row(lp["norm1_w"]), ln1_b=row(lp["norm1_b"]),
            ln2_w=row(lp["norm2_w"]), ln2_b=row(lp["norm2_b"]),
        )

    enc_layers = [prep_common(lp) for lp in params["encoder_layers"]]
    dec_layers = []
    for lp in params["decoder_layers"]:
        d = prep_common(lp)
        d["ca"] = prep_mha(lp["cross_attn"])
        d["ln3_w"] = row(lp["norm3_w"])
        d["ln3_b"] = row(lp["norm3_b"])
        dec_layers.append(d)

    body = dict(
        enc_layers=enc_layers,
        dec_layers=dec_layers,
        enc_norm_w=row(params["encoder_norm_w"]),
        enc_norm_b=row(params["encoder_norm_b"]),
        dec_norm_w=row(params["decoder_norm_w"]),
        dec_norm_b=row(params["decoder_norm_b"]),
        fc_w=jnp.asarray(params["fc_w"], f32).T,               # (E, C)
        fc_b=row(params["fc_b"]),                              # (1, C)
    )
    return dict(embedding=jnp.asarray(params["embedding"], f32), body=body)


# ---------------------------------------------------------------------------

if __name__ == "__main__":
    INPUT_SIZE = 50      # vocab size for nn.Embedding
    HIDDEN = 32
    NUM_CLASSES = 10
    NUM_LAYERS = 2
    NUM_HEADS = 4
    BATCH, SEQ = 2, 8

    key = jax.random.PRNGKey(0)
    kp, kx = jax.random.split(key)
    params = init_params(kp, INPUT_SIZE, HIDDEN, NUM_CLASSES, NUM_LAYERS)
    prepared = prepare_params(params)   # one-time weight relayout, outside jit
    tokens = jax.random.randint(kx, (BATCH, SEQ), 0, INPUT_SIZE, dtype=jnp.int32)

    fwd = jax.jit(functools.partial(transformer_model_forward, num_heads=NUM_HEADS))
    logits = fwd(prepared, tokens)
    jax.block_until_ready(logits)

    assert logits.shape == (BATCH, NUM_CLASSES), logits.shape
    assert logits.dtype == jnp.float32
    assert bool(jnp.all(jnp.isfinite(logits)))
    print("KERNEL_OK")
</pallas_src>

<mosaic_0001>
module attributes {stable_mosaic.version = 11 : i64} {
  func.func @_fused_transformer_kernel(%arg0: memref<16x32xf32, #tpu.memory_space<vmem>>, %arg1: memref<16x16xf32, #tpu.memory_space<vmem>>, %arg2: memref<2x16xf32, #tpu.memory_space<vmem>>, %arg3: memref<1x32xf32, #tpu.memory_space<vmem>>, %arg4: memref<32x32xf32, #tpu.memory_space<vmem>>, %arg5: memref<1x96xf32, #tpu.memory_space<vmem>>, %arg6: memref<32x96xf32, #tpu.memory_space<vmem>>, %arg7: memref<1x128xf32, #tpu.memory_space<vmem>>, %arg8: memref<32x128xf32, #tpu.memory_space<vmem>>, %arg9: memref<1x32xf32, #tpu.memory_space<vmem>>, %arg10: memref<128x32xf32, #tpu.memory_space<vmem>>, %arg11: memref<1x32xf32, #tpu.memory_space<vmem>>, %arg12: memref<1x32xf32, #tpu.memory_space<vmem>>, %arg13: memref<1x32xf32, #tpu.memory_space<vmem>>, %arg14: memref<1x32xf32, #tpu.memory_space<vmem>>, %arg15: memref<1x32xf32, #tpu.memory_space<vmem>>, %arg16: memref<1x32xf32, #tpu.memory_space<vmem>>, %arg17: memref<1x32xf32, #tpu.memory_space<vmem>>, %arg18: memref<32x32xf32, #tpu.memory_space<vmem>>, %arg19: memref<1x96xf32, #tpu.memory_space<vmem>>, %arg20: memref<32x96xf32, #tpu.memory_space<vmem>>, %arg21: memref<1x32xf32, #tpu.memory_space<vmem>>, %arg22: memref<32x32xf32, #tpu.memory_space<vmem>>, %arg23: memref<1x96xf32, #tpu.memory_space<vmem>>, %arg24: memref<32x96xf32, #tpu.memory_space<vmem>>, %arg25: memref<1x128xf32, #tpu.memory_space<vmem>>, %arg26: memref<32x128xf32, #tpu.memory_space<vmem>>, %arg27: memref<1x32xf32, #tpu.memory_space<vmem>>, %arg28: memref<128x32xf32, #tpu.memory_space<vmem>>, %arg29: memref<1x32xf32, #tpu.memory_space<vmem>>, %arg30: memref<1x32xf32, #tpu.memory_space<vmem>>, %arg31: memref<1x32xf32, #tpu.memory_space<vmem>>, %arg32: memref<1x32xf32, #tpu.memory_space<vmem>>, %arg33: memref<1x32xf32, #tpu.memory_space<vmem>>, %arg34: memref<1x32xf32, #tpu.memory_space<vmem>>, %arg35: memref<1x32xf32, #tpu.memory_space<vmem>>, %arg36: memref<32x32xf32, #tpu.memory_space<vmem>>, %arg37: memref<1x96xf32, #tpu.memory_space<vmem>>, %arg38: memref<32x96xf32, #tpu.memory_space<vmem>>, %arg39: memref<1x32xf32, #tpu.memory_space<vmem>>, %arg40: memref<1x32xf32, #tpu.memory_space<vmem>>, %arg41: memref<1x128xf32, #tpu.memory_space<vmem>>, %arg42: memref<32x128xf32, #tpu.memory_space<vmem>>, %arg43: memref<1x32xf32, #tpu.memory_space<vmem>>, %arg44: memref<128x32xf32, #tpu.memory_space<vmem>>, %arg45: memref<1x32xf32, #tpu.memory_space<vmem>>, %arg46: memref<1x32xf32, #tpu.memory_space<vmem>>, %arg47: memref<1x32xf32, #tpu.memory_space<vmem>>, %arg48: memref<1x32xf32, #tpu.memory_space<vmem>>, %arg49: memref<1x32xf32, #tpu.memory_space<vmem>>, %arg50: memref<32x32xf32, #tpu.memory_space<vmem>>, %arg51: memref<1x96xf32, #tpu.memory_space<vmem>>, %arg52: memref<32x96xf32, #tpu.memory_space<vmem>>, %arg53: memref<1x128xf32, #tpu.memory_space<vmem>>, %arg54: memref<32x128xf32, #tpu.memory_space<vmem>>, %arg55: memref<1x32xf32, #tpu.memory_space<vmem>>, %arg56: memref<128x32xf32, #tpu.memory_space<vmem>>, %arg57: memref<1x32xf32, #tpu.memory_space<vmem>>, %arg58: memref<1x32xf32, #tpu.memory_space<vmem>>, %arg59: memref<1x32xf32, #tpu.memory_space<vmem>>, %arg60: memref<1x32xf32, #tpu.memory_space<vmem>>, %arg61: memref<1x32xf32, #tpu.memory_space<vmem>>, %arg62: memref<32x32xf32, #tpu.memory_space<vmem>>, %arg63: memref<1x96xf32, #tpu.memory_space<vmem>>, %arg64: memref<32x96xf32, #tpu.memory_space<vmem>>, %arg65: memref<1x32xf32, #tpu.memory_space<vmem>>, %arg66: memref<1x32xf32, #tpu.memory_space<vmem>>, %arg67: memref<1x10xf32, #tpu.memory_space<vmem>>, %arg68: memref<32x10xf32, #tpu.memory_space<vmem>>, %arg69: memref<2x10xf32, #tpu.memory_space<vmem>>) attributes {dimension_semantics = [], scalar_prefetch = 0 : i64, scratch_operands = 0 : i64, tpu.core_type = #tpu.core_type<tc>} {
    %c0 = arith.constant 0 : index
    %c0_0 = arith.constant 0 : index
    %0 = vector.load %arg0[%c0, %c0_0] : memref<16x32xf32, #tpu.memory_space<vmem>>, vector<16x32xf32>
    %c0_1 = arith.constant 0 : index
    %c0_2 = arith.constant 0 : index
    %1 = vector.load %arg1[%c0_1, %c0_2] : memref<16x16xf32, #tpu.memory_space<vmem>>, vector<16x16xf32>
    %c0_3 = arith.constant 0 : index
    %c0_4 = arith.constant 0 : index
    %2 = vector.load %arg2[%c0_3, %c0_4] : memref<2x16xf32, #tpu.memory_space<vmem>>, vector<2x16xf32>
    %c0_5 = arith.constant 0 : index
    %c0_6 = arith.constant 0 : index
    %3 = vector.load %arg52[%c0_5, %c0_6] : memref<32x96xf32, #tpu.memory_space<vmem>>, vector<32x96xf32>
    %cst = arith.constant dense<0.000000e+00> : vector<16x96xf32>
    %4 = tpu.matmul %0, %3, %cst {dimension_numbers = #tpu.dot_dimension_numbers<[1], [0], [0], [1], [0, 0, 1, 1], [], []>} : vector<16x32xf32>, vector<32x96xf32>, vector<16x96xf32> -> vector<16x96xf32>
    %c0_7 = arith.constant 0 : index
    %c0_8 = arith.constant 0 : index
    %5 = vector.load %arg51[%c0_7, %c0_8] : memref<1x96xf32, #tpu.memory_space<vmem>>, vector<1x96xf32>
    %6 = vector.broadcast %5 : vector<1x96xf32> to vector<16x96xf32>
    %7 = arith.addf %4, %6 : vector<16x96xf32>
    %8 = vector.extract_strided_slice %7 {offsets = [0, 0], sizes = [16, 32], strides = [1, 1]} : vector<16x96xf32> to vector<16x32xf32>
    %9 = vector.extract_strided_slice %7 {offsets = [0, 32], sizes = [16, 32], strides = [1, 1]} : vector<16x96xf32> to vector<16x32xf32>
    %10 = vector.extract_strided_slice %7 {offsets = [0, 64], sizes = [16, 32], strides = [1, 1]} : vector<16x96xf32> to vector<16x32xf32>
    %c0_9 = arith.constant 0 : index
    %c0_10 = arith.constant 0 : index
    %11 = vector.load %arg50[%c0_9, %c0_10] : memref<32x32xf32, #tpu.memory_space<vmem>>, vector<32x32xf32>
    %12 = vector.extract_strided_slice %8 {offsets = [0, 0], sizes = [16, 8], strides = [1, 1]} : vector<16x32xf32> to vector<16x8xf32>
    %cst_11 = arith.constant 0.353553385 : f32
    %13 = vector.broadcast %cst_11 : f32 to vector<16x8xf32>
    %14 = arith.mulf %12, %13 : vector<16x8xf32>
    %15 = vector.extract_strided_slice %9 {offsets = [0, 0], sizes = [16, 8], strides = [1, 1]} : vector<16x32xf32> to vector<16x8xf32>
    %cst_12 = arith.constant dense<0.000000e+00> : vector<16x16xf32>
    %16 = tpu.matmul %14, %15, %cst_12 {dimension_numbers = #tpu.dot_dimension_numbers<[1], [1], [0], [0], [0, 0, 1, 0], [], []>} : vector<16x8xf32>, vector<16x8xf32>, vector<16x16xf32> -> vector<16x16xf32>
    %17 = arith.addf %16, %1 : vector<16x16xf32>
    %cst_13 = arith.constant dense<0xFF800000> : vector<16xf32>
    %18 = vector.multi_reduction <maximumf>, %17, %cst_13 [1] : vector<16x16xf32> to vector<16xf32>
    %19 = vector.shape_cast %18 : vector<16xf32> to vector<16x1xf32>
    %20 = vector.broadcast %19 : vector<16x1xf32> to vector<16x16xf32>
    %21 = arith.subf %17, %20 : vector<16x16xf32>
    %22 = math.exp %21 : vector<16x16xf32>
    %cst_14 = arith.constant dense<0.000000e+00> : vector<16xf32>
    %23 = vector.multi_reduction <add>, %22, %cst_14 [1] : vector<16x16xf32> to vector<16xf32>
    %24 = vector.shape_cast %23 : vector<16xf32> to vector<16x1xf32>
    %25 = vector.broadcast %24 : vector<16x1xf32> to vector<16x16xf32>
    %26 = arith.divf %22, %25 : vector<16x16xf32>
    %27 = vector.extract_strided_slice %10 {offsets = [0, 0], sizes = [16, 8], strides = [1, 1]} : vector<16x32xf32> to vector<16x8xf32>
    %cst_15 = arith.constant dense<0.000000e+00> : vector<16x8xf32>
    %28 = tpu.matmul %26, %27, %cst_15 {dimension_numbers = #tpu.dot_dimension_numbers<[1], [0], [0], [1], [0, 0, 1, 1], [], []>} : vector<16x16xf32>, vector<16x8xf32>, vector<16x8xf32> -> vector<16x8xf32>
    %29 = vector.extract_strided_slice %11 {offsets = [0, 0], sizes = [8, 32], strides = [1, 1]} : vector<32x32xf32> to vector<8x32xf32>
    %cst_16 = arith.constant dense<0.000000e+00> : vector<16x32xf32>
    %30 = tpu.matmul %28, %29, %cst_16 {dimension_numbers = #tpu.dot_dimension_numbers<[1], [0], [0], [1], [0, 0, 1, 1], [], []>} : vector<16x8xf32>, vector<8x32xf32>, vector<16x32xf32> -> vector<16x32xf32>
    %31 = vector.extract_strided_slice %8 {offsets = [0, 8], sizes = [16, 8], strides = [1, 1]} : vector<16x32xf32> to vector<16x8xf32>
    %cst_17 = arith.constant 0.353553385 : f32
    %32 = vector.broadcast %cst_17 : f32 to vector<16x8xf32>
    %33 = arith.mulf %31, %32 : vector<16x8xf32>
    %34 = vector.extract_strided_slice %9 {offsets = [0, 8], sizes = [16, 8], strides = [1, 1]} : vector<16x32xf32> to vector<16x8xf32>
    %cst_18 = arith.constant dense<0.000000e+00> : vector<16x16xf32>
    %35 = tpu.matmul %33, %34, %cst_18 {dimension_numbers = #tpu.dot_dimension_numbers<[1], [1], [0], [0], [0, 0, 1, 0], [], []>} : vector<16x8xf32>, vector<16x8xf32>, vector<16x16xf32> -> vector<16x16xf32>
    %36 = arith.addf %35, %1 : vector<16x16xf32>
    %cst_19 = arith.constant dense<0xFF800000> : vector<16xf32>
    %37 = vector.multi_reduction <maximumf>, %36, %cst_19 [1] : vector<16x16xf32> to vector<16xf32>
    %38 = vector.shape_cast %37 : vector<16xf32> to vector<16x1xf32>
    %39 = vector.broadcast %38 : vector<16x1xf32> to vector<16x16xf32>
    %40 = arith.subf %36, %39 : vector<16x16xf32>
    %41 = math.exp %40 : vector<16x16xf32>
    %cst_20 = arith.constant dense<0.000000e+00> : vector<16xf32>
    %42 = vector.multi_reduction <add>, %41, %cst_20 [1] : vector<16x16xf32> to vector<16xf32>
    %43 = vector.shape_cast %42 : vector<16xf32> to vector<16x1xf32>
    %44 = vector.broadcast %43 : vector<16x1xf32> to vector<16x16xf32>
    %45 = arith.divf %41, %44 : vector<16x16xf32>
    %46 = vector.extract_strided_slice %10 {offsets = [0, 8], sizes = [16, 8], strides = [1, 1]} : vector<16x32xf32> to vector<16x8xf32>
    %cst_21 = arith.constant dense<0.000000e+00> : vector<16x8xf32>
    %47 = tpu.matmul %45, %46, %cst_21 {dimension_numbers = #tpu.dot_dimension_numbers<[1], [0], [0], [1], [0, 0, 1, 1], [], []>} : vector<16x16xf32>, vector<16x8xf32>, vector<16x8xf32> -> vector<16x8xf32>
    %48 = vector.extract_strided_slice %11 {offsets = [8, 0], sizes = [8, 32], strides = [1, 1]} : vector<32x32xf32> to vector<8x32xf32>
    %cst_22 = arith.constant dense<0.000000e+00> : vector<16x32xf32>
    %49 = tpu.matmul %47, %48, %cst_22 {dimension_numbers = #tpu.dot_dimension_numbers<[1], [0], [0], [1], [0, 0, 1, 1], [], []>} : vector<16x8xf32>, vector<8x32xf32>, vector<16x32xf32> -> vector<16x32xf32>
    %50 = arith.addf %30, %49 : vector<16x32xf32>
    %51 = vector.extract_strided_slice %8 {offsets = [0, 16], sizes = [16, 8], strides = [1, 1]} : vector<16x32xf32> to vector<16x8xf32>
    %cst_23 = arith.constant 0.353553385 : f32
    %52 = vector.broadcast %cst_23 : f32 to vector<16x8xf32>
    %53 = arith.mulf %51, %52 : vector<16x8xf32>
    %54 = vector.extract_strided_slice %9 {offsets = [0, 16], sizes = [16, 8], strides = [1, 1]} : vector<16x32xf32> to vector<16x8xf32>
    %cst_24 = arith.constant dense<0.000000e+00> : vector<16x16xf32>
    %55 = tpu.matmul %53, %54, %cst_24 {dimension_numbers = #tpu.dot_dimension_numbers<[1], [1], [0], [0], [0, 0, 1, 0], [], []>} : vector<16x8xf32>, vector<16x8xf32>, vector<16x16xf32> -> vector<16x16xf32>
    %56 = arith.addf %55, %1 : vector<16x16xf32>
    %cst_25 = arith.constant dense<0xFF800000> : vector<16xf32>
    %57 = vector.multi_reduction <maximumf>, %56, %cst_25 [1] : vector<16x16xf32> to vector<16xf32>
    %58 = vector.shape_cast %57 : vector<16xf32> to vector<16x1xf32>
    %59 = vector.broadcast %58 : vector<16x1xf32> to vector<16x16xf32>
    %60 = arith.subf %56, %59 : vector<16x16xf32>
    %61 = math.exp %60 : vector<16x16xf32>
    %cst_26 = arith.constant dense<0.000000e+00> : vector<16xf32>
    %62 = vector.multi_reduction <add>, %61, %cst_26 [1] : vector<16x16xf32> to vector<16xf32>
    %63 = vector.shape_cast %62 : vector<16xf32> to vector<16x1xf32>
    %64 = vector.broadcast %63 : vector<16x1xf32> to vector<16x16xf32>
    %65 = arith.divf %61, %64 : vector<16x16xf32>
    %66 = vector.extract_strided_slice %10 {offsets = [0, 16], sizes = [16, 8], strides = [1, 1]} : vector<16x32xf32> to vector<16x8xf32>
    %cst_27 = arith.constant dense<0.000000e+00> : vector<16x8xf32>
    %67 = tpu.matmul %65, %66, %cst_27 {dimension_numbers = #tpu.dot_dimension_numbers<[1], [0], [0], [1], [0, 0, 1, 1], [], []>} : vector<16x16xf32>, vector<16x8xf32>, vector<16x8xf32> -> vector<16x8xf32>
    %68 = vector.extract_strided_slice %11 {offsets = [16, 0], sizes = [8, 32], strides = [1, 1]} : vector<32x32xf32> to vector<8x32xf32>
    %cst_28 = arith.constant dense<0.000000e+00> : vector<16x32xf32>
    %69 = tpu.matmul %67, %68, %cst_28 {dimension_numbers = #tpu.dot_dimension_numbers<[1], [0], [0], [1], [0, 0, 1, 1], [], []>} : vector<16x8xf32>, vector<8x32xf32>, vector<16x32xf32> -> vector<16x32xf32>
    %70 = arith.addf %50, %69 : vector<16x32xf32>
    %71 = vector.extract_strided_slice %8 {offsets = [0, 24], sizes = [16, 8], strides = [1, 1]} : vector<16x32xf32> to vector<16x8xf32>
    %cst_29 = arith.constant 0.353553385 : f32
    %72 = vector.broadcast %cst_29 : f32 to vector<16x8xf32>
    %73 = arith.mulf %71, %72 : vector<16x8xf32>
    %74 = vector.extract_strided_slice %9 {offsets = [0, 24], sizes = [16, 8], strides = [1, 1]} : vector<16x32xf32> to vector<16x8xf32>
    %cst_30 = arith.constant dense<0.000000e+00> : vector<16x16xf32>
    %75 = tpu.matmul %73, %74, %cst_30 {dimension_numbers = #tpu.dot_dimension_numbers<[1], [1], [0], [0], [0, 0, 1, 0], [], []>} : vector<16x8xf32>, vector<16x8xf32>, vector<16x16xf32> -> vector<16x16xf32>
    %76 = arith.addf %75, %1 : vector<16x16xf32>
    %cst_31 = arith.constant dense<0xFF800000> : vector<16xf32>
    %77 = vector.multi_reduction <maximumf>, %76, %cst_31 [1] : vector<16x16xf32> to vector<16xf32>
    %78 = vector.shape_cast %77 : vector<16xf32> to vector<16x1xf32>
    %79 = vector.broadcast %78 : vector<16x1xf32> to vector<16x16xf32>
    %80 = arith.subf %76, %79 : vector<16x16xf32>
    %81 = math.exp %80 : vector<16x16xf32>
    %cst_32 = arith.constant dense<0.000000e+00> : vector<16xf32>
    %82 = vector.multi_reduction <add>, %81, %cst_32 [1] : vector<16x16xf32> to vector<16xf32>
    %83 = vector.shape_cast %82 : vector<16xf32> to vector<16x1xf32>
    %84 = vector.broadcast %83 : vector<16x1xf32> to vector<16x16xf32>
    %85 = arith.divf %81, %84 : vector<16x16xf32>
    %86 = vector.extract_strided_slice %10 {offsets = [0, 24], sizes = [16, 8], strides = [1, 1]} : vector<16x32xf32> to vector<16x8xf32>
    %cst_33 = arith.constant dense<0.000000e+00> : vector<16x8xf32>
    %87 = tpu.matmul %85, %86, %cst_33 {dimension_numbers = #tpu.dot_dimension_numbers<[1], [0], [0], [1], [0, 0, 1, 1], [], []>} : vector<16x16xf32>, vector<16x8xf32>, vector<16x8xf32> -> vector<16x8xf32>
    %88 = vector.extract_strided_slice %11 {offsets = [24, 0], sizes = [8, 32], strides = [1, 1]} : vector<32x32xf32> to vector<8x32xf32>
    %cst_34 = arith.constant dense<0.000000e+00> : vector<16x32xf32>
    %89 = tpu.matmul %87, %88, %cst_34 {dimension_numbers = #tpu.dot_dimension_numbers<[1], [0], [0], [1], [0, 0, 1, 1], [], []>} : vector<16x8xf32>, vector<8x32xf32>, vector<16x32xf32> -> vector<16x32xf32>
    %90 = arith.addf %70, %89 : vector<16x32xf32>
    %c0_35 = arith.constant 0 : index
    %c0_36 = arith.constant 0 : index
    %91 = vector.load %arg49[%c0_35, %c0_36] : memref<1x32xf32, #tpu.memory_space<vmem>>, vector<1x32xf32>
    %92 = vector.broadcast %91 : vector<1x32xf32> to vector<16x32xf32>
    %93 = arith.addf %90, %92 : vector<16x32xf32>
    %94 = arith.addf %0, %93 : vector<16x32xf32>
    %cst_37 = arith.constant dense<0.000000e+00> : vector<16xf32>
    %95 = vector.multi_reduction <add>, %94, %cst_37 [1] : vector<16x32xf32> to vector<16xf32>
    %96 = vector.shape_cast %95 : vector<16xf32> to vector<16x1xf32>
    %cst_38 = arith.constant 3.200000e+01 : f32
    %97 = vector.broadcast %cst_38 : f32 to vector<16x1xf32>
    %98 = arith.divf %96, %97 : vector<16x1xf32>
    %99 = vector.broadcast %98 : vector<16x1xf32> to vector<16x32xf32>
    %100 = arith.subf %94, %99 : vector<16x32xf32>
    %101 = arith.mulf %100, %100 : vector<16x32xf32>
    %cst_39 = arith.constant dense<0.000000e+00> : vector<16xf32>
    %102 = vector.multi_reduction <add>, %101, %cst_39 [1] : vector<16x32xf32> to vector<16xf32>
    %103 = vector.shape_cast %102 : vector<16xf32> to vector<16x1xf32>
    %cst_40 = arith.constant 3.200000e+01 : f32
    %104 = vector.broadcast %cst_40 : f32 to vector<16x1xf32>
    %105 = arith.divf %103, %104 : vector<16x1xf32>
    %cst_41 = arith.constant 9.99999974E-6 : f32
    %106 = vector.broadcast %cst_41 : f32 to vector<16x1xf32>
    %107 = arith.addf %105, %106 : vector<16x1xf32>
    %108 = math.rsqrt %107 : vector<16x1xf32>
    %109 = vector.broadcast %108 : vector<16x1xf32> to vector<16x32xf32>
    %110 = arith.mulf %100, %109 : vector<16x32xf32>
    %c0_42 = arith.constant 0 : index
    %c0_43 = arith.constant 0 : index
    %111 = vector.load %arg46[%c0_42, %c0_43] : memref<1x32xf32, #tpu.memory_space<vmem>>, vector<1x32xf32>
    %112 = vector.broadcast %111 : vector<1x32xf32> to vector<16x32xf32>
    %113 = arith.mulf %110, %112 : vector<16x32xf32>
    %c0_44 = arith.constant 0 : index
    %c0_45 = arith.constant 0 : index
    %114 = vector.load %arg45[%c0_44, %c0_45] : memref<1x32xf32, #tpu.memory_space<vmem>>, vector<1x32xf32>
    %115 = vector.broadcast %114 : vector<1x32xf32> to vector<16x32xf32>
    %116 = arith.addf %113, %115 : vector<16x32xf32>
    %c0_46 = arith.constant 0 : index
    %c0_47 = arith.constant 0 : index
    %117 = vector.load %arg42[%c0_46, %c0_47] : memref<32x128xf32, #tpu.memory_space<vmem>>, vector<32x128xf32>
    %cst_48 = arith.constant dense<0.000000e+00> : vector<16x128xf32>
    %118 = tpu.matmul %116, %117, %cst_48 {dimension_numbers = #tpu.dot_dimension_numbers<[1], [0], [0], [1], [0, 0, 1, 1], [], []>} : vector<16x32xf32>, vector<32x128xf32>, vector<16x128xf32> -> vector<16x128xf32>
    %c0_49 = arith.constant 0 : index
    %c0_50 = arith.constant 0 : index
    %119 = vector.load %arg41[%c0_49, %c0_50] : memref<1x128xf32, #tpu.memory_space<vmem>>, vector<1x128xf32>
    %120 = vector.broadcast %119 : vector<1x128xf32> to vector<16x128xf32>
    %121 = arith.addf %118, %120 : vector<16x128xf32>
    %cst_51 = arith.constant 0.707106769 : f32
    %122 = vector.broadcast %cst_51 : f32 to vector<16x128xf32>
    %123 = arith.mulf %121, %122 : vector<16x128xf32>
    %124 = math.absf %123 : vector<16x128xf32>
    %cst_52 = arith.constant 0.327591091 : f32
    %125 = vector.broadcast %cst_52 : f32 to vector<16x128xf32>
    %126 = arith.mulf %125, %124 : vector<16x128xf32>
    %cst_53 = arith.constant 1.000000e+00 : f32
    %127 = vector.broadcast %cst_53 : f32 to vector<16x128xf32>
    %128 = arith.addf %127, %126 : vector<16x128xf32>
    %cst_54 = arith.constant 1.000000e+00 : f32
    %129 = vector.broadcast %cst_54 : f32 to vector<16x128xf32>
    %130 = arith.divf %129, %128 : vector<16x128xf32>
    %cst_55 = arith.constant 1.06140542 : f32
    %131 = vector.broadcast %cst_55 : f32 to vector<16x128xf32>
    %132 = arith.mulf %131, %130 : vector<16x128xf32>
    %cst_56 = arith.constant 1.45315206 : f32
    %133 = vector.broadcast %cst_56 : f32 to vector<16x128xf32>
    %134 = arith.subf %132, %133 : vector<16x128xf32>
    %135 = arith.mulf %134, %130 : vector<16x128xf32>
    %cst_57 = arith.constant 1.42141378 : f32
    %136 = vector.broadcast %cst_57 : f32 to vector<16x128xf32>
    %137 = arith.addf %135, %136 : vector<16x128xf32>
    %138 = arith.mulf %137, %130 : vector<16x128xf32>
    %cst_58 = arith.constant 0.284496725 : f32
    %139 = vector.broadcast %cst_58 : f32 to vector<16x128xf32>
    %140 = arith.subf %138, %139 : vector<16x128xf32>
    %141 = arith.mulf %140, %130 : vector<16x128xf32>
    %cst_59 = arith.constant 0.254829586 : f32
    %142 = vector.broadcast %cst_59 : f32 to vector<16x128xf32>
    %143 = arith.addf %141, %142 : vector<16x128xf32>
    %144 = arith.mulf %143, %130 : vector<16x128xf32>
    %cst_60 = arith.constant 0.000000e+00 : f32
    %145 = vector.broadcast %cst_60 : f32 to vector<16x128xf32>
    %146 = arith.subf %145, %124 : vector<16x128xf32>
    %147 = arith.mulf %146, %124 : vector<16x128xf32>
    %148 = math.exp %147 : vector<16x128xf32>
    %149 = arith.mulf %144, %148 : vector<16x128xf32>
    %cst_61 = arith.constant 1.000000e+00 : f32
    %150 = vector.broadcast %cst_61 : f32 to vector<16x128xf32>
    %151 = arith.subf %150, %149 : vector<16x128xf32>
    %cst_62 = arith.constant 0.000000e+00 : f32
    %152 = vector.broadcast %cst_62 : f32 to vector<16x128xf32>
    %153 = arith.cmpf olt, %123, %152 : vector<16x128xf32>
    %cst_63 = arith.constant 0.000000e+00 : f32
    %154 = vector.broadcast %cst_63 : f32 to vector<16x128xf32>
    %155 = arith.subf %154, %151 : vector<16x128xf32>
    %156 = arith.select %153, %155, %151 : vector<16x128xi1>, vector<16x128xf32>
    %cst_64 = arith.constant 5.000000e-01 : f32
    %157 = vector.broadcast %cst_64 : f32 to vector<16x128xf32>
    %158 = arith.mulf %157, %121 : vector<16x128xf32>
    %cst_65 = arith.constant 1.000000e+00 : f32
    %159 = vector.broadcast %cst_65 : f32 to vector<16x128xf32>
    %160 = arith.addf %159, %156 : vector<16x128xf32>
    %161 = arith.mulf %158, %160 : vector<16x128xf32>
    %c0_66 = arith.constant 0 : index
    %c0_67 = arith.constant 0 : index
    %162 = vector.load %arg44[%c0_66, %c0_67] : memref<128x32xf32, #tpu.memory_space<vmem>>, vector<128x32xf32>
    %cst_68 = arith.constant dense<0.000000e+00> : vector<16x32xf32>
    %163 = tpu.matmul %161, %162, %cst_68 {dimension_numbers = #tpu.dot_dimension_numbers<[1], [0], [0], [1], [0, 0, 1, 1], [], []>} : vector<16x128xf32>, vector<128x32xf32>, vector<16x32xf32> -> vector<16x32xf32>
    %c0_69 = arith.constant 0 : index
    %c0_70 = arith.constant 0 : index
    %164 = vector.load %arg43[%c0_69, %c0_70] : memref<1x32xf32, #tpu.memory_space<vmem>>, vector<1x32xf32>
    %165 = vector.broadcast %164 : vector<1x32xf32> to vector<16x32xf32>
    %166 = arith.addf %163, %165 : vector<16x32xf32>
    %167 = arith.addf %116, %166 : vector<16x32xf32>
    %cst_71 = arith.constant dense<0.000000e+00> : vector<16xf32>
    %168 = vector.multi_reduction <add>, %167, %cst_71 [1] : vector<16x32xf32> to vector<16xf32>
    %169 = vector.shape_cast %168 : vector<16xf32> to vector<16x1xf32>
    %cst_72 = arith.constant 3.200000e+01 : f32
    %170 = vector.broadcast %cst_72 : f32 to vector<16x1xf32>
    %171 = arith.divf %169, %170 : vector<16x1xf32>
    %172 = vector.broadcast %171 : vector<16x1xf32> to vector<16x32xf32>
    %173 = arith.subf %167, %172 : vector<16x32xf32>
    %174 = arith.mulf %173, %173 : vector<16x32xf32>
    %cst_73 = arith.constant dense<0.000000e+00> : vector<16xf32>
    %175 = vector.multi_reduction <add>, %174, %cst_73 [1] : vector<16x32xf32> to vector<16xf32>
    %176 = vector.shape_cast %175 : vector<16xf32> to vector<16x1xf32>
    %cst_74 = arith.constant 3.200000e+01 : f32
    %177 = vector.broadcast %cst_74 : f32 to vector<16x1xf32>
    %178 = arith.divf %176, %177 : vector<16x1xf32>
    %cst_75 = arith.constant 9.99999974E-6 : f32
    %179 = vector.broadcast %cst_75 : f32 to vector<16x1xf32>
    %180 = arith.addf %178, %179 : vector<16x1xf32>
    %181 = math.rsqrt %180 : vector<16x1xf32>
    %182 = vector.broadcast %181 : vector<16x1xf32> to vector<16x32xf32>
    %183 = arith.mulf %173, %182 : vector<16x32xf32>
    %c0_76 = arith.constant 0 : index
    %c0_77 = arith.constant 0 : index
    %184 = vector.load %arg48[%c0_76, %c0_77] : memref<1x32xf32, #tpu.memory_space<vmem>>, vector<1x32xf32>
    %185 = vector.broadcast %184 : vector<1x32xf32> to vector<16x32xf32>
    %186 = arith.mulf %183, %185 : vector<16x32xf32>
    %c0_78 = arith.constant 0 : index
    %c0_79 = arith.constant 0 : index
    %187 = vector.load %arg47[%c0_78, %c0_79] : memref<1x32xf32, #tpu.memory_space<vmem>>, vector<1x32xf32>
    %188 = vector.broadcast %187 : vector<1x32xf32> to vector<16x32xf32>
    %189 = arith.addf %186, %188 : vector<16x32xf32>
    %c0_80 = arith.constant 0 : index
    %c0_81 = arith.constant 0 : index
    %190 = vector.load %arg64[%c0_80, %c0_81] : memref<32x96xf32, #tpu.memory_space<vmem>>, vector<32x96xf32>
    %cst_82 = arith.constant dense<0.000000e+00> : vector<16x96xf32>
    %191 = tpu.matmul %189, %190, %cst_82 {dimension_numbers = #tpu.dot_dimension_numbers<[1], [0], [0], [1], [0, 0, 1, 1], [], []>} : vector<16x32xf32>, vector<32x96xf32>, vector<16x96xf32> -> vector<16x96xf32>
    %c0_83 = arith.constant 0 : index
    %c0_84 = arith.constant 0 : index
    %192 = vector.load %arg63[%c0_83, %c0_84] : memref<1x96xf32, #tpu.memory_space<vmem>>, vector<1x96xf32>
    %193 = vector.broadcast %192 : vector<1x96xf32> to vector<16x96xf32>
    %194 = arith.addf %191, %193 : vector<16x96xf32>
    %195 = vector.extract_strided_slice %194 {offsets = [0, 0], sizes = [16, 32], strides = [1, 1]} : vector<16x96xf32> to vector<16x32xf32>
    %196 = vector.extract_strided_slice %194 {offsets = [0, 32], sizes = [16, 32], strides = [1, 1]} : vector<16x96xf32> to vector<16x32xf32>
    %197 = vector.extract_strided_slice %194 {offsets = [0, 64], sizes = [16, 32], strides = [1, 1]} : vector<16x96xf32> to vector<16x32xf32>
    %c0_85 = arith.constant 0 : index
    %c0_86 = arith.constant 0 : index
    %198 = vector.load %arg62[%c0_85, %c0_86] : memref<32x32xf32, #tpu.memory_space<vmem>>, vector<32x32xf32>
    %199 = vector.extract_strided_slice %195 {offsets = [0, 0], sizes = [16, 8], strides = [1, 1]} : vector<16x32xf32> to vector<16x8xf32>
    %cst_87 = arith.constant 0.353553385 : f32
    %200 = vector.broadcast %cst_87 : f32 to vector<16x8xf32>
    %201 = arith.mulf %199, %200 : vector<16x8xf32>
    %202 = vector.extract_strided_slice %196 {offsets = [0, 0], sizes = [16, 8], strides = [1, 1]} : vector<16x32xf32> to vector<16x8xf32>
    %cst_88 = arith.constant dense<0.000000e+00> : vector<16x16xf32>
    %203 = tpu.matmul %201, %202, %cst_88 {dimension_numbers = #tpu.dot_dimension_numbers<[1], [1], [0], [0], [0, 0, 1, 0], [], []>} : vector<16x8xf32>, vector<16x8xf32>, vector<16x16xf32> -> vector<16x16xf32>
    %204 = arith.addf %203, %1 : vector<16x16xf32>
    %cst_89 = arith.constant dense<0xFF800000> : vector<16xf32>
    %205 = vector.multi_reduction <maximumf>, %204, %cst_89 [1] : vector<16x16xf32> to vector<16xf32>
    %206 = vector.shape_cast %205 : vector<16xf32> to vector<16x1xf32>
    %207 = vector.broadcast %206 : vector<16x1xf32> to vector<16x16xf32>
    %208 = arith.subf %204, %207 : vector<16x16xf32>
    %209 = math.exp %208 : vector<16x16xf32>
    %cst_90 = arith.constant dense<0.000000e+00> : vector<16xf32>
    %210 = vector.multi_reduction <add>, %209, %cst_90 [1] : vector<16x16xf32> to vector<16xf32>
    %211 = vector.shape_cast %210 : vector<16xf32> to vector<16x1xf32>
    %212 = vector.broadcast %211 : vector<16x1xf32> to vector<16x16xf32>
    %213 = arith.divf %209, %212 : vector<16x16xf32>
    %214 = vector.extract_strided_slice %197 {offsets = [0, 0], sizes = [16, 8], strides = [1, 1]} : vector<16x32xf32> to vector<16x8xf32>
    %cst_91 = arith.constant dense<0.000000e+00> : vector<16x8xf32>
    %215 = tpu.matmul %213, %214, %cst_91 {dimension_numbers = #tpu.dot_dimension_numbers<[1], [0], [0], [1], [0, 0, 1, 1], [], []>} : vector<16x16xf32>, vector<16x8xf32>, vector<16x8xf32> -> vector<16x8xf32>
    %216 = vector.extract_strided_slice %198 {offsets = [0, 0], sizes = [8, 32], strides = [1, 1]} : vector<32x32xf32> to vector<8x32xf32>
    %cst_92 = arith.constant dense<0.000000e+00> : vector<16x32xf32>
    %217 = tpu.matmul %215, %216, %cst_92 {dimension_numbers = #tpu.dot_dimension_numbers<[1], [0], [0], [1], [0, 0, 1, 1], [], []>} : vector<16x8xf32>, vector<8x32xf32>, vector<16x32xf32> -> vector<16x32xf32>
    %218 = vector.extract_strided_slice %195 {offsets = [0, 8], sizes = [16, 8], strides = [1, 1]} : vector<16x32xf32> to vector<16x8xf32>
    %cst_93 = arith.constant 0.353553385 : f32
    %219 = vector.broadcast %cst_93 : f32 to vector<16x8xf32>
    %220 = arith.mulf %218, %219 : vector<16x8xf32>
    %221 = vector.extract_strided_slice %196 {offsets = [0, 8], sizes = [16, 8], strides = [1, 1]} : vector<16x32xf32> to vector<16x8xf32>
    %cst_94 = arith.constant dense<0.000000e+00> : vector<16x16xf32>
    %222 = tpu.matmul %220, %221, %cst_94 {dimension_numbers = #tpu.dot_dimension_numbers<[1], [1], [0], [0], [0, 0, 1, 0], [], []>} : vector<16x8xf32>, vector<16x8xf32>, vector<16x16xf32> -> vector<16x16xf32>
    %223 = arith.addf %222, %1 : vector<16x16xf32>
    %cst_95 = arith.constant dense<0xFF800000> : vector<16xf32>
    %224 = vector.multi_reduction <maximumf>, %223, %cst_95 [1] : vector<16x16xf32> to vector<16xf32>
    %225 = vector.shape_cast %224 : vector<16xf32> to vector<16x1xf32>
    %226 = vector.broadcast %225 : vector<16x1xf32> to vector<16x16xf32>
    %227 = arith.subf %223, %226 : vector<16x16xf32>
    %228 = math.exp %227 : vector<16x16xf32>
    %cst_96 = arith.constant dense<0.000000e+00> : vector<16xf32>
    %229 = vector.multi_reduction <add>, %228, %cst_96 [1] : vector<16x16xf32> to vector<16xf32>
    %230 = vector.shape_cast %229 : vector<16xf32> to vector<16x1xf32>
    %231 = vector.broadcast %230 : vector<16x1xf32> to vector<16x16xf32>
    %232 = arith.divf %228, %231 : vector<16x16xf32>
    %233 = vector.extract_strided_slice %197 {offsets = [0, 8], sizes = [16, 8], strides = [1, 1]} : vector<16x32xf32> to vector<16x8xf32>
    %cst_97 = arith.constant dense<0.000000e+00> : vector<16x8xf32>
    %234 = tpu.matmul %232, %233, %cst_97 {dimension_numbers = #tpu.dot_dimension_numbers<[1], [0], [0], [1], [0, 0, 1, 1], [], []>} : vector<16x16xf32>, vector<16x8xf32>, vector<16x8xf32> -> vector<16x8xf32>
    %235 = vector.extract_strided_slice %198 {offsets = [8, 0], sizes = [8, 32], strides = [1, 1]} : vector<32x32xf32> to vector<8x32xf32>
    %cst_98 = arith.constant dense<0.000000e+00> : vector<16x32xf32>
    %236 = tpu.matmul %234, %235, %cst_98 {dimension_numbers = #tpu.dot_dimension_numbers<[1], [0], [0], [1], [0, 0, 1, 1], [], []>} : vector<16x8xf32>, vector<8x32xf32>, vector<16x32xf32> -> vector<16x32xf32>
    %237 = arith.addf %217, %236 : vector<16x32xf32>
    %238 = vector.extract_strided_slice %195 {offsets = [0, 16], sizes = [16, 8], strides = [1, 1]} : vector<16x32xf32> to vector<16x8xf32>
    %cst_99 = arith.constant 0.353553385 : f32
    %239 = vector.broadcast %cst_99 : f32 to vector<16x8xf32>
    %240 = arith.mulf %238, %239 : vector<16x8xf32>
    %241 = vector.extract_strided_slice %196 {offsets = [0, 16], sizes = [16, 8], strides = [1, 1]} : vector<16x32xf32> to vector<16x8xf32>
    %cst_100 = arith.constant dense<0.000000e+00> : vector<16x16xf32>
    %242 = tpu.matmul %240, %241, %cst_100 {dimension_numbers = #tpu.dot_dimension_numbers<[1], [1], [0], [0], [0, 0, 1, 0], [], []>} : vector<16x8xf32>, vector<16x8xf32>, vector<16x16xf32> -> vector<16x16xf32>
    %243 = arith.addf %242, %1 : vector<16x16xf32>
    %cst_101 = arith.constant dense<0xFF800000> : vector<16xf32>
    %244 = vector.multi_reduction <maximumf>, %243, %cst_101 [1] : vector<16x16xf32> to vector<16xf32>
    %245 = vector.shape_cast %244 : vector<16xf32> to vector<16x1xf32>
    %246 = vector.broadcast %245 : vector<16x1xf32> to vector<16x16xf32>
    %247 = arith.subf %243, %246 : vector<16x16xf32>
    %248 = math.exp %247 : vector<16x16xf32>
    %cst_102 = arith.constant dense<0.000000e+00> : vector<16xf32>
    %249 = vector.multi_reduction <add>, %248, %cst_102 [1] : vector<16x16xf32> to vector<16xf32>
    %250 = vector.shape_cast %249 : vector<16xf32> to vector<16x1xf32>
    %251 = vector.broadcast %250 : vector<16x1xf32> to vector<16x16xf32>
    %252 = arith.divf %248, %251 : vector<16x16xf32>
    %253 = vector.extract_strided_slice %197 {offsets = [0, 16], sizes = [16, 8], strides = [1, 1]} : vector<16x32xf32> to vector<16x8xf32>
    %cst_103 = arith.constant dense<0.000000e+00> : vector<16x8xf32>
    %254 = tpu.matmul %252, %253, %cst_103 {dimension_numbers = #tpu.dot_dimension_numbers<[1], [0], [0], [1], [0, 0, 1, 1], [], []>} : vector<16x16xf32>, vector<16x8xf32>, vector<16x8xf32> -> vector<16x8xf32>
    %255 = vector.extract_strided_slice %198 {offsets = [16, 0], sizes = [8, 32], strides = [1, 1]} : vector<32x32xf32> to vector<8x32xf32>
    %cst_104 = arith.constant dense<0.000000e+00> : vector<16x32xf32>
    %256 = tpu.matmul %254, %255, %cst_104 {dimension_numbers = #tpu.dot_dimension_numbers<[1], [0], [0], [1], [0, 0, 1, 1], [], []>} : vector<16x8xf32>, vector<8x32xf32>, vector<16x32xf32> -> vector<16x32xf32>
    %257 = arith.addf %237, %256 : vector<16x32xf32>
    %258 = vector.extract_strided_slice %195 {offsets = [0, 24], sizes = [16, 8], strides = [1, 1]} : vector<16x32xf32> to vector<16x8xf32>
    %cst_105 = arith.constant 0.353553385 : f32
    %259 = vector.broadcast %cst_105 : f32 to vector<16x8xf32>
    %260 = arith.mulf %258, %259 : vector<16x8xf32>
    %261 = vector.extract_strided_slice %196 {offsets = [0, 24], sizes = [16, 8], strides = [1, 1]} : vector<16x32xf32> to vector<16x8xf32>
    %cst_106 = arith.constant dense<0.000000e+00> : vector<16x16xf32>
    %262 = tpu.matmul %260, %261, %cst_106 {dimension_numbers = #tpu.dot_dimension_numbers<[1], [1], [0], [0], [0, 0, 1, 0], [], []>} : vector<16x8xf32>, vector<16x8xf32>, vector<16x16xf32> -> vector<16x16xf32>
    %263 = arith.addf %262, %1 : vector<16x16xf32>
    %cst_107 = arith.constant dense<0xFF800000> : vector<16xf32>
    %264 = vector.multi_reduction <maximumf>, %263, %cst_107 [1] : vector<16x16xf32> to vector<16xf32>
    %265 = vector.shape_cast %264 : vector<16xf32> to vector<16x1xf32>
    %266 = vector.broadcast %265 : vector<16x1xf32> to vector<16x16xf32>
    %267 = arith.subf %263, %266 : vector<16x16xf32>
    %268 = math.exp %267 : vector<16x16xf32>
    %cst_108 = arith.constant dense<0.000000e+00> : vector<16xf32>
    %269 = vector.multi_reduction <add>, %268, %cst_108 [1] : vector<16x16xf32> to vector<16xf32>
    %270 = vector.shape_cast %269 : vector<16xf32> to vector<16x1xf32>
    %271 = vector.broadcast %270 : vector<16x1xf32> to vector<16x16xf32>
    %272 = arith.divf %268, %271 : vector<16x16xf32>
    %273 = vector.extract_strided_slice %197 {offsets = [0, 24], sizes = [16, 8], strides = [1, 1]} : vector<16x32xf32> to vector<16x8xf32>
    %cst_109 = arith.constant dense<0.000000e+00> : vector<16x8xf32>
    %274 = tpu.matmul %272, %273, %cst_109 {dimension_numbers = #tpu.dot_dimension_numbers<[1], [0], [0], [1], [0, 0, 1, 1], [], []>} : vector<16x16xf32>, vector<16x8xf32>, vector<16x8xf32> -> vector<16x8xf32>
    %275 = vector.extract_strided_slice %198 {offsets = [24, 0], sizes = [8, 32], strides = [1, 1]} : vector<32x32xf32> to vector<8x32xf32>
    %cst_110 = arith.constant dense<0.000000e+00> : vector<16x32xf32>
    %276 = tpu.matmul %274, %275, %cst_110 {dimension_numbers = #tpu.dot_dimension_numbers<[1], [0], [0], [1], [0, 0, 1, 1], [], []>} : vector<16x8xf32>, vector<8x32xf32>, vector<16x32xf32> -> vector<16x32xf32>
    %277 = arith.addf %257, %276 : vector<16x32xf32>
    %c0_111 = arith.constant 0 : index
    %c0_112 = arith.constant 0 : index
    %278 = vector.load %arg61[%c0_111, %c0_112] : memref<1x32xf32, #tpu.memory_space<vmem>>, vector<1x32xf32>
    %279 = vector.broadcast %278 : vector<1x32xf32> to vector<16x32xf32>
    %280 = arith.addf %277, %279 : vector<16x32xf32>
    %281 = arith.addf %189, %280 : vector<16x32xf32>
    %cst_113 = arith.constant dense<0.000000e+00> : vector<16xf32>
    %282 = vector.multi_reduction <add>, %281, %cst_113 [1] : vector<16x32xf32> to vector<16xf32>
    %283 = vector.shape_cast %282 : vector<16xf32> to vector<16x1xf32>
    %cst_114 = arith.constant 3.200000e+01 : f32
    %284 = vector.broadcast %cst_114 : f32 to vector<16x1xf32>
    %285 = arith.divf %283, %284 : vector<16x1xf32>
    %286 = vector.broadcast %285 : vector<16x1xf32> to vector<16x32xf32>
    %287 = arith.subf %281, %286 : vector<16x32xf32>
    %288 = arith.mulf %287, %287 : vector<16x32xf32>
    %cst_115 = arith.constant dense<0.000000e+00> : vector<16xf32>
    %289 = vector.multi_reduction <add>, %288, %cst_115 [1] : vector<16x32xf32> to vector<16xf32>
    %290 = vector.shape_cast %289 : vector<16xf32> to vector<16x1xf32>
    %cst_116 = arith.constant 3.200000e+01 : f32
    %291 = vector.broadcast %cst_116 : f32 to vector<16x1xf32>
    %292 = arith.divf %290, %291 : vector<16x1xf32>
    %cst_117 = arith.constant 9.99999974E-6 : f32
    %293 = vector.broadcast %cst_117 : f32 to vector<16x1xf32>
    %294 = arith.addf %292, %293 : vector<16x1xf32>
    %295 = math.rsqrt %294 : vector<16x1xf32>
    %296 = vector.broadcast %295 : vector<16x1xf32> to vector<16x32xf32>
    %297 = arith.mulf %287, %296 : vector<16x32xf32>
    %c0_118 = arith.constant 0 : index
    %c0_119 = arith.constant 0 : index
    %298 = vector.load %arg58[%c0_118, %c0_119] : memref<1x32xf32, #tpu.memory_space<vmem>>, vector<1x32xf32>
    %299 = vector.broadcast %298 : vector<1x32xf32> to vector<16x32xf32>
    %300 = arith.mulf %297, %299 : vector<16x32xf32>
    %c0_120 = arith.constant 0 : index
    %c0_121 = arith.constant 0 : index
    %301 = vector.load %arg57[%c0_120, %c0_121] : memref<1x32xf32, #tpu.memory_space<vmem>>, vector<1x32xf32>
    %302 = vector.broadcast %301 : vector<1x32xf32> to vector<16x32xf32>
    %303 = arith.addf %300, %302 : vector<16x32xf32>
    %c0_122 = arith.constant 0 : index
    %c0_123 = arith.constant 0 : index
    %304 = vector.load %arg54[%c0_122, %c0_123] : memref<32x128xf32, #tpu.memory_space<vmem>>, vector<32x128xf32>
    %cst_124 = arith.constant dense<0.000000e+00> : vector<16x128xf32>
    %305 = tpu.matmul %303, %304, %cst_124 {dimension_numbers = #tpu.dot_dimension_numbers<[1], [0], [0], [1], [0, 0, 1, 1], [], []>} : vector<16x32xf32>, vector<32x128xf32>, vector<16x128xf32> -> vector<16x128xf32>
    %c0_125 = arith.constant 0 : index
    %c0_126 = arith.constant 0 : index
    %306 = vector.load %arg53[%c0_125, %c0_126] : memref<1x128xf32, #tpu.memory_space<vmem>>, vector<1x128xf32>
    %307 = vector.broadcast %306 : vector<1x128xf32> to vector<16x128xf32>
    %308 = arith.addf %305, %307 : vector<16x128xf32>
    %cst_127 = arith.constant 0.707106769 : f32
    %309 = vector.broadcast %cst_127 : f32 to vector<16x128xf32>
    %310 = arith.mulf %308, %309 : vector<16x128xf32>
    %311 = math.absf %310 : vector<16x128xf32>
    %cst_128 = arith.constant 0.327591091 : f32
    %312 = vector.broadcast %cst_128 : f32 to vector<16x128xf32>
    %313 = arith.mulf %312, %311 : vector<16x128xf32>
    %cst_129 = arith.constant 1.000000e+00 : f32
    %314 = vector.broadcast %cst_129 : f32 to vector<16x128xf32>
    %315 = arith.addf %314, %313 : vector<16x128xf32>
    %cst_130 = arith.constant 1.000000e+00 : f32
    %316 = vector.broadcast %cst_130 : f32 to vector<16x128xf32>
    %317 = arith.divf %316, %315 : vector<16x128xf32>
    %cst_131 = arith.constant 1.06140542 : f32
    %318 = vector.broadcast %cst_131 : f32 to vector<16x128xf32>
    %319 = arith.mulf %318, %317 : vector<16x128xf32>
    %cst_132 = arith.constant 1.45315206 : f32
    %320 = vector.broadcast %cst_132 : f32 to vector<16x128xf32>
    %321 = arith.subf %319, %320 : vector<16x128xf32>
    %322 = arith.mulf %321, %317 : vector<16x128xf32>
    %cst_133 = arith.constant 1.42141378 : f32
    %323 = vector.broadcast %cst_133 : f32 to vector<16x128xf32>
    %324 = arith.addf %322, %323 : vector<16x128xf32>
    %325 = arith.mulf %324, %317 : vector<16x128xf32>
    %cst_134 = arith.constant 0.284496725 : f32
    %326 = vector.broadcast %cst_134 : f32 to vector<16x128xf32>
    %327 = arith.subf %325, %326 : vector<16x128xf32>
    %328 = arith.mulf %327, %317 : vector<16x128xf32>
    %cst_135 = arith.constant 0.254829586 : f32
    %329 = vector.broadcast %cst_135 : f32 to vector<16x128xf32>
    %330 = arith.addf %328, %329 : vector<16x128xf32>
    %331 = arith.mulf %330, %317 : vector<16x128xf32>
    %cst_136 = arith.constant 0.000000e+00 : f32
    %332 = vector.broadcast %cst_136 : f32 to vector<16x128xf32>
    %333 = arith.subf %332, %311 : vector<16x128xf32>
    %334 = arith.mulf %333, %311 : vector<16x128xf32>
    %335 = math.exp %334 : vector<16x128xf32>
    %336 = arith.mulf %331, %335 : vector<16x128xf32>
    %cst_137 = arith.constant 1.000000e+00 : f32
    %337 = vector.broadcast %cst_137 : f32 to vector<16x128xf32>
    %338 = arith.subf %337, %336 : vector<16x128xf32>
    %cst_138 = arith.constant 0.000000e+00 : f32
    %339 = vector.broadcast %cst_138 : f32 to vector<16x128xf32>
    %340 = arith.cmpf olt, %310, %339 : vector<16x128xf32>
    %cst_139 = arith.constant 0.000000e+00 : f32
    %341 = vector.broadcast %cst_139 : f32 to vector<16x128xf32>
    %342 = arith.subf %341, %338 : vector<16x128xf32>
    %343 = arith.select %340, %342, %338 : vector<16x128xi1>, vector<16x128xf32>
    %cst_140 = arith.constant 5.000000e-01 : f32
    %344 = vector.broadcast %cst_140 : f32 to vector<16x128xf32>
    %345 = arith.mulf %344, %308 : vector<16x128xf32>
    %cst_141 = arith.constant 1.000000e+00 : f32
    %346 = vector.broadcast %cst_141 : f32 to vector<16x128xf32>
    %347 = arith.addf %346, %343 : vector<16x128xf32>
    %348 = arith.mulf %345, %347 : vector<16x128xf32>
    %c0_142 = arith.constant 0 : index
    %c0_143 = arith.constant 0 : index
    %349 = vector.load %arg56[%c0_142, %c0_143] : memref<128x32xf32, #tpu.memory_space<vmem>>, vector<128x32xf32>
    %cst_144 = arith.constant dense<0.000000e+00> : vector<16x32xf32>
    %350 = tpu.matmul %348, %349, %cst_144 {dimension_numbers = #tpu.dot_dimension_numbers<[1], [0], [0], [1], [0, 0, 1, 1], [], []>} : vector<16x128xf32>, vector<128x32xf32>, vector<16x32xf32> -> vector<16x32xf32>
    %c0_145 = arith.constant 0 : index
    %c0_146 = arith.constant 0 : index
    %351 = vector.load %arg55[%c0_145, %c0_146] : memref<1x32xf32, #tpu.memory_space<vmem>>, vector<1x32xf32>
    %352 = vector.broadcast %351 : vector<1x32xf32> to vector<16x32xf32>
    %353 = arith.addf %350, %352 : vector<16x32xf32>
    %354 = arith.addf %303, %353 : vector<16x32xf32>
    %cst_147 = arith.constant dense<0.000000e+00> : vector<16xf32>
    %355 = vector.multi_reduction <add>, %354, %cst_147 [1] : vector<16x32xf32> to vector<16xf32>
    %356 = vector.shape_cast %355 : vector<16xf32> to vector<16x1xf32>
    %cst_148 = arith.constant 3.200000e+01 : f32
    %357 = vector.broadcast %cst_148 : f32 to vector<16x1xf32>
    %358 = arith.divf %356, %357 : vector<16x1xf32>
    %359 = vector.broadcast %358 : vector<16x1xf32> to vector<16x32xf32>
    %360 = arith.subf %354, %359 : vector<16x32xf32>
    %361 = arith.mulf %360, %360 : vector<16x32xf32>
    %cst_149 = arith.constant dense<0.000000e+00> : vector<16xf32>
    %362 = vector.multi_reduction <add>, %361, %cst_149 [1] : vector<16x32xf32> to vector<16xf32>
    %363 = vector.shape_cast %362 : vector<16xf32> to vector<16x1xf32>
    %cst_150 = arith.constant 3.200000e+01 : f32
    %364 = vector.broadcast %cst_150 : f32 to vector<16x1xf32>
    %365 = arith.divf %363, %364 : vector<16x1xf32>
    %cst_151 = arith.constant 9.99999974E-6 : f32
    %366 = vector.broadcast %cst_151 : f32 to vector<16x1xf32>
    %367 = arith.addf %365, %366 : vector<16x1xf32>
    %368 = math.rsqrt %367 : vector<16x1xf32>
    %369 = vector.broadcast %368 : vector<16x1xf32> to vector<16x32xf32>
    %370 = arith.mulf %360, %369 : vector<16x32xf32>
    %c0_152 = arith.constant 0 : index
    %c0_153 = arith.constant 0 : index
    %371 = vector.load %arg60[%c0_152, %c0_153] : memref<1x32xf32, #tpu.memory_space<vmem>>, vector<1x32xf32>
    %372 = vector.broadcast %371 : vector<1x32xf32> to vector<16x32xf32>
    %373 = arith.mulf %370, %372 : vector<16x32xf32>
    %c0_154 = arith.constant 0 : index
    %c0_155 = arith.constant 0 : index
    %374 = vector.load %arg59[%c0_154, %c0_155] : memref<1x32xf32, #tpu.memory_space<vmem>>, vector<1x32xf32>
    %375 = vector.broadcast %374 : vector<1x32xf32> to vector<16x32xf32>
    %376 = arith.addf %373, %375 : vector<16x32xf32>
    %cst_156 = arith.constant dense<0.000000e+00> : vector<16xf32>
    %377 = vector.multi_reduction <add>, %376, %cst_156 [1] : vector<16x32xf32> to vector<16xf32>
    %378 = vector.shape_cast %377 : vector<16xf32> to vector<16x1xf32>
    %cst_157 = arith.constant 3.200000e+01 : f32
    %379 = vector.broadcast %cst_157 : f32 to vector<16x1xf32>
    %380 = arith.divf %378, %379 : vector<16x1xf32>
    %381 = vector.broadcast %380 : vector<16x1xf32> to vector<16x32xf32>
    %382 = arith.subf %376, %381 : vector<16x32xf32>
    %383 = arith.mulf %382, %382 : vector<16x32xf32>
    %cst_158 = arith.constant dense<0.000000e+00> : vector<16xf32>
    %384 = vector.multi_reduction <add>, %383, %cst_158 [1] : vector<16x32xf32> to vector<16xf32>
    %385 = vector.shape_cast %384 : vector<16xf32> to vector<16x1xf32>
    %cst_159 = arith.constant 3.200000e+01 : f32
    %386 = vector.broadcast %cst_159 : f32 to vector<16x1xf32>
    %387 = arith.divf %385, %386 : vector<16x1xf32>
    %cst_160 = arith.constant 9.99999974E-6 : f32
    %388 = vector.broadcast %cst_160 : f32 to vector<16x1xf32>
    %389 = arith.addf %387, %388 : vector<16x1xf32>
    %390 = math.rsqrt %389 : vector<16x1xf32>
    %391 = vector.broadcast %390 : vector<16x1xf32> to vector<16x32xf32>
    %392 = arith.mulf %382, %391 : vector<16x32xf32>
    %c0_161 = arith.constant 0 : index
    %c0_162 = arith.constant 0 : index
    %393 = vector.load %arg66[%c0_161, %c0_162] : memref<1x32xf32, #tpu.memory_space<vmem>>, vector<1x32xf32>
    %394 = vector.broadcast %393 : vector<1x32xf32> to vector<16x32xf32>
    %395 = arith.mulf %392, %394 : vector<16x32xf32>
    %c0_163 = arith.constant 0 : index
    %c0_164 = arith.constant 0 : index
    %396 = vector.load %arg65[%c0_163, %c0_164] : memref<1x32xf32, #tpu.memory_space<vmem>>, vector<1x32xf32>
    %397 = vector.broadcast %396 : vector<1x32xf32> to vector<16x32xf32>
    %398 = arith.addf %395, %397 : vector<16x32xf32>
    %c0_165 = arith.constant 0 : index
    %c0_166 = arith.constant 0 : index
    %399 = vector.load %arg20[%c0_165, %c0_166] : memref<32x96xf32, #tpu.memory_space<vmem>>, vector<32x96xf32>
    %cst_167 = arith.constant dense<0.000000e+00> : vector<16x96xf32>
    %400 = tpu.matmul %0, %399, %cst_167 {dimension_numbers = #tpu.dot_dimension_numbers<[1], [0], [0], [1], [0, 0, 1, 1], [], []>} : vector<16x32xf32>, vector<32x96xf32>, vector<16x96xf32> -> vector<16x96xf32>
    %c0_168 = arith.constant 0 : index
    %c0_169 = arith.constant 0 : index
    %401 = vector.load %arg19[%c0_168, %c0_169] : memref<1x96xf32, #tpu.memory_space<vmem>>, vector<1x96xf32>
    %402 = vector.broadcast %401 : vector<1x96xf32> to vector<16x96xf32>
    %403 = arith.addf %400, %402 : vector<16x96xf32>
    %404 = vector.extract_strided_slice %403 {offsets = [0, 0], sizes = [16, 32], strides = [1, 1]} : vector<16x96xf32> to vector<16x32xf32>
    %405 = vector.extract_strided_slice %403 {offsets = [0, 32], sizes = [16, 32], strides = [1, 1]} : vector<16x96xf32> to vector<16x32xf32>
    %406 = vector.extract_strided_slice %403 {offsets = [0, 64], sizes = [16, 32], strides = [1, 1]} : vector<16x96xf32> to vector<16x32xf32>
    %c0_170 = arith.constant 0 : index
    %c0_171 = arith.constant 0 : index
    %407 = vector.load %arg18[%c0_170, %c0_171] : memref<32x32xf32, #tpu.memory_space<vmem>>, vector<32x32xf32>
    %408 = vector.extract_strided_slice %404 {offsets = [0, 0], sizes = [16, 8], strides = [1, 1]} : vector<16x32xf32> to vector<16x8xf32>
    %cst_172 = arith.constant 0.353553385 : f32
    %409 = vector.broadcast %cst_172 : f32 to vector<16x8xf32>
    %410 = arith.mulf %408, %409 : vector<16x8xf32>
    %411 = vector.extract_strided_slice %405 {offsets = [0, 0], sizes = [16, 8], strides = [1, 1]} : vector<16x32xf32> to vector<16x8xf32>
    %cst_173 = arith.constant dense<0.000000e+00> : vector<16x16xf32>
    %412 = tpu.matmul %410, %411, %cst_173 {dimension_numbers = #tpu.dot_dimension_numbers<[1], [1], [0], [0], [0, 0, 1, 0], [], []>} : vector<16x8xf32>, vector<16x8xf32>, vector<16x16xf32> -> vector<16x16xf32>
    %413 = arith.addf %412, %1 : vector<16x16xf32>
    %cst_174 = arith.constant dense<0xFF800000> : vector<16xf32>
    %414 = vector.multi_reduction <maximumf>, %413, %cst_174 [1] : vector<16x16xf32> to vector<16xf32>
    %415 = vector.shape_cast %414 : vector<16xf32> to vector<16x1xf32>
    %416 = vector.broadcast %415 : vector<16x1xf32> to vector<16x16xf32>
    %417 = arith.subf %413, %416 : vector<16x16xf32>
    %418 = math.exp %417 : vector<16x16xf32>
    %cst_175 = arith.constant dense<0.000000e+00> : vector<16xf32>
    %419 = vector.multi_reduction <add>, %418, %cst_175 [1] : vector<16x16xf32> to vector<16xf32>
    %420 = vector.shape_cast %419 : vector<16xf32> to vector<16x1xf32>
    %421 = vector.broadcast %420 : vector<16x1xf32> to vector<16x16xf32>
    %422 = arith.divf %418, %421 : vector<16x16xf32>
    %423 = vector.extract_strided_slice %406 {offsets = [0, 0], sizes = [16, 8], strides = [1, 1]} : vector<16x32xf32> to vector<16x8xf32>
    %cst_176 = arith.constant dense<0.000000e+00> : vector<16x8xf32>
    %424 = tpu.matmul %422, %423, %cst_176 {dimension_numbers = #tpu.dot_dimension_numbers<[1], [0], [0], [1], [0, 0, 1, 1], [], []>} : vector<16x16xf32>, vector<16x8xf32>, vector<16x8xf32> -> vector<16x8xf32>
    %425 = vector.extract_strided_slice %407 {offsets = [0, 0], sizes = [8, 32], strides = [1, 1]} : vector<32x32xf32> to vector<8x32xf32>
    %cst_177 = arith.constant dense<0.000000e+00> : vector<16x32xf32>
    %426 = tpu.matmul %424, %425, %cst_177 {dimension_numbers = #tpu.dot_dimension_numbers<[1], [0], [0], [1], [0, 0, 1, 1], [], []>} : vector<16x8xf32>, vector<8x32xf32>, vector<16x32xf32> -> vector<16x32xf32>
    %427 = vector.extract_strided_slice %404 {offsets = [0, 8], sizes = [16, 8], strides = [1, 1]} : vector<16x32xf32> to vector<16x8xf32>
    %cst_178 = arith.constant 0.353553385 : f32
    %428 = vector.broadcast %cst_178 : f32 to vector<16x8xf32>
    %429 = arith.mulf %427, %428 : vector<16x8xf32>
    %430 = vector.extract_strided_slice %405 {offsets = [0, 8], sizes = [16, 8], strides = [1, 1]} : vector<16x32xf32> to vector<16x8xf32>
    %cst_179 = arith.constant dense<0.000000e+00> : vector<16x16xf32>
    %431 = tpu.matmul %429, %430, %cst_179 {dimension_numbers = #tpu.dot_dimension_numbers<[1], [1], [0], [0], [0, 0, 1, 0], [], []>} : vector<16x8xf32>, vector<16x8xf32>, vector<16x16xf32> -> vector<16x16xf32>
    %432 = arith.addf %431, %1 : vector<16x16xf32>
    %cst_180 = arith.constant dense<0xFF800000> : vector<16xf32>
    %433 = vector.multi_reduction <maximumf>, %432, %cst_180 [1] : vector<16x16xf32> to vector<16xf32>
    %434 = vector.shape_cast %433 : vector<16xf32> to vector<16x1xf32>
    %435 = vector.broadcast %434 : vector<16x1xf32> to vector<16x16xf32>
    %436 = arith.subf %432, %435 : vector<16x16xf32>
    %437 = math.exp %436 : vector<16x16xf32>
    %cst_181 = arith.constant dense<0.000000e+00> : vector<16xf32>
    %438 = vector.multi_reduction <add>, %437, %cst_181 [1] : vector<16x16xf32> to vector<16xf32>
    %439 = vector.shape_cast %438 : vector<16xf32> to vector<16x1xf32>
    %440 = vector.broadcast %439 : vector<16x1xf32> to vector<16x16xf32>
    %441 = arith.divf %437, %440 : vector<16x16xf32>
    %442 = vector.extract_strided_slice %406 {offsets = [0, 8], sizes = [16, 8], strides = [1, 1]} : vector<16x32xf32> to vector<16x8xf32>
    %cst_182 = arith.constant dense<0.000000e+00> : vector<16x8xf32>
    %443 = tpu.matmul %441, %442, %cst_182 {dimension_numbers = #tpu.dot_dimension_numbers<[1], [0], [0], [1], [0, 0, 1, 1], [], []>} : vector<16x16xf32>, vector<16x8xf32>, vector<16x8xf32> -> vector<16x8xf32>
    %444 = vector.extract_strided_slice %407 {offsets = [8, 0], sizes = [8, 32], strides = [1, 1]} : vector<32x32xf32> to vector<8x32xf32>
    %cst_183 = arith.constant dense<0.000000e+00> : vector<16x32xf32>
    %445 = tpu.matmul %443, %444, %cst_183 {dimension_numbers = #tpu.dot_dimension_numbers<[1], [0], [0], [1], [0, 0, 1, 1], [], []>} : vector<16x8xf32>, vector<8x32xf32>, vector<16x32xf32> -> vector<16x32xf32>
    %446 = arith.addf %426, %445 : vector<16x32xf32>
    %447 = vector.extract_strided_slice %404 {offsets = [0, 16], sizes = [16, 8], strides = [1, 1]} : vector<16x32xf32> to vector<16x8xf32>
    %cst_184 = arith.constant 0.353553385 : f32
    %448 = vector.broadcast %cst_184 : f32 to vector<16x8xf32>
    %449 = arith.mulf %447, %448 : vector<16x8xf32>
    %450 = vector.extract_strided_slice %405 {offsets = [0, 16], sizes = [16, 8], strides = [1, 1]} : vector<16x32xf32> to vector<16x8xf32>
    %cst_185 = arith.constant dense<0.000000e+00> : vector<16x16xf32>
    %451 = tpu.matmul %449, %450, %cst_185 {dimension_numbers = #tpu.dot_dimension_numbers<[1], [1], [0], [0], [0, 0, 1, 0], [], []>} : vector<16x8xf32>, vector<16x8xf32>, vector<16x16xf32> -> vector<16x16xf32>
    %452 = arith.addf %451, %1 : vector<16x16xf32>
    %cst_186 = arith.constant dense<0xFF800000> : vector<16xf32>
    %453 = vector.multi_reduction <maximumf>, %452, %cst_186 [1] : vector<16x16xf32> to vector<16xf32>
    %454 = vector.shape_cast %453 : vector<16xf32> to vector<16x1xf32>
    %455 = vector.broadcast %454 : vector<16x1xf32> to vector<16x16xf32>
    %456 = arith.subf %452, %455 : vector<16x16xf32>
    %457 = math.exp %456 : vector<16x16xf32>
    %cst_187 = arith.constant dense<0.000000e+00> : vector<16xf32>
    %458 = vector.multi_reduction <add>, %457, %cst_187 [1] : vector<16x16xf32> to vector<16xf32>
    %459 = vector.shape_cast %458 : vector<16xf32> to vector<16x1xf32>
    %460 = vector.broadcast %459 : vector<16x1xf32> to vector<16x16xf32>
    %461 = arith.divf %457, %460 : vector<16x16xf32>
    %462 = vector.extract_strided_slice %406 {offsets = [0, 16], sizes = [16, 8], strides = [1, 1]} : vector<16x32xf32> to vector<16x8xf32>
    %cst_188 = arith.constant dense<0.000000e+00> : vector<16x8xf32>
    %463 = tpu.matmul %461, %462, %cst_188 {dimension_numbers = #tpu.dot_dimension_numbers<[1], [0], [0], [1], [0, 0, 1, 1], [], []>} : vector<16x16xf32>, vector<16x8xf32>, vector<16x8xf32> -> vector<16x8xf32>
    %464 = vector.extract_strided_slice %407 {offsets = [16, 0], sizes = [8, 32], strides = [1, 1]} : vector<32x32xf32> to vector<8x32xf32>
    %cst_189 = arith.constant dense<0.000000e+00> : vector<16x32xf32>
    %465 = tpu.matmul %463, %464, %cst_189 {dimension_numbers = #tpu.dot_dimension_numbers<[1], [0], [0], [1], [0, 0, 1, 1], [], []>} : vector<16x8xf32>, vector<8x32xf32>, vector<16x32xf32> -> vector<16x32xf32>
    %466 = arith.addf %446, %465 : vector<16x32xf32>
    %467 = vector.extract_strided_slice %404 {offsets = [0, 24], sizes = [16, 8], strides = [1, 1]} : vector<16x32xf32> to vector<16x8xf32>
    %cst_190 = arith.constant 0.353553385 : f32
    %468 = vector.broadcast %cst_190 : f32 to vector<16x8xf32>
    %469 = arith.mulf %467, %468 : vector<16x8xf32>
    %470 = vector.extract_strided_slice %405 {offsets = [0, 24], sizes = [16, 8], strides = [1, 1]} : vector<16x32xf32> to vector<16x8xf32>
    %cst_191 = arith.constant dense<0.000000e+00> : vector<16x16xf32>
    %471 = tpu.matmul %469, %470, %cst_191 {dimension_numbers = #tpu.dot_dimension_numbers<[1], [1], [0], [0], [0, 0, 1, 0], [], []>} : vector<16x8xf32>, vector<16x8xf32>, vector<16x16xf32> -> vector<16x16xf32>
    %472 = arith.addf %471, %1 : vector<16x16xf32>
    %cst_192 = arith.constant dense<0xFF800000> : vector<16xf32>
    %473 = vector.multi_reduction <maximumf>, %472, %cst_192 [1] : vector<16x16xf32> to vector<16xf32>
    %474 = vector.shape_cast %473 : vector<16xf32> to vector<16x1xf32>
    %475 = vector.broadcast %474 : vector<16x1xf32> to vector<16x16xf32>
    %476 = arith.subf %472, %475 : vector<16x16xf32>
    %477 = math.exp %476 : vector<16x16xf32>
    %cst_193 = arith.constant dense<0.000000e+00> : vector<16xf32>
    %478 = vector.multi_reduction <add>, %477, %cst_193 [1] : vector<16x16xf32> to vector<16xf32>
    %479 = vector.shape_cast %478 : vector<16xf32> to vector<16x1xf32>
    %480 = vector.broadcast %479 : vector<16x1xf32> to vector<16x16xf32>
    %481 = arith.divf %477, %480 : vector<16x16xf32>
    %482 = vector.extract_strided_slice %406 {offsets = [0, 24], sizes = [16, 8], strides = [1, 1]} : vector<16x32xf32> to vector<16x8xf32>
    %cst_194 = arith.constant dense<0.000000e+00> : vector<16x8xf32>
    %483 = tpu.matmul %481, %482, %cst_194 {dimension_numbers = #tpu.dot_dimension_numbers<[1], [0], [0], [1], [0, 0, 1, 1], [], []>} : vector<16x16xf32>, vector<16x8xf32>, vector<16x8xf32> -> vector<16x8xf32>
    %484 = vector.extract_strided_slice %407 {offsets = [24, 0], sizes = [8, 32], strides = [1, 1]} : vector<32x32xf32> to vector<8x32xf32>
    %cst_195 = arith.constant dense<0.000000e+00> : vector<16x32xf32>
    %485 = tpu.matmul %483, %484, %cst_195 {dimension_numbers = #tpu.dot_dimension_numbers<[1], [0], [0], [1], [0, 0, 1, 1], [], []>} : vector<16x8xf32>, vector<8x32xf32>, vector<16x32xf32> -> vector<16x32xf32>
    %486 = arith.addf %466, %485 : vector<16x32xf32>
    %c0_196 = arith.constant 0 : index
    %c0_197 = arith.constant 0 : index
    %487 = vector.load %arg17[%c0_196, %c0_197] : memref<1x32xf32, #tpu.memory_space<vmem>>, vector<1x32xf32>
    %488 = vector.broadcast %487 : vector<1x32xf32> to vector<16x32xf32>
    %489 = arith.addf %486, %488 : vector<16x32xf32>
    %490 = arith.addf %0, %489 : vector<16x32xf32>
    %cst_198 = arith.constant dense<0.000000e+00> : vector<16xf32>
    %491 = vector.multi_reduction <add>, %490, %cst_198 [1] : vector<16x32xf32> to vector<16xf32>
    %492 = vector.shape_cast %491 : vector<16xf32> to vector<16x1xf32>
    %cst_199 = arith.constant 3.200000e+01 : f32
    %493 = vector.broadcast %cst_199 : f32 to vector<16x1xf32>
    %494 = arith.divf %492, %493 : vector<16x1xf32>
    %495 = vector.broadcast %494 : vector<16x1xf32> to vector<16x32xf32>
    %496 = arith.subf %490, %495 : vector<16x32xf32>
    %497 = arith.mulf %496, %496 : vector<16x32xf32>
    %cst_200 = arith.constant dense<0.000000e+00> : vector<16xf32>
    %498 = vector.multi_reduction <add>, %497, %cst_200 [1] : vector<16x32xf32> to vector<16xf32>
    %499 = vector.shape_cast %498 : vector<16xf32> to vector<16x1xf32>
    %cst_201 = arith.constant 3.200000e+01 : f32
    %500 = vector.broadcast %cst_201 : f32 to vector<16x1xf32>
    %501 = arith.divf %499, %500 : vector<16x1xf32>
    %cst_202 = arith.constant 9.99999974E-6 : f32
    %502 = vector.broadcast %cst_202 : f32 to vector<16x1xf32>
    %503 = arith.addf %501, %502 : vector<16x1xf32>
    %504 = math.rsqrt %503 : vector<16x1xf32>
    %505 = vector.broadcast %504 : vector<16x1xf32> to vector<16x32xf32>
    %506 = arith.mulf %496, %505 : vector<16x32xf32>
    %c0_203 = arith.constant 0 : index
    %c0_204 = arith.constant 0 : index
    %507 = vector.load %arg12[%c0_203, %c0_204] : memref<1x32xf32, #tpu.memory_space<vmem>>, vector<1x32xf32>
    %508 = vector.broadcast %507 : vector<1x32xf32> to vector<16x32xf32>
    %509 = arith.mulf %506, %508 : vector<16x32xf32>
    %c0_205 = arith.constant 0 : index
    %c0_206 = arith.constant 0 : index
    %510 = vector.load %arg11[%c0_205, %c0_206] : memref<1x32xf32, #tpu.memory_space<vmem>>, vector<1x32xf32>
    %511 = vector.broadcast %510 : vector<1x32xf32> to vector<16x32xf32>
    %512 = arith.addf %509, %511 : vector<16x32xf32>
    %c0_207 = arith.constant 0 : index
    %c0_208 = arith.constant 0 : index
    %513 = vector.load %arg6[%c0_207, %c0_208] : memref<32x96xf32, #tpu.memory_space<vmem>>, vector<32x96xf32>
    %c0_209 = arith.constant 0 : index
    %c0_210 = arith.constant 0 : index
    %514 = vector.load %arg5[%c0_209, %c0_210] : memref<1x96xf32, #tpu.memory_space<vmem>>, vector<1x96xf32>
    %515 = vector.extract_strided_slice %513 {offsets = [0, 0], sizes = [32, 32], strides = [1, 1]} : vector<32x96xf32> to vector<32x32xf32>
    %cst_211 = arith.constant dense<0.000000e+00> : vector<16x32xf32>
    %516 = tpu.matmul %512, %515, %cst_211 {dimension_numbers = #tpu.dot_dimension_numbers<[1], [0], [0], [1], [0, 0, 1, 1], [], []>} : vector<16x32xf32>, vector<32x32xf32>, vector<16x32xf32> -> vector<16x32xf32>
    %517 = vector.extract_strided_slice %514 {offsets = [0, 0], sizes = [1, 32], strides = [1, 1]} : vector<1x96xf32> to vector<1x32xf32>
    %518 = vector.broadcast %517 : vector<1x32xf32> to vector<16x32xf32>
    %519 = arith.addf %516, %518 : vector<16x32xf32>
    %520 = vector.extract_strided_slice %513 {offsets = [0, 32], sizes = [32, 64], strides = [1, 1]} : vector<32x96xf32> to vector<32x64xf32>
    %cst_212 = arith.constant dense<0.000000e+00> : vector<16x64xf32>
    %521 = tpu.matmul %398, %520, %cst_212 {dimension_numbers = #tpu.dot_dimension_numbers<[1], [0], [0], [1], [0, 0, 1, 1], [], []>} : vector<16x32xf32>, vector<32x64xf32>, vector<16x64xf32> -> vector<16x64xf32>
    %522 = vector.extract_strided_slice %514 {offsets = [0, 32], sizes = [1, 64], strides = [1, 1]} : vector<1x96xf32> to vector<1x64xf32>
    %523 = vector.broadcast %522 : vector<1x64xf32> to vector<16x64xf32>
    %524 = arith.addf %521, %523 : vector<16x64xf32>
    %525 = vector.extract_strided_slice %524 {offsets = [0, 0], sizes = [16, 32], strides = [1, 1]} : vector<16x64xf32> to vector<16x32xf32>
    %526 = vector.extract_strided_slice %524 {offsets = [0, 32], sizes = [16, 32], strides = [1, 1]} : vector<16x64xf32> to vector<16x32xf32>
    %c0_213 = arith.constant 0 : index
    %c0_214 = arith.constant 0 : index
    %527 = vector.load %arg4[%c0_213, %c0_214] : memref<32x32xf32, #tpu.memory_space<vmem>>, vector<32x32xf32>
    %528 = vector.extract_strided_slice %519 {offsets = [0, 0], sizes = [16, 8], strides = [1, 1]} : vector<16x32xf32> to vector<16x8xf32>
    %cst_215 = arith.constant 0.353553385 : f32
    %529 = vector.broadcast %cst_215 : f32 to vector<16x8xf32>
    %530 = arith.mulf %528, %529 : vector<16x8xf32>
    %531 = vector.extract_strided_slice %525 {offsets = [0, 0], sizes = [16, 8], strides = [1, 1]} : vector<16x32xf32> to vector<16x8xf32>
    %cst_216 = arith.constant dense<0.000000e+00> : vector<16x16xf32>
    %532 = tpu.matmul %530, %531, %cst_216 {dimension_numbers = #tpu.dot_dimension_numbers<[1], [1], [0], [0], [0, 0, 1, 0], [], []>} : vector<16x8xf32>, vector<16x8xf32>, vector<16x16xf32> -> vector<16x16xf32>
    %533 = arith.addf %532, %1 : vector<16x16xf32>
    %cst_217 = arith.constant dense<0xFF800000> : vector<16xf32>
    %534 = vector.multi_reduction <maximumf>, %533, %cst_217 [1] : vector<16x16xf32> to vector<16xf32>
    %535 = vector.shape_cast %534 : vector<16xf32> to vector<16x1xf32>
    %536 = vector.broadcast %535 : vector<16x1xf32> to vector<16x16xf32>
    %537 = arith.subf %533, %536 : vector<16x16xf32>
    %538 = math.exp %537 : vector<16x16xf32>
    %cst_218 = arith.constant dense<0.000000e+00> : vector<16xf32>
    %539 = vector.multi_reduction <add>, %538, %cst_218 [1] : vector<16x16xf32> to vector<16xf32>
    %540 = vector.shape_cast %539 : vector<16xf32> to vector<16x1xf32>
    %541 = vector.broadcast %540 : vector<16x1xf32> to vector<16x16xf32>
    %542 = arith.divf %538, %541 : vector<16x16xf32>
    %543 = vector.extract_strided_slice %526 {offsets = [0, 0], sizes = [16, 8], strides = [1, 1]} : vector<16x32xf32> to vector<16x8xf32>
    %cst_219 = arith.constant dense<0.000000e+00> : vector<16x8xf32>
    %544 = tpu.matmul %542, %543, %cst_219 {dimension_numbers = #tpu.dot_dimension_numbers<[1], [0], [0], [1], [0, 0, 1, 1], [], []>} : vector<16x16xf32>, vector<16x8xf32>, vector<16x8xf32> -> vector<16x8xf32>
    %545 = vector.extract_strided_slice %527 {offsets = [0, 0], sizes = [8, 32], strides = [1, 1]} : vector<32x32xf32> to vector<8x32xf32>
    %cst_220 = arith.constant dense<0.000000e+00> : vector<16x32xf32>
    %546 = tpu.matmul %544, %545, %cst_220 {dimension_numbers = #tpu.dot_dimension_numbers<[1], [0], [0], [1], [0, 0, 1, 1], [], []>} : vector<16x8xf32>, vector<8x32xf32>, vector<16x32xf32> -> vector<16x32xf32>
    %547 = vector.extract_strided_slice %519 {offsets = [0, 8], sizes = [16, 8], strides = [1, 1]} : vector<16x32xf32> to vector<16x8xf32>
    %cst_221 = arith.constant 0.353553385 : f32
    %548 = vector.broadcast %cst_221 : f32 to vector<16x8xf32>
    %549 = arith.mulf %547, %548 : vector<16x8xf32>
    %550 = vector.extract_strided_slice %525 {offsets = [0, 8], sizes = [16, 8], strides = [1, 1]} : vector<16x32xf32> to vector<16x8xf32>
    %cst_222 = arith.constant dense<0.000000e+00> : vector<16x16xf32>
    %551 = tpu.matmul %549, %550, %cst_222 {dimension_numbers = #tpu.dot_dimension_numbers<[1], [1], [0], [0], [0, 0, 1, 0], [], []>} : vector<16x8xf32>, vector<16x8xf32>, vector<16x16xf32> -> vector<16x16xf32>
    %552 = arith.addf %551, %1 : vector<16x16xf32>
    %cst_223 = arith.constant dense<0xFF800000> : vector<16xf32>
    %553 = vector.multi_reduction <maximumf>, %552, %cst_223 [1] : vector<16x16xf32> to vector<16xf32>
    %554 = vector.shape_cast %553 : vector<16xf32> to vector<16x1xf32>
    %555 = vector.broadcast %554 : vector<16x1xf32> to vector<16x16xf32>
    %556 = arith.subf %552, %555 : vector<16x16xf32>
    %557 = math.exp %556 : vector<16x16xf32>
    %cst_224 = arith.constant dense<0.000000e+00> : vector<16xf32>
    %558 = vector.multi_reduction <add>, %557, %cst_224 [1] : vector<16x16xf32> to vector<16xf32>
    %559 = vector.shape_cast %558 : vector<16xf32> to vector<16x1xf32>
    %560 = vector.broadcast %559 : vector<16x1xf32> to vector<16x16xf32>
    %561 = arith.divf %557, %560 : vector<16x16xf32>
    %562 = vector.extract_strided_slice %526 {offsets = [0, 8], sizes = [16, 8], strides = [1, 1]} : vector<16x32xf32> to vector<16x8xf32>
    %cst_225 = arith.constant dense<0.000000e+00> : vector<16x8xf32>
    %563 = tpu.matmul %561, %562, %cst_225 {dimension_numbers = #tpu.dot_dimension_numbers<[1], [0], [0], [1], [0, 0, 1, 1], [], []>} : vector<16x16xf32>, vector<16x8xf32>, vector<16x8xf32> -> vector<16x8xf32>
    %564 = vector.extract_strided_slice %527 {offsets = [8, 0], sizes = [8, 32], strides = [1, 1]} : vector<32x32xf32> to vector<8x32xf32>
    %cst_226 = arith.constant dense<0.000000e+00> : vector<16x32xf32>
    %565 = tpu.matmul %563, %564, %cst_226 {dimension_numbers = #tpu.dot_dimension_numbers<[1], [0], [0], [1], [0, 0, 1, 1], [], []>} : vector<16x8xf32>, vector<8x32xf32>, vector<16x32xf32> -> vector<16x32xf32>
    %566 = arith.addf %546, %565 : vector<16x32xf32>
    %567 = vector.extract_strided_slice %519 {offsets = [0, 16], sizes = [16, 8], strides = [1, 1]} : vector<16x32xf32> to vector<16x8xf32>
    %cst_227 = arith.constant 0.353553385 : f32
    %568 = vector.broadcast %cst_227 : f32 to vector<16x8xf32>
    %569 = arith.mulf %567, %568 : vector<16x8xf32>
    %570 = vector.extract_strided_slice %525 {offsets = [0, 16], sizes = [16, 8], strides = [1, 1]} : vector<16x32xf32> to vector<16x8xf32>
    %cst_228 = arith.constant dense<0.000000e+00> : vector<16x16xf32>
    %571 = tpu.matmul %569, %570, %cst_228 {dimension_numbers = #tpu.dot_dimension_numbers<[1], [1], [0], [0], [0, 0, 1, 0], [], []>} : vector<16x8xf32>, vector<16x8xf32>, vector<16x16xf32> -> vector<16x16xf32>
    %572 = arith.addf %571, %1 : vector<16x16xf32>
    %cst_229 = arith.constant dense<0xFF800000> : vector<16xf32>
    %573 = vector.multi_reduction <maximumf>, %572, %cst_229 [1] : vector<16x16xf32> to vector<16xf32>
    %574 = vector.shape_cast %573 : vector<16xf32> to vector<16x1xf32>
    %575 = vector.broadcast %574 : vector<16x1xf32> to vector<16x16xf32>
    %576 = arith.subf %572, %575 : vector<16x16xf32>
    %577 = math.exp %576 : vector<16x16xf32>
    %cst_230 = arith.constant dense<0.000000e+00> : vector<16xf32>
    %578 = vector.multi_reduction <add>, %577, %cst_230 [1] : vector<16x16xf32> to vector<16xf32>
    %579 = vector.shape_cast %578 : vector<16xf32> to vector<16x1xf32>
    %580 = vector.broadcast %579 : vector<16x1xf32> to vector<16x16xf32>
    %581 = arith.divf %577, %580 : vector<16x16xf32>
    %582 = vector.extract_strided_slice %526 {offsets = [0, 16], sizes = [16, 8], strides = [1, 1]} : vector<16x32xf32> to vector<16x8xf32>
    %cst_231 = arith.constant dense<0.000000e+00> : vector<16x8xf32>
    %583 = tpu.matmul %581, %582, %cst_231 {dimension_numbers = #tpu.dot_dimension_numbers<[1], [0], [0], [1], [0, 0, 1, 1], [], []>} : vector<16x16xf32>, vector<16x8xf32>, vector<16x8xf32> -> vector<16x8xf32>
    %584 = vector.extract_strided_slice %527 {offsets = [16, 0], sizes = [8, 32], strides = [1, 1]} : vector<32x32xf32> to vector<8x32xf32>
    %cst_232 = arith.constant dense<0.000000e+00> : vector<16x32xf32>
    %585 = tpu.matmul %583, %584, %cst_232 {dimension_numbers = #tpu.dot_dimension_numbers<[1], [0], [0], [1], [0, 0, 1, 1], [], []>} : vector<16x8xf32>, vector<8x32xf32>, vector<16x32xf32> -> vector<16x32xf32>
    %586 = arith.addf %566, %585 : vector<16x32xf32>
    %587 = vector.extract_strided_slice %519 {offsets = [0, 24], sizes = [16, 8], strides = [1, 1]} : vector<16x32xf32> to vector<16x8xf32>
    %cst_233 = arith.constant 0.353553385 : f32
    %588 = vector.broadcast %cst_233 : f32 to vector<16x8xf32>
    %589 = arith.mulf %587, %588 : vector<16x8xf32>
    %590 = vector.extract_strided_slice %525 {offsets = [0, 24], sizes = [16, 8], strides = [1, 1]} : vector<16x32xf32> to vector<16x8xf32>
    %cst_234 = arith.constant dense<0.000000e+00> : vector<16x16xf32>
    %591 = tpu.matmul %589, %590, %cst_234 {dimension_numbers = #tpu.dot_dimension_numbers<[1], [1], [0], [0], [0, 0, 1, 0], [], []>} : vector<16x8xf32>, vector<16x8xf32>, vector<16x16xf32> -> vector<16x16xf32>
    %592 = arith.addf %591, %1 : vector<16x16xf32>
    %cst_235 = arith.constant dense<0xFF800000> : vector<16xf32>
    %593 = vector.multi_reduction <maximumf>, %592, %cst_235 [1] : vector<16x16xf32> to vector<16xf32>
    %594 = vector.shape_cast %593 : vector<16xf32> to vector<16x1xf32>
    %595 = vector.broadcast %594 : vector<16x1xf32> to vector<16x16xf32>
    %596 = arith.subf %592, %595 : vector<16x16xf32>
    %597 = math.exp %596 : vector<16x16xf32>
    %cst_236 = arith.constant dense<0.000000e+00> : vector<16xf32>
    %598 = vector.multi_reduction <add>, %597, %cst_236 [1] : vector<16x16xf32> to vector<16xf32>
    %599 = vector.shape_cast %598 : vector<16xf32> to vector<16x1xf32>
    %600 = vector.broadcast %599 : vector<16x1xf32> to vector<16x16xf32>
    %601 = arith.divf %597, %600 : vector<16x16xf32>
    %602 = vector.extract_strided_slice %526 {offsets = [0, 24], sizes = [16, 8], strides = [1, 1]} : vector<16x32xf32> to vector<16x8xf32>
    %cst_237 = arith.constant dense<0.000000e+00> : vector<16x8xf32>
    %603 = tpu.matmul %601, %602, %cst_237 {dimension_numbers = #tpu.dot_dimension_numbers<[1], [0], [0], [1], [0, 0, 1, 1], [], []>} : vector<16x16xf32>, vector<16x8xf32>, vector<16x8xf32> -> vector<16x8xf32>
    %604 = vector.extract_strided_slice %527 {offsets = [24, 0], sizes = [8, 32], strides = [1, 1]} : vector<32x32xf32> to vector<8x32xf32>
    %cst_238 = arith.constant dense<0.000000e+00> : vector<16x32xf32>
    %605 = tpu.matmul %603, %604, %cst_238 {dimension_numbers = #tpu.dot_dimension_numbers<[1], [0], [0], [1], [0, 0, 1, 1], [], []>} : vector<16x8xf32>, vector<8x32xf32>, vector<16x32xf32> -> vector<16x32xf32>
    %606 = arith.addf %586, %605 : vector<16x32xf32>
    %c0_239 = arith.constant 0 : index
    %c0_240 = arith.constant 0 : index
    %607 = vector.load %arg3[%c0_239, %c0_240] : memref<1x32xf32, #tpu.memory_space<vmem>>, vector<1x32xf32>
    %608 = vector.broadcast %607 : vector<1x32xf32> to vector<16x32xf32>
    %609 = arith.addf %606, %608 : vector<16x32xf32>
    %610 = arith.addf %512, %609 : vector<16x32xf32>
    %cst_241 = arith.constant dense<0.000000e+00> : vector<16xf32>
    %611 = vector.multi_reduction <add>, %610, %cst_241 [1] : vector<16x32xf32> to vector<16xf32>
    %612 = vector.shape_cast %611 : vector<16xf32> to vector<16x1xf32>
    %cst_242 = arith.constant 3.200000e+01 : f32
    %613 = vector.broadcast %cst_242 : f32 to vector<16x1xf32>
    %614 = arith.divf %612, %613 : vector<16x1xf32>
    %615 = vector.broadcast %614 : vector<16x1xf32> to vector<16x32xf32>
    %616 = arith.subf %610, %615 : vector<16x32xf32>
    %617 = arith.mulf %616, %616 : vector<16x32xf32>
    %cst_243 = arith.constant dense<0.000000e+00> : vector<16xf32>
    %618 = vector.multi_reduction <add>, %617, %cst_243 [1] : vector<16x32xf32> to vector<16xf32>
    %619 = vector.shape_cast %618 : vector<16xf32> to vector<16x1xf32>
    %cst_244 = arith.constant 3.200000e+01 : f32
    %620 = vector.broadcast %cst_244 : f32 to vector<16x1xf32>
    %621 = arith.divf %619, %620 : vector<16x1xf32>
    %cst_245 = arith.constant 9.99999974E-6 : f32
    %622 = vector.broadcast %cst_245 : f32 to vector<16x1xf32>
    %623 = arith.addf %621, %622 : vector<16x1xf32>
    %624 = math.rsqrt %623 : vector<16x1xf32>
    %625 = vector.broadcast %624 : vector<16x1xf32> to vector<16x32xf32>
    %626 = arith.mulf %616, %625 : vector<16x32xf32>
    %c0_246 = arith.constant 0 : index
    %c0_247 = arith.constant 0 : index
    %627 = vector.load %arg14[%c0_246, %c0_247] : memref<1x32xf32, #tpu.memory_space<vmem>>, vector<1x32xf32>
    %628 = vector.broadcast %627 : vector<1x32xf32> to vector<16x32xf32>
    %629 = arith.mulf %626, %628 : vector<16x32xf32>
    %c0_248 = arith.constant 0 : index
    %c0_249 = arith.constant 0 : index
    %630 = vector.load %arg13[%c0_248, %c0_249] : memref<1x32xf32, #tpu.memory_space<vmem>>, vector<1x32xf32>
    %631 = vector.broadcast %630 : vector<1x32xf32> to vector<16x32xf32>
    %632 = arith.addf %629, %631 : vector<16x32xf32>
    %c0_250 = arith.constant 0 : index
    %c0_251 = arith.constant 0 : index
    %633 = vector.load %arg8[%c0_250, %c0_251] : memref<32x128xf32, #tpu.memory_space<vmem>>, vector<32x128xf32>
    %cst_252 = arith.constant dense<0.000000e+00> : vector<16x128xf32>
    %634 = tpu.matmul %632, %633, %cst_252 {dimension_numbers = #tpu.dot_dimension_numbers<[1], [0], [0], [1], [0, 0, 1, 1], [], []>} : vector<16x32xf32>, vector<32x128xf32>, vector<16x128xf32> -> vector<16x128xf32>
    %c0_253 = arith.constant 0 : index
    %c0_254 = arith.constant 0 : index
    %635 = vector.load %arg7[%c0_253, %c0_254] : memref<1x128xf32, #tpu.memory_space<vmem>>, vector<1x128xf32>
    %636 = vector.broadcast %635 : vector<1x128xf32> to vector<16x128xf32>
    %637 = arith.addf %634, %636 : vector<16x128xf32>
    %cst_255 = arith.constant 0.707106769 : f32
    %638 = vector.broadcast %cst_255 : f32 to vector<16x128xf32>
    %639 = arith.mulf %637, %638 : vector<16x128xf32>
    %640 = math.absf %639 : vector<16x128xf32>
    %cst_256 = arith.constant 0.327591091 : f32
    %641 = vector.broadcast %cst_256 : f32 to vector<16x128xf32>
    %642 = arith.mulf %641, %640 : vector<16x128xf32>
    %cst_257 = arith.constant 1.000000e+00 : f32
    %643 = vector.broadcast %cst_257 : f32 to vector<16x128xf32>
    %644 = arith.addf %643, %642 : vector<16x128xf32>
    %cst_258 = arith.constant 1.000000e+00 : f32
    %645 = vector.broadcast %cst_258 : f32 to vector<16x128xf32>
    %646 = arith.divf %645, %644 : vector<16x128xf32>
    %cst_259 = arith.constant 1.06140542 : f32
    %647 = vector.broadcast %cst_259 : f32 to vector<16x128xf32>
    %648 = arith.mulf %647, %646 : vector<16x128xf32>
    %cst_260 = arith.constant 1.45315206 : f32
    %649 = vector.broadcast %cst_260 : f32 to vector<16x128xf32>
    %650 = arith.subf %648, %649 : vector<16x128xf32>
    %651 = arith.mulf %650, %646 : vector<16x128xf32>
    %cst_261 = arith.constant 1.42141378 : f32
    %652 = vector.broadcast %cst_261 : f32 to vector<16x128xf32>
    %653 = arith.addf %651, %652 : vector<16x128xf32>
    %654 = arith.mulf %653, %646 : vector<16x128xf32>
    %cst_262 = arith.constant 0.284496725 : f32
    %655 = vector.broadcast %cst_262 : f32 to vector<16x128xf32>
    %656 = arith.subf %654, %655 : vector<16x128xf32>
    %657 = arith.mulf %656, %646 : vector<16x128xf32>
    %cst_263 = arith.constant 0.254829586 : f32
    %658 = vector.broadcast %cst_263 : f32 to vector<16x128xf32>
    %659 = arith.addf %657, %658 : vector<16x128xf32>
    %660 = arith.mulf %659, %646 : vector<16x128xf32>
    %cst_264 = arith.constant 0.000000e+00 : f32
    %661 = vector.broadcast %cst_264 : f32 to vector<16x128xf32>
    %662 = arith.subf %661, %640 : vector<16x128xf32>
    %663 = arith.mulf %662, %640 : vector<16x128xf32>
    %664 = math.exp %663 : vector<16x128xf32>
    %665 = arith.mulf %660, %664 : vector<16x128xf32>
    %cst_265 = arith.constant 1.000000e+00 : f32
    %666 = vector.broadcast %cst_265 : f32 to vector<16x128xf32>
    %667 = arith.subf %666, %665 : vector<16x128xf32>
    %cst_266 = arith.constant 0.000000e+00 : f32
    %668 = vector.broadcast %cst_266 : f32 to vector<16x128xf32>
    %669 = arith.cmpf olt, %639, %668 : vector<16x128xf32>
    %cst_267 = arith.constant 0.000000e+00 : f32
    %670 = vector.broadcast %cst_267 : f32 to vector<16x128xf32>
    %671 = arith.subf %670, %667 : vector<16x128xf32>
    %672 = arith.select %669, %671, %667 : vector<16x128xi1>, vector<16x128xf32>
    %cst_268 = arith.constant 5.000000e-01 : f32
    %673 = vector.broadcast %cst_268 : f32 to vector<16x128xf32>
    %674 = arith.mulf %673, %637 : vector<16x128xf32>
    %cst_269 = arith.constant 1.000000e+00 : f32
    %675 = vector.broadcast %cst_269 : f32 to vector<16x128xf32>
    %676 = arith.addf %675, %672 : vector<16x128xf32>
    %677 = arith.mulf %674, %676 : vector<16x128xf32>
    %c0_270 = arith.constant 0 : index
    %c0_271 = arith.constant 0 : index
    %678 = vector.load %arg10[%c0_270, %c0_271] : memref<128x32xf32, #tpu.memory_space<vmem>>, vector<128x32xf32>
    %cst_272 = arith.constant dense<0.000000e+00> : vector<16x32xf32>
    %679 = tpu.matmul %677, %678, %cst_272 {dimension_numbers = #tpu.dot_dimension_numbers<[1], [0], [0], [1], [0, 0, 1, 1], [], []>} : vector<16x128xf32>, vector<128x32xf32>, vector<16x32xf32> -> vector<16x32xf32>
    %c0_273 = arith.constant 0 : index
    %c0_274 = arith.constant 0 : index
    %680 = vector.load %arg9[%c0_273, %c0_274] : memref<1x32xf32, #tpu.memory_space<vmem>>, vector<1x32xf32>
    %681 = vector.broadcast %680 : vector<1x32xf32> to vector<16x32xf32>
    %682 = arith.addf %679, %681 : vector<16x32xf32>
    %683 = arith.addf %632, %682 : vector<16x32xf32>
    %cst_275 = arith.constant dense<0.000000e+00> : vector<16xf32>
    %684 = vector.multi_reduction <add>, %683, %cst_275 [1] : vector<16x32xf32> to vector<16xf32>
    %685 = vector.shape_cast %684 : vector<16xf32> to vector<16x1xf32>
    %cst_276 = arith.constant 3.200000e+01 : f32
    %686 = vector.broadcast %cst_276 : f32 to vector<16x1xf32>
    %687 = arith.divf %685, %686 : vector<16x1xf32>
    %688 = vector.broadcast %687 : vector<16x1xf32> to vector<16x32xf32>
    %689 = arith.subf %683, %688 : vector<16x32xf32>
    %690 = arith.mulf %689, %689 : vector<16x32xf32>
    %cst_277 = arith.constant dense<0.000000e+00> : vector<16xf32>
    %691 = vector.multi_reduction <add>, %690, %cst_277 [1] : vector<16x32xf32> to vector<16xf32>
    %692 = vector.shape_cast %691 : vector<16xf32> to vector<16x1xf32>
    %cst_278 = arith.constant 3.200000e+01 : f32
    %693 = vector.broadcast %cst_278 : f32 to vector<16x1xf32>
    %694 = arith.divf %692, %693 : vector<16x1xf32>
    %cst_279 = arith.constant 9.99999974E-6 : f32
    %695 = vector.broadcast %cst_279 : f32 to vector<16x1xf32>
    %696 = arith.addf %694, %695 : vector<16x1xf32>
    %697 = math.rsqrt %696 : vector<16x1xf32>
    %698 = vector.broadcast %697 : vector<16x1xf32> to vector<16x32xf32>
    %699 = arith.mulf %689, %698 : vector<16x32xf32>
    %c0_280 = arith.constant 0 : index
    %c0_281 = arith.constant 0 : index
    %700 = vector.load %arg16[%c0_280, %c0_281] : memref<1x32xf32, #tpu.memory_space<vmem>>, vector<1x32xf32>
    %701 = vector.broadcast %700 : vector<1x32xf32> to vector<16x32xf32>
    %702 = arith.mulf %699, %701 : vector<16x32xf32>
    %c0_282 = arith.constant 0 : index
    %c0_283 = arith.constant 0 : index
    %703 = vector.load %arg15[%c0_282, %c0_283] : memref<1x32xf32, #tpu.memory_space<vmem>>, vector<1x32xf32>
    %704 = vector.broadcast %703 : vector<1x32xf32> to vector<16x32xf32>
    %705 = arith.addf %702, %704 : vector<16x32xf32>
    %c0_284 = arith.constant 0 : index
    %c0_285 = arith.constant 0 : index
    %706 = vector.load %arg38[%c0_284, %c0_285] : memref<32x96xf32, #tpu.memory_space<vmem>>, vector<32x96xf32>
    %cst_286 = arith.constant dense<0.000000e+00> : vector<16x96xf32>
    %707 = tpu.matmul %705, %706, %cst_286 {dimension_numbers = #tpu.dot_dimension_numbers<[1], [0], [0], [1], [0, 0, 1, 1], [], []>} : vector<16x32xf32>, vector<32x96xf32>, vector<16x96xf32> -> vector<16x96xf32>
    %c0_287 = arith.constant 0 : index
    %c0_288 = arith.constant 0 : index
    %708 = vector.load %arg37[%c0_287, %c0_288] : memref<1x96xf32, #tpu.memory_space<vmem>>, vector<1x96xf32>
    %709 = vector.broadcast %708 : vector<1x96xf32> to vector<16x96xf32>
    %710 = arith.addf %707, %709 : vector<16x96xf32>
    %711 = vector.extract_strided_slice %710 {offsets = [0, 0], sizes = [16, 32], strides = [1, 1]} : vector<16x96xf32> to vector<16x32xf32>
    %712 = vector.extract_strided_slice %710 {offsets = [0, 32], sizes = [16, 32], strides = [1, 1]} : vector<16x96xf32> to vector<16x32xf32>
    %713 = vector.extract_strided_slice %710 {offsets = [0, 64], sizes = [16, 32], strides = [1, 1]} : vector<16x96xf32> to vector<16x32xf32>
    %c0_289 = arith.constant 0 : index
    %c0_290 = arith.constant 0 : index
    %714 = vector.load %arg36[%c0_289, %c0_290] : memref<32x32xf32, #tpu.memory_space<vmem>>, vector<32x32xf32>
    %715 = vector.extract_strided_slice %711 {offsets = [0, 0], sizes = [16, 8], strides = [1, 1]} : vector<16x32xf32> to vector<16x8xf32>
    %cst_291 = arith.constant 0.353553385 : f32
    %716 = vector.broadcast %cst_291 : f32 to vector<16x8xf32>
    %717 = arith.mulf %715, %716 : vector<16x8xf32>
    %718 = vector.extract_strided_slice %712 {offsets = [0, 0], sizes = [16, 8], strides = [1, 1]} : vector<16x32xf32> to vector<16x8xf32>
    %cst_292 = arith.constant dense<0.000000e+00> : vector<16x16xf32>
    %719 = tpu.matmul %717, %718, %cst_292 {dimension_numbers = #tpu.dot_dimension_numbers<[1], [1], [0], [0], [0, 0, 1, 0], [], []>} : vector<16x8xf32>, vector<16x8xf32>, vector<16x16xf32> -> vector<16x16xf32>
    %720 = arith.addf %719, %1 : vector<16x16xf32>
    %cst_293 = arith.constant dense<0xFF800000> : vector<16xf32>
    %721 = vector.multi_reduction <maximumf>, %720, %cst_293 [1] : vector<16x16xf32> to vector<16xf32>
    %722 = vector.shape_cast %721 : vector<16xf32> to vector<16x1xf32>
    %723 = vector.broadcast %722 : vector<16x1xf32> to vector<16x16xf32>
    %724 = arith.subf %720, %723 : vector<16x16xf32>
    %725 = math.exp %724 : vector<16x16xf32>
    %cst_294 = arith.constant dense<0.000000e+00> : vector<16xf32>
    %726 = vector.multi_reduction <add>, %725, %cst_294 [1] : vector<16x16xf32> to vector<16xf32>
    %727 = vector.shape_cast %726 : vector<16xf32> to vector<16x1xf32>
    %728 = vector.broadcast %727 : vector<16x1xf32> to vector<16x16xf32>
    %729 = arith.divf %725, %728 : vector<16x16xf32>
    %730 = vector.extract_strided_slice %713 {offsets = [0, 0], sizes = [16, 8], strides = [1, 1]} : vector<16x32xf32> to vector<16x8xf32>
    %cst_295 = arith.constant dense<0.000000e+00> : vector<16x8xf32>
    %731 = tpu.matmul %729, %730, %cst_295 {dimension_numbers = #tpu.dot_dimension_numbers<[1], [0], [0], [1], [0, 0, 1, 1], [], []>} : vector<16x16xf32>, vector<16x8xf32>, vector<16x8xf32> -> vector<16x8xf32>
    %732 = vector.extract_strided_slice %714 {offsets = [0, 0], sizes = [8, 32], strides = [1, 1]} : vector<32x32xf32> to vector<8x32xf32>
    %cst_296 = arith.constant dense<0.000000e+00> : vector<16x32xf32>
    %733 = tpu.matmul %731, %732, %cst_296 {dimension_numbers = #tpu.dot_dimension_numbers<[1], [0], [0], [1], [0, 0, 1, 1], [], []>} : vector<16x8xf32>, vector<8x32xf32>, vector<16x32xf32> -> vector<16x32xf32>
    %734 = vector.extract_strided_slice %711 {offsets = [0, 8], sizes = [16, 8], strides = [1, 1]} : vector<16x32xf32> to vector<16x8xf32>
    %cst_297 = arith.constant 0.353553385 : f32
    %735 = vector.broadcast %cst_297 : f32 to vector<16x8xf32>
    %736 = arith.mulf %734, %735 : vector<16x8xf32>
    %737 = vector.extract_strided_slice %712 {offsets = [0, 8], sizes = [16, 8], strides = [1, 1]} : vector<16x32xf32> to vector<16x8xf32>
    %cst_298 = arith.constant dense<0.000000e+00> : vector<16x16xf32>
    %738 = tpu.matmul %736, %737, %cst_298 {dimension_numbers = #tpu.dot_dimension_numbers<[1], [1], [0], [0], [0, 0, 1, 0], [], []>} : vector<16x8xf32>, vector<16x8xf32>, vector<16x16xf32> -> vector<16x16xf32>
    %739 = arith.addf %738, %1 : vector<16x16xf32>
    %cst_299 = arith.constant dense<0xFF800000> : vector<16xf32>
    %740 = vector.multi_reduction <maximumf>, %739, %cst_299 [1] : vector<16x16xf32> to vector<16xf32>
    %741 = vector.shape_cast %740 : vector<16xf32> to vector<16x1xf32>
    %742 = vector.broadcast %741 : vector<16x1xf32> to vector<16x16xf32>
    %743 = arith.subf %739, %742 : vector<16x16xf32>
    %744 = math.exp %743 : vector<16x16xf32>
    %cst_300 = arith.constant dense<0.000000e+00> : vector<16xf32>
    %745 = vector.multi_reduction <add>, %744, %cst_300 [1] : vector<16x16xf32> to vector<16xf32>
    %746 = vector.shape_cast %745 : vector<16xf32> to vector<16x1xf32>
    %747 = vector.broadcast %746 : vector<16x1xf32> to vector<16x16xf32>
    %748 = arith.divf %744, %747 : vector<16x16xf32>
    %749 = vector.extract_strided_slice %713 {offsets = [0, 8], sizes = [16, 8], strides = [1, 1]} : vector<16x32xf32> to vector<16x8xf32>
    %cst_301 = arith.constant dense<0.000000e+00> : vector<16x8xf32>
    %750 = tpu.matmul %748, %749, %cst_301 {dimension_numbers = #tpu.dot_dimension_numbers<[1], [0], [0], [1], [0, 0, 1, 1], [], []>} : vector<16x16xf32>, vector<16x8xf32>, vector<16x8xf32> -> vector<16x8xf32>
    %751 = vector.extract_strided_slice %714 {offsets = [8, 0], sizes = [8, 32], strides = [1, 1]} : vector<32x32xf32> to vector<8x32xf32>
    %cst_302 = arith.constant dense<0.000000e+00> : vector<16x32xf32>
    %752 = tpu.matmul %750, %751, %cst_302 {dimension_numbers = #tpu.dot_dimension_numbers<[1], [0], [0], [1], [0, 0, 1, 1], [], []>} : vector<16x8xf32>, vector<8x32xf32>, vector<16x32xf32> -> vector<16x32xf32>
    %753 = arith.addf %733, %752 : vector<16x32xf32>
    %754 = vector.extract_strided_slice %711 {offsets = [0, 16], sizes = [16, 8], strides = [1, 1]} : vector<16x32xf32> to vector<16x8xf32>
    %cst_303 = arith.constant 0.353553385 : f32
    %755 = vector.broadcast %cst_303 : f32 to vector<16x8xf32>
    %756 = arith.mulf %754, %755 : vector<16x8xf32>
    %757 = vector.extract_strided_slice %712 {offsets = [0, 16], sizes = [16, 8], strides = [1, 1]} : vector<16x32xf32> to vector<16x8xf32>
    %cst_304 = arith.constant dense<0.000000e+00> : vector<16x16xf32>
    %758 = tpu.matmul %756, %757, %cst_304 {dimension_numbers = #tpu.dot_dimension_numbers<[1], [1], [0], [0], [0, 0, 1, 0], [], []>} : vector<16x8xf32>, vector<16x8xf32>, vector<16x16xf32> -> vector<16x16xf32>
    %759 = arith.addf %758, %1 : vector<16x16xf32>
    %cst_305 = arith.constant dense<0xFF800000> : vector<16xf32>
    %760 = vector.multi_reduction <maximumf>, %759, %cst_305 [1] : vector<16x16xf32> to vector<16xf32>
    %761 = vector.shape_cast %760 : vector<16xf32> to vector<16x1xf32>
    %762 = vector.broadcast %761 : vector<16x1xf32> to vector<16x16xf32>
    %763 = arith.subf %759, %762 : vector<16x16xf32>
    %764 = math.exp %763 : vector<16x16xf32>
    %cst_306 = arith.constant dense<0.000000e+00> : vector<16xf32>
    %765 = vector.multi_reduction <add>, %764, %cst_306 [1] : vector<16x16xf32> to vector<16xf32>
    %766 = vector.shape_cast %765 : vector<16xf32> to vector<16x1xf32>
    %767 = vector.broadcast %766 : vector<16x1xf32> to vector<16x16xf32>
    %768 = arith.divf %764, %767 : vector<16x16xf32>
    %769 = vector.extract_strided_slice %713 {offsets = [0, 16], sizes = [16, 8], strides = [1, 1]} : vector<16x32xf32> to vector<16x8xf32>
    %cst_307 = arith.constant dense<0.000000e+00> : vector<16x8xf32>
    %770 = tpu.matmul %768, %769, %cst_307 {dimension_numbers = #tpu.dot_dimension_numbers<[1], [0], [0], [1], [0, 0, 1, 1], [], []>} : vector<16x16xf32>, vector<16x8xf32>, vector<16x8xf32> -> vector<16x8xf32>
    %771 = vector.extract_strided_slice %714 {offsets = [16, 0], sizes = [8, 32], strides = [1, 1]} : vector<32x32xf32> to vector<8x32xf32>
    %cst_308 = arith.constant dense<0.000000e+00> : vector<16x32xf32>
    %772 = tpu.matmul %770, %771, %cst_308 {dimension_numbers = #tpu.dot_dimension_numbers<[1], [0], [0], [1], [0, 0, 1, 1], [], []>} : vector<16x8xf32>, vector<8x32xf32>, vector<16x32xf32> -> vector<16x32xf32>
    %773 = arith.addf %753, %772 : vector<16x32xf32>
    %774 = vector.extract_strided_slice %711 {offsets = [0, 24], sizes = [16, 8], strides = [1, 1]} : vector<16x32xf32> to vector<16x8xf32>
    %cst_309 = arith.constant 0.353553385 : f32
    %775 = vector.broadcast %cst_309 : f32 to vector<16x8xf32>
    %776 = arith.mulf %774, %775 : vector<16x8xf32>
    %777 = vector.extract_strided_slice %712 {offsets = [0, 24], sizes = [16, 8], strides = [1, 1]} : vector<16x32xf32> to vector<16x8xf32>
    %cst_310 = arith.constant dense<0.000000e+00> : vector<16x16xf32>
    %778 = tpu.matmul %776, %777, %cst_310 {dimension_numbers = #tpu.dot_dimension_numbers<[1], [1], [0], [0], [0, 0, 1, 0], [], []>} : vector<16x8xf32>, vector<16x8xf32>, vector<16x16xf32> -> vector<16x16xf32>
    %779 = arith.addf %778, %1 : vector<16x16xf32>
    %cst_311 = arith.constant dense<0xFF800000> : vector<16xf32>
    %780 = vector.multi_reduction <maximumf>, %779, %cst_311 [1] : vector<16x16xf32> to vector<16xf32>
    %781 = vector.shape_cast %780 : vector<16xf32> to vector<16x1xf32>
    %782 = vector.broadcast %781 : vector<16x1xf32> to vector<16x16xf32>
    %783 = arith.subf %779, %782 : vector<16x16xf32>
    %784 = math.exp %783 : vector<16x16xf32>
    %cst_312 = arith.constant dense<0.000000e+00> : vector<16xf32>
    %785 = vector.multi_reduction <add>, %784, %cst_312 [1] : vector<16x16xf32> to vector<16xf32>
    %786 = vector.shape_cast %785 : vector<16xf32> to vector<16x1xf32>
    %787 = vector.broadcast %786 : vector<16x1xf32> to vector<16x16xf32>
    %788 = arith.divf %784, %787 : vector<16x16xf32>
    %789 = vector.extract_strided_slice %713 {offsets = [0, 24], sizes = [16, 8], strides = [1, 1]} : vector<16x32xf32> to vector<16x8xf32>
    %cst_313 = arith.constant dense<0.000000e+00> : vector<16x8xf32>
    %790 = tpu.matmul %788, %789, %cst_313 {dimension_numbers = #tpu.dot_dimension_numbers<[1], [0], [0], [1], [0, 0, 1, 1], [], []>} : vector<16x16xf32>, vector<16x8xf32>, vector<16x8xf32> -> vector<16x8xf32>
    %791 = vector.extract_strided_slice %714 {offsets = [24, 0], sizes = [8, 32], strides = [1, 1]} : vector<32x32xf32> to vector<8x32xf32>
    %cst_314 = arith.constant dense<0.000000e+00> : vector<16x32xf32>
    %792 = tpu.matmul %790, %791, %cst_314 {dimension_numbers = #tpu.dot_dimension_numbers<[1], [0], [0], [1], [0, 0, 1, 1], [], []>} : vector<16x8xf32>, vector<8x32xf32>, vector<16x32xf32> -> vector<16x32xf32>
    %793 = arith.addf %773, %792 : vector<16x32xf32>
    %c0_315 = arith.constant 0 : index
    %c0_316 = arith.constant 0 : index
    %794 = vector.load %arg35[%c0_315, %c0_316] : memref<1x32xf32, #tpu.memory_space<vmem>>, vector<1x32xf32>
    %795 = vector.broadcast %794 : vector<1x32xf32> to vector<16x32xf32>
    %796 = arith.addf %793, %795 : vector<16x32xf32>
    %797 = arith.addf %705, %796 : vector<16x32xf32>
    %cst_317 = arith.constant dense<0.000000e+00> : vector<16xf32>
    %798 = vector.multi_reduction <add>, %797, %cst_317 [1] : vector<16x32xf32> to vector<16xf32>
    %799 = vector.shape_cast %798 : vector<16xf32> to vector<16x1xf32>
    %cst_318 = arith.constant 3.200000e+01 : f32
    %800 = vector.broadcast %cst_318 : f32 to vector<16x1xf32>
    %801 = arith.divf %799, %800 : vector<16x1xf32>
    %802 = vector.broadcast %801 : vector<16x1xf32> to vector<16x32xf32>
    %803 = arith.subf %797, %802 : vector<16x32xf32>
    %804 = arith.mulf %803, %803 : vector<16x32xf32>
    %cst_319 = arith.constant dense<0.000000e+00> : vector<16xf32>
    %805 = vector.multi_reduction <add>, %804, %cst_319 [1] : vector<16x32xf32> to vector<16xf32>
    %806 = vector.shape_cast %805 : vector<16xf32> to vector<16x1xf32>
    %cst_320 = arith.constant 3.200000e+01 : f32
    %807 = vector.broadcast %cst_320 : f32 to vector<16x1xf32>
    %808 = arith.divf %806, %807 : vector<16x1xf32>
    %cst_321 = arith.constant 9.99999974E-6 : f32
    %809 = vector.broadcast %cst_321 : f32 to vector<16x1xf32>
    %810 = arith.addf %808, %809 : vector<16x1xf32>
    %811 = math.rsqrt %810 : vector<16x1xf32>
    %812 = vector.broadcast %811 : vector<16x1xf32> to vector<16x32xf32>
    %813 = arith.mulf %803, %812 : vector<16x32xf32>
    %c0_322 = arith.constant 0 : index
    %c0_323 = arith.constant 0 : index
    %814 = vector.load %arg30[%c0_322, %c0_323] : memref<1x32xf32, #tpu.memory_space<vmem>>, vector<1x32xf32>
    %815 = vector.broadcast %814 : vector<1x32xf32> to vector<16x32xf32>
    %816 = arith.mulf %813, %815 : vector<16x32xf32>
    %c0_324 = arith.constant 0 : index
    %c0_325 = arith.constant 0 : index
    %817 = vector.load %arg29[%c0_324, %c0_325] : memref<1x32xf32, #tpu.memory_space<vmem>>, vector<1x32xf32>
    %818 = vector.broadcast %817 : vector<1x32xf32> to vector<16x32xf32>
    %819 = arith.addf %816, %818 : vector<16x32xf32>
    %c0_326 = arith.constant 0 : index
    %c0_327 = arith.constant 0 : index
    %820 = vector.load %arg24[%c0_326, %c0_327] : memref<32x96xf32, #tpu.memory_space<vmem>>, vector<32x96xf32>
    %c0_328 = arith.constant 0 : index
    %c0_329 = arith.constant 0 : index
    %821 = vector.load %arg23[%c0_328, %c0_329] : memref<1x96xf32, #tpu.memory_space<vmem>>, vector<1x96xf32>
    %822 = vector.extract_strided_slice %820 {offsets = [0, 0], sizes = [32, 32], strides = [1, 1]} : vector<32x96xf32> to vector<32x32xf32>
    %cst_330 = arith.constant dense<0.000000e+00> : vector<16x32xf32>
    %823 = tpu.matmul %819, %822, %cst_330 {dimension_numbers = #tpu.dot_dimension_numbers<[1], [0], [0], [1], [0, 0, 1, 1], [], []>} : vector<16x32xf32>, vector<32x32xf32>, vector<16x32xf32> -> vector<16x32xf32>
    %824 = vector.extract_strided_slice %821 {offsets = [0, 0], sizes = [1, 32], strides = [1, 1]} : vector<1x96xf32> to vector<1x32xf32>
    %825 = vector.broadcast %824 : vector<1x32xf32> to vector<16x32xf32>
    %826 = arith.addf %823, %825 : vector<16x32xf32>
    %827 = vector.extract_strided_slice %820 {offsets = [0, 32], sizes = [32, 64], strides = [1, 1]} : vector<32x96xf32> to vector<32x64xf32>
    %cst_331 = arith.constant dense<0.000000e+00> : vector<16x64xf32>
    %828 = tpu.matmul %398, %827, %cst_331 {dimension_numbers = #tpu.dot_dimension_numbers<[1], [0], [0], [1], [0, 0, 1, 1], [], []>} : vector<16x32xf32>, vector<32x64xf32>, vector<16x64xf32> -> vector<16x64xf32>
    %829 = vector.extract_strided_slice %821 {offsets = [0, 32], sizes = [1, 64], strides = [1, 1]} : vector<1x96xf32> to vector<1x64xf32>
    %830 = vector.broadcast %829 : vector<1x64xf32> to vector<16x64xf32>
    %831 = arith.addf %828, %830 : vector<16x64xf32>
    %832 = vector.extract_strided_slice %831 {offsets = [0, 0], sizes = [16, 32], strides = [1, 1]} : vector<16x64xf32> to vector<16x32xf32>
    %833 = vector.extract_strided_slice %831 {offsets = [0, 32], sizes = [16, 32], strides = [1, 1]} : vector<16x64xf32> to vector<16x32xf32>
    %c0_332 = arith.constant 0 : index
    %c0_333 = arith.constant 0 : index
    %834 = vector.load %arg22[%c0_332, %c0_333] : memref<32x32xf32, #tpu.memory_space<vmem>>, vector<32x32xf32>
    %835 = vector.extract_strided_slice %826 {offsets = [0, 0], sizes = [16, 8], strides = [1, 1]} : vector<16x32xf32> to vector<16x8xf32>
    %cst_334 = arith.constant 0.353553385 : f32
    %836 = vector.broadcast %cst_334 : f32 to vector<16x8xf32>
    %837 = arith.mulf %835, %836 : vector<16x8xf32>
    %838 = vector.extract_strided_slice %832 {offsets = [0, 0], sizes = [16, 8], strides = [1, 1]} : vector<16x32xf32> to vector<16x8xf32>
    %cst_335 = arith.constant dense<0.000000e+00> : vector<16x16xf32>
    %839 = tpu.matmul %837, %838, %cst_335 {dimension_numbers = #tpu.dot_dimension_numbers<[1], [1], [0], [0], [0, 0, 1, 0], [], []>} : vector<16x8xf32>, vector<16x8xf32>, vector<16x16xf32> -> vector<16x16xf32>
    %840 = arith.addf %839, %1 : vector<16x16xf32>
    %cst_336 = arith.constant dense<0xFF800000> : vector<16xf32>
    %841 = vector.multi_reduction <maximumf>, %840, %cst_336 [1] : vector<16x16xf32> to vector<16xf32>
    %842 = vector.shape_cast %841 : vector<16xf32> to vector<16x1xf32>
    %843 = vector.broadcast %842 : vector<16x1xf32> to vector<16x16xf32>
    %844 = arith.subf %840, %843 : vector<16x16xf32>
    %845 = math.exp %844 : vector<16x16xf32>
    %cst_337 = arith.constant dense<0.000000e+00> : vector<16xf32>
    %846 = vector.multi_reduction <add>, %845, %cst_337 [1] : vector<16x16xf32> to vector<16xf32>
    %847 = vector.shape_cast %846 : vector<16xf32> to vector<16x1xf32>
    %848 = vector.broadcast %847 : vector<16x1xf32> to vector<16x16xf32>
    %849 = arith.divf %845, %848 : vector<16x16xf32>
    %850 = vector.extract_strided_slice %833 {offsets = [0, 0], sizes = [16, 8], strides = [1, 1]} : vector<16x32xf32> to vector<16x8xf32>
    %cst_338 = arith.constant dense<0.000000e+00> : vector<16x8xf32>
    %851 = tpu.matmul %849, %850, %cst_338 {dimension_numbers = #tpu.dot_dimension_numbers<[1], [0], [0], [1], [0, 0, 1, 1], [], []>} : vector<16x16xf32>, vector<16x8xf32>, vector<16x8xf32> -> vector<16x8xf32>
    %852 = vector.extract_strided_slice %834 {offsets = [0, 0], sizes = [8, 32], strides = [1, 1]} : vector<32x32xf32> to vector<8x32xf32>
    %cst_339 = arith.constant dense<0.000000e+00> : vector<16x32xf32>
    %853 = tpu.matmul %851, %852, %cst_339 {dimension_numbers = #tpu.dot_dimension_numbers<[1], [0], [0], [1], [0, 0, 1, 1], [], []>} : vector<16x8xf32>, vector<8x32xf32>, vector<16x32xf32> -> vector<16x32xf32>
    %854 = vector.extract_strided_slice %826 {offsets = [0, 8], sizes = [16, 8], strides = [1, 1]} : vector<16x32xf32> to vector<16x8xf32>
    %cst_340 = arith.constant 0.353553385 : f32
    %855 = vector.broadcast %cst_340 : f32 to vector<16x8xf32>
    %856 = arith.mulf %854, %855 : vector<16x8xf32>
    %857 = vector.extract_strided_slice %832 {offsets = [0, 8], sizes = [16, 8], strides = [1, 1]} : vector<16x32xf32> to vector<16x8xf32>
    %cst_341 = arith.constant dense<0.000000e+00> : vector<16x16xf32>
    %858 = tpu.matmul %856, %857, %cst_341 {dimension_numbers = #tpu.dot_dimension_numbers<[1], [1], [0], [0], [0, 0, 1, 0], [], []>} : vector<16x8xf32>, vector<16x8xf32>, vector<16x16xf32> -> vector<16x16xf32>
    %859 = arith.addf %858, %1 : vector<16x16xf32>
    %cst_342 = arith.constant dense<0xFF800000> : vector<16xf32>
    %860 = vector.multi_reduction <maximumf>, %859, %cst_342 [1] : vector<16x16xf32> to vector<16xf32>
    %861 = vector.shape_cast %860 : vector<16xf32> to vector<16x1xf32>
    %862 = vector.broadcast %861 : vector<16x1xf32> to vector<16x16xf32>
    %863 = arith.subf %859, %862 : vector<16x16xf32>
    %864 = math.exp %863 : vector<16x16xf32>
    %cst_343 = arith.constant dense<0.000000e+00> : vector<16xf32>
    %865 = vector.multi_reduction <add>, %864, %cst_343 [1] : vector<16x16xf32> to vector<16xf32>
    %866 = vector.shape_cast %865 : vector<16xf32> to vector<16x1xf32>
    %867 = vector.broadcast %866 : vector<16x1xf32> to vector<16x16xf32>
    %868 = arith.divf %864, %867 : vector<16x16xf32>
    %869 = vector.extract_strided_slice %833 {offsets = [0, 8], sizes = [16, 8], strides = [1, 1]} : vector<16x32xf32> to vector<16x8xf32>
    %cst_344 = arith.constant dense<0.000000e+00> : vector<16x8xf32>
    %870 = tpu.matmul %868, %869, %cst_344 {dimension_numbers = #tpu.dot_dimension_numbers<[1], [0], [0], [1], [0, 0, 1, 1], [], []>} : vector<16x16xf32>, vector<16x8xf32>, vector<16x8xf32> -> vector<16x8xf32>
    %871 = vector.extract_strided_slice %834 {offsets = [8, 0], sizes = [8, 32], strides = [1, 1]} : vector<32x32xf32> to vector<8x32xf32>
    %cst_345 = arith.constant dense<0.000000e+00> : vector<16x32xf32>
    %872 = tpu.matmul %870, %871, %cst_345 {dimension_numbers = #tpu.dot_dimension_numbers<[1], [0], [0], [1], [0, 0, 1, 1], [], []>} : vector<16x8xf32>, vector<8x32xf32>, vector<16x32xf32> -> vector<16x32xf32>
    %873 = arith.addf %853, %872 : vector<16x32xf32>
    %874 = vector.extract_strided_slice %826 {offsets = [0, 16], sizes = [16, 8], strides = [1, 1]} : vector<16x32xf32> to vector<16x8xf32>
    %cst_346 = arith.constant 0.353553385 : f32
    %875 = vector.broadcast %cst_346 : f32 to vector<16x8xf32>
    %876 = arith.mulf %874, %875 : vector<16x8xf32>
    %877 = vector.extract_strided_slice %832 {offsets = [0, 16], sizes = [16, 8], strides = [1, 1]} : vector<16x32xf32> to vector<16x8xf32>
    %cst_347 = arith.constant dense<0.000000e+00> : vector<16x16xf32>
    %878 = tpu.matmul %876, %877, %cst_347 {dimension_numbers = #tpu.dot_dimension_numbers<[1], [1], [0], [0], [0, 0, 1, 0], [], []>} : vector<16x8xf32>, vector<16x8xf32>, vector<16x16xf32> -> vector<16x16xf32>
    %879 = arith.addf %878, %1 : vector<16x16xf32>
    %cst_348 = arith.constant dense<0xFF800000> : vector<16xf32>
    %880 = vector.multi_reduction <maximumf>, %879, %cst_348 [1] : vector<16x16xf32> to vector<16xf32>
    %881 = vector.shape_cast %880 : vector<16xf32> to vector<16x1xf32>
    %882 = vector.broadcast %881 : vector<16x1xf32> to vector<16x16xf32>
    %883 = arith.subf %879, %882 : vector<16x16xf32>
    %884 = math.exp %883 : vector<16x16xf32>
    %cst_349 = arith.constant dense<0.000000e+00> : vector<16xf32>
    %885 = vector.multi_reduction <add>, %884, %cst_349 [1] : vector<16x16xf32> to vector<16xf32>
    %886 = vector.shape_cast %885 : vector<16xf32> to vector<16x1xf32>
    %887 = vector.broadcast %886 : vector<16x1xf32> to vector<16x16xf32>
    %888 = arith.divf %884, %887 : vector<16x16xf32>
    %889 = vector.extract_strided_slice %833 {offsets = [0, 16], sizes = [16, 8], strides = [1, 1]} : vector<16x32xf32> to vector<16x8xf32>
    %cst_350 = arith.constant dense<0.000000e+00> : vector<16x8xf32>
    %890 = tpu.matmul %888, %889, %cst_350 {dimension_numbers = #tpu.dot_dimension_numbers<[1], [0], [0], [1], [0, 0, 1, 1], [], []>} : vector<16x16xf32>, vector<16x8xf32>, vector<16x8xf32> -> vector<16x8xf32>
    %891 = vector.extract_strided_slice %834 {offsets = [16, 0], sizes = [8, 32], strides = [1, 1]} : vector<32x32xf32> to vector<8x32xf32>
    %cst_351 = arith.constant dense<0.000000e+00> : vector<16x32xf32>
    %892 = tpu.matmul %890, %891, %cst_351 {dimension_numbers = #tpu.dot_dimension_numbers<[1], [0], [0], [1], [0, 0, 1, 1], [], []>} : vector<16x8xf32>, vector<8x32xf32>, vector<16x32xf32> -> vector<16x32xf32>
    %893 = arith.addf %873, %892 : vector<16x32xf32>
    %894 = vector.extract_strided_slice %826 {offsets = [0, 24], sizes = [16, 8], strides = [1, 1]} : vector<16x32xf32> to vector<16x8xf32>
    %cst_352 = arith.constant 0.353553385 : f32
    %895 = vector.broadcast %cst_352 : f32 to vector<16x8xf32>
    %896 = arith.mulf %894, %895 : vector<16x8xf32>
    %897 = vector.extract_strided_slice %832 {offsets = [0, 24], sizes = [16, 8], strides = [1, 1]} : vector<16x32xf32> to vector<16x8xf32>
    %cst_353 = arith.constant dense<0.000000e+00> : vector<16x16xf32>
    %898 = tpu.matmul %896, %897, %cst_353 {dimension_numbers = #tpu.dot_dimension_numbers<[1], [1], [0], [0], [0, 0, 1, 0], [], []>} : vector<16x8xf32>, vector<16x8xf32>, vector<16x16xf32> -> vector<16x16xf32>
    %899 = arith.addf %898, %1 : vector<16x16xf32>
    %cst_354 = arith.constant dense<0xFF800000> : vector<16xf32>
    %900 = vector.multi_reduction <maximumf>, %899, %cst_354 [1] : vector<16x16xf32> to vector<16xf32>
    %901 = vector.shape_cast %900 : vector<16xf32> to vector<16x1xf32>
    %902 = vector.broadcast %901 : vector<16x1xf32> to vector<16x16xf32>
    %903 = arith.subf %899, %902 : vector<16x16xf32>
    %904 = math.exp %903 : vector<16x16xf32>
    %cst_355 = arith.constant dense<0.000000e+00> : vector<16xf32>
    %905 = vector.multi_reduction <add>, %904, %cst_355 [1] : vector<16x16xf32> to vector<16xf32>
    %906 = vector.shape_cast %905 : vector<16xf32> to vector<16x1xf32>
    %907 = vector.broadcast %906 : vector<16x1xf32> to vector<16x16xf32>
    %908 = arith.divf %904, %907 : vector<16x16xf32>
    %909 = vector.extract_strided_slice %833 {offsets = [0, 24], sizes = [16, 8], strides = [1, 1]} : vector<16x32xf32> to vector<16x8xf32>
    %cst_356 = arith.constant dense<0.000000e+00> : vector<16x8xf32>
    %910 = tpu.matmul %908, %909, %cst_356 {dimension_numbers = #tpu.dot_dimension_numbers<[1], [0], [0], [1], [0, 0, 1, 1], [], []>} : vector<16x16xf32>, vector<16x8xf32>, vector<16x8xf32> -> vector<16x8xf32>
    %911 = vector.extract_strided_slice %834 {offsets = [24, 0], sizes = [8, 32], strides = [1, 1]} : vector<32x32xf32> to vector<8x32xf32>
    %cst_357 = arith.constant dense<0.000000e+00> : vector<16x32xf32>
    %912 = tpu.matmul %910, %911, %cst_357 {dimension_numbers = #tpu.dot_dimension_numbers<[1], [0], [0], [1], [0, 0, 1, 1], [], []>} : vector<16x8xf32>, vector<8x32xf32>, vector<16x32xf32> -> vector<16x32xf32>
    %913 = arith.addf %893, %912 : vector<16x32xf32>
    %c0_358 = arith.constant 0 : index
    %c0_359 = arith.constant 0 : index
    %914 = vector.load %arg21[%c0_358, %c0_359] : memref<1x32xf32, #tpu.memory_space<vmem>>, vector<1x32xf32>
    %915 = vector.broadcast %914 : vector<1x32xf32> to vector<16x32xf32>
    %916 = arith.addf %913, %915 : vector<16x32xf32>
    %917 = arith.addf %819, %916 : vector<16x32xf32>
    %cst_360 = arith.constant dense<0.000000e+00> : vector<16xf32>
    %918 = vector.multi_reduction <add>, %917, %cst_360 [1] : vector<16x32xf32> to vector<16xf32>
    %919 = vector.shape_cast %918 : vector<16xf32> to vector<16x1xf32>
    %cst_361 = arith.constant 3.200000e+01 : f32
    %920 = vector.broadcast %cst_361 : f32 to vector<16x1xf32>
    %921 = arith.divf %919, %920 : vector<16x1xf32>
    %922 = vector.broadcast %921 : vector<16x1xf32> to vector<16x32xf32>
    %923 = arith.subf %917, %922 : vector<16x32xf32>
    %924 = arith.mulf %923, %923 : vector<16x32xf32>
    %cst_362 = arith.constant dense<0.000000e+00> : vector<16xf32>
    %925 = vector.multi_reduction <add>, %924, %cst_362 [1] : vector<16x32xf32> to vector<16xf32>
    %926 = vector.shape_cast %925 : vector<16xf32> to vector<16x1xf32>
    %cst_363 = arith.constant 3.200000e+01 : f32
    %927 = vector.broadcast %cst_363 : f32 to vector<16x1xf32>
    %928 = arith.divf %926, %927 : vector<16x1xf32>
    %cst_364 = arith.constant 9.99999974E-6 : f32
    %929 = vector.broadcast %cst_364 : f32 to vector<16x1xf32>
    %930 = arith.addf %928, %929 : vector<16x1xf32>
    %931 = math.rsqrt %930 : vector<16x1xf32>
    %932 = vector.broadcast %931 : vector<16x1xf32> to vector<16x32xf32>
    %933 = arith.mulf %923, %932 : vector<16x32xf32>
    %c0_365 = arith.constant 0 : index
    %c0_366 = arith.constant 0 : index
    %934 = vector.load %arg32[%c0_365, %c0_366] : memref<1x32xf32, #tpu.memory_space<vmem>>, vector<1x32xf32>
    %935 = vector.broadcast %934 : vector<1x32xf32> to vector<16x32xf32>
    %936 = arith.mulf %933, %935 : vector<16x32xf32>
    %c0_367 = arith.constant 0 : index
    %c0_368 = arith.constant 0 : index
    %937 = vector.load %arg31[%c0_367, %c0_368] : memref<1x32xf32, #tpu.memory_space<vmem>>, vector<1x32xf32>
    %938 = vector.broadcast %937 : vector<1x32xf32> to vector<16x32xf32>
    %939 = arith.addf %936, %938 : vector<16x32xf32>
    %c0_369 = arith.constant 0 : index
    %c0_370 = arith.constant 0 : index
    %940 = vector.load %arg26[%c0_369, %c0_370] : memref<32x128xf32, #tpu.memory_space<vmem>>, vector<32x128xf32>
    %cst_371 = arith.constant dense<0.000000e+00> : vector<16x128xf32>
    %941 = tpu.matmul %939, %940, %cst_371 {dimension_numbers = #tpu.dot_dimension_numbers<[1], [0], [0], [1], [0, 0, 1, 1], [], []>} : vector<16x32xf32>, vector<32x128xf32>, vector<16x128xf32> -> vector<16x128xf32>
    %c0_372 = arith.constant 0 : index
    %c0_373 = arith.constant 0 : index
    %942 = vector.load %arg25[%c0_372, %c0_373] : memref<1x128xf32, #tpu.memory_space<vmem>>, vector<1x128xf32>
    %943 = vector.broadcast %942 : vector<1x128xf32> to vector<16x128xf32>
    %944 = arith.addf %941, %943 : vector<16x128xf32>
    %cst_374 = arith.constant 0.707106769 : f32
    %945 = vector.broadcast %cst_374 : f32 to vector<16x128xf32>
    %946 = arith.mulf %944, %945 : vector<16x128xf32>
    %947 = math.absf %946 : vector<16x128xf32>
    %cst_375 = arith.constant 0.327591091 : f32
    %948 = vector.broadcast %cst_375 : f32 to vector<16x128xf32>
    %949 = arith.mulf %948, %947 : vector<16x128xf32>
    %cst_376 = arith.constant 1.000000e+00 : f32
    %950 = vector.broadcast %cst_376 : f32 to vector<16x128xf32>
    %951 = arith.addf %950, %949 : vector<16x128xf32>
    %cst_377 = arith.constant 1.000000e+00 : f32
    %952 = vector.broadcast %cst_377 : f32 to vector<16x128xf32>
    %953 = arith.divf %952, %951 : vector<16x128xf32>
    %cst_378 = arith.constant 1.06140542 : f32
    %954 = vector.broadcast %cst_378 : f32 to vector<16x128xf32>
    %955 = arith.mulf %954, %953 : vector<16x128xf32>
    %cst_379 = arith.constant 1.45315206 : f32
    %956 = vector.broadcast %cst_379 : f32 to vector<16x128xf32>
    %957 = arith.subf %955, %956 : vector<16x128xf32>
    %958 = arith.mulf %957, %953 : vector<16x128xf32>
    %cst_380 = arith.constant 1.42141378 : f32
    %959 = vector.broadcast %cst_380 : f32 to vector<16x128xf32>
    %960 = arith.addf %958, %959 : vector<16x128xf32>
    %961 = arith.mulf %960, %953 : vector<16x128xf32>
    %cst_381 = arith.constant 0.284496725 : f32
    %962 = vector.broadcast %cst_381 : f32 to vector<16x128xf32>
    %963 = arith.subf %961, %962 : vector<16x128xf32>
    %964 = arith.mulf %963, %953 : vector<16x128xf32>
    %cst_382 = arith.constant 0.254829586 : f32
    %965 = vector.broadcast %cst_382 : f32 to vector<16x128xf32>
    %966 = arith.addf %964, %965 : vector<16x128xf32>
    %967 = arith.mulf %966, %953 : vector<16x128xf32>
    %cst_383 = arith.constant 0.000000e+00 : f32
    %968 = vector.broadcast %cst_383 : f32 to vector<16x128xf32>
    %969 = arith.subf %968, %947 : vector<16x128xf32>
    %970 = arith.mulf %969, %947 : vector<16x128xf32>
    %971 = math.exp %970 : vector<16x128xf32>
    %972 = arith.mulf %967, %971 : vector<16x128xf32>
    %cst_384 = arith.constant 1.000000e+00 : f32
    %973 = vector.broadcast %cst_384 : f32 to vector<16x128xf32>
    %974 = arith.subf %973, %972 : vector<16x128xf32>
    %cst_385 = arith.constant 0.000000e+00 : f32
    %975 = vector.broadcast %cst_385 : f32 to vector<16x128xf32>
    %976 = arith.cmpf olt, %946, %975 : vector<16x128xf32>
    %cst_386 = arith.constant 0.000000e+00 : f32
    %977 = vector.broadcast %cst_386 : f32 to vector<16x128xf32>
    %978 = arith.subf %977, %974 : vector<16x128xf32>
    %979 = arith.select %976, %978, %974 : vector<16x128xi1>, vector<16x128xf32>
    %cst_387 = arith.constant 5.000000e-01 : f32
    %980 = vector.broadcast %cst_387 : f32 to vector<16x128xf32>
    %981 = arith.mulf %980, %944 : vector<16x128xf32>
    %cst_388 = arith.constant 1.000000e+00 : f32
    %982 = vector.broadcast %cst_388 : f32 to vector<16x128xf32>
    %983 = arith.addf %982, %979 : vector<16x128xf32>
    %984 = arith.mulf %981, %983 : vector<16x128xf32>
    %c0_389 = arith.constant 0 : index
    %c0_390 = arith.constant 0 : index
    %985 = vector.load %arg28[%c0_389, %c0_390] : memref<128x32xf32, #tpu.memory_space<vmem>>, vector<128x32xf32>
    %cst_391 = arith.constant dense<0.000000e+00> : vector<16x32xf32>
    %986 = tpu.matmul %984, %985, %cst_391 {dimension_numbers = #tpu.dot_dimension_numbers<[1], [0], [0], [1], [0, 0, 1, 1], [], []>} : vector<16x128xf32>, vector<128x32xf32>, vector<16x32xf32> -> vector<16x32xf32>
    %c0_392 = arith.constant 0 : index
    %c0_393 = arith.constant 0 : index
    %987 = vector.load %arg27[%c0_392, %c0_393] : memref<1x32xf32, #tpu.memory_space<vmem>>, vector<1x32xf32>
    %988 = vector.broadcast %987 : vector<1x32xf32> to vector<16x32xf32>
    %989 = arith.addf %986, %988 : vector<16x32xf32>
    %990 = arith.addf %939, %989 : vector<16x32xf32>
    %cst_394 = arith.constant dense<0.000000e+00> : vector<16xf32>
    %991 = vector.multi_reduction <add>, %990, %cst_394 [1] : vector<16x32xf32> to vector<16xf32>
    %992 = vector.shape_cast %991 : vector<16xf32> to vector<16x1xf32>
    %cst_395 = arith.constant 3.200000e+01 : f32
    %993 = vector.broadcast %cst_395 : f32 to vector<16x1xf32>
    %994 = arith.divf %992, %993 : vector<16x1xf32>
    %995 = vector.broadcast %994 : vector<16x1xf32> to vector<16x32xf32>
    %996 = arith.subf %990, %995 : vector<16x32xf32>
    %997 = arith.mulf %996, %996 : vector<16x32xf32>
    %cst_396 = arith.constant dense<0.000000e+00> : vector<16xf32>
    %998 = vector.multi_reduction <add>, %997, %cst_396 [1] : vector<16x32xf32> to vector<16xf32>
    %999 = vector.shape_cast %998 : vector<16xf32> to vector<16x1xf32>
    %cst_397 = arith.constant 3.200000e+01 : f32
    %1000 = vector.broadcast %cst_397 : f32 to vector<16x1xf32>
    %1001 = arith.divf %999, %1000 : vector<16x1xf32>
    %cst_398 = arith.constant 9.99999974E-6 : f32
    %1002 = vector.broadcast %cst_398 : f32 to vector<16x1xf32>
    %1003 = arith.addf %1001, %1002 : vector<16x1xf32>
    %1004 = math.rsqrt %1003 : vector<16x1xf32>
    %1005 = vector.broadcast %1004 : vector<16x1xf32> to vector<16x32xf32>
    %1006 = arith.mulf %996, %1005 : vector<16x32xf32>
    %c0_399 = arith.constant 0 : index
    %c0_400 = arith.constant 0 : index
    %1007 = vector.load %arg34[%c0_399, %c0_400] : memref<1x32xf32, #tpu.memory_space<vmem>>, vector<1x32xf32>
    %1008 = vector.broadcast %1007 : vector<1x32xf32> to vector<16x32xf32>
    %1009 = arith.mulf %1006, %1008 : vector<16x32xf32>
    %c0_401 = arith.constant 0 : index
    %c0_402 = arith.constant 0 : index
    %1010 = vector.load %arg33[%c0_401, %c0_402] : memref<1x32xf32, #tpu.memory_space<vmem>>, vector<1x32xf32>
    %1011 = vector.broadcast %1010 : vector<1x32xf32> to vector<16x32xf32>
    %1012 = arith.addf %1009, %1011 : vector<16x32xf32>
    %cst_403 = arith.constant dense<0.000000e+00> : vector<16xf32>
    %1013 = vector.multi_reduction <add>, %1012, %cst_403 [1] : vector<16x32xf32> to vector<16xf32>
    %1014 = vector.shape_cast %1013 : vector<16xf32> to vector<16x1xf32>
    %cst_404 = arith.constant 3.200000e+01 : f32
    %1015 = vector.broadcast %cst_404 : f32 to vector<16x1xf32>
    %1016 = arith.divf %1014, %1015 : vector<16x1xf32>
    %1017 = vector.broadcast %1016 : vector<16x1xf32> to vector<16x32xf32>
    %1018 = arith.subf %1012, %1017 : vector<16x32xf32>
    %1019 = arith.mulf %1018, %1018 : vector<16x32xf32>
    %cst_405 = arith.constant dense<0.000000e+00> : vector<16xf32>
    %1020 = vector.multi_reduction <add>, %1019, %cst_405 [1] : vector<16x32xf32> to vector<16xf32>
    %1021 = vector.shape_cast %1020 : vector<16xf32> to vector<16x1xf32>
    %cst_406 = arith.constant 3.200000e+01 : f32
    %1022 = vector.broadcast %cst_406 : f32 to vector<16x1xf32>
    %1023 = arith.divf %1021, %1022 : vector<16x1xf32>
    %cst_407 = arith.constant 9.99999974E-6 : f32
    %1024 = vector.broadcast %cst_407 : f32 to vector<16x1xf32>
    %1025 = arith.addf %1023, %1024 : vector<16x1xf32>
    %1026 = math.rsqrt %1025 : vector<16x1xf32>
    %1027 = vector.broadcast %1026 : vector<16x1xf32> to vector<16x32xf32>
    %1028 = arith.mulf %1018, %1027 : vector<16x32xf32>
    %c0_408 = arith.constant 0 : index
    %c0_409 = arith.constant 0 : index
    %1029 = vector.load %arg40[%c0_408, %c0_409] : memref<1x32xf32, #tpu.memory_space<vmem>>, vector<1x32xf32>
    %1030 = vector.broadcast %1029 : vector<1x32xf32> to vector<16x32xf32>
    %1031 = arith.mulf %1028, %1030 : vector<16x32xf32>
    %c0_410 = arith.constant 0 : index
    %c0_411 = arith.constant 0 : index
    %1032 = vector.load %arg39[%c0_410, %c0_411] : memref<1x32xf32, #tpu.memory_space<vmem>>, vector<1x32xf32>
    %1033 = vector.broadcast %1032 : vector<1x32xf32> to vector<16x32xf32>
    %1034 = arith.addf %1031, %1033 : vector<16x32xf32>
    %cst_412 = arith.constant dense<0.000000e+00> : vector<2x32xf32>
    %1035 = tpu.matmul %2, %1034, %cst_412 {dimension_numbers = #tpu.dot_dimension_numbers<[1], [0], [0], [1], [0, 0, 1, 1], [], []>} : vector<2x16xf32>, vector<16x32xf32>, vector<2x32xf32> -> vector<2x32xf32>
    %c0_413 = arith.constant 0 : index
    %c0_414 = arith.constant 0 : index
    %1036 = vector.load %arg68[%c0_413, %c0_414] : memref<32x10xf32, #tpu.memory_space<vmem>>, vector<32x10xf32>
    %cst_415 = arith.constant dense<0.000000e+00> : vector<2x10xf32>
    %1037 = tpu.matmul %1035, %1036, %cst_415 {dimension_numbers = #tpu.dot_dimension_numbers<[1], [0], [0], [1], [0, 0, 1, 1], [], []>} : vector<2x32xf32>, vector<32x10xf32>, vector<2x10xf32> -> vector<2x10xf32>
    %c0_416 = arith.constant 0 : index
    %c0_417 = arith.constant 0 : index
    %1038 = vector.load %arg67[%c0_416, %c0_417] : memref<1x10xf32, #tpu.memory_space<vmem>>, vector<1x10xf32>
    %1039 = vector.broadcast %1038 : vector<1x10xf32> to vector<2x10xf32>
    %1040 = arith.addf %1037, %1039 : vector<2x10xf32>
    %c0_418 = arith.constant 0 : index
    %c0_419 = arith.constant 0 : index
    %1041 = vector.load %arg69[%c0_418, %c0_419] : memref<2x10xf32, #tpu.memory_space<vmem>>, vector<2x10xf32>
    tpu.vector_store %arg69[%c0_418, %c0_419], %1040 {strides = array<i32>} : memref<2x10xf32, #tpu.memory_space<vmem>>, vector<2x10xf32>,
    return
  }
}

</mosaic_0001>

<bundles_post_ra>
// kernel: transformer_model_forward.1
= control target key start
LH: loop header
LB: loop body
LE: loop exit
PB: predicated region body
PF: predicated region fallthrough
CT: control target
= control target key end

     0   :  { %s13138_s6 = smov 1   ;;  %s13139_s10 = smov 2   ;;  %s14709_s0 = inlined_call_operand.smem [shape: u32[70], index: -1, kind: input, shape index: {}] }
   0x1   :  { %s13255_s5 = sld [smem:[%s14709_s0]]   ;;  %s13140_s14 = smov 3  }
   0x2   :  { %s13260_s9 = sld [smem:[%s14709_s0 + %s13138_s6]]   ;;  %s13141_s18 = smov 4  }
   0x3   :  { %s13265_s13 = sld [smem:[%s14709_s0 + %s13139_s10]]   ;;  %s13142_s22 = smov 5  }
   0x4   :  { %s13270_s17 = sld [smem:[%s14709_s0 + %s13140_s14]]   ;;  %s13143_s26 = smov 6  }
   0x5   :  { %s13275_s21 = sld [smem:[%s14709_s0 + %s13141_s18]]   ;;  %s13144_s30 = smov 7  }
   0x6   :  { %s13280_s25 = sld [smem:[%s14709_s0 + %s13142_s22]]   ;;  %s13145_s4 = smov 8  }
   0x7   :  { %14741 = sst [smem:[#allocation56_spill]] %s13255_s5  ;;  %s13146_s10 = smov 9  }
   0x8   :  { %14742 = sst [smem:[#allocation57_spill]] %s13260_s9  ;;  %s13147_s15 = smov 10  }
   0x9   :  { %14743 = sst [smem:[#allocation58_spill]] %s13265_s13  ;;  %s13148_s20 = smov 11  }
   0xa   :  { %14744 = sst [smem:[#allocation59_spill]] %s13270_s17  ;;  %s13150_s1 = smov 13  }
   0xb   :  { %14745 = sst [smem:[#allocation60_spill]] %s13275_s21  ;;  %s13151_s7 = smov 14  }
   0xc   :  { %14746 = sst [smem:[#allocation61_spill]] %s13280_s25  ;;  %s13153_s22 = smov 16  }
   0xd   :  { %s13285_s29 = sld [smem:[%s14709_s0 + %s13143_s26]]   ;;  %s13149_s26 = smov 12  }
   0xe   :  { %s13290_s3 = sld [smem:[%s14709_s0 + %s13144_s30]]   ;;  %s13154_s28 = smov 17  }
   0xf   :  { %s13295_s8 = sld [smem:[%s14709_s0 + %s13145_s4]]  }
  0x10   :  { %s13300_s14 = sld [smem:[%s14709_s0 + %s13146_s10]]  }
  0x11   :  { %s13305_s19 = sld [smem:[%s14709_s0 + %s13147_s15]]   ;;  %s13152_s15 = smov 15  }
  0x12   :  { %s13310_s24 = sld [smem:[%s14709_s0 + %s13148_s20]]  }
  0x13   :  { %14747 = sst [smem:[#allocation62_spill]] %s13285_s29 }
  0x14   :  { %14748 = sst [smem:[#allocation63_spill]] %s13290_s3 }
  0x15   :  { %14749 = sst [smem:[#allocation64_spill]] %s13295_s8 }
  0x16   :  { %14750 = sst [smem:[#allocation65_spill]] %s13300_s14 }
  0x17   :  { %14751 = sst [smem:[#allocation66_spill]] %s13305_s19 }
  0x18   :  { %14752 = sst [smem:[#allocation67_spill]] %s13310_s24 }
  0x19   :  { %s13315_s30 = sld [smem:[%s14709_s0 + %s13149_s26]]  }
  0x1a   :  { %s13320_s6 = sld [smem:[%s14709_s0 + %s13150_s1]]  }
  0x1b   :  { %s13325_s12 = sld [smem:[%s14709_s0 + %s13151_s7]]   ;;  %s13155_s7 = smov 18  }
  0x1c   :  { %s13330_s20 = sld [smem:[%s14709_s0 + %s13152_s15]]   ;;  %s13156_s15 = smov 19  }
  0x1d   :  { %s13335_s27 = sld [smem:[%s14709_s0 + %s13153_s22]]   ;;  %s13157_s22 = smov 20  }
  0x1e   :  { %s13340_s4 = sld [smem:[%s14709_s0 + %s13154_s28]]   ;;  %s13158_s28 = smov 21  }
  0x1f   :  { %14753 = sst [smem:[#allocation68_spill]] %s13315_s30 }
  0x20   :  { %14754 = sst [smem:[#allocation69_spill]] %s13320_s6 }
  0x21   :  { %14755 = sst [smem:[#allocation70_spill]] %s13325_s12 }
  0x22   :  { %14756 = sst [smem:[#allocation71_spill]] %s13330_s20 }
  0x23   :  { %14757 = sst [smem:[#allocation72_spill]] %s13335_s27 }
  0x24   :  { %14758 = sst [smem:[#allocation73_spill]] %s13340_s4 }
  0x25   :  { %s13345_s13 = sld [smem:[%s14709_s0 + %s13155_s7]]   ;;  %s13159_s7 = smov 22  }
  0x26   :  { %s13350_s20 = sld [smem:[%s14709_s0 + %s13156_s15]]   ;;  %s13160_s15 = smov 23  }
  0x27   :  { %s13355_s27 = sld [smem:[%s14709_s0 + %s13157_s22]]   ;;  %s13161_s22 = smov 24  }
  0x28   :  { %s13360_s14 = sld [smem:[%s14709_s0 + %s13158_s28]]   ;;  %s13162_s28 = smov 25  }
  0x29   :  { %s13365_s3 = sld [smem:[%s14709_s0 + %s13159_s7]]   ;;  %s13163_s7 = smov 26  }
  0x2a   :  { %s13370_s19 = sld [smem:[%s14709_s0 + %s13160_s15]]   ;;  %s13164_s15 = smov 27  }
  0x2b   :  { %14759 = sst [smem:[#allocation74_spill]] %s13345_s13 }
  0x2c   :  { %14760 = sst [smem:[#allocation75_spill]] %s13350_s20 }
  0x2d   :  { %14761 = sst [smem:[#allocation76_spill]] %s13355_s27 }
  0x2e   :  { %14762 = sst [smem:[#allocation77_spill]] %s13360_s14 }
  0x2f   :  { %14763 = sst [smem:[#allocation78_spill]] %s13365_s3 }
  0x30   :  { %14764 = sst [smem:[#allocation79_spill]] %s13370_s19 }
  0x31   :  { %s13375_s6 = sld [smem:[%s14709_s0 + %s13161_s22]]   ;;  %s13165_s22 = smov 28  }
  0x32   :  { %s13380_s14 = sld [smem:[%s14709_s0 + %s13162_s28]]   ;;  %s13166_s28 = smov 29  }
  0x33   :  { %s13385_s3 = sld [smem:[%s14709_s0 + %s13163_s7]]   ;;  %s13167_s7 = smov 30  }
  0x34   :  { %s13390_s19 = sld [smem:[%s14709_s0 + %s13164_s15]]   ;;  %s13168_s15 = smov 31  }
  0x37   :  { %14765 = sst [smem:[#allocation80_spill]] %s13375_s6 }
  0x38   :  { %14766 = sst [smem:[#allocation81_spill]] %s13380_s14 }
  0x39   :  { %14767 = sst [smem:[#allocation82_spill]] %s13385_s3 }
  0x3a   :  { %14768 = sst [smem:[#allocation83_spill]] %s13390_s19 }
  0x3b   :  { %s13395_s6 = sld [smem:[%s14709_s0 + %s13165_s22]]   ;;  %s13169_s22 = smov 32  }
  0x3c   :  { %s13400_s14 = sld [smem:[%s14709_s0 + %s13166_s28]]   ;;  %s13170_s28 = smov 33  }
  0x3d   :  { %s13405_s3 = sld [smem:[%s14709_s0 + %s13167_s7]]   ;;  %s13171_s7 = smov 34  }
  0x3e   :  { %s13410_s19 = sld [smem:[%s14709_s0 + %s13168_s15]]   ;;  %s13172_s15 = smov 35  }
  0x41   :  { %14769 = sst [smem:[#allocation84_spill]] %s13395_s6 }
  0x42   :  { %14770 = sst [smem:[#allocation85_spill]] %s13400_s14 }
  0x43   :  { %14771 = sst [smem:[#allocation86_spill]] %s13405_s3 }
  0x44   :  { %14772 = sst [smem:[#allocation87_spill]] %s13410_s19 }
  0x45   :  { %s13415_s6 = sld [smem:[%s14709_s0 + %s13169_s22]]   ;;  %s13173_s22 = smov 36  }
  0x46   :  { %s13420_s14 = sld [smem:[%s14709_s0 + %s13170_s28]]   ;;  %s13174_s28 = smov 37  }
  0x47   :  { %s13425_s3 = sld [smem:[%s14709_s0 + %s13171_s7]]   ;;  %s13175_s7 = smov 38  }
  0x48   :  { %s13430_s19 = sld [smem:[%s14709_s0 + %s13172_s15]]   ;;  %s13176_s15 = smov 39  }
  0x49   :  { %s13440_s12 = sld [smem:[%s14709_s0 + %s13174_s28]]   ;;  %s13178_s28 = smov 41  }
  0x4a   :  { %s13445_s8 = sld [smem:[%s14709_s0 + %s13175_s7]]   ;;  %s13179_s7 = smov 42  }
  0x4b   :  { %14773 = sst [smem:[#allocation88_spill]] %s13415_s6 }
  0x4c   :  { %s13435_s6 = sld [smem:[%s14709_s0 + %s13173_s22]]   ;;  %s13177_s22 = smov 40  }
  0x4d   :  { %s13450_s17 = sld [smem:[%s14709_s0 + %s13176_s15]]   ;;  %s13180_s15 = smov 43  }
  0x4e   :  { %s13460_s21 = sld [smem:[%s14709_s0 + %s13178_s28]]   ;;  %s13182_s28 = smov 45  }
  0x4f   :  { %s13470_s24 = sld [smem:[%s14709_s0 + %s13180_s15]]   ;;  %s13184_s15 = smov 47  }
  0x50   :  { %14775 = sst [smem:[#allocation90_spill]] %s13445_s8 }
  0x51   :  { %s13465_s8 = sld [smem:[%s14709_s0 + %s13179_s7]]   ;;  %s13183_s7 = smov 46  }
  0x52   :  { %14774 = sst [smem:[#allocation89_spill]] %s13435_s6 }
  0x53   :  { %s13455_s6 = sld [smem:[%s14709_s0 + %s13177_s22]]   ;;  %s13181_s22 = smov 44  }
  0x54   :  { %14776 = sst [smem:[#allocation91_spill]] %s13460_s21 }
  0x55   :  { %s13475_s30 = sld [smem:[%s14709_s0 + %s13181_s22]]   ;;  %s13185_s22 = smov 48  }
  0x56   :  { %s13480_s25 = sld [smem:[%s14709_s0 + %s13182_s28]]   ;;  %s13186_s28 = smov 49  }
  0x57   :  { %14777 = sst [smem:[#allocation92_spill]] %s13465_s8 }
  0x58   :  { %s13485_s29 = sld [smem:[%s14709_s0 + %s13183_s7]]   ;;  %s13187_s7 = smov 50  }
  0x59   :  { %s13490_s4 = sld [smem:[%s14709_s0 + %s13184_s15]]   ;;  %s13188_s15 = smov 51  }
  0x5a   :  { %s13495_s13 = sld [smem:[%s14709_s0 + %s13185_s22]]   ;;  %s13189_s22 = smov 52  }
  0x5b   :  { %14778 = sst [smem:[#allocation93_spill]] %s13475_s30 }
  0x5c   :  { %14779 = sst [smem:[#allocation94_spill]] %s13480_s25 }
  0x5d   :  { %s13500_s20 = sld [smem:[%s14709_s0 + %s13186_s28]]   ;;  %s13190_s28 = smov 53  }
  0x5e   :  { %s13505_s27 = sld [smem:[%s14709_s0 + %s13187_s7]]   ;;  %s13191_s7 = smov 54  }
  0x5f   :  { %14780 = sst [smem:[#allocation95_spill]] %s13490_s4 }
  0x60   :  { %s13510_s30 = sld [smem:[%s14709_s0 + %s13188_s15]]   ;;  %s13192_s15 = smov 55  }
  0x61   :  { %s13515_s8 = sld [smem:[%s14709_s0 + %s13189_s22]]   ;;  %s13193_s22 = smov 56  }
  0x62   :  { %s13520_s9 = sld [smem:[%s14709_s0 + %s13190_s28]]   ;;  %s13194_s28 = smov 57  }
  0x63   :  { %14781 = sst [smem:[#allocation96_spill]] %s13500_s20 }
  0x64   :  { %14782 = sst [smem:[#allocation97_spill]] %s13505_s27 }
  0x65   :  { %s13525_s27 = sld [smem:[%s14709_s0 + %s13191_s7]]   ;;  %s13195_s7 = smov 58  }
  0x66   :  { %s13530_s5 = sld [smem:[%s14709_s0 + %s13192_s15]]   ;;  %s13196_s15 = smov 59  }
  0x67   :  { %14783 = sst [smem:[#allocation98_spill]] %s13515_s8 }
  0x68   :  { %14784 = sst [smem:[#allocation99_spill]] %s13520_s9 }
  0x69   :  { %s13535_s8 = sld [smem:[%s14709_s0 + %s13193_s22]]   ;;  %s13197_s22 = smov 60  }
  0x6a   :  { %s13540_s9 = sld [smem:[%s14709_s0 + %s13194_s28]]   ;;  %s13198_s28 = smov 61  }
  0x6b   :  { %14785 = sst [smem:[#allocation100_spill]] %s13525_s27 }
  0x6c   :  { %s13545_s27 = sld [smem:[%s14709_s0 + %s13195_s7]]   ;;  %s13199_s7 = smov 62  }
  0x6d   :  { %s13550_s20 = sld [smem:[%s14709_s0 + %s13196_s15]]   ;;  %s13200_s15 = smov 63  }
  0x6e   :  { %s13565_s4 = sld [smem:[%s14709_s0 + %s13199_s7]]   ;;  %s13203_s7 = smov 66  }
  0x6f   :  { %14786 = sst [smem:[#allocation101_spill]] %s13535_s8 }
  0x70   :  { %14787 = sst [smem:[#allocation102_spill]] %s13540_s9 }
  0x71   :  { %s13555_s8 = sld [smem:[%s14709_s0 + %s13197_s22]]   ;;  %s13201_s22 = smov 64  }
  0x72   :  { %s13560_s9 = sld [smem:[%s14709_s0 + %s13198_s28]]   ;;  %s13202_s28 = smov 65  }
  0x73   :  { %14788 = sst [smem:[#allocation103_spill]] %s13550_s20 }
  0x74   :  { %14790 = sst [smem:[#allocation105_spill]] %s13565_s4 }
  0x75   :  { %s13570_s20 = sld [smem:[%s14709_s0 + %s13200_s15]]   ;;  %s13204_s15 = smov 67  }
  0x76   :  { %s13575_s25 = sld [smem:[%s14709_s0 + %s13201_s22]]   ;;  %s13205_s22 = smov 68  }
  0x77   :  { %s13585_s4 = sld [smem:[%s14709_s0 + %s13203_s7]]  }
  0x78   :  { %14789 = sst [smem:[#allocation104_spill]] %s13560_s9 }
  0x79   :  { %s13580_s9 = sld [smem:[%s14709_s0 + %s13202_s28]]   ;;  %s13206_s28 = smov 69  }
  0x7a   :  { %s13590_s21 = sld [smem:[%s14709_s0 + %s13204_s15]]  }
  0x7c   :  { %14791 = sst [smem:[#allocation106_spill]] %s13575_s25 }
  0x7d   :  { %s13595_s25 = sld [smem:[%s14709_s0 + %s13205_s22]]  }
  0x7f   :  { %14792 = sst [smem:[#allocation107_spill]] %s13580_s9 }
  0x80   :  { %s13600_s9 = sld [smem:[%s14709_s0 + %s13206_s28]]  }
  0x81   :  { %144 = vsyncpa [#allocation3], 0 }
  0x82   :  { %145 = vsyncpa [#allocation6], 0 }
  0x83   :  { %146 = vsyncpa [#allocation9], 0 }
  0x84   :  { %147 = vsyncpa [#allocation12], 0 }
  0x85   :  { %148 = vsyncpa [#allocation15], 0 }
  0x86   :  { %149 = vsyncpa [#allocation18], 0 }
  0x87   :  { %150 = vsyncpa [#allocation21], 0 }
  0x88   :  { %151 = vsyncpa [#allocation24], 0 }
  0x89   :  { %152 = vsyncpa [#allocation27], 0 }
  0x8a   :  { %153 = vsyncpa [#allocation30], 0 }
  0x8b   :  { %154 = vsyncpa [#allocation33], 0 }
  0x8c   :  { %155 = vsyncpa [#allocation36], 0 }
  0x8d   :  { %156 = vsyncpa [#allocation39], 0 }
  0x8e   :  { %157 = vsyncpa [#allocation4], 0  ;;  %s13207_s7 = smov [#allocation5]   ;;  %s13208_s10 = smov [#allocation8]  }
  0x8f   :  { %s240_s0 = sshll.u32 %s13207_s7, 4  ;;  %s262_s11 = sshll.u32 %s13208_s10, 4  ;;  %s241_s0 = int_to_ptr.vmem [resolvable:$true] %s240_s0  ;;  %s263_s11 = int_to_ptr.vmem [resolvable:$true] %s262_s11 }
  0x90   :  { %s12538_s15 = scalar_lea.hbm %s13425_s3, 16 }
  0x91   :  { %p12539_p0 = scmp.ne.s32.totalorder %s13425_s3, %s12538_s15  ;;  %p12542_p1 = scmp.lt.u32.totalorder %s12538_s15, %s13425_s3 }
  0x93   :  { %p12544_p2 = pnand %p12542_p1, %p12539_p0 }
  0x95   :  { %12547 = shalt.err (!%p12544_p2)
}
  0x96   :  { %s12548_s16 = scalar_lea.vmem %s241_s0, 16  ;;  %s12552_s18 = scalar_lea.vmem %s241_s0, 32 }
  0x97   :  { %p12549_p3 = scmp.ne.s32.totalorder %s241_s0, %s12548_s16  ;;  %p12553_p4 = scmp.lt.s32.totalorder %s241_s0, %s241_s0 }
  0x98   :  { %p12554_p5 = scmp.lt.s32.totalorder %s12552_s18, %s12548_s16 }
  0x9a   :  { %p12555_p6 = por %p12554_p5, %p12553_p4 }
  0x9c   :  { %p12556_p7 = pnand %p12555_p6, %p12549_p3 }
  0x9e   :  { %12559 = shalt.err (!%p12556_p7)
}
  0x9f   :  { %243 = dma.hbm_to_vmem [thread:$0]  %s13425_s3, 16, %s241_s0, [#allocation6]  }
  0xa0   :  { %s12560_s22 = scalar_lea.hbm %s13440_s12, 16 }
  0xa1   :  { %p12561_p8 = scmp.ne.s32.totalorder %s13440_s12, %s12560_s22  ;;  %p12564_p9 = scmp.lt.u32.totalorder %s12560_s22, %s13440_s12 }
  0xa3   :  { %p12566_p10 = pnand %p12564_p9, %p12561_p8 }
  0xa5   :  { %12569 = shalt.err (!%p12566_p10)
}
  0xa6   :  { %s12570_s23 = scalar_lea.vmem %s263_s11, 16  ;;  %s12574_s26 = scalar_lea.vmem %s263_s11, 32 }
  0xa7   :  { %p12571_p11 = scmp.ne.s32.totalorder %s263_s11, %s12570_s23  ;;  %p12575_p12 = scmp.lt.s32.totalorder %s263_s11, %s263_s11 }
  0xa8   :  { %p12576_p13 = scmp.lt.s32.totalorder %s12574_s26, %s12570_s23 }
  0xaa   :  { %p12577_p0 = por %p12576_p13, %p12575_p12 }
  0xac   :  { %p12578_p1 = pnand %p12577_p0, %p12571_p11 }
  0xae   :  { %12581 = shalt.err (!%p12578_p1)
}
  0xaf   :  { %265 = dma.hbm_to_vmem [thread:$0]  %s13440_s12, 16, %s263_s11, [#allocation9]  }
  0xb0   :  { %s13209_s28 = smov [#allocation11]   ;;  %s13210_s1 = smov [#allocation14]  }
  0xb1   :  { %s284_s3 = sshll.u32 %s13209_s28, 4  ;;  %s306_s2 = sshll.u32 %s13210_s1, 4  ;;  %s285_s3 = int_to_ptr.vmem [resolvable:$true] %s284_s3  ;;  %s307_s2 = int_to_ptr.vmem [resolvable:$true] %s306_s2 }
  0xb2   :  { %s12582_s7 = scalar_lea.hbm %s13455_s6, 16 }
  0xb3   :  { %p12583_p2 = scmp.ne.s32.totalorder %s13455_s6, %s12582_s7  ;;  %p12586_p3 = scmp.lt.u32.totalorder %s12582_s7, %s13455_s6 }
  0xb5   :  { %p12588_p4 = pnand %p12586_p3, %p12583_p2 }
  0xb7   :  { %12591 = shalt.err (!%p12588_p4)
}
  0xb8   :  { %s12592_s0 = scalar_lea.vmem %s285_s3, 16  ;;  %s12596_s10 = scalar_lea.vmem %s285_s3, 32 }
  0xb9   :  { %p12593_p5 = scmp.ne.s32.totalorder %s285_s3, %s12592_s0  ;;  %p12597_p6 = scmp.lt.s32.totalorder %s285_s3, %s285_s3 }
  0xba   :  { %p12598_p7 = scmp.lt.s32.totalorder %s12596_s10, %s12592_s0 }
  0xbc   :  { %p12599_p8 = por %p12598_p7, %p12597_p6 }
  0xbe   :  { %p12600_p9 = pnand %p12599_p8, %p12593_p5 }
  0xc0   :  { %12603 = shalt.err (!%p12600_p9)
}
  0xc1   :  { %287 = dma.hbm_to_vmem [thread:$0]  %s13455_s6, 16, %s285_s3, [#allocation12]  }
  0xc2   :  { %s12604_s12 = scalar_lea.hbm %s13470_s24, 16 }
  0xc3   :  { %p12605_p10 = scmp.ne.s32.totalorder %s13470_s24, %s12604_s12  ;;  %p12608_p11 = scmp.lt.u32.totalorder %s12604_s12, %s13470_s24 }
  0xc5   :  { %p12610_p12 = pnand %p12608_p11, %p12605_p10 }
  0xc7   :  { %12613 = shalt.err (!%p12610_p12)
}
  0xc8   :  { %s12614_s11 = scalar_lea.vmem %s307_s2, 16  ;;  %s12618_s15 = scalar_lea.vmem %s307_s2, 32 }
  0xc9   :  { %p12615_p13 = scmp.ne.s32.totalorder %s307_s2, %s12614_s11  ;;  %p12619_p0 = scmp.lt.s32.totalorder %s307_s2, %s307_s2 }
  0xca   :  { %p12620_p1 = scmp.lt.s32.totalorder %s12618_s15, %s12614_s11 }
  0xcc   :  { %p12621_p2 = por %p12620_p1, %p12619_p0 }
  0xce   :  { %p12622_p3 = pnand %p12621_p2, %p12615_p13 }
  0xd0   :  { %12625 = shalt.err (!%p12622_p3)
}
  0xd1   :  { %309 = dma.hbm_to_vmem [thread:$0]  %s13470_s24, 16, %s307_s2, [#allocation15]  }
  0xd2   :  { %s13211_s16 = smov [#allocation17]   ;;  %s13212_s18 = smov [#allocation20]  }
  0xd3   :  { %s328_s6 = sshll.u32 %s13211_s16, 4  ;;  %s348_s22 = sshll.u32 %s13212_s18, 4  ;;  %s329_s6 = int_to_ptr.vmem [resolvable:$true] %s328_s6  ;;  %s349_s22 = int_to_ptr.vmem [resolvable:$true] %s348_s22 }
  0xd4   :  { %s12626_s23 = scalar_lea.hbm %s13485_s29, 16 }
  0xd5   :  { %p12627_p4 = scmp.ne.s32.totalorder %s13485_s29, %s12626_s23  ;;  %p12630_p5 = scmp.lt.u32.totalorder %s12626_s23, %s13485_s29 }
  0xd7   :  { %p12632_p6 = pnand %p12630_p5, %p12627_p4 }
  0xd9   :  { %12635 = shalt.err (!%p12632_p6)
}
  0xda   :  { %s12636_s26 = scalar_lea.vmem %s329_s6, 16  ;;  %s12640_s28 = scalar_lea.vmem %s329_s6, 32 }
  0xdb   :  { %p12637_p7 = scmp.ne.s32.totalorder %s329_s6, %s12636_s26  ;;  %p12641_p8 = scmp.lt.s32.totalorder %s329_s6, %s329_s6 }
  0xdc   :  { %p12642_p9 = scmp.lt.s32.totalorder %s12640_s28, %s12636_s26 }
  0xde   :  { %p12643_p10 = por %p12642_p9, %p12641_p8 }
  0xe0   :  { %p12644_p11 = pnand %p12643_p10, %p12637_p7 }
  0xe2   :  { %12647 = shalt.err (!%p12644_p11)
}
  0xe3   :  { %331 = dma.hbm_to_vmem [thread:$0]  %s13485_s29, 16, %s329_s6, [#allocation18]  }
  0xe4   :  { %s12648_s24 = scalar_lea.hbm %s13495_s13, 16 }
  0xe5   :  { %p12649_p12 = scmp.ne.s32.totalorder %s13495_s13, %s12648_s24  ;;  %p12652_p13 = scmp.lt.u32.totalorder %s12648_s24, %s13495_s13 }
  0xe7   :  { %p12654_p0 = pnand %p12652_p13, %p12649_p12 }
  0xe9   :  { %12657 = shalt.err (!%p12654_p0)
}
  0xea   :  { %s12658_s3 = scalar_lea.vmem %s349_s22, 16  ;;  %s12662_s1 = scalar_lea.vmem %s349_s22, 32 }
  0xeb   :  { %p12659_p1 = scmp.ne.s32.totalorder %s349_s22, %s12658_s3  ;;  %p12663_p2 = scmp.lt.s32.totalorder %s349_s22, %s349_s22 }
  0xec   :  { %p12664_p3 = scmp.lt.s32.totalorder %s12662_s1, %s12658_s3 }
  0xee   :  { %p12665_p4 = por %p12664_p3, %p12663_p2 }
  0xf0   :  { %p12666_p5 = pnand %p12665_p4, %p12659_p1 }
  0xf2   :  { %12669 = shalt.err (!%p12666_p5)
}
  0xf3   :  { %351 = dma.hbm_to_vmem [thread:$0]  %s13495_s13, 16, %s349_s22, [#allocation21]  }
  0xf4   :  { %s13213_s2 = smov [#allocation23]   ;;  %s13214_s7 = smov [#allocation26]  }
  0xf5   :  { %s370_s29 = sshll.u32 %s13213_s2, 4  ;;  %s394_s0 = sshll.u32 %s13214_s7, 4  ;;  %s371_s29 = int_to_ptr.vmem [resolvable:$true] %s370_s29  ;;  %s395_s0 = int_to_ptr.vmem [resolvable:$true] %s394_s0 }
  0xf6   :  { %s12670_s10 = scalar_lea.hbm %s13510_s30, 16 }
  0xf7   :  { %p12671_p6 = scmp.ne.s32.totalorder %s13510_s30, %s12670_s10  ;;  %p12674_p7 = scmp.lt.u32.totalorder %s12670_s10, %s13510_s30 }
  0xf9   :  { %p12676_p8 = pnand %p12674_p7, %p12671_p6 }
  0xfb   :  { %12679 = shalt.err (!%p12676_p8)
}
  0xfc   :  { %s12680_s12 = scalar_lea.vmem %s371_s29, 16  ;;  %s12684_s11 = scalar_lea.vmem %s371_s29, 32 }
  0xfd   :  { %p12681_p9 = scmp.ne.s32.totalorder %s371_s29, %s12680_s12  ;;  %p12685_p10 = scmp.lt.s32.totalorder %s371_s29, %s371_s29 }
  0xfe   :  { %p12686_p11 = scmp.lt.s32.totalorder %s12684_s11, %s12680_s12 }
 0x100   :  { %p12687_p12 = por %p12686_p11, %p12685_p10 }
 0x102   :  { %p12688_p13 = pnand %p12687_p12, %p12681_p9 }
 0x104   :  { %12691 = shalt.err (!%p12688_p13)
}
 0x105   :  { %373 = dma.hbm_to_vmem [thread:$0]  %s13510_s30, 16, %s371_s29, [#allocation24]  }
 0x106   :  { %s12692_s13 = scalar_lea.hbm %s13530_s5, 16 }
 0x107   :  { %p12693_p0 = scmp.ne.s32.totalorder %s13530_s5, %s12692_s13  ;;  %p12696_p1 = scmp.lt.u32.totalorder %s12692_s13, %s13530_s5 }
 0x109   :  { %p12698_p2 = pnand %p12696_p1, %p12693_p0 }
 0x10b   :  { %12701 = shalt.err (!%p12698_p2)
}
 0x10c   :  { %s12702_s15 = scalar_lea.vmem %s395_s0, 16  ;;  %s12706_s16 = scalar_lea.vmem %s395_s0, 32 }
 0x10d   :  { %p12703_p3 = scmp.ne.s32.totalorder %s395_s0, %s12702_s15  ;;  %p12707_p4 = scmp.lt.s32.totalorder %s395_s0, %s395_s0 }
 0x10e   :  { %p12708_p5 = scmp.lt.s32.totalorder %s12706_s16, %s12702_s15 }
 0x110   :  { %p12709_p6 = por %p12708_p5, %p12707_p4 }
 0x112   :  { %p12710_p7 = pnand %p12709_p6, %p12703_p3 }
 0x114   :  { %12713 = shalt.err (!%p12710_p7)
}
 0x115   :  { %397 = dma.hbm_to_vmem [thread:$0]  %s13530_s5, 16, %s395_s0, [#allocation27]  }
 0x116   :  { %s13215_s6 = smov [#allocation29]   ;;  %s13216_s18 = smov [#allocation32]  }
 0x117   :  { %s416_s30 = sshll.u32 %s13215_s6, 4  ;;  %s436_s22 = sshll.u32 %s13216_s18, 4  ;;  %s417_s30 = int_to_ptr.vmem [resolvable:$true] %s416_s30  ;;  %s437_s22 = int_to_ptr.vmem [resolvable:$true] %s436_s22 }
 0x118   :  { %s12714_s23 = scalar_lea.hbm %s13545_s27, 16 }
 0x119   :  { %p12715_p8 = scmp.ne.s32.totalorder %s13545_s27, %s12714_s23  ;;  %p12718_p9 = scmp.lt.u32.totalorder %s12714_s23, %s13545_s27 }
 0x11b   :  { %p12720_p10 = pnand %p12718_p9, %p12715_p8 }
 0x11d   :  { %12723 = shalt.err (!%p12720_p10)
}
 0x11e   :  { %s12724_s26 = scalar_lea.vmem %s417_s30, 16  ;;  %s12728_s28 = scalar_lea.vmem %s417_s30, 32 }
 0x11f   :  { %p12725_p11 = scmp.ne.s32.totalorder %s417_s30, %s12724_s26  ;;  %p12729_p12 = scmp.lt.s32.totalorder %s417_s30, %s417_s30 }
 0x120   :  { %p12730_p13 = scmp.lt.s32.totalorder %s12728_s28, %s12724_s26 }
 0x122   :  { %p12731_p0 = por %p12730_p13, %p12729_p12 }
 0x124   :  { %p12732_p1 = pnand %p12731_p0, %p12725_p11 }
 0x126   :  { %12735 = shalt.err (!%p12732_p1)
}
 0x127   :  { %419 = dma.hbm_to_vmem [thread:$0]  %s13545_s27, 16, %s417_s30, [#allocation30]  }
 0x128   :  { %s12736_s5 = scalar_lea.hbm %s13555_s8, 16 }
 0x129   :  { %p12737_p2 = scmp.ne.s32.totalorder %s13555_s8, %s12736_s5  ;;  %p12740_p3 = scmp.lt.u32.totalorder %s12736_s5, %s13555_s8 }
 0x12b   :  { %p12742_p4 = pnand %p12740_p3, %p12737_p2 }
 0x12d   :  { %12745 = shalt.err (!%p12742_p4)
}
 0x12e   :  { %s12746_s24 = scalar_lea.vmem %s437_s22, 16  ;;  %s12750_s3 = scalar_lea.vmem %s437_s22, 32 }
 0x12f   :  { %p12747_p5 = scmp.ne.s32.totalorder %s437_s22, %s12746_s24  ;;  %p12751_p6 = scmp.lt.s32.totalorder %s437_s22, %s437_s22 }
 0x130   :  { %p12752_p7 = scmp.lt.s32.totalorder %s12750_s3, %s12746_s24 }
 0x132   :  { %p12753_p8 = por %p12752_p7, %p12751_p6 }
 0x134   :  { %p12754_p9 = pnand %p12753_p8, %p12747_p5 }
 0x136   :  { %12757 = shalt.err (!%p12754_p9)
}
 0x137   :  { %439 = dma.hbm_to_vmem [thread:$0]  %s13555_s8, 16, %s437_s22, [#allocation33]  }
 0x138   :  { %s13217_s1 = smov [#allocation35]   ;;  %s13218_s2 = smov [#allocation38]  }
 0x139   :  { %s458_s27 = sshll.u32 %s13217_s1, 4  ;;  %s480_s29 = sshll.u32 %s13218_s2, 4  ;;  %s459_s27 = int_to_ptr.vmem [resolvable:$true] %s458_s27  ;;  %s481_s29 = int_to_ptr.vmem [resolvable:$true] %s480_s29 }
 0x13a   :  { %s12758_s7 = scalar_lea.hbm %s13570_s20, 16 }
 0x13b   :  { %p12759_p10 = scmp.ne.s32.totalorder %s13570_s20, %s12758_s7  ;;  %p12762_p11 = scmp.lt.u32.totalorder %s12758_s7, %s13570_s20 }
 0x13d   :  { %p12764_p12 = pnand %p12762_p11, %p12759_p10 }
 0x13f   :  { %12767 = shalt.err (!%p12764_p12)
}
 0x140   :  { %s12768_s0 = scalar_lea.vmem %s459_s27, 16  ;;  %s12772_s10 = scalar_lea.vmem %s459_s27, 32 }
 0x141   :  { %p12769_p13 = scmp.ne.s32.totalorder %s459_s27, %s12768_s0  ;;  %p12773_p0 = scmp.lt.s32.totalorder %s459_s27, %s459_s27 }
 0x142   :  { %p12774_p1 = scmp.lt.s32.totalorder %s12772_s10, %s12768_s0 }
 0x144   :  { %p12775_p2 = por %p12774_p1, %p12773_p0 }
 0x146   :  { %p12776_p3 = pnand %p12775_p2, %p12769_p13 }
 0x148   :  { %12779 = shalt.err (!%p12776_p3)
}
 0x149   :  { %461 = dma.hbm_to_vmem [thread:$0]  %s13570_s20, 16, %s459_s27, [#allocation36]  }
 0x14a   :  { %s12780_s8 = scalar_lea.hbm %s13585_s4, 16 }
 0x14b   :  { %p12781_p4 = scmp.ne.s32.totalorder %s13585_s4, %s12780_s8  ;;  %p12784_p5 = scmp.lt.u32.totalorder %s12780_s8, %s13585_s4 }
 0x14d   :  { %p12786_p6 = pnand %p12784_p5, %p12781_p4 }
 0x14f   :  { %12789 = shalt.err (!%p12786_p6)
}
 0x150   :  { %s12790_s12 = scalar_lea.vmem %s481_s29, 16  ;;  %s12794_s11 = scalar_lea.vmem %s481_s29, 32 }
 0x151   :  { %p12791_p7 = scmp.ne.s32.totalorder %s481_s29, %s12790_s12  ;;  %p12795_p8 = scmp.lt.s32.totalorder %s481_s29, %s481_s29 }
 0x152   :  { %p12796_p9 = scmp.lt.s32.totalorder %s12794_s11, %s12790_s12 }
 0x154   :  { %p12797_p10 = por %p12796_p9, %p12795_p8 }
 0x156   :  { %p12798_p11 = pnand %p12797_p10, %p12791_p7 }
 0x158   :  { %12801 = shalt.err (!%p12798_p11)
}
 0x159   :  { %483 = dma.hbm_to_vmem [thread:$0]  %s13585_s4, 16, %s481_s29, [#allocation39]  }
 0x15a   :  { %s13219_s13 = smov [#allocation2]   ;;  %s13220_s15 = smov [#allocation7]  }
 0x15b   :  { %s230_s20 = sshll.u32 %s13219_s13, 4  ;;  %s250_s16 = sshll.u32 %s13220_s15, 4  ;;  %s231_s20 = int_to_ptr.vmem [resolvable:$true] %s230_s20  ;;  %s251_s16 = int_to_ptr.vmem [resolvable:$true] %s250_s16 }
 0x15c   :  { %s12802_s6 = scalar_lea.hbm %s13420_s14, 16 }
 0x15d   :  { %p12803_p12 = scmp.ne.s32.totalorder %s13420_s14, %s12802_s6  ;;  %p12806_p13 = scmp.lt.u32.totalorder %s12802_s6, %s13420_s14 }
 0x15f   :  { %p12808_p0 = pnand %p12806_p13, %p12803_p12 }
 0x161   :  { %12811 = shalt.err (!%p12808_p0)
}
 0x162   :  { %s12812_s30 = scalar_lea.vmem %s231_s20, 16  ;;  %s12816_s18 = scalar_lea.vmem %s231_s20, 32 }
 0x163   :  { %p12813_p1 = scmp.ne.s32.totalorder %s231_s20, %s12812_s30  ;;  %p12817_p2 = scmp.lt.s32.totalorder %s231_s20, %s231_s20 }
 0x164   :  { %p12818_p3 = scmp.lt.s32.totalorder %s12816_s18, %s12812_s30 }
 0x166   :  { %p12819_p4 = por %p12818_p3, %p12817_p2 }
 0x168   :  { %p12820_p5 = pnand %p12819_p4, %p12813_p1 }
 0x16a   :  { %12823 = shalt.err (!%p12820_p5)
}
 0x16b   :  { %233 = dma.hbm_to_vmem [thread:$0]  %s13420_s14, 16, %s231_s20, [#allocation3]  }
 0x16c   :  { %s12824_s4 = scalar_lea.hbm %s13430_s19, 16 }
 0x16d   :  { %p12825_p6 = scmp.ne.s32.totalorder %s13430_s19, %s12824_s4  ;;  %p12828_p7 = scmp.lt.u32.totalorder %s12824_s4, %s13430_s19 }
 0x16f   :  { %p12830_p8 = pnand %p12828_p7, %p12825_p6 }
 0x171   :  { %12833 = shalt.err (!%p12830_p8)
}
 0x172   :  { %s12834_s22 = scalar_lea.vmem %s251_s16, 16  ;;  %s12838_s23 = scalar_lea.vmem %s251_s16, 32 }
 0x173   :  { %p12835_p9 = scmp.ne.s32.totalorder %s251_s16, %s12834_s22  ;;  %p12839_p10 = scmp.lt.s32.totalorder %s251_s16, %s251_s16 }
 0x174   :  { %p12840_p11 = scmp.lt.s32.totalorder %s12838_s23, %s12834_s22 }
 0x176   :  { %p12841_p12 = por %p12840_p11, %p12839_p10 }
 0x178   :  { %p12842_p13 = pnand %p12841_p12, %p12835_p9 }
 0x17a   :  { %12845 = shalt.err (!%p12842_p13)
}
 0x17b   :  { %253 = dma.hbm_to_vmem [thread:$0]  %s13430_s19, 16, %s251_s16, [#allocation6]  }
 0x17c   :  { %s13221_s26 = smov [#allocation10]   ;;  %s13222_s28 = smov [#allocation13]  }
 0x17d   :  { %s274_s14 = sshll.u32 %s13221_s26, 4  ;;  %s294_s5 = sshll.u32 %s13222_s28, 4  ;;  %s275_s14 = int_to_ptr.vmem [resolvable:$true] %s274_s14  ;;  %s295_s5 = int_to_ptr.vmem [resolvable:$true] %s294_s5 }
 0x17e   :  { %s12846_s24 = scalar_lea.hbm %s13450_s17, 16 }
 0x17f   :  { %p12847_p0 = scmp.ne.s32.totalorder %s13450_s17, %s12846_s24  ;;  %p12850_p1 = scmp.lt.u32.totalorder %s12846_s24, %s13450_s17 }
 0x181   :  { %p12852_p2 = pnand %p12850_p1, %p12847_p0 }
 0x183   :  { %12855 = shalt.err (!%p12852_p2)
}
 0x184   :  { %s12856_s3 = scalar_lea.vmem %s275_s14, 16  ;;  %s12860_s1 = scalar_lea.vmem %s275_s14, 32 }
 0x185   :  { %p12857_p3 = scmp.ne.s32.totalorder %s275_s14, %s12856_s3  ;;  %p12861_p4 = scmp.lt.s32.totalorder %s275_s14, %s275_s14 }
 0x186   :  { %p12862_p5 = scmp.lt.s32.totalorder %s12860_s1, %s12856_s3 }
 0x188   :  { %p12863_p6 = por %p12862_p5, %p12861_p4 }
 0x18a   :  { %p12864_p7 = pnand %p12863_p6, %p12857_p3 }
 0x18c   :  { %12867 = shalt.err (!%p12864_p7)
}
 0x18d   :  { %s14793_s19 = sld [smem:[#allocation91_spill]] }
 0x18e   :  { %277 = dma.hbm_to_vmem [thread:$0]  %s13450_s17, 16, %s275_s14, [#allocation9]  }
 0x193   :  { %s12868_s27 = scalar_lea.hbm %s14793_s19, 16 }
 0x194   :  { %p12869_p8 = scmp.ne.s32.totalorder %s14793_s19, %s12868_s27  ;;  %p12872_p9 = scmp.lt.u32.totalorder %s12868_s27, %s14793_s19 }
 0x196   :  { %p12874_p10 = pnand %p12872_p9, %p12869_p8 }
 0x198   :  { %12877 = shalt.err (!%p12874_p10)
}
 0x199   :  { %s12878_s2 = scalar_lea.vmem %s295_s5, 16  ;;  %s12882_s29 = scalar_lea.vmem %s295_s5, 32 }
 0x19a   :  { %p12879_p11 = scmp.ne.s32.totalorder %s295_s5, %s12878_s2  ;;  %p12883_p12 = scmp.lt.s32.totalorder %s295_s5, %s295_s5 }
 0x19b   :  { %p12884_p13 = scmp.lt.s32.totalorder %s12882_s29, %s12878_s2 }
 0x19d   :  { %p12885_p0 = por %p12884_p13, %p12883_p12 }
 0x19f   :  { %p12886_p1 = pnand %p12885_p0, %p12879_p11 }
 0x1a1   :  { %12889 = shalt.err (!%p12886_p1)
}
 0x1a2   :  { %s14794_s7 = sld [smem:[#allocation94_spill]]  ;;  %s13223_s0 = smov [#allocation16]  }
 0x1a3   :  { %297 = dma.hbm_to_vmem [thread:$0]  %s14793_s19, 16, %s295_s5, [#allocation12]  }
 0x1a4   :  { %s318_s17 = sshll.u32 %s13223_s0, 4  ;;  %s13224_s10 = smov [#allocation19]   ;;  %s319_s17 = int_to_ptr.vmem [resolvable:$true] %s318_s17 }
 0x1a5   :  { %s338_s8 = sshll.u32 %s13224_s10, 4  ;;  %s339_s8 = int_to_ptr.vmem [resolvable:$true] %s338_s8 }
 0x1a8   :  { %s12890_s12 = scalar_lea.hbm %s14794_s7, 16 }
 0x1a9   :  { %p12891_p2 = scmp.ne.s32.totalorder %s14794_s7, %s12890_s12  ;;  %p12894_p3 = scmp.lt.u32.totalorder %s12890_s12, %s14794_s7 }
 0x1ab   :  { %p12896_p4 = pnand %p12894_p3, %p12891_p2 }
 0x1ad   :  { %12899 = shalt.err (!%p12896_p4)
}
 0x1ae   :  { %s12900_s11 = scalar_lea.vmem %s319_s17, 16  ;;  %s12904_s13 = scalar_lea.vmem %s319_s17, 32 }
 0x1af   :  { %p12901_p5 = scmp.ne.s32.totalorder %s319_s17, %s12900_s11  ;;  %p12905_p6 = scmp.lt.s32.totalorder %s319_s17, %s319_s17 }
 0x1b0   :  { %p12906_p7 = scmp.lt.s32.totalorder %s12904_s13, %s12900_s11 }
 0x1b2   :  { %p12907_p8 = por %p12906_p7, %p12905_p6 }
 0x1b4   :  { %p12908_p9 = pnand %p12907_p8, %p12901_p5 }
 0x1b6   :  { %12911 = shalt.err (!%p12908_p9)
}
 0x1b7   :  { %s14795_s20 = sld [smem:[#allocation95_spill]] }
 0x1b8   :  { %321 = dma.hbm_to_vmem [thread:$0]  %s14794_s7, 16, %s319_s17, [#allocation15]  }
 0x1bd   :  { %s12912_s15 = scalar_lea.hbm %s14795_s20, 16 }
 0x1be   :  { %p12913_p10 = scmp.ne.s32.totalorder %s14795_s20, %s12912_s15  ;;  %p12916_p11 = scmp.lt.u32.totalorder %s12912_s15, %s14795_s20 }
 0x1c0   :  { %p12918_p12 = pnand %p12916_p11, %p12913_p10 }
 0x1c2   :  { %12921 = shalt.err (!%p12918_p12)
}
 0x1c3   :  { %s12922_s16 = scalar_lea.vmem %s339_s8, 16  ;;  %s12926_s6 = scalar_lea.vmem %s339_s8, 32 }
 0x1c4   :  { %p12923_p13 = scmp.ne.s32.totalorder %s339_s8, %s12922_s16  ;;  %p12927_p0 = scmp.lt.s32.totalorder %s339_s8, %s339_s8 }
 0x1c5   :  { %p12928_p1 = scmp.lt.s32.totalorder %s12926_s6, %s12922_s16 }
 0x1c7   :  { %p12929_p2 = por %p12928_p1, %p12927_p0 }
 0x1c9   :  { %p12930_p3 = pnand %p12929_p2, %p12923_p13 }
 0x1cb   :  { %12933 = shalt.err (!%p12930_p3)
}
 0x1cc   :  { %s14796_s30 = sld [smem:[#allocation96_spill]]  ;;  %s13225_s18 = smov [#allocation22]  }
 0x1cd   :  { %341 = dma.hbm_to_vmem [thread:$0]  %s14795_s20, 16, %s339_s8, [#allocation18]  }
 0x1ce   :  { %s358_s4 = sshll.u32 %s13225_s18, 4  ;;  %s13226_s22 = smov [#allocation25]   ;;  %s359_s4 = int_to_ptr.vmem [resolvable:$true] %s358_s4 }
 0x1cf   :  { %s382_s23 = sshll.u32 %s13226_s22, 4  ;;  %s383_s23 = int_to_ptr.vmem [resolvable:$true] %s382_s23 }
 0x1d2   :  { %s12934_s26 = scalar_lea.hbm %s14796_s30, 16 }
 0x1d3   :  { %p12935_p4 = scmp.ne.s32.totalorder %s14796_s30, %s12934_s26  ;;  %p12938_p5 = scmp.lt.u32.totalorder %s12934_s26, %s14796_s30 }
 0x1d5   :  { %p12940_p6 = pnand %p12938_p5, %p12935_p4 }
 0x1d7   :  { %12943 = shalt.err (!%p12940_p6)
}
 0x1d8   :  { %s12944_s14 = scalar_lea.vmem %s359_s4, 16  ;;  %s12948_s28 = scalar_lea.vmem %s359_s4, 32 }
 0x1d9   :  { %p12945_p7 = scmp.ne.s32.totalorder %s359_s4, %s12944_s14  ;;  %p12949_p8 = scmp.lt.s32.totalorder %s359_s4, %s359_s4 }
 0x1da   :  { %p12950_p9 = scmp.lt.s32.totalorder %s12948_s28, %s12944_s14 }
 0x1dc   :  { %p12951_p10 = por %p12950_p9, %p12949_p8 }
 0x1de   :  { %p12952_p11 = pnand %p12951_p10, %p12945_p7 }
 0x1e0   :  { %12955 = shalt.err (!%p12952_p11)
}
 0x1e1   :  { %s14797_s5 = sld [smem:[#allocation99_spill]] }
 0x1e2   :  { %361 = dma.hbm_to_vmem [thread:$0]  %s14796_s30, 16, %s359_s4, [#allocation21]  }
 0x1e7   :  { %s12956_s24 = scalar_lea.hbm %s14797_s5, 16 }
 0x1e8   :  { %p12957_p12 = scmp.ne.s32.totalorder %s14797_s5, %s12956_s24  ;;  %p12960_p13 = scmp.lt.u32.totalorder %s12956_s24, %s14797_s5 }
 0x1ea   :  { %p12962_p0 = pnand %p12960_p13, %p12957_p12 }
 0x1ec   :  { %12965 = shalt.err (!%p12962_p0)
}
 0x1ed   :  { %s12966_s3 = scalar_lea.vmem %s383_s23, 16  ;;  %s12970_s1 = scalar_lea.vmem %s383_s23, 32 }
 0x1ee   :  { %p12967_p1 = scmp.ne.s32.totalorder %s383_s23, %s12966_s3  ;;  %p12971_p2 = scmp.lt.s32.totalorder %s383_s23, %s383_s23 }
 0x1ef   :  { %p12972_p3 = scmp.lt.s32.totalorder %s12970_s1, %s12966_s3 }
 0x1f1   :  { %p12973_p4 = por %p12972_p3, %p12971_p2 }
 0x1f3   :  { %p12974_p5 = pnand %p12973_p4, %p12967_p1 }
 0x1f5   :  { %12977 = shalt.err (!%p12974_p5)
}
 0x1f6   :  { %s14798_s19 = sld [smem:[#allocation102_spill]]  ;;  %s13227_s27 = smov [#allocation28]  }
 0x1f7   :  { %385 = dma.hbm_to_vmem [thread:$0]  %s14797_s5, 16, %s383_s23, [#allocation24]  }
 0x1f8   :  { %s406_s2 = sshll.u32 %s13227_s27, 4  ;;  %s13228_s29 = smov [#allocation31]   ;;  %s407_s2 = int_to_ptr.vmem [resolvable:$true] %s406_s2 }
 0x1f9   :  { %s426_s7 = sshll.u32 %s13228_s29, 4  ;;  %s427_s7 = int_to_ptr.vmem [resolvable:$true] %s426_s7 }
 0x1fc   :  { %s12978_s0 = scalar_lea.hbm %s14798_s19, 16 }
 0x1fd   :  { %p12979_p6 = scmp.ne.s32.totalorder %s14798_s19, %s12978_s0  ;;  %p12982_p7 = scmp.lt.u32.totalorder %s12978_s0, %s14798_s19 }
 0x1ff   :  { %p12984_p8 = pnand %p12982_p7, %p12979_p6 }
 0x201   :  { %12987 = shalt.err (!%p12984_p8)
}
 0x202   :  { %s12988_s17 = scalar_lea.vmem %s407_s2, 16  ;;  %s12992_s10 = scalar_lea.vmem %s407_s2, 32 }
 0x203   :  { %p12989_p9 = scmp.ne.s32.totalorder %s407_s2, %s12988_s17  ;;  %p12993_p10 = scmp.lt.s32.totalorder %s407_s2, %s407_s2 }
 0x204   :  { %p12994_p11 = scmp.lt.s32.totalorder %s12992_s10, %s12988_s17 }
 0x206   :  { %p12995_p12 = por %p12994_p11, %p12993_p10 }
 0x208   :  { %p12996_p13 = pnand %p12995_p12, %p12989_p9 }
 0x20a   :  { %12999 = shalt.err (!%p12996_p13)
}
 0x20b   :  { %s14799_s8 = sld [smem:[#allocation103_spill]] }
 0x20c   :  { %409 = dma.hbm_to_vmem [thread:$0]  %s14798_s19, 16, %s407_s2, [#allocation27]  }
 0x211   :  { %s13000_s12 = scalar_lea.hbm %s14799_s8, 16 }
 0x212   :  { %p13001_p0 = scmp.ne.s32.totalorder %s14799_s8, %s13000_s12  ;;  %p13004_p1 = scmp.lt.u32.totalorder %s13000_s12, %s14799_s8 }
 0x214   :  { %p13006_p2 = pnand %p13004_p1, %p13001_p0 }
 0x216   :  { %13009 = shalt.err (!%p13006_p2)
}
 0x217   :  { %s13010_s11 = scalar_lea.vmem %s427_s7, 16  ;;  %s13014_s13 = scalar_lea.vmem %s427_s7, 32 }
 0x218   :  { %p13011_p3 = scmp.ne.s32.totalorder %s427_s7, %s13010_s11  ;;  %p13015_p4 = scmp.lt.s32.totalorder %s427_s7, %s427_s7 }
 0x219   :  { %p13016_p5 = scmp.lt.s32.totalorder %s13014_s13, %s13010_s11 }
 0x21b   :  { %p13017_p6 = por %p13016_p5, %p13015_p4 }
 0x21d   :  { %p13018_p7 = pnand %p13017_p6, %p13011_p3 }
 0x21f   :  { %13021 = shalt.err (!%p13018_p7)
}
 0x220   :  { %s14800_s20 = sld [smem:[#allocation104_spill]]  ;;  %s13229_s15 = smov [#allocation34]  }
 0x221   :  { %429 = dma.hbm_to_vmem [thread:$0]  %s14799_s8, 16, %s427_s7, [#allocation30]  }
 0x222   :  { %s446_s16 = sshll.u32 %s13229_s15, 4  ;;  %s13230_s6 = smov [#allocation37]   ;;  %s447_s16 = int_to_ptr.vmem [resolvable:$true] %s446_s16 }
 0x223   :  { %s470_s30 = sshll.u32 %s13230_s6, 4  ;;  %s471_s30 = int_to_ptr.vmem [resolvable:$true] %s470_s30 }
 0x226   :  { %s13022_s18 = scalar_lea.hbm %s14800_s20, 16 }
 0x227   :  { %p13023_p8 = scmp.ne.s32.totalorder %s14800_s20, %s13022_s18  ;;  %p13026_p9 = scmp.lt.u32.totalorder %s13022_s18, %s14800_s20 }
 0x229   :  { %p13028_p10 = pnand %p13026_p9, %p13023_p8 }
 0x22b   :  { %13031 = shalt.err (!%p13028_p10)
}
 0x22c   :  { %s13032_s4 = scalar_lea.vmem %s447_s16, 16  ;;  %s13036_s22 = scalar_lea.vmem %s447_s16, 32 }
 0x22d   :  { %p13033_p11 = scmp.ne.s32.totalorder %s447_s16, %s13032_s4  ;;  %p13037_p12 = scmp.lt.s32.totalorder %s447_s16, %s447_s16 }
 0x22e   :  { %p13038_p13 = scmp.lt.s32.totalorder %s13036_s22, %s13032_s4 }
 0x230   :  { %p13039_p0 = por %p13038_p13, %p13037_p12 }
 0x232   :  { %p13040_p1 = pnand %p13039_p0, %p13033_p11 }
 0x234   :  { %13043 = shalt.err (!%p13040_p1)
}
 0x235   :  { %s14801_s23 = sld [smem:[#allocation107_spill]] }
 0x236   :  { %449 = dma.hbm_to_vmem [thread:$0]  %s14800_s20, 16, %s447_s16, [#allocation33]  }
 0x23b   :  { %s13044_s26 = scalar_lea.hbm %s14801_s23, 16 }
 0x23c   :  { %p13045_p2 = scmp.ne.s32.totalorder %s14801_s23, %s13044_s26  ;;  %p13048_p3 = scmp.lt.u32.totalorder %s13044_s26, %s14801_s23 }
 0x23e   :  { %p13050_p4 = pnand %p13048_p3, %p13045_p2 }
 0x240   :  { %13053 = shalt.err (!%p13050_p4)
}
 0x241   :  { %s13054_s14 = scalar_lea.vmem %s471_s30, 16  ;;  %s13058_s28 = scalar_lea.vmem %s471_s30, 32 }
 0x242   :  { %p13055_p5 = scmp.ne.s32.totalorder %s471_s30, %s13054_s14  ;;  %p13059_p6 = scmp.lt.s32.totalorder %s471_s30, %s471_s30 }
 0x243   :  { %p13060_p7 = scmp.lt.s32.totalorder %s13058_s28, %s13054_s14 }
 0x245   :  { %p13061_p8 = por %p13060_p7, %p13059_p6 }
 0x247   :  { %p13062_p9 = pnand %p13061_p8, %p13055_p5 }
 0x249   :  { %13065 = shalt.err (!%p13062_p9)
}
 0x24a   :  { %473 = dma.hbm_to_vmem [thread:$0]  %s14801_s23, 16, %s471_s30, [#allocation36]  }
 0x24b   :  { %s13231_s5 = smov [#allocation40]   ;;  %s13066_s3 = scalar_lea.hbm %s13590_s21, 16 }
 0x24c   :  { %s490_s24 = sshll.u32 %s13231_s5, 4  ;;  %p13067_p10 = scmp.ne.s32.totalorder %s13590_s21, %s13066_s3  ;;  %s491_s24 = int_to_ptr.vmem [resolvable:$true] %s490_s24 }
 0x24d   :  { %p13070_p11 = scmp.lt.u32.totalorder %s13066_s3, %s13590_s21 }
 0x24f   :  { %p13072_p12 = pnand %p13070_p11, %p13067_p10 }
 0x251   :  { %13075 = shalt.err (!%p13072_p12)
}
 0x252   :  { %s13076_s1 = scalar_lea.vmem %s491_s24, 16  ;;  %s13080_s19 = scalar_lea.vmem %s491_s24, 32 }
 0x253   :  { %p13077_p13 = scmp.ne.s32.totalorder %s491_s24, %s13076_s1  ;;  %p13081_p0 = scmp.lt.s32.totalorder %s491_s24, %s491_s24 }
 0x254   :  { %p13082_p1 = scmp.lt.s32.totalorder %s13080_s19, %s13076_s1 }
 0x256   :  { %p13083_p2 = por %p13082_p1, %p13081_p0 }
 0x258   :  { %p13084_p3 = pnand %p13083_p2, %p13077_p13 }
 0x25a   :  { %13087 = shalt.err (!%p13084_p3)
}
 0x25b   :  { %493 = dma.hbm_to_vmem [thread:$0]  %s13590_s21, 16, %s491_s24, [#allocation39]  }
 0x25c   :  { %13110 = dma.done.wait [#allocation3], 16  }
 0x25d   :  { %13111 = vsyncadd [#allocation3], 4294967280 }
 0x25e   :  { %13112 = dma.done.wait [#allocation6], 32  }
 0x25f   :  { %13113 = vsyncadd [#allocation6], 4294967264 }
 0x260   :  { %13114 = dma.done.wait [#allocation9], 32  }
 0x261   :  { %13115 = vsyncadd [#allocation9], 4294967264 }
 0x262   :  { %13116 = dma.done.wait [#allocation12], 32  }
 0x263   :  { %13117 = vsyncadd [#allocation12], 4294967264 }
 0x264   :  { %13118 = dma.done.wait [#allocation15], 32  }
 0x265   :  { %13119 = vsyncadd [#allocation15], 4294967264 }
 0x266   :  { %13120 = dma.done.wait [#allocation18], 32  }
 0x267   :  { %13121 = vsyncadd [#allocation18], 4294967264 }
 0x268   :  { %13122 = dma.done.wait [#allocation21], 32  }
 0x269   :  { %13123 = vsyncadd [#allocation21], 4294967264 }
 0x26a   :  { %13124 = dma.done.wait [#allocation24], 32  }
 0x26b   :  { %13125 = vsyncadd [#allocation24], 4294967264 }
 0x26c   :  { %13126 = dma.done.wait [#allocation27], 32  }
 0x26d   :  { %13127 = vsyncadd [#allocation27], 4294967264 }
 0x26e   :  { %13128 = dma.done.wait [#allocation30], 32  }
 0x26f   :  { %13129 = vsyncadd [#allocation30], 4294967264 }
 0x270   :  { %13130 = dma.done.wait [#allocation33], 32  }
 0x271   :  { %13131 = vsyncadd [#allocation33], 4294967264 }
 0x272   :  { %13132 = dma.done.wait [#allocation36], 32  }
 0x273   :  { %13133 = vsyncadd [#allocation36], 4294967264 }
 0x274   :  { %13134 = dma.done.wait [#allocation39], 32  }
 0x275   :  { %13135 = vsyncadd [#allocation39], 4294967264  ;;  %s14802_s21 = sld [smem:[#allocation98_spill]]  ;;  %s14803_s27 = sld [smem:[#allocation56_spill]]  ;;  %vm587_vm0 = vcmask 261120   ;;  %vm681_vm1 = vcmask 64512  }
 0x276   :  { %v9949_v8 = vld [vmem:[#allocation23] ss:$0 sm:$0xff]  ;;  %s13232_s2 = smov 96   ;;  %s13233_s29 = smov 120   ;;  %vm13740_vm2 = vmpackc.low %vm681_vm1, %vm681_vm1  ;;  %vm767_vm3 = vcmask 130048   ;;  %vm13244_vm12 = vmmov 0  }
 0x277   :  { %s13234_s7 = smov 88   ;;  %s13235_s0 = smov 80   ;;  %vm9851_vm13 = vcmask 74752  }
 0x278   :  { %s13236_s17 = smov 112   ;;  %s14806_s10 = sld [smem:[#allocation57_spill]] }
 0x279   :  { %s13237_s8 = smov 56   ;;  %s13238_s12 = smov 72  }
 0x27a   :  { %s13239_s11 = smov 64   ;;  %s13240_s13 = smov 104  }
 0x27b   :  { %v576_v0 = vld [vmem:[%s14802_s21] sm:$0xff]  ;;  %v577_v1 = vld [vmem:[%s14802_s21 + $0x8] sm:$0xff]  ;;  %v578_v2 = vld [vmem:[%s14802_s21 + $0x10] sm:$0xff]  ;;  %s13241_s20 = smov 48   ;;  %s13242_s15 = smov 40  }
 0x27c   :  { %v11390_v3 = vpack.c.bf16 %v577_v1, %v576_v0  ;;  %v579_v4 = vld [vmem:[%s14802_s21 + $0x18] sm:$0xff]  ;;  %v13707_v5 = vld [vmem:[%s14803_s27] sm:$0xff]  ;;  %v13712_v7 = vld [vmem:[%s14803_s27 + $0x8] sm:$0xff]  ;;  %s14807_s16 = sld [smem:[#allocation97_spill]]  ;;  %s14808_s6 = sld [smem:[#allocation92_spill]] }
 0x27d   :  { %v11394_v6 = vpack.c.bf16 %v579_v4, %v578_v2  ;;  %10652 = vmatprep.mubr.msk.f32.mxu1 %vm587_vm0, %v13707_v5  ;;  %s14809_s30 = sld [smem:[#allocation93_spill]]  ;;  %s14810_s18 = sld [smem:[#allocation106_spill]] }
 0x27e   :  { %11391 = vmatprep.subr.bf16.mxu1 %v11390_v3  ;;  %v13763_v33 = vld [vmem:[%s14806_s10 + $0x8] sm:$0xff]  ;;  %v13766_v34 = vld [vmem:[%s14806_s10] sm:$0xff]  ;;  %s14811_s4 = sld [smem:[#allocation105_spill]]  ;;  %s14812_s22 = sld [smem:[#allocation100_spill]] }
 0x27f   :  { %11393 = vmatpush3.bf16.msra.mxu1 %v11390_v3  ;;  %s14813_s23 = sld [smem:[#allocation76_spill]]  ;;  %s14814_s26 = sld [smem:[#allocation101_spill]] }
 0x280   :  { %11395 = vmatprep.subr.bf16.mxu1 %v11394_v6  ;;  %s14815_s14 = sld [smem:[#allocation75_spill]]  ;;  %s14816_s28 = sld [smem:[#allocation74_spill]] }
 0x281   :  { %s14817_s5 = sld [smem:[#allocation73_spill]]  ;;  %s14818_s24 = sld [smem:[#allocation62_spill]] }
 0x282   :  { %s14819_s3 = sld [smem:[#allocation61_spill]]  ;;  %s14820_s1 = sld [smem:[#allocation68_spill]] }
 0x283   :  { %11397 = vmatpush3.bf16.msra.mxu1 %v11394_v6  ;;  %s14821_s19 = sld [smem:[#allocation67_spill]]  ;;  %s14822_s21 = sld [smem:[#allocation60_spill]] }
 0x286   :  { %10653 = vmatmul.mubr.msk.f32.vlgmr.msra.gmra.mrb[0].mxu1 %vm587_vm0, %v13712_v7 }
 0x359   :  { %v10654_v9 = vpop.f32.mrb[0].mxu1 }
 0x35a   :  { %v666_v10 = vadd.f32 %v10654_v9, %v9949_v8  ;;  %v660_v11 = vpop.f32.mrb[1].mxu1 }
 0x35b   :  { %v661_v12 = vadd.f32 %v9949_v8, %v660_v11 }
 0x35c   :  { %v13726_v15 = vmul.f32 0.35355338, %v666_v10 }
 0x35d   :  { %v13716_v13 = vpack.i.bf16 %v666_v10, %v661_v12  ;;  %v13718_v14 = vmul.f32 0.35355338, %v661_v12 }
 0x35f   :  { %12009 = vrot.lane.b32.xlu0 %v13716_v13, %s13232_s2  ;;  %877 = vrot.lane.b32.xlu1 %v13718_v14, %s13233_s29 }
 0x360   :  { %10659 = vmatprep.mubr.msk.f32.mxu1 %vm681_vm1, %v13718_v14 }
 0x363   :  { %12014 = vrot.lane.b32.xlu0 %v13716_v13, %s13234_s7  ;;  %879 = vrot.lane.b32.xlu1 %v13726_v15, %s13233_s29 }
 0x367   :  { %12019 = vrot.lane.b32.xlu0 %v13716_v13, %s13235_s0  ;;  %1239 = vrot.lane.b32.xlu1 %v13718_v14, %s13236_s17 }
 0x36b   :  { %1241 = vrot.lane.b32.xlu0 %v13726_v15, %s13236_s17 }
 0x3d1   :  { %v12010_v16 = vpop.permute.xlu0 %12009  ;;  %v878_v26 = vpop.permute.xlu1 %877 }
 0x3d2   :  { %v12012_v17 = vunpack.i.h.bf16 %v12010_v16  ;;  %v12011_v18 = vunpack.i.l.bf16 %v12010_v16 }
 0x3d4   :  { %v11398_v20 = vpack.c.bf16 %v12012_v17, %v12011_v18 }
 0x3d5   :  { %v12015_v21 = vpop.permute.xlu0 %12014  ;;  %v880_v30 = vpop.permute.xlu1 %879 }
 0x3d6   :  { %v12017_v22 = vunpack.i.h.bf16 %v12015_v21  ;;  %v12016_v23 = vunpack.i.l.bf16 %v12015_v21  ;;  %11400 = vmatprep.subr.msk.bf16.mxu1 %vm13740_vm2, %v11398_v20 }
 0x3d7   :  { %11403 = vmatpush3.bf16.xpose.msk.msra.mxu1 %vm13740_vm2, %v11398_v20 }
 0x3d8   :  { %v11408_v24 = vpack.c.bf16 %v12017_v22, %v12016_v23 }
 0x3d9   :  { %v12020_v25 = vpop.permute.xlu0 %12019  ;;  %v1240_v31 = vpop.permute.xlu1 %1239 }
 0x3da   :  { %v12022_v27 = vunpack.i.h.bf16 %v12020_v25  ;;  %v12021_v28 = vunpack.i.l.bf16 %v12020_v25  ;;  %11410 = vmatprep.subr.msk.bf16.mxu1 %vm13740_vm2, %v11408_v24 }
 0x3dc   :  { %v11418_v29 = vpack.c.bf16 %v12022_v27, %v12021_v28 }
 0x3dd   :  { %v1242_v32 = vpop.permute.xlu0 %1241 }
 0x3de   :  { %10660 = vmatmul.mubr.msk.f32.vlgmr.msra.gmra.mrb[2].mxu1 %vm681_vm1, %v13726_v15 }
 0x3df   :  { %11413 = vmatpush3.bf16.xpose.msk.msra.mxu1 %vm13740_vm2, %v11408_v24  ;;  %10673 = vmatprep.mubr.msk.f32.mxu1 %vm681_vm1, %v878_v26 }
 0x3e0   :  { %11420 = vmatprep.subr.msk.bf16.mxu1 %vm13740_vm2, %v11418_v29 }
 0x3e6   :  { %10674 = vmatmul.mubr.msk.f32.vlgmr.msra.gmra.mrb[4].mxu1 %vm681_vm1, %v880_v30 }
 0x3e7   :  { %11423 = vmatpush3.bf16.xpose.msk.msra.mxu1 %vm13740_vm2, %v11418_v29  ;;  %10697 = vmatprep.mubr.msk.f32.mxu1 %vm681_vm1, %v1240_v31 }
 0x3ee   :  { %10698 = vmatmul.mubr.msk.f32.vlgmr.msra.gmra.mrb[6].mxu1 %vm681_vm1, %v1242_v32 }
 0x4b1   :  { %v10661_v35 = vpop.f32.mrb[2].mxu1 }
 0x4b2   :  { %v764_v36 = vadd.f32 %v10661_v35, %v13763_v33  ;;  %v758_v37 = vpop.f32.mrb[3].mxu1 }
 0x4b3   :  { %v759_v38 = vadd.f32 %v758_v37, %v13766_v34 }
 0x4b4   :  { %v771_v39 = vsel %vm767_vm3, %v764_v36, -inf }
 0x4b5   :  { %772 = vmax.xlane.f32.xlu0 %v771_v39  ;;  %v768_v40 = vsel %vm767_vm3, %v759_v38, -inf }
 0x4b6   :  { %769 = vmax.xlane.f32.xlu1 %v768_v40 }
 0x4b9   :  { %v10675_v41 = vpop.f32.mrb[4].mxu1 }
 0x4ba   :  { %v965_v42 = vadd.f32 %v10675_v41, %v13763_v33  ;;  %v959_v43 = vpop.f32.mrb[5].mxu1 }
 0x4bb   :  { %v960_v44 = vadd.f32 %v959_v43, %v13766_v34 }
 0x4bc   :  { %v971_v45 = vsel %vm767_vm3, %v965_v42, -inf }
 0x4bd   :  { %972 = vmax.xlane.f32.xlu1 %v971_v45  ;;  %v968_v46 = vsel %vm767_vm3, %v960_v44, -inf }
 0x4be   :  { %969 = vmax.xlane.f32.xlu0 %v968_v46 }
 0x4c1   :  { %v10699_v47 = vpop.f32.mrb[6].mxu1 }
 0x4c2   :  { %v1321_v48 = vpop.f32.mrb[7].mxu1  ;;  %v1327_v8 = vadd.f32 %v10699_v47, %v13763_v33 }
 0x4c3   :  { %v1322_v6 = vadd.f32 %v1321_v48, %v13766_v34 }
 0x4c4   :  { %v1333_v10 = vsel %vm767_vm3, %v1327_v8, -inf }
 0x4c5   :  { %v1330_v9 = vsel %vm767_vm3, %v1322_v6, -inf }
 0x542   :  { %v773_v49 = vpop.xlane.xlu0 %772 }
 0x543   :  { %v775_v50 = vsub.f32 %v764_v36, %v773_v49  ;;  %v770_v51 = vpop.xlane.xlu1 %769 }
 0x544   :  { %v774_v52 = vsub.f32 %v759_v38, %v770_v51  ;;  %v669_v51 = vld [vmem:[%s14807_s16] sm:$0xff] }
 0x545   :  { %v778_v53 = vmul.f32 1.442695, %v775_v50  ;;  %v670_v50 = vld [vmem:[%s14807_s16 + $0x8] sm:$0xff] }
 0x546   :  { %v776_v54 = vmul.f32 1.442695, %v774_v52 }
 0x547   :  { %12258 = vpow2.f32 %v778_v53 }
 0x548   :  { %12260 = vpow2.f32 %v776_v54 }
 0x54a   :  { %v973_v55 = vpop.xlane.xlu1 %972 }
 0x54b   :  { %v975_v56 = vsub.f32 %v965_v42, %v973_v55  ;;  %v970_v57 = vpop.xlane.xlu0 %969 }
 0x54c   :  { %v974_v58 = vsub.f32 %v960_v44, %v970_v57 }
 0x54d   :  { %v978_v59 = vmul.f32 1.442695, %v975_v56 }
 0x54e   :  { %v976_v60 = vmul.f32 1.442695, %v974_v58 }
 0x54f   :  { %12262 = vpow2.f32 %v978_v59 }
 0x550   :  { %12264 = vpow2.f32 %v976_v60 }
 0x551   :  { %v12259_v61 = vpop.eup %12258 }
 0x552   :  { %v12261_v62 = vpop.eup %12260  ;;  %v783_v63 = vsel %vm767_vm3, %v12259_v61, 0.0 }
 0x553   :  { %784 = vadd.xlane.f32.xlu1 %v783_v63  ;;  %v780_v0 = vsel %vm767_vm3, %v12261_v62, 0.0 }
 0x554   :  { %781 = vadd.xlane.f32.xlu0 %v780_v0 }
 0x559   :  { %v13778_v1 = vpop.eup %12262 }
 0x55a   :  { %v12265_v2 = vpop.eup %12264  ;;  %v983_v3 = vsel %vm767_vm3, %v13778_v1, 0.0 }
 0x55b   :  { %984 = vadd.xlane.f32.xlu1 %v983_v3  ;;  %v980_v4 = vsel %vm767_vm3, %v12265_v2, 0.0 }
 0x55c   :  { %981 = vadd.xlane.f32.xlu0 %v980_v4 }
 0x56c   :  { %12029 = vrot.lane.b32.xlu1 %v13716_v13, %s13237_s8 }
 0x570   :  { %12034 = vrot.lane.b32.xlu1 %v13716_v13, %s13238_s12 }
 0x572   :  { %12024 = vrot.lane.b32.xlu0 %v13716_v13, %s13239_s11 }
 0x574   :  { %1524 = vrot.lane.b32.xlu1 %v13726_v15, %s13240_s13 }
 0x576   :  { %1522 = vrot.lane.b32.xlu0 %v13718_v14, %s13240_s13 }
 0x595   :  { %1331 = vmax.xlane.f32.xlu0 %v1330_v9 }
 0x598   :  { %1334 = vmax.xlane.f32.xlu1 %v1333_v10 }
 0x5a9   :  { %12039 = vrot.lane.b32.xlu1 %v13716_v13, %s13241_s20 }
 0x5ad   :  { %12044 = vrot.lane.b32.xlu1 %v13716_v13, %s13242_s15 }
 0x5e0   :  { %v785_v12 = vpop.xlane.xlu1 %784 }
 0x5e1   :  { %v782_v11 = vpop.xlane.xlu0 %781 }
 0x5e2   :  { %12266 = vrcp.f32 %v782_v11 }
 0x5e3   :  { %12268 = vrcp.f32 %v785_v12 }
 0x5e8   :  { %v985_v14 = vpop.xlane.xlu1 %984 }
 0x5e9   :  { %v982_v15 = vpop.xlane.xlu0 %981 }
 0x5ea   :  { %12270 = vrcp.f32 %v982_v15 }
 0x5eb   :  { %12272 = vrcp.f32 %v985_v14 }
 0x5ec   :  { %v12267_v16 = vpop.eup %12266  ;;  %v12030_v17 = vpop.permute.xlu1 %12029 }
 0x5ed   :  { %v12025_v18 = vpop.permute.xlu0 %12024  ;;  %v787_v20 = vmul.f32 %v12267_v16, %v12261_v62  ;;  %v12032_v21 = vunpack.i.h.bf16 %v12030_v17  ;;  %v12031_v22 = vunpack.i.l.bf16 %v12030_v17  ;;  %v12269_v26 = vpop.eup %12268 }
 0x5ee   :  { %v12027_v23 = vunpack.i.h.bf16 %v12025_v18  ;;  %v12026_v24 = vunpack.i.l.bf16 %v12025_v18  ;;  %v789_v35 = vmul.f32 %v12269_v26, %v12259_v61 }
 0x5ef   :  { %10666 = vmatprep.mubr.msk.f32.mxu0 %vm767_vm3, %v787_v20  ;;  %v11414_v30 = vpack.c.bf16 %v12032_v21, %v12031_v22 }
 0x5f0   :  { %v12035_v25 = vpop.permute.xlu1 %12034  ;;  %v11404_v13 = vpack.c.bf16 %v12027_v23, %v12026_v24 }
 0x5f1   :  { %v12037_v27 = vunpack.i.h.bf16 %v12035_v25  ;;  %v12036_v28 = vunpack.i.l.bf16 %v12035_v25  ;;  %v1523_v29 = vpop.permute.xlu0 %1522 }
 0x5f2   :  { %11405 = vmatprep.subr.bf16.mxu0 %v11404_v13  ;;  %10716 = vmatprep.mubr.msk.f32.mxu1 %vm681_vm1, %v1523_v29 }
 0x5f3   :  { %v11428_v31 = vpack.c.bf16 %v12037_v27, %v12036_v28  ;;  %11407 = vmatpush3.bf16.msra.mxu0 %v11404_v13  ;;  %v672_v28 = vld [vmem:[%s14807_s16 + $0x18] sm:$0xff] }
 0x5f4   :  { %v12271_v32 = vpop.eup %12270  ;;  %11415 = vmatprep.subr.bf16.mxu0 %v11414_v30  ;;  %v1525_v39 = vpop.permute.xlu1 %1524 }
 0x5f5   :  { %v12273_v36 = vpop.eup %12272  ;;  %11430 = vmatprep.subr.msk.bf16.mxu1 %vm13740_vm2, %v11428_v31  ;;  %v987_v37 = vmul.f32 %v12271_v32, %v12265_v2 }
 0x5f6   :  { %10667 = vmatmul.mubr.msk.f32.vlgmr.msra.gmra.mrb[0].mxu0 %vm767_vm3, %v789_v35  ;;  %11433 = vmatpush3.bf16.xpose.msk.msra.mxu1 %vm13740_vm2, %v11428_v31  ;;  %v989_v38 = vmul.f32 %v12273_v36, %v13778_v1 }
 0x5f7   :  { %11417 = vmatpush3.bf16.msra.mxu0 %v11414_v30  ;;  %10680 = vmatprep.mubr.msk.f32.mxu0 %vm767_vm3, %v987_v37 }
 0x5f8   :  { %10683 = vmatprep.subr.mxu0 %v670_v50 }
 0x5fa   :  { %10681 = vmatmul.mubr.msk.f32.vlgmr.msra.gmra.mrb[2].mxu0 %vm767_vm3, %v989_v38 }
 0x5fb   :  { %10684 = vmatpush3.msra.mxu0 %v670_v50 }
 0x5fc   :  { %10688 = vmatprep.subr.mxu0 %v669_v51 }
 0x5fd   :  { %10717 = vmatmul.mubr.msk.f32.vlgmr.msra.gmra.mrb[8].mxu1 %vm681_vm1, %v1525_v39  ;;  %v9984_v39 = vld [vmem:[#allocation22] ss:$0 sm:$0xff] }
 0x622   :  { %v1332_v40 = vpop.xlane.xlu0 %1331 }
 0x623   :  { %v1336_v41 = vsub.f32 %v1322_v6, %v1332_v40 }
 0x625   :  { %v1338_v42 = vmul.f32 1.442695, %v1336_v41  ;;  %v1335_v43 = vpop.xlane.xlu1 %1334 }
 0x626   :  { %v1337_v44 = vsub.f32 %v1327_v8, %v1335_v43  ;;  %v671_v8 = vld [vmem:[%s14807_s16 + $0x10] sm:$0xff]  ;;  %s14824_s16 = sld [smem:[#allocation64_spill]] }
 0x627   :  { %12274 = vpow2.f32 %v1338_v42 }
 0x628   :  { %v1340_v45 = vmul.f32 1.442695, %v1337_v44 }
 0x629   :  { %v12040_v53 = vpop.permute.xlu1 %12039 }
 0x62a   :  { %12276 = vpow2.f32 %v1340_v45  ;;  %v12042_v57 = vunpack.i.h.bf16 %v12040_v53  ;;  %v12041_v58 = vunpack.i.l.bf16 %v12040_v53 }
 0x62c   :  { %v11424_v62 = vpack.c.bf16 %v12042_v57, %v12041_v58  ;;  %v1862_v57 = vld [vmem:[%s14808_s6 + $0x8] sm:$0xff]  ;;  %v1863_v58 = vld [vmem:[%s14808_s6 + $0x10] sm:$0xff] }
 0x62d   :  { %v12045_v4 = vpop.permute.xlu1 %12044 }
 0x62e   :  { %v12047_v9 = vunpack.i.h.bf16 %v12045_v4  ;;  %v12046_v10 = vunpack.i.l.bf16 %v12045_v4 }
 0x630   :  { %v11434_v15 = vpack.c.bf16 %v12047_v9, %v12046_v10  ;;  %v9986_v9 = vld [vmem:[#allocation16] ss:$0 sm:$0xff] }
 0x631   :  { %v12275_v46 = vpop.eup %12274 }
 0x632   :  { %v1342_v47 = vsel %vm767_vm3, %v12275_v46, 0.0 }
 0x633   :  { %1343 = vadd.xlane.f32.xlu0 %v1342_v47 }
 0x634   :  { %v12277_v48 = vpop.eup %12276 }
 0x635   :  { %v1345_v49 = vsel %vm767_vm3, %v12277_v48, 0.0 }
 0x637   :  { %1346 = vadd.xlane.f32.xlu0 %v1345_v49 }
 0x6c0   :  { %v1344_v52 = vpop.xlane.xlu0 %1343 }
 0x6c1   :  { %12278 = vrcp.f32 %v1344_v52 }
 0x6c4   :  { %v1347_v55 = vpop.xlane.xlu0 %1346 }
 0x6c5   :  { %12280 = vrcp.f32 %v1347_v55 }
 0x6c9   :  { %v10668_v54 = vpop.f32.mrb[0].mxu0 }
 0x6ca   :  { %v868_v56 = vpop.f32.mrb[1].mxu0 }
 0x6cb   :  { %v12279_v3 = vpop.eup %12278 }
 0x6cc   :  { %v1349_v12 = vmul.f32 %v12279_v3, %v12275_v46 }
 0x6cd   :  { %v10682_v59 = vpop.f32.mrb[2].mxu0 }
 0x6ce   :  { %v1068_v60 = vpop.f32.mrb[3].mxu0 }
 0x6cf   :  { %10685 = vmatprep.mubr.msk.f32.mxu0 %vm681_vm1, %v1068_v60  ;;  %v12281_v6 = vpop.eup %12280  ;;  %v1864_v60 = vld [vmem:[%s14808_s6 + $0x18] sm:$0xff] }
 0x6d0   :  { %10686 = vmatmul.mubr.msk.f32.vlgmr.msra.gmra.mrb[4].mxu0 %vm681_vm1, %v10682_v59  ;;  %v10718_v61 = vpop.f32.mrb[8].mxu1  ;;  %v1351_v14 = vmul.f32 %v12281_v6, %v12277_v48  ;;  %v9985_v6 = vld [vmem:[#allocation17] ss:$0 sm:$0xff] }
 0x6d1   :  { %10689 = vmatpush3.msra.mxu0 %v669_v51  ;;  %10690 = vmatprep.mubr.msk.f32.mxu0 %vm681_vm1, %v868_v56  ;;  %v1604_v63 = vpop.f32.mrb[9].mxu1  ;;  %v1610_v1 = vadd.f32 %v10718_v61, %v13763_v33  ;;  %v1861_v56 = vld [vmem:[%s14808_s6] sm:$0xff]  ;;  %v11442_v61 = vpack.c.bf16 %v1864_v60, %v1863_v58  ;;  %s14825_s6 = sld [smem:[#allocation70_spill]] }
 0x6d2   :  { %11425 = vmatprep.subr.bf16.mxu0 %v11424_v62  ;;  %v1605_v0 = vadd.f32 %v1604_v63, %v13766_v34  ;;  %v11438_v59 = vpack.c.bf16 %v1862_v57, %v1861_v56 }
 0x6d3   :  { %v1616_v11 = vsel %vm767_vm3, %v1610_v1, -inf }
 0x6d4   :  { %v1613_v2 = vsel %vm767_vm3, %v1605_v0, -inf  ;;  %11439 = vmatprep.subr.bf16.mxu1 %v11438_v59 }
 0x6d5   :  { %1614 = vmax.xlane.f32.xlu0 %v1613_v2  ;;  %11441 = vmatpush3.bf16.msra.mxu1 %v11438_v59 }
 0x6d6   :  { %11443 = vmatprep.subr.bf16.mxu1 %v11442_v61 }
 0x6d8   :  { %10691 = vmatmul.mubr.msk.f32.vlgmr.msra.gmra.mrb[4].mxu0 %vm681_vm1, %v10668_v54 }
 0x6d9   :  { %11427 = vmatpush3.bf16.msra.mxu0 %v11424_v62  ;;  %1617 = vmax.xlane.f32.xlu0 %v1616_v11 }
 0x6da   :  { %10704 = vmatprep.mubr.msk.f32.mxu0 %vm767_vm3, %v1349_v12  ;;  %10707 = vmatprep.subr.mxu0 %v671_v8 }
 0x6db   :  { %11445 = vmatpush3.bf16.msra.mxu1 %v11442_v61 }
 0x6dc   :  { %10705 = vmatmul.mubr.msk.f32.vlgmr.msra.gmra.mrb[6].mxu0 %vm767_vm3, %v1351_v14 }
 0x6dd   :  { %10708 = vmatpush3.msra.mxu0 %v671_v8 }
 0x6de   :  { %11435 = vmatprep.subr.bf16.mxu0 %v11434_v15 }
 0x762   :  { %v1615_v16 = vpop.xlane.xlu0 %1614 }
 0x763   :  { %v1619_v17 = vsub.f32 %v1605_v0, %v1615_v16 }
 0x765   :  { %v1621_v18 = vmul.f32 1.442695, %v1619_v17  ;;  %v2007_v17 = vld [vmem:[%s14809_s30] sm:$0xff] }
 0x766   :  { %v1618_v20 = vpop.xlane.xlu0 %1617 }
 0x767   :  { %12282 = vpow2.f32 %v1621_v18  ;;  %v1620_v21 = vsub.f32 %v1610_v1, %v1618_v20  ;;  %v2008_v18 = vld [vmem:[%s14809_s30 + $0x8] sm:$0xff] }
 0x768   :  { %v11446_v20 = vpack.c.bf16 %v2008_v18, %v2007_v17 }
 0x769   :  { %v1623_v22 = vmul.f32 1.442695, %v1620_v21  ;;  %v2009_v21 = vld [vmem:[%s14809_s30 + $0x10] sm:$0xff] }
 0x76b   :  { %12284 = vpow2.f32 %v1623_v22  ;;  %v2010_v22 = vld [vmem:[%s14809_s30 + $0x18] sm:$0xff] }
 0x771   :  { %v12283_v23 = vpop.eup %12282 }
 0x772   :  { %v1625_v24 = vsel %vm767_vm3, %v12283_v23, 0.0 }
 0x773   :  { %1626 = vadd.xlane.f32.xlu0 %v1625_v24  ;;  %v2011_v24 = vld [vmem:[%s14809_s30 + $0x20] sm:$0xff] }
 0x775   :  { %v12285_v25 = vpop.eup %12284 }
 0x776   :  { %v1628_v13 = vsel %vm767_vm3, %v12285_v25, 0.0 }
 0x777   :  { %1629 = vadd.xlane.f32.xlu0 %v1628_v13 }
 0x7af   :  { %v10706_v26 = vpop.f32.mrb[6].mxu0 }
 0x7b0   :  { %v1430_v27 = vpop.f32.mrb[7].mxu0 }
 0x7b1   :  { %10709 = vmatprep.mubr.msk.f32.mxu0 %vm681_vm1, %v1430_v27  ;;  %v2014_v27 = vld [vmem:[%s14809_s30 + $0x38] sm:$0xff] }
 0x7b2   :  { %10710 = vmatmul.mubr.msk.f32.vlgmr.msra.gmra.mrb[4].mxu0 %vm681_vm1, %v10706_v26  ;;  %v2013_v26 = vld [vmem:[%s14809_s30 + $0x30] sm:$0xff] }
 0x7b3   :  { %11437 = vmatpush3.bf16.msra.mxu0 %v11434_v15 }
 0x7b4   :  { %10726 = vmatprep.subr.mxu0 %v672_v28 }
 0x800   :  { %v1627_v29 = vpop.xlane.xlu0 %1626 }
 0x801   :  { %12286 = vrcp.f32 %v1627_v29  ;;  %v2015_v29 = vld [vmem:[%s14809_s30 + $0x40] sm:$0xff] }
 0x804   :  { %v1630_v30 = vpop.xlane.xlu0 %1629 }
 0x805   :  { %12288 = vrcp.f32 %v1630_v30  ;;  %v2016_v30 = vld [vmem:[%s14809_s30 + $0x48] sm:$0xff] }
 0x80b   :  { %v12287_v31 = vpop.eup %12286 }
 0x80c   :  { %v1632_v32 = vmul.f32 %v12287_v31, %v12283_v23  ;;  %v11450_v23 = vpack.c.bf16 %v2010_v22, %v2009_v21  ;;  %v11462_v31 = vpack.c.bf16 %v2016_v30, %v2015_v29 }
 0x80e   :  { %10723 = vmatprep.mubr.msk.f32.mxu0 %vm767_vm3, %v1632_v32  ;;  %v2017_v32 = vld [vmem:[%s14809_s30 + $0x50] sm:$0xff] }
 0x80f   :  { %v12289_v35 = vpop.eup %12288 }
 0x810   :  { %v1634_v36 = vmul.f32 %v12289_v35, %v12285_v25  ;;  %v2012_v25 = vld [vmem:[%s14809_s30 + $0x28] sm:$0xff]  ;;  %v2018_v35 = vld [vmem:[%s14809_s30 + $0x58] sm:$0xff] }
 0x811   :  { %v11454_v13 = vpack.c.bf16 %v2012_v25, %v2011_v24 }
 0x812   :  { %10724 = vmatmul.mubr.msk.f32.vlgmr.msra.gmra.mrb[8].mxu0 %vm767_vm3, %v1634_v36  ;;  %v11466_v36 = vpack.c.bf16 %v2018_v35, %v2017_v32 }
 0x813   :  { %10727 = vmatpush3.msra.mxu0 %v672_v28  ;;  %v11458_v28 = vpack.c.bf16 %v2014_v27, %v2013_v26 }
 0x814   :  { %11447 = vmatprep.subr.bf16.mxu0 %v11446_v20 }
 0x8e5   :  { %v10725_v37 = vpop.f32.mrb[8].mxu0 }
 0x8e6   :  { %v1713_v38 = vpop.f32.mrb[9].mxu0 }
 0x8e7   :  { %10728 = vmatprep.mubr.msk.f32.mxu0 %vm681_vm1, %v1713_v38  ;;  %v2020_v38 = vld [vmem:[%s14809_s30 + $0x68] sm:$0xff] }
 0x8e8   :  { %10729 = vmatmul.mubr.msk.f32.vlgmr.msra.gmra.mrb[4].mxu0 %vm681_vm1, %v10725_v37  ;;  %v2019_v37 = vld [vmem:[%s14809_s30 + $0x60] sm:$0xff] }
 0x8e9   :  { %11449 = vmatpush3.bf16.msra.mxu0 %v11446_v20 }
 0x8ea   :  { %11451 = vmatprep.subr.bf16.mxu0 %v11450_v23 }
 0x8ed   :  { %11453 = vmatpush3.bf16.msra.mxu0 %v11450_v23 }
 0x8ee   :  { %11455 = vmatprep.subr.bf16.mxu0 %v11454_v13 }
 0x8f1   :  { %11457 = vmatpush3.bf16.msra.mxu0 %v11454_v13 }
 0x8f2   :  { %11459 = vmatprep.subr.bf16.mxu0 %v11458_v28 }
 0x8f5   :  { %11461 = vmatpush3.bf16.msra.mxu0 %v11458_v28 }
 0x8f6   :  { %11463 = vmatprep.subr.bf16.mxu0 %v11462_v31 }
 0x8f9   :  { %11465 = vmatpush3.bf16.msra.mxu0 %v11462_v31 }
 0x8fa   :  { %11467 = vmatprep.subr.bf16.mxu0 %v11466_v36 }
 0x8fd   :  { %11469 = vmatpush3.bf16.msra.mxu0 %v11466_v36 }
 0x9bb   :  { %v10730_v40 = vpop.f32.mrb[4].mxu0 }
 0x9bc   :  { %v1813_v41 = vadd.f32 %v10730_v40, %v9984_v39  ;;  %v1794_v42 = vpop.f32.mrb[5].mxu0  ;;  %v2021_v40 = vld [vmem:[%s14809_s30 + $0x70] sm:$0xff] }
 0x9bd   :  { %v1812_v43 = vadd.f32 %v9984_v39, %v1794_v42  ;;  %v11470_v39 = vpack.c.bf16 %v2020_v38, %v2019_v37 }
 0x9be   :  { %v1815_v44 = vadd.f32 %v1813_v41, %v13712_v7  ;;  %v2022_v41 = vld [vmem:[%s14809_s30 + $0x78] sm:$0xff]  ;;  %s14826_s30 = sld [smem:[#allocation69_spill]] }
 0x9bf   :  { %v1814_v45 = vadd.f32 %v1812_v43, %v13707_v5  ;;  %11471 = vmatprep.subr.bf16.mxu0 %v11470_v39  ;;  %v11474_v42 = vpack.c.bf16 %v2022_v41, %v2021_v40  ;;  %v9987_v43 = vld [vmem:[#allocation13] ss:$0 sm:$0xff] }
 0x9c0   :  { %v1819_v46 = vsel %vm587_vm0, %v1815_v44, 0.0  ;;  %11473 = vmatpush3.bf16.msra.mxu0 %v11470_v39  ;;  %v9994_v39 = vld [vmem:[#allocation14] ss:$0 sm:$0xff] }
 0x9c1   :  { %1820 = vadd.xlane.f32.xlu1 %v1819_v46  ;;  %v1816_v47 = vsel %vm587_vm0, %v1814_v45, 0.0  ;;  %11475 = vmatprep.subr.bf16.mxu0 %v11474_v42 }
 0x9c2   :  { %1817 = vadd.xlane.f32.xlu0 %v1816_v47 }
 0x9c4   :  { %11477 = vmatpush3.bf16.msra.mxu0 %v11474_v42 }
 0xa4e   :  { %v1821_v48 = vpop.xlane.xlu1 %1820 }
 0xa4f   :  { %v1824_v49 = vmul.f32 0.03125, %v1821_v48  ;;  %v1818_v50 = vpop.xlane.xlu0 %1817 }
 0xa50   :  { %v1823_v51 = vmul.f32 0.03125, %v1818_v50 }
 0xa51   :  { %v1826_v52 = vsub.f32 %v1815_v44, %v1824_v49 }
 0xa52   :  { %v1825_v53 = vsub.f32 %v1814_v45, %v1823_v51 }
 0xa53   :  { %v1828_v5 = vmul.f32 %v1826_v52, %v1826_v52 }
 0xa54   :  { %v1827_v54 = vmul.f32 %v1825_v53, %v1825_v53 }
 0xa55   :  { %v1832_v55 = vsel %vm587_vm0, %v1828_v5, 0.0 }
 0xa56   :  { %v1829_v7 = vsel %vm587_vm0, %v1827_v54, 0.0 }
 0xa57   :  { %1830 = vadd.xlane.f32.xlu0 %v1829_v7 }
 0xa5b   :  { %1833 = vadd.xlane.f32.xlu0 %v1832_v55 }
 0xae4   :  { %v1831_v62 = vpop.xlane.xlu0 %1830 }
 0xae5   :  { %v1835_v63 = vmul.f32 0.03125, %v1831_v62 }
 0xae7   :  { %v1837_v0 = vadd.f32 1e-05, %v1835_v63 }
 0xae8   :  { %v1834_v1 = vpop.xlane.xlu0 %1833 }
 0xae9   :  { %12290 = vrsqrt.f32 %v1837_v0  ;;  %v1836_v2 = vmul.f32 0.03125, %v1834_v1 }
 0xaeb   :  { %v1838_v3 = vadd.f32 1e-05, %v1836_v2 }
 0xaed   :  { %12292 = vrsqrt.f32 %v1838_v3 }
 0xaf3   :  { %v12291_v4 = vpop.eup %12290 }
 0xaf4   :  { %v1841_v8 = vmul.f32 %v12291_v4, %v1825_v53 }
 0xaf6   :  { %v1850_v10 = vmul.f32 %v9985_v6, %v1841_v8 }
 0xaf7   :  { %v12293_v11 = vpop.eup %12292 }
 0xaf8   :  { %v1842_v12 = vmul.f32 %v12293_v11, %v1826_v52  ;;  %v13846_v14 = vadd.f32 %v9986_v9, %v1850_v10 }
 0xafa   :  { %v1851_v15 = vmul.f32 %v9985_v6, %v1842_v12  ;;  %10739 = vmatprep.mubr.msk.f32.mxu1 %vm587_vm0, %v13846_v14 }
 0xafc   :  { %v13850_v16 = vadd.f32 %v9986_v9, %v1851_v15 }
 0xafe   :  { %10740 = vmatmul.mubr.msk.f32.vlgmr.msra.gmra.mrb[10].mxu1 %vm587_vm0, %v13850_v16 }
 0xbd1   :  { %v10741_v44 = vpop.f32.mrb[10].mxu1 }
 0xbd2   :  { %v1950_v45 = vadd.f32 %v10741_v44, %v9987_v43  ;;  %v1944_v46 = vpop.f32.mrb[11].mxu1 }
 0xbd3   :  { %v1945_v47 = vadd.f32 %v9987_v43, %v1944_v46 }
 0xbd4   :  { %v1954_v48 = vmul.f32 0.70710677, %v1950_v45  ;;  %v2002_v36 = vmul.f32 0.5, %v1950_v45 }
 0xbd5   :  { %v1953_v49 = vmul.f32 0.70710677, %v1945_v47  ;;  %v2001_v32 = vmul.f32 0.5, %v1945_v47 }
 0xbd6   :  { %v1956_v50 = vand.u32 2147483647, %v1954_v48  ;;  %vm1996_vm4 = vcmp.lt.f32.partialorder %v1954_v48, 0.0 }
 0xbd7   :  { %v1955_v51 = vand.u32 2147483647, %v1953_v49  ;;  %vm1995_vm5 = vcmp.lt.f32.partialorder %v1953_v49, 0.0 }
 0xbd8   :  { %v1958_v52 = vmul.f32 0.3275911, %v1956_v50  ;;  %v1984_v5 = vsub.f32 0.0, %v1956_v50 }
 0xbd9   :  { %v1957_v53 = vmul.f32 0.3275911, %v1955_v51  ;;  %v1983_v55 = vsub.f32 0.0, %v1955_v51 }
 0xbda   :  { %v1960_v54 = vadd.f32 1.0, %v1958_v52  ;;  %v1986_v57 = vmul.f32 %v1984_v5, %v1956_v50  ;;  %v2151_v5 = vld [vmem:[%s14810_s18] sm:$0xff] }
 0xbdb   :  { %v1959_v7 = vadd.f32 1.0, %v1957_v53  ;;  %v1985_v60 = vmul.f32 %v1983_v55, %v1955_v51  ;;  %v2152_v55 = vld [vmem:[%s14810_s18 + $0x8] sm:$0xff] }
 0xbdc   :  { %12294 = vrcp.f32 %v1960_v54  ;;  %v1989_v63 = vmul.f32 1.442695, %v1986_v57  ;;  %v11478_v57 = vpack.c.bf16 %v2152_v55, %v2151_v5 }
 0xbdd   :  { %12296 = vrcp.f32 %v1959_v7  ;;  %v1987_v2 = vmul.f32 1.442695, %v1985_v60 }
 0xbde   :  { %12298 = vpow2.f32 %v1989_v63  ;;  %11479 = vmatprep.subr.bf16.mxu1 %v11478_v57 }
 0xbdf   :  { %12300 = vpow2.f32 %v1987_v2  ;;  %11481 = vmatpush3.bf16.msra.mxu1 %v11478_v57 }
 0xbe6   :  { %v12295_v56 = vpop.eup %12294 }
 0xbe7   :  { %v12297_v58 = vpop.eup %12296  ;;  %v1966_v59 = vmul.f32 1.0614054, %v12295_v56 }
 0xbe8   :  { %v1965_v61 = vmul.f32 1.0614054, %v12297_v58  ;;  %v12299_v21 = vpop.eup %12298 }
 0xbe9   :  { %v9991_v62 = vadd.f32 -1.4531521, %v1966_v59  ;;  %v12301_v23 = vpop.eup %12300 }
 0xbea   :  { %v9990_v0 = vadd.f32 -1.4531521, %v1965_v61 }
 0xbeb   :  { %v1970_v1 = vmul.f32 %v12295_v56, %v9991_v62 }
 0xbec   :  { %v1969_v3 = vmul.f32 %v12297_v58, %v9990_v0 }
 0xbed   :  { %v1972_v4 = vadd.f32 1.4214138, %v1970_v1 }
 0xbee   :  { %v1971_v6 = vadd.f32 1.4214138, %v1969_v3  ;;  %v9995_v3 = vld [vmem:[#allocation20] ss:$0 sm:$0xff] }
 0xbef   :  { %v1974_v8 = vmul.f32 %v12295_v56, %v1972_v4 }
 0xbf0   :  { %v1973_v9 = vmul.f32 %v12297_v58, %v1971_v6  ;;  %v9996_v6 = vld [vmem:[#allocation19] ss:$0 sm:$0xff] }
 0xbf1   :  { %v9993_v10 = vadd.f32 -0.28449672, %v1974_v8 }
 0xbf2   :  { %v9992_v11 = vadd.f32 -0.28449672, %v1973_v9 }
 0xbf3   :  { %v1978_v12 = vmul.f32 %v12295_v56, %v9993_v10 }
 0xbf4   :  { %v1977_v15 = vmul.f32 %v12297_v58, %v9992_v11 }
 0xbf5   :  { %v1980_v17 = vadd.f32 0.2548296, %v1978_v12 }
 0xbf6   :  { %v1979_v18 = vadd.f32 0.2548296, %v1977_v15 }
 0xbf7   :  { %v1982_v20 = vmul.f32 %v12295_v56, %v1980_v17  ;;  %v2153_v56 = vld [vmem:[%s14810_s18 + $0x10] sm:$0xff]  ;;  %v9997_v17 = vld [vmem:[#allocation35] ss:$0 sm:$0xff] }
 0xbf8   :  { %v1981_v22 = vmul.f32 %v12297_v58, %v1979_v18  ;;  %v2154_v58 = vld [vmem:[%s14810_s18 + $0x18] sm:$0xff]  ;;  %s14827_s18 = sld [smem:[#allocation66_spill]] }
 0xbf9   :  { %v1992_v24 = vmul.f32 %v12299_v21, %v1982_v20  ;;  %v11482_v59 = vpack.c.bf16 %v2154_v58, %v2153_v56 }
 0xbfa   :  { %v1991_v25 = vmul.f32 %v12301_v23, %v1981_v22 }
 0xbfb   :  { %v1994_v13 = vsub.f32 1.0, %v1992_v24  ;;  %11483 = vmatprep.subr.bf16.mxu1 %v11482_v59 }
 0xbfc   :  { %v1993_v26 = vsub.f32 1.0, %v1991_v25  ;;  %11485 = vmatpush3.bf16.msra.mxu1 %v11482_v59 }
 0xbfd   :  { %v1998_v27 = vsub.f32 0.0, %v1994_v13 }
 0xbfe   :  { %v1997_v28 = vsub.f32 0.0, %v1993_v26 }
 0xbff   :  { %v2000_v29 = vsel %vm1996_vm4, %v1998_v27, %v1994_v13 }
 0xc00   :  { %v2004_v30 = vadd.f32 1.0, %v2000_v29  ;;  %v1999_v31 = vsel %vm1995_vm5, %v1997_v28, %v1993_v26 }
 0xc01   :  { %v2003_v35 = vadd.f32 1.0, %v1999_v31 }
 0xc02   :  { %v2006_v38 = vmul.f32 %v2004_v30, %v2002_v36 }
 0xc03   :  { %v2005_v37 = vmul.f32 %v2003_v35, %v2001_v32 }
 0xc05   :  { %10774 = vmatprep.mubr.f32.mxu0 %v2005_v37 }
 0xc06   :  { %10775 = vmatmul.mubr.f32.vlgmr.msra.gmra.mrb[10].mxu0 %v2006_v38 }
 0xcd9   :  { %v10776_v40 = vpop.f32.mrb[10].mxu0 }
 0xcda   :  { %v2096_v41 = vpop.f32.mrb[11].mxu0  ;;  %v2102_v42 = vadd.f32 %v10776_v40, %v9994_v39 }
 0xcdb   :  { %v2097_v43 = vadd.f32 %v9994_v39, %v2096_v41 }
 0xcdc   :  { %v2106_v48 = vadd.f32 %v2102_v42, %v13850_v16 }
 0xcdd   :  { %v2105_v44 = vadd.f32 %v2097_v43, %v13846_v14 }
 0xcde   :  { %v2110_v45 = vsel %vm587_vm0, %v2106_v48, 0.0 }
 0xcdf   :  { %v2107_v46 = vsel %vm587_vm0, %v2105_v44, 0.0 }
 0xce0   :  { %2108 = vadd.xlane.f32.xlu0 %v2107_v46 }
 0xce4   :  { %2111 = vadd.xlane.f32.xlu0 %v2110_v45 }
 0xd6d   :  { %v2109_v47 = vpop.xlane.xlu0 %2108 }
 0xd6e   :  { %v2113_v49 = vmul.f32 0.03125, %v2109_v47 }
 0xd70   :  { %v2115_v50 = vsub.f32 %v2105_v44, %v2113_v49 }
 0xd71   :  { %v2112_v51 = vpop.xlane.xlu0 %2111 }
 0xd72   :  { %v2114_v52 = vmul.f32 0.03125, %v2112_v51  ;;  %v2117_v53 = vmul.f32 %v2115_v50, %v2115_v50 }
 0xd74   :  { %v2116_v54 = vsub.f32 %v2106_v48, %v2114_v52  ;;  %v2119_v14 = vsel %vm587_vm0, %v2117_v53, 0.0 }
 0xd75   :  { %2120 = vadd.xlane.f32.xlu0 %v2119_v14 }
 0xd76   :  { %v2118_v7 = vmul.f32 %v2116_v54, %v2116_v54 }
 0xd78   :  { %v2122_v16 = vsel %vm587_vm0, %v2118_v7, 0.0 }
 0xd79   :  { %2123 = vadd.xlane.f32.xlu0 %v2122_v16 }
 0xe02   :  { %v2121_v60 = vpop.xlane.xlu0 %2120 }
 0xe03   :  { %v2125_v61 = vmul.f32 0.03125, %v2121_v60 }
 0xe05   :  { %v2127_v62 = vadd.f32 1e-05, %v2125_v61 }
 0xe06   :  { %v2124_v63 = vpop.xlane.xlu0 %2123 }
 0xe07   :  { %12302 = vrsqrt.f32 %v2127_v62  ;;  %v2126_v0 = vmul.f32 0.03125, %v2124_v63 }
 0xe09   :  { %v2128_v1 = vadd.f32 1e-05, %v2126_v0 }
 0xe0b   :  { %12304 = vrsqrt.f32 %v2128_v1 }
 0xe11   :  { %v12303_v2 = vpop.eup %12302 }
 0xe12   :  { %v2131_v4 = vmul.f32 %v12303_v2, %v2115_v50 }
 0xe14   :  { %v2140_v8 = vmul.f32 %v9995_v3, %v2131_v4 }
 0xe15   :  { %v12305_v9 = vpop.eup %12304 }
 0xe16   :  { %v2132_v10 = vmul.f32 %v12305_v9, %v2116_v54  ;;  %v13880_v11 = vadd.f32 %v9996_v6, %v2140_v8 }
 0xe18   :  { %v2141_v12 = vmul.f32 %v9995_v3, %v2132_v10  ;;  %10785 = vmatprep.mubr.msk.f32.mxu1 %vm587_vm0, %v13880_v11 }
 0xe1a   :  { %v13884_v15 = vadd.f32 %v9996_v6, %v2141_v12 }
 0xe1c   :  { %10786 = vmatmul.mubr.msk.f32.vlgmr.msra.gmra.mrb[12].mxu1 %vm587_vm0, %v13884_v15 }
 0xeef   :  { %v10787_v18 = vpop.f32.mrb[12].mxu1 }
 0xef0   :  { %v2240_v20 = vadd.f32 %v10787_v18, %v9997_v17  ;;  %v2234_v21 = vpop.f32.mrb[13].mxu1 }
 0xef1   :  { %v2235_v22 = vadd.f32 %v9997_v17, %v2234_v21 }
 0xef2   :  { %v13900_v28 = vmul.f32 0.35355338, %v2240_v20 }
 0xef3   :  { %v13888_v23 = vpack.i.bf16 %v2240_v20, %v2235_v22  ;;  %v13890_v24 = vmul.f32 0.35355338, %v2235_v22 }
 0xef5   :  { %12049 = vrot.lane.b32.xlu0 %v13888_v23, %s13232_s2  ;;  %10792 = vmatprep.mubr.msk.f32.mxu1 %vm681_vm1, %v13890_v24 }
 0xf67   :  { %v12050_v25 = vpop.permute.xlu0 %12049 }
 0xf68   :  { %v12052_v13 = vunpack.i.h.bf16 %v12050_v25  ;;  %v12051_v26 = vunpack.i.l.bf16 %v12050_v25 }
 0xf6a   :  { %v11486_v27 = vpack.c.bf16 %v12052_v13, %v12051_v26 }
 0xf6c   :  { %11488 = vmatprep.subr.msk.bf16.mxu1 %vm13740_vm2, %v11486_v27 }
 0xf6d   :  { %11491 = vmatpush3.bf16.xpose.msk.msra.mxu1 %vm13740_vm2, %v11486_v27 }
 0xf74   :  { %10793 = vmatmul.mubr.msk.f32.vlgmr.msra.gmra.mrb[14].mxu1 %vm681_vm1, %v13900_v28 }
0x1047   :  { %v10794_v29 = vpop.f32.mrb[14].mxu1 }
0x1048   :  { %v2331_v30 = vpop.f32.mrb[15].mxu1  ;;  %v2337_v32 = vadd.f32 %v10794_v29, %v13763_v33 }
0x1049   :  { %v2332_v31 = vadd.f32 %v2331_v30, %v13766_v34 }
0x104a   :  { %v2343_v36 = vsel %vm767_vm3, %v2337_v32, -inf }
0x104b   :  { %v2340_v35 = vsel %vm767_vm3, %v2332_v31, -inf }
0x104c   :  { %2341 = vmax.xlane.f32.xlu1 %v2340_v35 }
0x1050   :  { %2344 = vmax.xlane.f32.xlu1 %v2343_v36 }
0x1061   :  { %12054 = vrot.lane.b32.xlu1 %v13888_v23, %s13239_s11 }
0x1065   :  { %12059 = vrot.lane.b32.xlu1 %v13888_v23, %s13234_s7 }
0x1069   :  { %2449 = vrot.lane.b32.xlu1 %v13890_v24, %s13233_s29 }
0x10d9   :  { %v2342_v37 = vpop.xlane.xlu1 %2341 }
0x10da   :  { %v2346_v38 = vsub.f32 %v2332_v31, %v2342_v37 }
0x10dc   :  { %v2348_v39 = vmul.f32 1.442695, %v2346_v38 }
0x10dd   :  { %v2345_v40 = vpop.xlane.xlu1 %2344 }
0x10de   :  { %12306 = vpow2.f32 %v2348_v39  ;;  %v2347_v41 = vsub.f32 %v2337_v32, %v2345_v40 }
0x10e0   :  { %v2350_v42 = vmul.f32 1.442695, %v2347_v41 }
0x10e1   :  { %v12055_v43 = vpop.permute.xlu1 %12054 }
0x10e2   :  { %12308 = vpow2.f32 %v2350_v42  ;;  %v12057_v44 = vunpack.i.h.bf16 %v12055_v43  ;;  %v12056_v46 = vunpack.i.l.bf16 %v12055_v43  ;;  %v2244_v43 = vld [vmem:[%s14811_s4 + $0x8] sm:$0xff] }
0x10e3   :  { %10816 = vmatprep.subr.mxu0 %v2244_v43 }
0x10e4   :  { %v11492_v48 = vpack.c.bf16 %v12057_v44, %v12056_v46  ;;  %10817 = vmatpush3.msra.mxu0 %v2244_v43  ;;  %v2243_v44 = vld [vmem:[%s14811_s4] sm:$0xff] }
0x10e5   :  { %v12060_v45 = vpop.permute.xlu1 %12059  ;;  %10821 = vmatprep.subr.mxu0 %v2243_v44 }
0x10e6   :  { %v12062_v47 = vunpack.i.h.bf16 %v12060_v45  ;;  %v12061_v49 = vunpack.i.l.bf16 %v12060_v45  ;;  %11493 = vmatprep.subr.bf16.mxu1 %v11492_v48 }
0x10e7   :  { %11495 = vmatpush3.bf16.msra.mxu1 %v11492_v48 }
0x10e8   :  { %v12307_v50 = vpop.eup %12306  ;;  %v11496_v51 = vpack.c.bf16 %v12062_v47, %v12061_v49  ;;  %v13971_v47 = vld [vmem:[%s14806_s10 + $0x8] sm:$0xff] }
0x10e9   :  { %v2352_v52 = vsel %vm767_vm3, %v12307_v50, 0.0  ;;  %v2450_v14 = vpop.permute.xlu1 %2449 }
0x10ea   :  { %2353 = vadd.xlane.f32.xlu1 %v2352_v52  ;;  %11498 = vmatprep.subr.msk.bf16.mxu1 %vm13740_vm2, %v11496_v51 }
0x10ec   :  { %v12309_v53 = vpop.eup %12308 }
0x10ed   :  { %v2355_v54 = vsel %vm767_vm3, %v12309_v53, 0.0 }
0x10ee   :  { %2356 = vadd.xlane.f32.xlu0 %v2355_v54 }
0x10fb   :  { %2451 = vrot.lane.b32.xlu1 %v13900_v28, %s13233_s29 }
0x1177   :  { %v2354_v7 = vpop.xlane.xlu1 %2353 }
0x1178   :  { %12310 = vrcp.f32 %v2354_v7 }
0x117b   :  { %v2357_v16 = vpop.xlane.xlu0 %2356  ;;  %v2452_v58 = vpop.permute.xlu1 %2451 }
0x117c   :  { %12312 = vrcp.f32 %v2357_v16 }
0x1182   :  { %v12311_v5 = vpop.eup %12310 }
0x1183   :  { %v2359_v55 = vmul.f32 %v12311_v5, %v12307_v50 }
0x1185   :  { %10799 = vmatprep.mubr.msk.f32.mxu1 %vm767_vm3, %v2359_v55 }
0x1186   :  { %v12313_v56 = vpop.eup %12312 }
0x1187   :  { %v2361_v57 = vmul.f32 %v12313_v56, %v12309_v53 }
0x1189   :  { %10800 = vmatmul.mubr.msk.f32.vlgmr.msra.gmra.mrb[16].mxu1 %vm767_vm3, %v2361_v57 }
0x118a   :  { %11501 = vmatpush3.bf16.xpose.msk.msra.mxu1 %vm13740_vm2, %v11496_v51  ;;  %10806 = vmatprep.mubr.msk.f32.mxu1 %vm681_vm1, %v2450_v14  ;;  %v13975_v51 = vld [vmem:[%s14806_s10] sm:$0xff] }
0x1191   :  { %10807 = vmatmul.mubr.msk.f32.vlgmr.msra.gmra.mrb[18].mxu1 %vm681_vm1, %v2452_v58 }
0x125c   :  { %v13926_v59 = vpop.f32.mrb[16].mxu1 }
0x125d   :  { %v13928_v60 = vpop.f32.mrb[17].mxu1 }
0x1264   :  { %v10808_v61 = vpop.f32.mrb[18].mxu1 }
0x1265   :  { %v2537_v62 = vadd.f32 %v10808_v61, %v13763_v33  ;;  %v2531_v63 = vpop.f32.mrb[19].mxu1 }
0x1266   :  { %v2532_v0 = vadd.f32 %v2531_v63, %v13766_v34 }
0x1267   :  { %v2543_v1 = vsel %vm767_vm3, %v2537_v62, -inf }
0x1268   :  { %2544 = vmax.xlane.f32.xlu0 %v2543_v1  ;;  %v2540_v2 = vsel %vm767_vm3, %v2532_v0, -inf }
0x1269   :  { %2541 = vmax.xlane.f32.xlu1 %v2540_v2 }
0x127a   :  { %2811 = vrot.lane.b32.xlu1 %v13890_v24, %s13236_s17 }
0x127e   :  { %12064 = vrot.lane.b32.xlu0 %v13888_v23, %s13237_s8 }
0x12f5   :  { %v2545_v3 = vpop.xlane.xlu0 %2544 }
0x12f6   :  { %v2547_v4 = vsub.f32 %v2537_v62, %v2545_v3  ;;  %v2542_v6 = vpop.xlane.xlu1 %2541 }
0x12f7   :  { %v2546_v8 = vsub.f32 %v2532_v0, %v2542_v6 }
0x12f8   :  { %v2550_v33 = vmul.f32 1.442695, %v2547_v4 }
0x12f9   :  { %v2548_v9 = vmul.f32 1.442695, %v2546_v8  ;;  %v12065_v10 = vpop.permute.xlu0 %12064 }
0x12fa   :  { %12314 = vpow2.f32 %v2550_v33  ;;  %v12067_v34 = vunpack.i.h.bf16 %v12065_v10  ;;  %v12066_v12 = vunpack.i.l.bf16 %v12065_v10  ;;  %v2812_v39 = vpop.permute.xlu1 %2811 }
0x12fb   :  { %12316 = vpow2.f32 %v2548_v9 }
0x12fc   :  { %v11502_v17 = vpack.c.bf16 %v12067_v34, %v12066_v12 }
0x12fe   :  { %11503 = vmatprep.subr.bf16.mxu1 %v11502_v17 }
0x12ff   :  { %11505 = vmatpush3.bf16.msra.mxu1 %v11502_v17 }
0x1304   :  { %v12315_v18 = vpop.eup %12314 }
0x1305   :  { %v2555_v20 = vsel %vm767_vm3, %v12315_v18, 0.0  ;;  %v12317_v21 = vpop.eup %12316 }
0x1306   :  { %2556 = vadd.xlane.f32.xlu0 %v2555_v20  ;;  %v2552_v22 = vsel %vm767_vm3, %v12317_v21, 0.0 }
0x130a   :  { %2553 = vadd.xlane.f32.xlu0 %v2552_v22 }
0x1320   :  { %12069 = vrot.lane.b32.xlu0 %v13888_v23, %s13235_s0 }
0x1324   :  { %2813 = vrot.lane.b32.xlu0 %v13900_v28, %s13236_s17 }
0x1328   :  { %12074 = vrot.lane.b32.xlu0 %v13888_v23, %s13238_s12 }
0x132c   :  { %3094 = vrot.lane.b32.xlu0 %v13890_v24, %s13240_s13 }
0x1330   :  { %3096 = vrot.lane.b32.xlu0 %v13900_v28, %s13240_s13 }
0x1393   :  { %v2557_v25 = vpop.xlane.xlu0 %2556 }
0x1394   :  { %12318 = vrcp.f32 %v2557_v25 }
0x1397   :  { %v2554_v13 = vpop.xlane.xlu0 %2553 }
0x1398   :  { %12320 = vrcp.f32 %v2554_v13 }
0x139b   :  { %v12070_v26 = vpop.permute.xlu0 %12069 }
0x139c   :  { %v12072_v27 = vunpack.i.h.bf16 %v12070_v26  ;;  %v12071_v29 = vunpack.i.l.bf16 %v12070_v26 }
0x139e   :  { %v11506_v30 = vpack.c.bf16 %v12072_v27, %v12071_v29  ;;  %v12319_v32 = vpop.eup %12318 }
0x139f   :  { %v2814_v31 = vpop.permute.xlu0 %2813  ;;  %v2561_v28 = vmul.f32 %v12319_v32, %v12315_v18 }
0x13a0   :  { %11508 = vmatprep.subr.msk.bf16.mxu1 %vm13740_vm2, %v11506_v30 }
0x13a2   :  { %v12321_v35 = vpop.eup %12320 }
0x13a3   :  { %v12075_v36 = vpop.permute.xlu0 %12074  ;;  %v2559_v37 = vmul.f32 %v12321_v35, %v12317_v21 }
0x13a4   :  { %v12077_v24 = vunpack.i.h.bf16 %v12075_v36  ;;  %v12076_v38 = vunpack.i.l.bf16 %v12075_v36 }
0x13a5   :  { %10813 = vmatprep.mubr.msk.f32.mxu1 %vm767_vm3, %v2559_v37 }
0x13a6   :  { %v11516_v40 = vpack.c.bf16 %v12077_v24, %v12076_v38  ;;  %10814 = vmatmul.mubr.msk.f32.vlgmr.msra.gmra.mrb[20].mxu1 %vm767_vm3, %v2561_v28 }
0x13a7   :  { %11511 = vmatpush3.bf16.xpose.msk.msra.mxu1 %vm13740_vm2, %v11506_v30  ;;  %10830 = vmatprep.mubr.msk.f32.mxu1 %vm681_vm1, %v2812_v39  ;;  %v3095_v41 = vpop.permute.xlu0 %3094 }
0x13a8   :  { %11518 = vmatprep.subr.msk.bf16.mxu1 %vm13740_vm2, %v11516_v40 }
0x13ab   :  { %v3097_v42 = vpop.permute.xlu0 %3096 }
0x13ae   :  { %10831 = vmatmul.mubr.msk.f32.vlgmr.msra.gmra.mrb[22].mxu1 %vm681_vm1, %v2814_v31  ;;  %v2245_v31 = vld [vmem:[%s14811_s4 + $0x10] sm:$0xff] }
0x13af   :  { %11521 = vmatpush3.bf16.xpose.msk.msra.mxu1 %vm13740_vm2, %v11516_v40  ;;  %10849 = vmatprep.mubr.msk.f32.mxu1 %vm681_vm1, %v3095_v41 }
0x13b6   :  { %10850 = vmatmul.mubr.msk.f32.vlgmr.msra.gmra.mrb[24].mxu1 %vm681_vm1, %v3097_v42  ;;  %v2246_v42 = vld [vmem:[%s14811_s4 + $0x18] sm:$0xff]  ;;  %s14828_s4 = sld [smem:[#allocation63_spill]] }
0x1479   :  { %v10815_v46 = vpop.f32.mrb[20].mxu1 }
0x147a   :  { %v2640_v48 = vpop.f32.mrb[21].mxu1 }
0x147b   :  { %10818 = vmatprep.mubr.msk.f32.mxu0 %vm681_vm1, %v2640_v48  ;;  %v10032_v48 = vld [vmem:[#allocation34] ss:$0 sm:$0xff] }
0x147c   :  { %10819 = vmatmul.mubr.msk.f32.vlgmr.msra.gmra.mrb[12].mxu0 %vm681_vm1, %v10815_v46 }
0x147d   :  { %10823 = vmatprep.mubr.msk.f32.mxu0 %vm681_vm1, %v13928_v60  ;;  %10822 = vmatpush3.msra.mxu0 %v2243_v44 }
0x1481   :  { %v10832_v45 = vpop.f32.mrb[22].mxu1 }
0x1482   :  { %v2899_v49 = vadd.f32 %v13971_v47, %v10832_v45  ;;  %v2893_v50 = vpop.f32.mrb[23].mxu1 }
0x1483   :  { %v2894_v52 = vadd.f32 %v13975_v51, %v2893_v50 }
0x1484   :  { %10824 = vmatmul.mubr.msk.f32.vlgmr.msra.gmra.mrb[12].mxu0 %vm681_vm1, %v13926_v59  ;;  %v2905_v53 = vsel %vm767_vm3, %v2899_v49, -inf }
0x1485   :  { %2906 = vmax.xlane.f32.xlu0 %v2905_v53  ;;  %v2902_v54 = vsel %vm767_vm3, %v2894_v52, -inf }
0x1486   :  { %2903 = vmax.xlane.f32.xlu1 %v2902_v54 }
0x1489   :  { %v10851_v14 = vpop.f32.mrb[24].mxu1 }
0x148a   :  { %v3176_v7 = vpop.f32.mrb[25].mxu1  ;;  %v3182_v0 = vadd.f32 %v13971_v47, %v10851_v14 }
0x148b   :  { %v3177_v59 = vadd.f32 %v13975_v51, %v3176_v7 }
0x148c   :  { %v3188_v2 = vsel %vm767_vm3, %v3182_v0, -inf }
0x148d   :  { %v3185_v1 = vsel %vm767_vm3, %v3177_v59, -inf }
0x1512   :  { %v2907_v16 = vpop.xlane.xlu0 %2906 }
0x1513   :  { %v2909_v5 = vsub.f32 %v2899_v49, %v2907_v16  ;;  %v2904_v55 = vpop.xlane.xlu1 %2903 }
0x1514   :  { %v2908_v56 = vsub.f32 %v2894_v52, %v2904_v55 }
0x1515   :  { %v2912_v57 = vmul.f32 1.442695, %v2909_v5 }
0x1516   :  { %v2910_v58 = vmul.f32 1.442695, %v2908_v56 }
0x1517   :  { %12322 = vpow2.f32 %v2912_v57 }
0x1518   :  { %12324 = vpow2.f32 %v2910_v58 }
0x1521   :  { %v12323_v60 = vpop.eup %12322 }
0x1522   :  { %v12325_v61 = vpop.eup %12324  ;;  %v2917_v62 = vsel %vm767_vm3, %v12323_v60, 0.0 }
0x1523   :  { %2918 = vadd.xlane.f32.xlu1 %v2917_v62  ;;  %v2914_v63 = vsel %vm767_vm3, %v12325_v61, 0.0  ;;  %v3433_v62 = vld [vmem:[%s14812_s22 + $0x8] sm:$0xff] }
0x1524   :  { %2915 = vadd.xlane.f32.xlu0 %v2914_v63  ;;  %v3434_v63 = vld [vmem:[%s14812_s22 + $0x10] sm:$0xff] }
0x1527   :  { %3186 = vmax.xlane.f32.xlu1 %v3185_v1  ;;  %v3435_v1 = vld [vmem:[%s14812_s22 + $0x18] sm:$0xff] }
0x152b   :  { %3189 = vmax.xlane.f32.xlu1 %v3188_v2  ;;  %v11530_v2 = vpack.c.bf16 %v3435_v1, %v3434_v63  ;;  %v10047_v63 = vld [vmem:[%s14815_s14] ss:$0 sm:$0xff]  ;;  %s14832_s14 = sld [smem:[#allocation71_spill]] }
0x153a   :  { %12079 = vrot.lane.b32.xlu0 %v13888_v23, %s13241_s20 }
0x15b0   :  { %v2919_v3 = vpop.xlane.xlu1 %2918 }
0x15b1   :  { %12326 = vrcp.f32 %v2919_v3  ;;  %v2916_v4 = vpop.xlane.xlu0 %2915  ;;  %v3766_v3 = vld [vmem:[%s14813_s23] sm:$0xff] }
0x15b2   :  { %12328 = vrcp.f32 %v2916_v4  ;;  %v3767_v4 = vld [vmem:[%s14813_s23 + $0x8] sm:$0xff] }
0x15b4   :  { %v3187_v6 = vpop.xlane.xlu1 %3186 }
0x15b5   :  { %v12080_v8 = vpop.permute.xlu0 %12079  ;;  %v3191_v10 = vsub.f32 %v3177_v59, %v3187_v6  ;;  %v3432_v59 = vld [vmem:[%s14812_s22] sm:$0xff]  ;;  %v11566_v6 = vpack.c.bf16 %v3767_v4, %v3766_v3  ;;  %s14829_s22 = sld [smem:[#allocation65_spill]] }
0x15b6   :  { %v12082_v33 = vunpack.i.h.bf16 %v12080_v8  ;;  %v12081_v9 = vunpack.i.l.bf16 %v12080_v8 }
0x15b7   :  { %v3193_v20 = vmul.f32 1.442695, %v3191_v10 }
0x15b8   :  { %v3190_v34 = vpop.xlane.xlu1 %3189  ;;  %v11512_v12 = vpack.c.bf16 %v12082_v33, %v12081_v9 }
0x15b9   :  { %v3192_v17 = vsub.f32 %v3182_v0, %v3190_v34  ;;  %v11526_v0 = vpack.c.bf16 %v3433_v62, %v3432_v59 }
0x15ba   :  { %11513 = vmatprep.subr.bf16.mxu0 %v11512_v12 }
0x15bb   :  { %v12327_v18 = vpop.eup %12326  ;;  %v3195_v21 = vmul.f32 1.442695, %v3192_v17  ;;  %11515 = vmatpush3.bf16.msra.mxu0 %v11512_v12  ;;  %11527 = vmatprep.subr.bf16.mxu1 %v11526_v0 }
0x15bc   :  { %v12329_v22 = vpop.eup %12328  ;;  %v2923_v13 = vmul.f32 %v12327_v18, %v12323_v60  ;;  %10840 = vmatprep.subr.mxu0 %v2245_v31  ;;  %11529 = vmatpush3.bf16.msra.mxu1 %v11526_v0  ;;  %v10033_v18 = vld [vmem:[#allocation29] ss:$0 sm:$0xff] }
0x15bd   :  { %12330 = vpow2.f32 %v3195_v21  ;;  %v2921_v25 = vmul.f32 %v12329_v22, %v12325_v61  ;;  %11531 = vmatprep.subr.bf16.mxu1 %v11530_v2  ;;  %v10034_v21 = vld [vmem:[#allocation28] ss:$0 sm:$0xff] }
0x15be   :  { %12332 = vpow2.f32 %v3193_v20 }
0x15bf   :  { %10837 = vmatprep.mubr.msk.f32.mxu0 %vm767_vm3, %v2921_v25 }
0x15c0   :  { %10838 = vmatmul.mubr.msk.f32.vlgmr.msra.gmra.mrb[14].mxu0 %vm767_vm3, %v2923_v13  ;;  %11533 = vmatpush3.bf16.msra.mxu1 %v11530_v2 }
0x15c1   :  { %10841 = vmatpush3.msra.mxu0 %v2245_v31  ;;  %11567 = vmatprep.subr.bf16.mxu1 %v11566_v6 }
0x15c7   :  { %v12331_v26 = vpop.eup %12330 }
0x15c8   :  { %v3200_v27 = vsel %vm767_vm3, %v12331_v26, 0.0  ;;  %v12333_v29 = vpop.eup %12332 }
0x15c9   :  { %3201 = vadd.xlane.f32.xlu1 %v3200_v27  ;;  %v3197_v30 = vsel %vm767_vm3, %v12333_v29, 0.0  ;;  %v3768_v27 = vld [vmem:[%s14813_s23 + $0x10] sm:$0xff] }
0x15cd   :  { %3198 = vadd.xlane.f32.xlu1 %v3197_v30 }
0x15de   :  { %12084 = vrot.lane.b32.xlu1 %v13888_v23, %s13242_s15 }
0x1656   :  { %v3202_v32 = vpop.xlane.xlu1 %3201 }
0x165a   :  { %v3199_v35 = vpop.xlane.xlu1 %3198 }
0x165b   :  { %12334 = vrcp.f32 %v3199_v35  ;;  %v14027_v35 = vld [vmem:[%s14803_s27] sm:$0xff] }
0x165c   :  { %12336 = vrcp.f32 %v3202_v32 }
0x165e   :  { %v12085_v36 = vpop.permute.xlu1 %12084 }
0x165f   :  { %v12087_v37 = vunpack.i.h.bf16 %v12085_v36  ;;  %v12086_v24 = vunpack.i.l.bf16 %v12085_v36  ;;  %v14032_v36 = vld [vmem:[%s14803_s27 + $0x8] sm:$0xff]  ;;  %s14823_s27 = sld [smem:[#allocation59_spill]] }
0x1661   :  { %v11522_v38 = vpack.c.bf16 %v12087_v37, %v12086_v24  ;;  %v3578_v37 = vld [vmem:[%s14814_s26] sm:$0xff]  ;;  %v3579_v24 = vld [vmem:[%s14814_s26 + $0x8] sm:$0xff] }
0x1663   :  { %11523 = vmatprep.subr.bf16.mxu0 %v11522_v38 }
0x1665   :  { %v12335_v28 = vpop.eup %12334 }
0x1666   :  { %v12337_v41 = vpop.eup %12336  ;;  %v3204_v23 = vmul.f32 %v12335_v28, %v12333_v29  ;;  %v3769_v29 = vld [vmem:[%s14813_s23 + $0x18] sm:$0xff]  ;;  %v3580_v28 = vld [vmem:[%s14814_s26 + $0x10] sm:$0xff]  ;;  %s14830_s23 = sld [smem:[#allocation90_spill]] }
0x1667   :  { %v3206_v43 = vmul.f32 %v12337_v41, %v12331_v26  ;;  %v11570_v32 = vpack.c.bf16 %v3769_v29, %v3768_v27  ;;  %v3582_v41 = vld [vmem:[%s14814_s26 + $0x20] sm:$0xff] }
0x1693   :  { %v10839_v39 = vpop.f32.mrb[14].mxu0 }
0x1694   :  { %v3002_v40 = vpop.f32.mrb[15].mxu0 }
0x1695   :  { %10842 = vmatprep.mubr.msk.f32.mxu0 %vm681_vm1, %v3002_v40 }
0x1696   :  { %10843 = vmatmul.mubr.msk.f32.vlgmr.msra.gmra.mrb[12].mxu0 %vm681_vm1, %v10839_v39  ;;  %v3581_v39 = vld [vmem:[%s14814_s26 + $0x18] sm:$0xff] }
0x1697   :  { %11525 = vmatpush3.bf16.msra.mxu0 %v11522_v38  ;;  %10856 = vmatprep.mubr.msk.f32.mxu0 %vm767_vm3, %v3204_v23  ;;  %v11534_v38 = vpack.c.bf16 %v3579_v24, %v3578_v37  ;;  %v11538_v40 = vpack.c.bf16 %v3581_v39, %v3580_v28  ;;  %v3583_v23 = vld [vmem:[%s14814_s26 + $0x28] sm:$0xff] }
0x1698   :  { %10859 = vmatprep.subr.mxu0 %v2246_v42 }
0x169a   :  { %10857 = vmatmul.mubr.msk.f32.vlgmr.msra.gmra.mrb[16].mxu0 %vm767_vm3, %v3206_v43  ;;  %v3584_v43 = vld [vmem:[%s14814_s26 + $0x30] sm:$0xff] }
0x169b   :  { %10860 = vmatpush3.msra.mxu0 %v2246_v42  ;;  %v11542_v42 = vpack.c.bf16 %v3583_v23, %v3582_v41 }
0x169c   :  { %11535 = vmatprep.subr.bf16.mxu0 %v11534_v38 }
0x176d   :  { %v10858_v44 = vpop.f32.mrb[16].mxu0 }
0x176e   :  { %v3285_v46 = vpop.f32.mrb[17].mxu0 }
0x176f   :  { %10861 = vmatprep.mubr.msk.f32.mxu0 %vm681_vm1, %v3285_v46 }
0x1770   :  { %10862 = vmatmul.mubr.msk.f32.vlgmr.msra.gmra.mrb[12].mxu0 %vm681_vm1, %v10858_v44  ;;  %v3585_v44 = vld [vmem:[%s14814_s26 + $0x38] sm:$0xff] }
0x1771   :  { %11537 = vmatpush3.bf16.msra.mxu0 %v11534_v38  ;;  %v11546_v46 = vpack.c.bf16 %v3585_v44, %v3584_v43 }
0x1772   :  { %11539 = vmatprep.subr.bf16.mxu0 %v11538_v40 }
0x1775   :  { %11541 = vmatpush3.bf16.msra.mxu0 %v11538_v40 }
0x1776   :  { %11543 = vmatprep.subr.bf16.mxu0 %v11542_v42 }
0x1779   :  { %11545 = vmatpush3.bf16.msra.mxu0 %v11542_v42 }
0x177a   :  { %11547 = vmatprep.subr.bf16.mxu0 %v11546_v46 }
0x177d   :  { %11549 = vmatpush3.bf16.msra.mxu0 %v11546_v46 }
0x1843   :  { %v10863_v45 = vpop.f32.mrb[12].mxu0 }
0x1844   :  { %v3385_v49 = vadd.f32 %v10863_v45, %v10032_v48  ;;  %v3366_v50 = vpop.f32.mrb[13].mxu0  ;;  %v3587_v45 = vld [vmem:[%s14814_s26 + $0x48] sm:$0xff] }
0x1845   :  { %v3384_v52 = vadd.f32 %v10032_v48, %v3366_v50  ;;  %v3586_v48 = vld [vmem:[%s14814_s26 + $0x40] sm:$0xff]  ;;  %v3588_v50 = vld [vmem:[%s14814_s26 + $0x50] sm:$0xff] }
0x1846   :  { %v3387_v53 = vadd.f32 %v3385_v49, %v13884_v15  ;;  %v11550_v49 = vpack.c.bf16 %v3587_v45, %v3586_v48 }
0x1847   :  { %v3386_v54 = vadd.f32 %v3384_v52, %v13880_v11  ;;  %v3589_v52 = vld [vmem:[%s14814_s26 + $0x58] sm:$0xff] }
0x1848   :  { %v3391_v14 = vsel %vm587_vm0, %v3387_v53, 0.0  ;;  %11551 = vmatprep.subr.bf16.mxu0 %v11550_v49 }
0x1849   :  { %3392 = vadd.xlane.f32.xlu1 %v3391_v14  ;;  %v3388_v7 = vsel %vm587_vm0, %v3386_v54, 0.0  ;;  %11553 = vmatpush3.bf16.msra.mxu0 %v11550_v49  ;;  %v3591_v14 = vld [vmem:[%s14814_s26 + $0x68] sm:$0xff] }
0x184a   :  { %3389 = vadd.xlane.f32.xlu0 %v3388_v7 }
0x18d6   :  { %v3393_v16 = vpop.xlane.xlu1 %3392 }
0x18d7   :  { %v3395_v5 = vmul.f32 0.03125, %v3393_v16  ;;  %v3390_v55 = vpop.xlane.xlu0 %3389  ;;  %v3592_v16 = vld [vmem:[%s14814_s26 + $0x70] sm:$0xff] }
0x18d8   :  { %v3394_v56 = vmul.f32 0.03125, %v3390_v55 }
0x18d9   :  { %v3397_v57 = vsub.f32 %v3387_v53, %v3395_v5  ;;  %v11554_v53 = vpack.c.bf16 %v3589_v52, %v3588_v50  ;;  %v3593_v5 = vld [vmem:[%s14814_s26 + $0x78] sm:$0xff] }
0x18da   :  { %v3396_v58 = vsub.f32 %v3386_v54, %v3394_v56  ;;  %v3590_v54 = vld [vmem:[%s14814_s26 + $0x60] sm:$0xff]  ;;  %v11562_v55 = vpack.c.bf16 %v3593_v5, %v3592_v16  ;;  %v10035_v56 = vld [vmem:[#allocation25] ss:$0 sm:$0xff]  ;;  %s14831_s26 = sld [smem:[#allocation72_spill]] }
0x18db   :  { %v3399_v15 = vmul.f32 %v3397_v57, %v3397_v57  ;;  %11555 = vmatprep.subr.bf16.mxu0 %v11554_v53  ;;  %v11558_v7 = vpack.c.bf16 %v3591_v14, %v3590_v54 }
0x18dc   :  { %v3398_v60 = vmul.f32 %v3396_v58, %v3396_v58  ;;  %11557 = vmatpush3.bf16.msra.mxu0 %v11554_v53 }
0x18dd   :  { %v3403_v61 = vsel %vm587_vm0, %v3399_v15, 0.0  ;;  %11559 = vmatprep.subr.bf16.mxu0 %v11558_v7 }
0x18de   :  { %v3400_v11 = vsel %vm587_vm0, %v3398_v60, 0.0 }
0x18df   :  { %3401 = vadd.xlane.f32.xlu0 %v3400_v11 }
0x18e0   :  { %11561 = vmatpush3.bf16.msra.mxu0 %v11558_v7 }
0x18e1   :  { %11563 = vmatprep.subr.bf16.mxu0 %v11562_v55 }
0x18e3   :  { %3404 = vadd.xlane.f32.xlu0 %v3403_v61 }
0x18e4   :  { %11565 = vmatpush3.bf16.msra.mxu0 %v11562_v55 }
0x196c   :  { %v3402_v8 = vpop.xlane.xlu0 %3401 }
0x196d   :  { %v3406_v33 = vmul.f32 0.03125, %v3402_v8 }
0x196f   :  { %v3408_v9 = vadd.f32 1e-05, %v3406_v33 }
0x1970   :  { %v3405_v10 = vpop.xlane.xlu0 %3404 }
0x1971   :  { %12338 = vrsqrt.f32 %v3408_v9  ;;  %v3407_v34 = vmul.f32 0.03125, %v3405_v10 }
0x1973   :  { %v3409_v12 = vadd.f32 1e-05, %v3407_v34 }
0x1975   :  { %12340 = vrsqrt.f32 %v3409_v12 }
0x197b   :  { %v12339_v17 = vpop.eup %12338 }
0x197c   :  { %v3412_v20 = vmul.f32 %v12339_v17, %v3396_v58 }
0x197e   :  { %v3421_v22 = vmul.f32 %v10033_v18, %v3412_v20 }
0x197f   :  { %v12341_v25 = vpop.eup %12340 }
0x1980   :  { %v3413_v13 = vmul.f32 %v12341_v25, %v3397_v57  ;;  %v14016_v26 = vadd.f32 %v10034_v21, %v3421_v22 }
0x1982   :  { %v3422_v30 = vmul.f32 %v10033_v18, %v3413_v13  ;;  %10872 = vmatprep.mubr.msk.f32.mxu1 %vm587_vm0, %v14016_v26 }
0x1984   :  { %v14022_v31 = vadd.f32 %v10034_v21, %v3422_v30 }
0x1986   :  { %10873 = vmatmul.mubr.msk.f32.vlgmr.msra.gmra.mrb[26].mxu1 %vm587_vm0, %v14022_v31 }
0x1987   :  { %11569 = vmatpush3.bf16.msra.mxu1 %v11566_v6  ;;  %10918 = vmatprep.mubr.msk.f32.mxu1 %vm587_vm0, %v14027_v35 }
0x1988   :  { %11571 = vmatprep.subr.bf16.mxu1 %v11570_v32 }
0x198b   :  { %11573 = vmatpush3.bf16.msra.mxu1 %v11570_v32 }
0x198e   :  { %10919 = vmatmul.mubr.msk.f32.vlgmr.msra.gmra.mrb[28].mxu1 %vm587_vm0, %v14032_v36 }
0x1a59   :  { %v10874_v57 = vpop.f32.mrb[26].mxu1 }
0x1a5a   :  { %v14052_v58 = vadd.f32 %v10874_v57, %v10035_v56  ;;  %v3515_v60 = vpop.f32.mrb[27].mxu1 }
0x1a5b   :  { %v3516_v11 = vadd.f32 %v10035_v56, %v3515_v60 }
0x1a5c   :  { %v3525_v15 = vmul.f32 0.70710677, %v14052_v58  ;;  %v3573_v60 = vmul.f32 0.5, %v14052_v58  ;;  %v14077_v58 = vld [vmem:[#allocation26] ss:$0 sm:$0xff] }
0x1a5d   :  { %v3524_v61 = vmul.f32 0.70710677, %v3516_v11  ;;  %v3572_v56 = vmul.f32 0.5, %v3516_v11 }
0x1a5e   :  { %v3527_v59 = vand.u32 2147483647, %v3525_v15  ;;  %vm3567_vm6 = vcmp.lt.f32.partialorder %v3525_v15, 0.0 }
0x1a5f   :  { %v3526_v62 = vand.u32 2147483647, %v3524_v61  ;;  %vm3566_vm7 = vcmp.lt.f32.partialorder %v3524_v61, 0.0 }
0x1a60   :  { %v3529_v0 = vmul.f32 0.3275911, %v3527_v59  ;;  %v3555_v34 = vsub.f32 0.0, %v3527_v59 }
0x1a61   :  { %v3528_v1 = vmul.f32 0.3275911, %v3526_v62  ;;  %v10920_v2 = vpop.f32.mrb[28].mxu1  ;;  %v3554_v12 = vsub.f32 0.0, %v3526_v62 }
0x1a62   :  { %v3531_v3 = vadd.f32 1.0, %v3529_v0  ;;  %v14056_v4 = vadd.f32 %v10920_v2, %v10047_v63  ;;  %v3843_v6 = vpop.f32.mrb[29].mxu1  ;;  %v3557_v18 = vmul.f32 %v3555_v34, %v3527_v59 }
0x1a63   :  { %v3530_v8 = vadd.f32 1.0, %v3528_v1  ;;  %v3844_v33 = vadd.f32 %v10047_v63, %v3843_v6  ;;  %v3556_v22 = vmul.f32 %v3554_v12, %v3526_v62 }
0x1a64   :  { %12342 = vrcp.f32 %v3531_v3  ;;  %v3560_v27 = vmul.f32 1.442695, %v3557_v18  ;;  %v14073_v15 = vmul.f32 0.35355338, %v14056_v4 }
0x1a65   :  { %12344 = vrcp.f32 %v3530_v8  ;;  %v14059_v9 = vpack.i.bf16 %v14056_v4, %v3844_v33  ;;  %v14061_v10 = vmul.f32 0.35355338, %v3844_v33  ;;  %v3558_v32 = vmul.f32 1.442695, %v3556_v22 }
0x1a66   :  { %12346 = vpow2.f32 %v3560_v27 }
0x1a67   :  { %12089 = vrot.lane.b32.xlu0 %v14059_v9, %s13232_s2  ;;  %10925 = vmatprep.mubr.msk.f32.mxu1 %vm681_vm1, %v14061_v10  ;;  %12348 = vpow2.f32 %v3558_v32 }
0x1a6e   :  { %v12343_v17 = vpop.eup %12342 }
0x1a6f   :  { %v12345_v20 = vpop.eup %12344  ;;  %v3537_v21 = vmul.f32 1.0614054, %v12343_v17 }
0x1a70   :  { %v3536_v25 = vmul.f32 1.0614054, %v12345_v20  ;;  %v12347_v48 = vpop.eup %12346 }
0x1a71   :  { %v10039_v13 = vadd.f32 -1.4531521, %v3537_v21  ;;  %v12349_v49 = vpop.eup %12348 }
0x1a72   :  { %v10038_v29 = vadd.f32 -1.4531521, %v3536_v25 }
0x1a73   :  { %v3541_v30 = vmul.f32 %v12343_v17, %v10039_v13 }
0x1a74   :  { %v3540_v37 = vmul.f32 %v12345_v20, %v10038_v29 }
0x1a75   :  { %v3543_v24 = vadd.f32 1.4214138, %v3541_v30 }
0x1a76   :  { %v3542_v38 = vadd.f32 1.4214138, %v3540_v37 }
0x1a77   :  { %v3545_v28 = vmul.f32 %v12343_v17, %v3543_v24 }
0x1a78   :  { %v3544_v39 = vmul.f32 %v12345_v20, %v3542_v38 }
0x1a79   :  { %v10041_v40 = vadd.f32 -0.28449672, %v3545_v28 }
0x1a7a   :  { %v10040_v41 = vadd.f32 -0.28449672, %v3544_v39 }
0x1a7b   :  { %v3549_v23 = vmul.f32 %v12343_v17, %v10041_v40 }
0x1a7c   :  { %v3548_v42 = vmul.f32 %v12345_v20, %v10040_v41 }
0x1a7d   :  { %v3551_v43 = vadd.f32 0.2548296, %v3549_v23 }
0x1a7e   :  { %v3550_v44 = vadd.f32 0.2548296, %v3548_v42 }
0x1a7f   :  { %v3553_v46 = vmul.f32 %v12343_v17, %v3551_v43 }
0x1a80   :  { %v3552_v45 = vmul.f32 %v12345_v20, %v3550_v44 }
0x1a81   :  { %v3563_v50 = vmul.f32 %v12347_v48, %v3553_v46 }
0x1a82   :  { %v3562_v52 = vmul.f32 %v12349_v49, %v3552_v45 }
0x1a83   :  { %v3565_v53 = vsub.f32 1.0, %v3563_v50 }
0x1a84   :  { %v3564_v54 = vsub.f32 1.0, %v3562_v52 }
0x1a85   :  { %v3569_v14 = vsub.f32 0.0, %v3565_v53 }
0x1a86   :  { %v3568_v7 = vsub.f32 0.0, %v3564_v54 }
0x1a87   :  { %v3571_v16 = vsel %vm3567_vm6, %v3569_v14, %v3565_v53 }
0x1a88   :  { %v3575_v5 = vadd.f32 1.0, %v3571_v16  ;;  %v3570_v55 = vsel %vm3566_vm7, %v3568_v7, %v3564_v54 }
0x1a89   :  { %v3574_v57 = vadd.f32 1.0, %v3570_v55 }
0x1a8a   :  { %v3577_v62 = vmul.f32 %v3575_v5, %v3573_v60 }
0x1a8b   :  { %v3576_v59 = vmul.f32 %v3574_v57, %v3572_v56 }
0x1a8d   :  { %10907 = vmatprep.mubr.f32.mxu0 %v3576_v59 }
0x1a8e   :  { %10908 = vmatmul.mubr.f32.vlgmr.msra.gmra.mrb[18].mxu0 %v3577_v62 }
0x1ad9   :  { %v12090_v63 = vpop.permute.xlu0 %12089 }
0x1ada   :  { %v12092_v0 = vunpack.i.h.bf16 %v12090_v63  ;;  %v12091_v1 = vunpack.i.l.bf16 %v12090_v63 }
0x1adc   :  { %v11574_v2 = vpack.c.bf16 %v12092_v0, %v12091_v1 }
0x1ade   :  { %11576 = vmatprep.subr.msk.bf16.mxu1 %vm13740_vm2, %v11574_v2 }
0x1adf   :  { %11579 = vmatpush3.bf16.xpose.msk.msra.mxu1 %vm13740_vm2, %v11574_v2 }
0x1ae6   :  { %10926 = vmatmul.mubr.msk.f32.vlgmr.msra.gmra.mrb[30].mxu1 %vm681_vm1, %v14073_v15 }
0x1b61   :  { %v10909_v11 = vpop.f32.mrb[18].mxu0 }
0x1b62   :  { %v14080_v61 = vadd.f32 %v10909_v11, %v14077_v58  ;;  %v14082_v3 = vpop.f32.mrb[19].mxu0 }
0x1bb9   :  { %v10927_v6 = vpop.f32.mrb[30].mxu1 }
0x1bba   :  { %v3940_v8 = vpop.f32.mrb[31].mxu1  ;;  %v3946_v34 = vadd.f32 %v13971_v47, %v10927_v6 }
0x1bbb   :  { %v3941_v33 = vadd.f32 %v13975_v51, %v3940_v8 }
0x1bbc   :  { %v3952_v12 = vsel %vm767_vm3, %v3946_v34, -inf }
0x1bbd   :  { %v3949_v4 = vsel %vm767_vm3, %v3941_v33, -inf }
0x1bbe   :  { %3950 = vmax.xlane.f32.xlu1 %v3949_v4 }
0x1bc2   :  { %3953 = vmax.xlane.f32.xlu1 %v3952_v12 }
0x1bd3   :  { %12094 = vrot.lane.b32.xlu1 %v14059_v9, %s13239_s11 }
0x1bd7   :  { %12099 = vrot.lane.b32.xlu1 %v14059_v9, %s13234_s7 }
0x1bdb   :  { %4058 = vrot.lane.b32.xlu1 %v14061_v10, %s13233_s29 }
0x1c4b   :  { %v3951_v17 = vpop.xlane.xlu1 %3950 }
0x1c4c   :  { %v3955_v18 = vsub.f32 %v3941_v33, %v3951_v17 }
0x1c4e   :  { %v3957_v20 = vmul.f32 1.442695, %v3955_v18 }
0x1c4f   :  { %v3954_v21 = vpop.xlane.xlu1 %3953 }
0x1c50   :  { %12350 = vpow2.f32 %v3957_v20  ;;  %v3956_v22 = vsub.f32 %v3946_v34, %v3954_v21 }
0x1c52   :  { %v3959_v25 = vmul.f32 1.442695, %v3956_v22 }
0x1c53   :  { %v12095_v13 = vpop.permute.xlu1 %12094 }
0x1c54   :  { %12352 = vpow2.f32 %v3959_v25  ;;  %v12097_v27 = vunpack.i.h.bf16 %v12095_v13  ;;  %v12096_v29 = vunpack.i.l.bf16 %v12095_v13 }
0x1c56   :  { %v11580_v30 = vpack.c.bf16 %v12097_v27, %v12096_v29 }
0x1c57   :  { %v12100_v32 = vpop.permute.xlu1 %12099 }
0x1c58   :  { %v12102_v37 = vunpack.i.h.bf16 %v12100_v32  ;;  %v12101_v24 = vunpack.i.l.bf16 %v12100_v32  ;;  %11581 = vmatprep.subr.bf16.mxu1 %v11580_v30 }
0x1c59   :  { %11583 = vmatpush3.bf16.msra.mxu1 %v11580_v30 }
0x1c5a   :  { %v12351_v38 = vpop.eup %12350  ;;  %v11584_v28 = vpack.c.bf16 %v12102_v37, %v12101_v24 }
0x1c5b   :  { %v3961_v39 = vsel %vm767_vm3, %v12351_v38, 0.0  ;;  %v4059_v23 = vpop.permute.xlu1 %4058 }
0x1c5c   :  { %3962 = vadd.xlane.f32.xlu1 %v3961_v39  ;;  %11586 = vmatprep.subr.msk.bf16.mxu1 %vm13740_vm2, %v11584_v28 }
0x1c5e   :  { %v12353_v40 = vpop.eup %12352 }
0x1c5f   :  { %v3964_v41 = vsel %vm767_vm3, %v12353_v40, 0.0 }
0x1c60   :  { %3965 = vadd.xlane.f32.xlu0 %v3964_v41 }
0x1c6d   :  { %4060 = vrot.lane.b32.xlu1 %v14073_v15, %s13233_s29 }
0x1ce9   :  { %v3963_v42 = vpop.xlane.xlu1 %3962 }
0x1cea   :  { %12354 = vrcp.f32 %v3963_v42 }
0x1ced   :  { %v3966_v43 = vpop.xlane.xlu0 %3965  ;;  %v4061_v49 = vpop.permute.xlu1 %4060 }
0x1cee   :  { %12356 = vrcp.f32 %v3966_v43 }
0x1cf4   :  { %v12355_v44 = vpop.eup %12354 }
0x1cf5   :  { %v3968_v46 = vmul.f32 %v12355_v44, %v12351_v38  ;;  %v3853_v38 = vld [vmem:[%s14816_s28 + $0x8] sm:$0xff] }
0x1cf6   :  { %10949 = vmatprep.subr.mxu0 %v3853_v38 }
0x1cf7   :  { %10932 = vmatprep.mubr.msk.f32.mxu1 %vm767_vm3, %v3968_v46  ;;  %10950 = vmatpush3.msra.mxu0 %v3853_v38 }
0x1cf8   :  { %v12357_v48 = vpop.eup %12356 }
0x1cf9   :  { %v3970_v45 = vmul.f32 %v12357_v48, %v12353_v40 }
0x1cfb   :  { %10933 = vmatmul.mubr.msk.f32.vlgmr.msra.gmra.mrb[32].mxu1 %vm767_vm3, %v3970_v45 }
0x1cfc   :  { %11589 = vmatpush3.bf16.xpose.msk.msra.mxu1 %vm13740_vm2, %v11584_v28  ;;  %10939 = vmatprep.mubr.msk.f32.mxu1 %vm681_vm1, %v4059_v23  ;;  %v3852_v28 = vld [vmem:[%s14816_s28] sm:$0xff] }
0x1cfd   :  { %10954 = vmatprep.subr.mxu0 %v3852_v28 }
0x1d03   :  { %10940 = vmatmul.mubr.msk.f32.vlgmr.msra.gmra.mrb[34].mxu1 %vm681_vm1, %v4061_v49 }
0x1dce   :  { %v14106_v50 = vpop.f32.mrb[32].mxu1 }
0x1dcf   :  { %v14108_v52 = vpop.f32.mrb[33].mxu1 }
0x1dd6   :  { %v10941_v53 = vpop.f32.mrb[34].mxu1 }
0x1dd7   :  { %v4146_v54 = vadd.f32 %v13971_v47, %v10941_v53  ;;  %v4140_v14 = vpop.f32.mrb[35].mxu1 }
0x1dd8   :  { %v4141_v7 = vadd.f32 %v13975_v51, %v4140_v14 }
0x1dd9   :  { %v4152_v16 = vsel %vm767_vm3, %v4146_v54, -inf }
0x1dda   :  { %4153 = vmax.xlane.f32.xlu0 %v4152_v16  ;;  %v4149_v5 = vsel %vm767_vm3, %v4141_v7, -inf }
0x1ddb   :  { %4150 = vmax.xlane.f32.xlu1 %v4149_v5 }
0x1dec   :  { %4420 = vrot.lane.b32.xlu1 %v14061_v10, %s13236_s17 }
0x1df0   :  { %12104 = vrot.lane.b32.xlu0 %v14059_v9, %s13237_s8 }
0x1e67   :  { %v4154_v55 = vpop.xlane.xlu0 %4153 }
0x1e68   :  { %v4156_v56 = vsub.f32 %v4146_v54, %v4154_v55  ;;  %v4151_v57 = vpop.xlane.xlu1 %4150 }
0x1e69   :  { %v4155_v60 = vsub.f32 %v4141_v7, %v4151_v57 }
0x1e6a   :  { %v4159_v59 = vmul.f32 1.442695, %v4156_v56 }
0x1e6b   :  { %v4157_v62 = vmul.f32 1.442695, %v4155_v60  ;;  %v12105_v63 = vpop.permute.xlu0 %12104 }
0x1e6c   :  { %12358 = vpow2.f32 %v4159_v59  ;;  %v12107_v0 = vunpack.i.h.bf16 %v12105_v63  ;;  %v12106_v1 = vunpack.i.l.bf16 %v12105_v63  ;;  %v4421_v30 = vpop.permute.xlu1 %4420 }
0x1e6d   :  { %12360 = vpow2.f32 %v4157_v62 }
0x1e6e   :  { %v11590_v2 = vpack.c.bf16 %v12107_v0, %v12106_v1 }
0x1e70   :  { %11591 = vmatprep.subr.bf16.mxu1 %v11590_v2 }
0x1e71   :  { %11593 = vmatpush3.bf16.msra.mxu1 %v11590_v2 }
0x1e76   :  { %v12359_v11 = vpop.eup %12358 }
0x1e77   :  { %v4164_v6 = vsel %vm767_vm3, %v12359_v11, 0.0  ;;  %v12361_v8 = vpop.eup %12360 }
0x1e78   :  { %4165 = vadd.xlane.f32.xlu0 %v4164_v6  ;;  %v4161_v33 = vsel %vm767_vm3, %v12361_v8, 0.0 }
0x1e7c   :  { %4162 = vadd.xlane.f32.xlu0 %v4161_v33 }
0x1e92   :  { %12109 = vrot.lane.b32.xlu0 %v14059_v9, %s13235_s0 }
0x1e96   :  { %4422 = vrot.lane.b32.xlu0 %v14073_v15, %s13236_s17 }
0x1e9a   :  { %12114 = vrot.lane.b32.xlu0 %v14059_v9, %s13238_s12 }
0x1e9e   :  { %4703 = vrot.lane.b32.xlu0 %v14061_v10, %s13240_s13 }
0x1ea2   :  { %4705 = vrot.lane.b32.xlu0 %v14073_v15, %s13240_s13 }
0x1f05   :  { %v4166_v34 = vpop.xlane.xlu0 %4165 }
0x1f06   :  { %12362 = vrcp.f32 %v4166_v34 }
0x1f09   :  { %v4163_v4 = vpop.xlane.xlu0 %4162 }
0x1f0a   :  { %12364 = vrcp.f32 %v4163_v4 }
0x1f0d   :  { %v12110_v12 = vpop.permute.xlu0 %12109 }
0x1f0e   :  { %v12112_v17 = vunpack.i.h.bf16 %v12110_v12  ;;  %v12111_v18 = vunpack.i.l.bf16 %v12110_v12 }
0x1f10   :  { %v11594_v20 = vpack.c.bf16 %v12112_v17, %v12111_v18  ;;  %v12363_v22 = vpop.eup %12362 }
0x1f11   :  { %v4423_v21 = vpop.permute.xlu0 %4422  ;;  %v4170_v15 = vmul.f32 %v12363_v22, %v12359_v11 }
0x1f12   :  { %11596 = vmatprep.subr.msk.bf16.mxu1 %vm13740_vm2, %v11594_v20 }
0x1f14   :  { %v12365_v25 = vpop.eup %12364 }
0x1f15   :  { %v12115_v13 = vpop.permute.xlu0 %12114  ;;  %v4168_v27 = vmul.f32 %v12365_v25, %v12361_v8 }
0x1f16   :  { %v12117_v10 = vunpack.i.h.bf16 %v12115_v13  ;;  %v12116_v29 = vunpack.i.l.bf16 %v12115_v13  ;;  %v3854_v13 = vld [vmem:[%s14816_s28 + $0x10] sm:$0xff] }
0x1f17   :  { %10946 = vmatprep.mubr.msk.f32.mxu1 %vm767_vm3, %v4168_v27 }
0x1f18   :  { %v11604_v32 = vpack.c.bf16 %v12117_v10, %v12116_v29  ;;  %10947 = vmatmul.mubr.msk.f32.vlgmr.msra.gmra.mrb[36].mxu1 %vm767_vm3, %v4170_v15 }
0x1f19   :  { %11599 = vmatpush3.bf16.xpose.msk.msra.mxu1 %vm13740_vm2, %v11594_v20  ;;  %10963 = vmatprep.mubr.msk.f32.mxu1 %vm681_vm1, %v4421_v30  ;;  %v4704_v37 = vpop.permute.xlu0 %4703 }
0x1f1a   :  { %11606 = vmatprep.subr.msk.bf16.mxu1 %vm13740_vm2, %v11604_v32 }
0x1f1d   :  { %v4706_v24 = vpop.permute.xlu0 %4705 }
0x1f20   :  { %10964 = vmatmul.mubr.msk.f32.vlgmr.msra.gmra.mrb[38].mxu1 %vm681_vm1, %v4423_v21 }
0x1f21   :  { %11609 = vmatpush3.bf16.xpose.msk.msra.mxu1 %vm13740_vm2, %v11604_v32  ;;  %10982 = vmatprep.mubr.msk.f32.mxu1 %vm681_vm1, %v4704_v37  ;;  %v3677_v32 = vadd.f32 %v14080_v61, %v14022_v31  ;;  %v10043_v61 = vld [vmem:[#allocation32] ss:$0 sm:$0xff] }
0x1f23   :  { %v3681_v37 = vsel %vm587_vm0, %v3677_v32, 0.0 }
0x1f28   :  { %10983 = vmatmul.mubr.msk.f32.vlgmr.msra.gmra.mrb[40].mxu1 %vm681_vm1, %v4706_v24 }
0x1feb   :  { %v10948_v39 = vpop.f32.mrb[36].mxu1 }
0x1fec   :  { %v4249_v40 = vpop.f32.mrb[37].mxu1 }
0x1fed   :  { %10951 = vmatprep.mubr.msk.f32.mxu0 %vm681_vm1, %v4249_v40 }
0x1fee   :  { %10952 = vmatmul.mubr.msk.f32.vlgmr.msra.gmra.mrb[20].mxu0 %vm681_vm1, %v10948_v39 }
0x1fef   :  { %10956 = vmatprep.mubr.msk.f32.mxu0 %vm681_vm1, %v14108_v52  ;;  %10955 = vmatpush3.msra.mxu0 %v3852_v28 }
0x1ff3   :  { %v10965_v41 = vpop.f32.mrb[38].mxu1 }
0x1ff4   :  { %v4508_v23 = vadd.f32 %v13971_v47, %v10965_v41  ;;  %v4502_v42 = vpop.f32.mrb[39].mxu1 }
0x1ff5   :  { %v4503_v43 = vadd.f32 %v13975_v51, %v4502_v42 }
0x1ff6   :  { %v4514_v44 = vsel %vm767_vm3, %v4508_v23, -inf  ;;  %10957 = vmatmul.mubr.msk.f32.vlgmr.msra.gmra.mrb[20].mxu0 %vm681_vm1, %v14106_v50 }
0x1ff7   :  { %4515 = vmax.xlane.f32.xlu0 %v4514_v44  ;;  %v4511_v46 = vsel %vm767_vm3, %v4503_v43, -inf }
0x1ff8   :  { %4512 = vmax.xlane.f32.xlu1 %v4511_v46 }
0x1ffb   :  { %v10984_v48 = vpop.f32.mrb[40].mxu1 }
0x1ffc   :  { %v4785_v45 = vpop.f32.mrb[41].mxu1  ;;  %v4791_v57 = vadd.f32 %v13971_v47, %v10984_v48 }
0x1ffd   :  { %v4786_v55 = vadd.f32 %v13975_v51, %v4785_v45  ;;  %v3668_v51 = vadd.f32 %v14077_v58, %v14082_v3 }
0x1ffe   :  { %v4797_v59 = vsel %vm767_vm3, %v4791_v57, -inf }
0x1fff   :  { %v4794_v60 = vsel %vm767_vm3, %v4786_v55, -inf  ;;  %v3676_v62 = vadd.f32 %v3668_v51, %v14016_v26 }
0x2001   :  { %v3678_v63 = vsel %vm587_vm0, %v3676_v62, 0.0 }
0x2084   :  { %v4516_v49 = vpop.xlane.xlu0 %4515 }
0x2085   :  { %v4518_v52 = vsub.f32 %v4508_v23, %v4516_v49  ;;  %v4513_v53 = vpop.xlane.xlu1 %4512 }
0x2086   :  { %v4517_v54 = vsub.f32 %v4503_v43, %v4513_v53 }
0x2087   :  { %v4521_v14 = vmul.f32 1.442695, %v4518_v52 }
0x2088   :  { %v4519_v7 = vmul.f32 1.442695, %v4517_v54 }
0x2089   :  { %12366 = vpow2.f32 %v4521_v14  ;;  %v10044_v14 = vld [vmem:[#allocation31] ss:$0 sm:$0xff] }
0x208a   :  { %12368 = vpow2.f32 %v4519_v7 }
0x2093   :  { %v12367_v16 = vpop.eup %12366 }
0x2094   :  { %v12369_v5 = vpop.eup %12368  ;;  %v4526_v50 = vsel %vm767_vm3, %v12367_v16, 0.0 }
0x2095   :  { %4527 = vadd.xlane.f32.xlu1 %v4526_v50  ;;  %v4523_v56 = vsel %vm767_vm3, %v12369_v5, 0.0 }
0x2096   :  { %4524 = vadd.xlane.f32.xlu0 %v4523_v56 }
0x2099   :  { %4795 = vmax.xlane.f32.xlu1 %v4794_v60 }
0x209d   :  { %4798 = vmax.xlane.f32.xlu1 %v4797_v59 }
0x20ac   :  { %12119 = vrot.lane.b32.xlu0 %v14059_v9, %s13241_s20 }
0x20cb   :  { %3679 = vadd.xlane.f32.xlu0 %v3678_v63 }
0x2122   :  { %v4528_v0 = vpop.xlane.xlu1 %4527 }
0x2123   :  { %12370 = vrcp.f32 %v4528_v0  ;;  %v4525_v47 = vpop.xlane.xlu0 %4524 }
0x2124   :  { %12372 = vrcp.f32 %v4525_v47 }
0x2126   :  { %v4796_v1 = vpop.xlane.xlu1 %4795 }
0x2127   :  { %v12120_v2 = vpop.permute.xlu0 %12119  ;;  %v4800_v8 = vsub.f32 %v4786_v55, %v4796_v1 }
0x2128   :  { %v12122_v11 = vunpack.i.h.bf16 %v12120_v2  ;;  %v12121_v6 = vunpack.i.l.bf16 %v12120_v2 }
0x2129   :  { %v4802_v58 = vmul.f32 1.442695, %v4800_v8 }
0x212a   :  { %v4799_v33 = vpop.xlane.xlu1 %4798  ;;  %v11600_v34 = vpack.c.bf16 %v12122_v11, %v12121_v6 }
0x212b   :  { %v4801_v4 = vsub.f32 %v4791_v57, %v4799_v33  ;;  %v3855_v57 = vld [vmem:[%s14816_s28 + $0x18] sm:$0xff]  ;;  %s14845_s28 = sld [smem:[#allocation83_spill]] }
0x212c   :  { %11601 = vmatprep.subr.bf16.mxu0 %v11600_v34 }
0x212d   :  { %v12371_v12 = vpop.eup %12370  ;;  %v4804_v3 = vmul.f32 1.442695, %v4801_v4  ;;  %11603 = vmatpush3.bf16.msra.mxu0 %v11600_v34  ;;  %v10082_v4 = vld [vmem:[%s14817_s5] ss:$0 sm:$0xff]  ;;  %s14846_s5 = sld [smem:[#allocation58_spill]] }
0x212e   :  { %v12373_v26 = vpop.eup %12372  ;;  %v4532_v18 = vmul.f32 %v12371_v12, %v12367_v16  ;;  %10973 = vmatprep.subr.mxu0 %v3854_v13 }
0x212f   :  { %12374 = vpow2.f32 %v4804_v3  ;;  %v4530_v17 = vmul.f32 %v12373_v26, %v12369_v5 }
0x2130   :  { %12376 = vpow2.f32 %v4802_v58 }
0x2131   :  { %10970 = vmatprep.mubr.msk.f32.mxu0 %vm767_vm3, %v4530_v17 }
0x2132   :  { %10971 = vmatmul.mubr.msk.f32.vlgmr.msra.gmra.mrb[22].mxu0 %vm767_vm3, %v4532_v18 }
0x2133   :  { %10974 = vmatpush3.msra.mxu0 %v3854_v13 }
0x2139   :  { %v12375_v20 = vpop.eup %12374 }
0x213a   :  { %v4809_v21 = vsel %vm767_vm3, %v12375_v20, 0.0  ;;  %v12377_v22 = vpop.eup %12376 }
0x213b   :  { %4810 = vadd.xlane.f32.xlu1 %v4809_v21  ;;  %v4806_v25 = vsel %vm767_vm3, %v12377_v22, 0.0 }
0x213f   :  { %4807 = vadd.xlane.f32.xlu1 %v4806_v25 }
0x2150   :  { %12124 = vrot.lane.b32.xlu1 %v14059_v9, %s13242_s15 }
0x2158   :  { %v3680_v27 = vpop.xlane.xlu0 %3679 }
0x2159   :  { %v3684_v10 = vmul.f32 0.03125, %v3680_v27 }
0x215b   :  { %v3686_v29 = vsub.f32 %v3676_v62, %v3684_v10 }
0x215d   :  { %v3688_v15 = vmul.f32 %v3686_v29, %v3686_v29 }
0x215f   :  { %v3690_v30 = vsel %vm587_vm0, %v3688_v15, 0.0 }
0x2160   :  { %3691 = vadd.xlane.f32.xlu0 %v3690_v30 }
0x2174   :  { %3682 = vadd.xlane.f32.xlu1 %v3681_v37 }
0x21c8   :  { %v4811_v24 = vpop.xlane.xlu1 %4810 }
0x21cc   :  { %v4808_v38 = vpop.xlane.xlu1 %4807 }
0x21d0   :  { %v12125_v28 = vpop.permute.xlu1 %12124 }
0x21d1   :  { %v12127_v9 = vunpack.i.h.bf16 %v12125_v28  ;;  %v12126_v39 = vunpack.i.l.bf16 %v12125_v28 }
0x21d3   :  { %v11610_v40 = vpack.c.bf16 %v12127_v9, %v12126_v39 }
0x21d5   :  { %11611 = vmatprep.subr.bf16.mxu0 %v11610_v40 }
0x21ed   :  { %v3692_v41 = vpop.xlane.xlu0 %3691 }
0x21ee   :  { %v3696_v23 = vmul.f32 0.03125, %v3692_v41 }
0x21f0   :  { %v3698_v42 = vadd.f32 1e-05, %v3696_v23 }
0x21f2   :  { %12378 = vrsqrt.f32 %v3698_v42 }
0x21f3   :  { %12380 = vrcp.f32 %v4808_v38 }
0x21f4   :  { %12382 = vrcp.f32 %v4811_v24 }
0x21fc   :  { %v12379_v43 = vpop.eup %12378 }
0x21fd   :  { %v3702_v46 = vmul.f32 %v12379_v43, %v3686_v29  ;;  %v12381_v48 = vpop.eup %12380 }
0x21fe   :  { %v12383_v7 = vpop.eup %12382  ;;  %v4813_v16 = vmul.f32 %v12381_v48, %v12377_v22 }
0x21ff   :  { %v3711_v52 = vmul.f32 %v10043_v61, %v3702_v46  ;;  %v4815_v50 = vmul.f32 %v12383_v7, %v12375_v20  ;;  %v5044_v46 = vld [vmem:[%s14818_s24 + $0x18] sm:$0xff] }
0x2201   :  { %v3683_v44 = vpop.xlane.xlu1 %3682  ;;  %v3720_v55 = vadd.f32 %v10044_v14, %v3711_v52  ;;  %v10046_v52 = vld [vmem:[#allocation37] ss:$0 sm:$0xff] }
0x2202   :  { %v3685_v31 = vmul.f32 0.03125, %v3683_v44  ;;  %v5043_v44 = vld [vmem:[%s14818_s24 + $0x10] sm:$0xff] }
0x2203   :  { %v3722_v56 = vsel %vm587_vm0, %v3720_v55, 0.0 }
0x2204   :  { %v3687_v45 = vsub.f32 %v3677_v32, %v3685_v31 }
0x2205   :  { %v10972_v49 = vpop.f32.mrb[22].mxu0 }
0x2206   :  { %v4611_v53 = vpop.f32.mrb[23].mxu0  ;;  %v3689_v54 = vmul.f32 %v3687_v45, %v3687_v45 }
0x2207   :  { %10975 = vmatprep.mubr.msk.f32.mxu0 %vm681_vm1, %v4611_v53  ;;  %v12133_v53 = vpack.i.bf16 %v5044_v46, %v5043_v44 }
0x2208   :  { %10976 = vmatmul.mubr.msk.f32.vlgmr.msra.gmra.mrb[20].mxu0 %vm681_vm1, %v10972_v49  ;;  %v3693_v5 = vsel %vm587_vm0, %v3689_v54, 0.0 }
0x2209   :  { %11613 = vmatpush3.bf16.msra.mxu0 %v11610_v40  ;;  %10989 = vmatprep.mubr.msk.f32.mxu0 %vm767_vm3, %v4813_v16  ;;  %v5041_v16 = vld [vmem:[%s14818_s24] sm:$0xff] }
0x220a   :  { %3694 = vadd.xlane.f32.xlu0 %v3693_v5  ;;  %10992 = vmatprep.subr.mxu0 %v3855_v57  ;;  %v5042_v5 = vld [vmem:[%s14818_s24 + $0x8] sm:$0xff]  ;;  %s13246_s24 = smov [#allocation41]  }
0x220c   :  { %10990 = vmatmul.mubr.msk.f32.vlgmr.msra.gmra.mrb[24].mxu0 %vm767_vm3, %v4815_v50  ;;  %v12128_v50 = vpack.i.bf16 %v5042_v5, %v5041_v16 }
0x220d   :  { %10993 = vmatpush3.msra.mxu0 %v3855_v57  ;;  %v11618_v57 = vpack.c.bf16 %v5044_v46, %v5043_v44 }
0x220e   :  { %3723 = vadd.xlane.f32.xlu0 %v3722_v56  ;;  %v11614_v56 = vpack.c.bf16 %v5042_v5, %v5041_v16 }
0x2210   :  { %11615 = vmatprep.subr.bf16.mxu1 %v11614_v56 }
0x2211   :  { %11617 = vmatpush3.bf16.msra.mxu1 %v11614_v56 }
0x2212   :  { %11619 = vmatprep.subr.bf16.mxu1 %v11618_v57 }
0x2215   :  { %11621 = vmatpush3.bf16.msra.mxu1 %v11618_v57 }
0x2297   :  { %v3695_v60 = vpop.xlane.xlu0 %3694 }
0x2298   :  { %v3697_v59 = vmul.f32 0.03125, %v3695_v60  ;;  %v10085_v60 = vld [vmem:[%s14819_s3] ss:$0 sm:$0xff]  ;;  %s9859_s3 = sshll.u32 %s13246_s24, 4  ;;  %s9860_s3 = int_to_ptr.vmem [resolvable:$true] %s9859_s3 }
0x2299   :  { %p13093_p5 = scmp.lt.s32.totalorder %s9860_s3, %s9860_s3 }
0x229a   :  { %v3699_v51 = vadd.f32 1e-05, %v3697_v59 }
0x229b   :  { %v3724_v6 = vpop.xlane.xlu0 %3723 }
0x229c   :  { %12384 = vrsqrt.f32 %v3699_v51  ;;  %v3728_v34 = vmul.f32 0.03125, %v3724_v6 }
0x229e   :  { %v3730_v17 = vsub.f32 %v3720_v55, %v3728_v34 }
0x22a0   :  { %v3732_v27 = vmul.f32 %v3730_v17, %v3730_v17 }
0x22a2   :  { %v3734_v29 = vsel %vm587_vm0, %v3732_v27, 0.0 }
0x22a6   :  { %v12385_v62 = vpop.eup %12384 }
0x22a7   :  { %v3703_v63 = vmul.f32 %v12385_v62, %v3687_v45 }
0x22a9   :  { %v3712_v0 = vmul.f32 %v10043_v61, %v3703_v63  ;;  %v10045_v61 = vld [vmem:[#allocation38] ss:$0 sm:$0xff] }
0x22ab   :  { %v3721_v47 = vadd.f32 %v10044_v14, %v3712_v0 }
0x22ad   :  { %v3725_v1 = vsel %vm587_vm0, %v3721_v47, 0.0 }
0x22ae   :  { %3726 = vadd.xlane.f32.xlu0 %v3725_v1 }
0x22df   :  { %v10991_v2 = vpop.f32.mrb[24].mxu0 }
0x22e0   :  { %v4894_v11 = vpop.f32.mrb[25].mxu0 }
0x22e1   :  { %10994 = vmatprep.mubr.msk.f32.mxu0 %vm681_vm1, %v4894_v11 }
0x22e2   :  { %10995 = vmatmul.mubr.msk.f32.vlgmr.msra.gmra.mrb[20].mxu0 %vm681_vm1, %v10991_v2 }
0x233b   :  { %v3727_v8 = vpop.xlane.xlu0 %3726 }
0x233c   :  { %v3729_v33 = vmul.f32 0.03125, %v3727_v8 }
0x233e   :  { %v3731_v58 = vsub.f32 %v3721_v47, %v3729_v33 }
0x2340   :  { %v3733_v25 = vmul.f32 %v3731_v58, %v3731_v58 }
0x2342   :  { %v3737_v10 = vsel %vm587_vm0, %v3733_v25, 0.0 }
0x23b5   :  { %v10996_v12 = vpop.f32.mrb[20].mxu0 }
0x23b6   :  { %v4994_v3 = vadd.f32 %v10996_v12, %v10082_v4  ;;  %v4975_v26 = vpop.f32.mrb[21].mxu0 }
0x23b7   :  { %v4993_v18 = vadd.f32 %v10082_v4, %v4975_v26 }
0x23b8   :  { %v4996_v20 = vadd.f32 %v14032_v36, %v4994_v3 }
0x23b9   :  { %v4995_v21 = vadd.f32 %v14027_v35, %v4993_v18 }
0x23ba   :  { %v5000_v22 = vsel %vm587_vm0, %v4996_v20, 0.0 }
0x23bb   :  { %5001 = vadd.xlane.f32.xlu1 %v5000_v22  ;;  %v4997_v13 = vsel %vm587_vm0, %v4995_v21, 0.0 }
0x23bc   :  { %4998 = vadd.xlane.f32.xlu0 %v4997_v13 }
0x23bf   :  { %3738 = vadd.xlane.f32.xlu1 %v3737_v10 }
0x23c0   :  { %3735 = vadd.xlane.f32.xlu0 %v3734_v29 }
0x2448   :  { %v5002_v15 = vpop.xlane.xlu1 %5001 }
0x2449   :  { %v5004_v30 = vmul.f32 0.03125, %v5002_v15  ;;  %v4999_v32 = vpop.xlane.xlu0 %4998 }
0x244a   :  { %v5003_v36 = vmul.f32 0.03125, %v4999_v32 }
0x244b   :  { %v14196_v37 = vsub.f32 %v4996_v20, %v5004_v30  ;;  %v10084_v20 = vld [vmem:[%s14821_s19] ss:$0 sm:$0xff] }
0x244c   :  { %v14198_v35 = vsub.f32 %v4995_v21, %v5003_v36  ;;  %v3739_v24 = vpop.xlane.xlu1 %3738 }
0x244d   :  { %v3741_v38 = vmul.f32 0.03125, %v3739_v24  ;;  %v3736_v28 = vpop.xlane.xlu0 %3735  ;;  %v5008_v9 = vmul.f32 %v14196_v37, %v14196_v37 }
0x244e   :  { %v3740_v39 = vmul.f32 0.03125, %v3736_v28  ;;  %v5007_v40 = vmul.f32 %v14198_v35, %v14198_v35 }
0x244f   :  { %v3743_v41 = vadd.f32 1e-05, %v3741_v38  ;;  %v5012_v23 = vsel %vm587_vm0, %v5008_v9, 0.0 }
0x2450   :  { %v3742_v42 = vadd.f32 1e-05, %v3740_v39  ;;  %5013 = vadd.xlane.f32.xlu1 %v5012_v23  ;;  %v5009_v43 = vsel %vm587_vm0, %v5007_v40, 0.0 }
0x2451   :  { %12386 = vrsqrt.f32 %v3743_v41  ;;  %5010 = vadd.xlane.f32.xlu0 %v5009_v43 }
0x2452   :  { %12388 = vrsqrt.f32 %v3742_v42 }
0x245b   :  { %v12387_v31 = vpop.eup %12386 }
0x245c   :  { %v12389_v48 = vpop.eup %12388  ;;  %v3747_v45 = vmul.f32 %v12387_v31, %v3731_v58  ;;  %v10083_v58 = vld [vmem:[%s14820_s1] ss:$0 sm:$0xff] }
0x245d   :  { %v3746_v49 = vmul.f32 %v12389_v48, %v3730_v17 }
0x245e   :  { %v3756_v54 = vmul.f32 %v10045_v61, %v3747_v45 }
0x245f   :  { %v3755_v14 = vmul.f32 %v10045_v61, %v3746_v49  ;;  %v14273_v49 = vld [vmem:[%s14806_s10 + $0x8] sm:$0xff] }
0x2460   :  { %v14208_v7 = vadd.f32 %v10046_v52, %v3756_v54  ;;  %v14277_v54 = vld [vmem:[%s14806_s10] sm:$0xff] }
0x2461   :  { %v14212_v55 = vadd.f32 %v10046_v52, %v3755_v14  ;;  %12134 = vrot.lane.b32.xlu1 %v12133_v53, %s13232_s2 }
0x2463   :  { %11016 = vmatprep.mubr.msk.f32.mxu0 %vm587_vm0, %v14212_v55 }
0x2465   :  { %5149 = vrot.lane.b32.xlu1 %v10085_v60, %s13232_s2 }
0x2467   :  { %12129 = vrot.lane.b32.xlu0 %v12128_v50, %s13232_s2 }
0x24dd   :  { %v5014_v59 = vpop.xlane.xlu1 %5013 }
0x24de   :  { %v5016_v51 = vmul.f32 0.03125, %v5014_v59  ;;  %v5011_v62 = vpop.xlane.xlu0 %5010 }
0x24df   :  { %v5015_v63 = vmul.f32 0.03125, %v5011_v62 }
0x24e0   :  { %v5018_v0 = vadd.f32 1e-05, %v5016_v51 }
0x24e1   :  { %v5017_v47 = vadd.f32 1e-05, %v5015_v63  ;;  %v12135_v1 = vpop.permute.xlu1 %12134 }
0x24e2   :  { %12390 = vrsqrt.f32 %v5018_v0  ;;  %v12130_v2 = vpop.permute.xlu0 %12129  ;;  %v12137_v11 = vunpack.i.h.bf16 %v12135_v1  ;;  %v12136_v6 = vunpack.i.l.bf16 %v12135_v1 }
0x24e3   :  { %12392 = vrsqrt.f32 %v5017_v47  ;;  %v12132_v8 = vunpack.i.h.bf16 %v12130_v2  ;;  %v12131_v33 = vunpack.i.l.bf16 %v12130_v2 }
0x24e4   :  { %v11626_v4 = vpack.c.bf16 %v12137_v11, %v12136_v6 }
0x24e5   :  { %v11622_v34 = vpack.c.bf16 %v12132_v8, %v12131_v33  ;;  %v5150_v13 = vpop.permute.xlu1 %5149 }
0x24e7   :  { %11623 = vmatprep.subr.bf16.mxu0 %v11622_v34 }
0x24e8   :  { %11625 = vmatpush3.bf16.msra.mxu0 %v11622_v34 }
0x24e9   :  { %11627 = vmatprep.subr.bf16.mxu0 %v11626_v4 }
0x24ec   :  { %v12391_v12 = vpop.eup %12390  ;;  %11629 = vmatpush3.bf16.msra.mxu0 %v11626_v4 }
0x24ed   :  { %v12393_v3 = vpop.eup %12392  ;;  %v5022_v26 = vmul.f32 %v12391_v12, %v14196_v37 }
0x24ee   :  { %v5021_v17 = vmul.f32 %v12393_v3, %v14198_v35 }
0x24ef   :  { %11017 = vmatmul.mubr.msk.f32.vlgmr.msra.gmra.mrb[26].mxu0 %vm587_vm0, %v14208_v7  ;;  %v5031_v18 = vmul.f32 %v10083_v58, %v5022_v26 }
0x24f0   :  { %v5030_v21 = vmul.f32 %v10083_v58, %v5021_v17 }
0x24f1   :  { %v14228_v25 = vadd.f32 %v10084_v20, %v5031_v18 }
0x24f2   :  { %v14226_v22 = vadd.f32 %v10084_v20, %v5030_v21 }
0x24f4   :  { %11005 = vmatprep.mubr.msk.f32.mxu1 %vm587_vm0, %v14226_v22 }
0x24f5   :  { %11006 = vmatmul.mubr.msk.f32.vlgmr.msra.gmra.mrb[42].mxu1 %vm587_vm0, %v14228_v25 }
0x25c2   :  { %v11018_v27 = vpop.f32.mrb[26].mxu0 }
0x25c3   :  { %v5230_v10 = vadd.f32 %v11018_v27, %v5150_v13  ;;  %v5224_v29 = vpop.f32.mrb[27].mxu0 }
0x25c4   :  { %v5225_v15 = vadd.f32 %v5224_v29, %v5150_v13 }
0x25c6   :  { %v14234_v30 = vpack.i.bf16 %v5230_v10, %v5225_v15  ;;  %v11630_v32 = vpack.c.bf16 %v5230_v10, %v5225_v15 }
0x25c8   :  { %v11007_v36 = vpop.f32.mrb[42].mxu1  ;;  %12139 = vrot.lane.b32.xlu0 %v14234_v30, %s13233_s29  ;;  %11632 = vmatprep.subr.msk.bf16.mxu1 %vm13740_vm2, %v11630_v32 }
0x25c9   :  { %v5130_v37 = vadd.f32 %v11007_v36, %v10085_v60  ;;  %v5124_v35 = vpop.f32.mrb[43].mxu1  ;;  %11635 = vmatpush3.bf16.xpose.msk.msra.mxu1 %vm13740_vm2, %v11630_v32 }
0x25ca   :  { %v5125_v24 = vadd.f32 %v10085_v60, %v5124_v35 }
0x25cb   :  { %v14242_v38 = vmul.f32 0.35355338, %v5130_v37 }
0x25cc   :  { %v14244_v28 = vmul.f32 0.35355338, %v5125_v24 }
0x25cd   :  { %5437 = vrot.lane.b32.xlu0 %v14242_v38, %s13233_s29 }
0x25ce   :  { %5435 = vrot.lane.b32.xlu1 %v14244_v28, %s13233_s29  ;;  %11023 = vmatprep.mubr.msk.f32.mxu1 %vm681_vm1, %v14244_v28 }
0x25d0   :  { %11024 = vmatmul.mubr.msk.f32.vlgmr.msra.gmra.mrb[44].mxu1 %vm681_vm1, %v14242_v38 }
0x25d1   :  { %5797 = vrot.lane.b32.xlu0 %v14244_v28, %s13236_s17 }
0x25d2   :  { %12144 = vrot.lane.b32.xlu1 %v14234_v30, %s13236_s17 }
0x25d6   :  { %5799 = vrot.lane.b32.xlu1 %v14242_v38, %s13236_s17 }
0x263a   :  { %v12140_v9 = vpop.permute.xlu0 %12139 }
0x263b   :  { %v12142_v39 = vunpack.i.h.bf16 %v12140_v9  ;;  %v12141_v40 = vunpack.i.l.bf16 %v12140_v9 }
0x263d   :  { %v11640_v41 = vpack.c.bf16 %v12142_v39, %v12141_v40 }
0x263f   :  { %11642 = vmatprep.subr.msk.bf16.mxu1 %vm13740_vm2, %v11640_v41  ;;  %v5438_v42 = vpop.permute.xlu0 %5437 }
0x2640   :  { %v5436_v23 = vpop.permute.xlu1 %5435  ;;  %11645 = vmatpush3.bf16.xpose.msk.msra.mxu1 %vm13740_vm2, %v11640_v41 }
0x2641   :  { %11037 = vmatprep.mubr.msk.f32.mxu1 %vm681_vm1, %v5436_v23 }
0x2643   :  { %v5798_v31 = vpop.permute.xlu0 %5797 }
0x2644   :  { %v12145_v43 = vpop.permute.xlu1 %12144 }
0x2645   :  { %v12147_v44 = vunpack.i.h.bf16 %v12145_v43  ;;  %v12146_v46 = vunpack.i.l.bf16 %v12145_v43 }
0x2647   :  { %v11650_v61 = vpack.c.bf16 %v12147_v44, %v12146_v46  ;;  %11038 = vmatmul.mubr.msk.f32.vlgmr.msra.gmra.mrb[46].mxu1 %vm681_vm1, %v5438_v42 }
0x2648   :  { %11061 = vmatprep.mubr.msk.f32.mxu1 %vm681_vm1, %v5798_v31  ;;  %v5800_v48 = vpop.permute.xlu1 %5799 }
0x2649   :  { %11652 = vmatprep.subr.msk.bf16.mxu1 %vm13740_vm2, %v11650_v61 }
0x264a   :  { %11655 = vmatpush3.bf16.xpose.msk.msra.mxu1 %vm13740_vm2, %v11650_v61 }
0x2651   :  { %11062 = vmatmul.mubr.msk.f32.vlgmr.msra.gmra.mrb[48].mxu1 %vm681_vm1, %v5800_v48 }
0x26a3   :  { %v11025_v45 = vpop.f32.mrb[44].mxu1 }
0x26a4   :  { %v5323_v52 = vadd.f32 %v14273_v49, %v11025_v45  ;;  %v5317_v53 = vpop.f32.mrb[45].mxu1 }
0x26a5   :  { %v5318_v14 = vadd.f32 %v14277_v54, %v5317_v53 }
0x26a6   :  { %v5329_v16 = vsel %vm767_vm3, %v5323_v52, -inf }
0x26a7   :  { %5330 = vmax.xlane.f32.xlu1 %v5329_v16  ;;  %v5326_v5 = vsel %vm767_vm3, %v5318_v14, -inf }
0x26a8   :  { %5327 = vmax.xlane.f32.xlu0 %v5326_v5 }
0x271a   :  { %v11039_v50 = vpop.f32.mrb[46].mxu1 }
0x271b   :  { %v5517_v56 = vpop.f32.mrb[47].mxu1  ;;  %v5523_v60 = vadd.f32 %v14273_v49, %v11039_v50 }
0x271c   :  { %v5518_v57 = vadd.f32 %v14277_v54, %v5517_v56 }
0x271d   :  { %v5529_v51 = vsel %vm767_vm3, %v5523_v60, -inf }
0x271e   :  { %v5526_v59 = vsel %vm767_vm3, %v5518_v57, -inf }
0x271f   :  { %5527 = vmax.xlane.f32.xlu0 %v5526_v59 }
0x2723   :  { %5530 = vmax.xlane.f32.xlu0 %v5529_v51 }
0x2724   :  { %v11063_v62 = vpop.f32.mrb[48].mxu1 }
0x2725   :  { %v5879_v63 = vpop.f32.mrb[49].mxu1  ;;  %v5885_v32 = vadd.f32 %v14273_v49, %v11063_v62 }
0x2726   :  { %v5880_v36 = vadd.f32 %v14277_v54, %v5879_v63 }
0x2727   :  { %v5891_v35 = vsel %vm767_vm3, %v5885_v32, -inf }
0x2728   :  { %v5888_v37 = vsel %vm767_vm3, %v5880_v36, -inf }
0x2734   :  { %v5331_v0 = vpop.xlane.xlu1 %5330 }
0x2735   :  { %v5333_v47 = vsub.f32 %v5323_v52, %v5331_v0  ;;  %v5328_v1 = vpop.xlane.xlu0 %5327 }
0x2736   :  { %v5332_v2 = vsub.f32 %v5318_v14, %v5328_v1 }
0x2737   :  { %v5336_v11 = vmul.f32 1.442695, %v5333_v47 }
0x2738   :  { %v5334_v6 = vmul.f32 1.442695, %v5332_v2 }
0x2739   :  { %12394 = vpow2.f32 %v5336_v11  ;;  %v5234_v11 = vld [vmem:[%s14822_s21 + $0x8] sm:$0xff] }
0x273a   :  { %12396 = vpow2.f32 %v5334_v6  ;;  %v5233_v6 = vld [vmem:[%s14822_s21] sm:$0xff] }
0x2743   :  { %v12395_v8 = vpop.eup %12394 }
0x2744   :  { %v12397_v33 = vpop.eup %12396  ;;  %v5341_v34 = vsel %vm767_vm3, %v12395_v8, 0.0 }
0x2745   :  { %5342 = vadd.xlane.f32.xlu0 %v5341_v34  ;;  %v5338_v4 = vsel %vm767_vm3, %v12397_v33, 0.0 }
0x2746   :  { %5339 = vadd.xlane.f32.xlu1 %v5338_v4 }
0x27ac   :  { %v5528_v12 = vpop.xlane.xlu0 %5527 }
0x27ad   :  { %v5532_v58 = vsub.f32 %v5518_v57, %v5528_v12 }
0x27af   :  { %v5534_v3 = vmul.f32 1.442695, %v5532_v58 }
0x27b0   :  { %v5531_v26 = vpop.xlane.xlu0 %5530 }
0x27b1   :  { %12398 = vpow2.f32 %v5534_v3  ;;  %v5533_v17 = vsub.f32 %v5523_v60, %v5531_v26 }
0x27b3   :  { %v5536_v18 = vmul.f32 1.442695, %v5533_v17 }
0x27b5   :  { %12400 = vpow2.f32 %v5536_v18 }
0x27bb   :  { %v12399_v20 = vpop.eup %12398 }
0x27bc   :  { %v5538_v21 = vsel %vm767_vm3, %v12399_v20, 0.0 }
0x27bd   :  { %5539 = vadd.xlane.f32.xlu1 %v5538_v21 }
0x27bf   :  { %v12401_v13 = vpop.eup %12400 }
0x27c0   :  { %v5541_v27 = vsel %vm767_vm3, %v12401_v13, 0.0 }
0x27c1   :  { %5542 = vadd.xlane.f32.xlu0 %v5541_v27 }
0x27ce   :  { %12149 = vrot.lane.b32.xlu1 %v14234_v30, %s13232_s2 }
0x27d2   :  { %12159 = vrot.lane.b32.xlu1 %v14234_v30, %s13240_s13  ;;  %v5343_v24 = vpop.xlane.xlu0 %5342 }
0x27d3   :  { %v5340_v10 = vpop.xlane.xlu1 %5339 }
0x27d4   :  { %12402 = vrcp.f32 %v5340_v10 }
0x27d5   :  { %12404 = vrcp.f32 %v5343_v24 }
0x27d6   :  { %6080 = vrot.lane.b32.xlu1 %v14244_v28, %s13240_s13 }
0x27d7   :  { %12154 = vrot.lane.b32.xlu0 %v14234_v30, %s13234_s7 }
0x27db   :  { %6082 = vrot.lane.b32.xlu0 %v14242_v38, %s13240_s13 }
0x27de   :  { %v12403_v29 = vpop.eup %12402 }
0x27df   :  { %v5345_v15 = vmul.f32 %v12403_v29, %v12397_v33  ;;  %v12405_v23 = vpop.eup %12404 }
0x27e0   :  { %v5347_v52 = vmul.f32 %v12405_v23, %v12395_v8 }
0x27e1   :  { %11030 = vmatprep.mubr.msk.f32.mxu0 %vm767_vm3, %v5345_v15 }
0x27fa   :  { %5889 = vmax.xlane.f32.xlu1 %v5888_v37  ;;  %5892 = vmax.xlane.f32.xlu0 %v5891_v35  ;;  %v5235_v35 = vld [vmem:[%s14822_s21 + $0x10] sm:$0xff] }
0x284a   :  { %v5540_v28 = vpop.xlane.xlu1 %5539 }
0x284b   :  { %12406 = vrcp.f32 %v5540_v28 }
0x284e   :  { %v12150_v9 = vpop.permute.xlu1 %12149  ;;  %v5543_v38 = vpop.xlane.xlu0 %5542 }
0x284f   :  { %v12152_v39 = vunpack.i.h.bf16 %v12150_v9  ;;  %v12151_v40 = vunpack.i.l.bf16 %v12150_v9  ;;  %12408 = vrcp.f32 %v5543_v38 }
0x2851   :  { %v11636_v41 = vpack.c.bf16 %v12152_v39, %v12151_v40 }
0x2852   :  { %v12160_v42 = vpop.permute.xlu1 %12159  ;;  %v12155_v43 = vpop.permute.xlu0 %12154 }
0x2853   :  { %v12162_v44 = vunpack.i.h.bf16 %v12160_v42  ;;  %v12161_v46 = vunpack.i.l.bf16 %v12160_v42  ;;  %v12157_v31 = vunpack.i.h.bf16 %v12155_v43  ;;  %v12156_v61 = vunpack.i.l.bf16 %v12155_v43  ;;  %11637 = vmatprep.subr.bf16.mxu0 %v11636_v41 }
0x2854   :  { %11639 = vmatpush3.bf16.msra.mxu0 %v11636_v41 }
0x2855   :  { %v12407_v48 = vpop.eup %12406  ;;  %v11660_v45 = vpack.c.bf16 %v12162_v44, %v12161_v46  ;;  %v11646_v53 = vpack.c.bf16 %v12157_v31, %v12156_v61 }
0x2856   :  { %v6081_v14 = vpop.permute.xlu1 %6080  ;;  %v5545_v16 = vmul.f32 %v12407_v48, %v12399_v20  ;;  %v6083_v56 = vpop.permute.xlu0 %6082 }
0x2857   :  { %11031 = vmatmul.mubr.msk.f32.vlgmr.msra.gmra.mrb[28].mxu0 %vm767_vm3, %v5347_v52  ;;  %11647 = vmatprep.subr.bf16.mxu0 %v11646_v53 }
0x2858   :  { %11662 = vmatprep.subr.msk.bf16.mxu1 %vm13740_vm2, %v11660_v45  ;;  %11080 = vmatprep.mubr.msk.f32.mxu1 %vm681_vm1, %v6081_v14  ;;  %v5236_v14 = vld [vmem:[%s14822_s21 + $0x18] sm:$0xff] }
0x2859   :  { %v12409_v5 = vpop.eup %12408  ;;  %11649 = vmatpush3.bf16.msra.mxu0 %v11646_v53  ;;  %11044 = vmatprep.mubr.msk.f32.mxu0 %vm767_vm3, %v5545_v16 }
0x285a   :  { %11665 = vmatpush3.bf16.xpose.msk.msra.mxu1 %vm13740_vm2, %v11660_v45  ;;  %v5547_v50 = vmul.f32 %v12409_v5, %v12401_v13  ;;  %11047 = vmatprep.subr.mxu0 %v5234_v11 }
0x285c   :  { %11045 = vmatmul.mubr.msk.f32.vlgmr.msra.gmra.mrb[30].mxu0 %vm767_vm3, %v5547_v50 }
0x285d   :  { %11048 = vmatpush3.msra.mxu0 %v5234_v11 }
0x285e   :  { %11052 = vmatprep.subr.mxu0 %v5233_v6 }
0x2861   :  { %11081 = vmatmul.mubr.msk.f32.vlgmr.msra.gmra.mrb[50].mxu1 %vm681_vm1, %v6083_v56 }
0x2887   :  { %v5890_v57 = vpop.xlane.xlu1 %5889  ;;  %v5893_v60 = vpop.xlane.xlu0 %5892 }
0x2888   :  { %v5894_v59 = vsub.f32 %v5880_v36, %v5890_v57  ;;  %v5895_v51 = vsub.f32 %v5885_v32, %v5893_v60  ;;  %v10122_v60 = vld [vmem:[%s14823_s27] ss:$0 sm:$0xff] }
0x288a   :  { %v5896_v62 = vmul.f32 1.442695, %v5894_v59  ;;  %v5898_v63 = vmul.f32 1.442695, %v5895_v51 }
0x288c   :  { %12410 = vpow2.f32 %v5896_v62 }
0x288d   :  { %12412 = vpow2.f32 %v5898_v63 }
0x2896   :  { %v12411_v0 = vpop.eup %12410 }
0x2897   :  { %v12413_v47 = vpop.eup %12412  ;;  %v5900_v1 = vsel %vm767_vm3, %v12411_v0, 0.0 }
0x2898   :  { %5901 = vadd.xlane.f32.xlu0 %v5900_v1  ;;  %v5903_v2 = vsel %vm767_vm3, %v12413_v47, 0.0 }
0x2899   :  { %5904 = vadd.xlane.f32.xlu1 %v5903_v2 }
0x28ae   :  { %12164 = vrot.lane.b32.xlu0 %v14234_v30, %s13235_s0 }
0x2925   :  { %v5902_v8 = vpop.xlane.xlu0 %5901 }
0x2926   :  { %v5905_v12 = vpop.xlane.xlu1 %5904  ;;  %12414 = vrcp.f32 %v5902_v8 }
0x2927   :  { %12416 = vrcp.f32 %v5905_v12 }
0x2929   :  { %v12165_v34 = vpop.permute.xlu0 %12164 }
0x292a   :  { %v11032_v33 = vpop.f32.mrb[28].mxu0  ;;  %v12167_v58 = vunpack.i.h.bf16 %v12165_v34  ;;  %v12166_v3 = vunpack.i.l.bf16 %v12165_v34 }
0x292b   :  { %v5426_v4 = vpop.f32.mrb[29].mxu0 }
0x292c   :  { %v11656_v18 = vpack.c.bf16 %v12167_v58, %v12166_v3  ;;  %v6418_v3 = vld [vmem:[%s14824_s16] sm:$0xff] }
0x292f   :  { %v11046_v26 = vpop.f32.mrb[30].mxu0 }
0x2930   :  { %v5626_v17 = vpop.f32.mrb[31].mxu0  ;;  %v12415_v13 = vpop.eup %12414 }
0x2931   :  { %11049 = vmatprep.mubr.msk.f32.mxu0 %vm681_vm1, %v5626_v17  ;;  %v12417_v15 = vpop.eup %12416  ;;  %v5907_v32 = vmul.f32 %v12415_v13, %v12411_v0 }
0x2932   :  { %11050 = vmatmul.mubr.msk.f32.vlgmr.msra.gmra.mrb[32].mxu0 %vm681_vm1, %v11046_v26  ;;  %v5909_v36 = vmul.f32 %v12417_v15, %v12413_v47  ;;  %v6419_v26 = vld [vmem:[%s14824_s16 + $0x8] sm:$0xff] }
0x2933   :  { %11053 = vmatpush3.msra.mxu0 %v5233_v6  ;;  %11054 = vmatprep.mubr.msk.f32.mxu0 %vm681_vm1, %v5426_v4  ;;  %v11670_v17 = vpack.c.bf16 %v6419_v26, %v6418_v3 }
0x2934   :  { %v11082_v20 = vpop.f32.mrb[50].mxu1  ;;  %11657 = vmatprep.subr.bf16.mxu0 %v11656_v18 }
0x2935   :  { %v6162_v21 = vpop.f32.mrb[51].mxu1  ;;  %v6168_v10 = vadd.f32 %v14273_v49, %v11082_v20  ;;  %11671 = vmatprep.subr.bf16.mxu1 %v11670_v17  ;;  %v6421_v20 = vld [vmem:[%s14824_s16 + $0x18] sm:$0xff] }
0x2936   :  { %v6163_v27 = vadd.f32 %v14277_v54, %v6162_v21  ;;  %11673 = vmatpush3.bf16.msra.mxu1 %v11670_v17 }
0x2937   :  { %v6174_v37 = vsel %vm767_vm3, %v6168_v10, -inf }
0x2938   :  { %v6171_v29 = vsel %vm767_vm3, %v6163_v27, -inf }
0x2939   :  { %6172 = vmax.xlane.f32.xlu1 %v6171_v29 }
0x293a   :  { %11055 = vmatmul.mubr.msk.f32.vlgmr.msra.gmra.mrb[32].mxu0 %vm681_vm1, %v11032_v33 }
0x293b   :  { %11659 = vmatpush3.bf16.msra.mxu0 %v11656_v18  ;;  %11068 = vmatprep.mubr.msk.f32.mxu0 %vm767_vm3, %v5907_v32  ;;  %v6420_v18 = vld [vmem:[%s14824_s16 + $0x10] sm:$0xff] }
0x293c   :  { %11071 = vmatprep.subr.mxu0 %v5235_v35  ;;  %v11674_v21 = vpack.c.bf16 %v6421_v20, %v6420_v18 }
0x293d   :  { %6175 = vmax.xlane.f32.xlu1 %v6174_v37  ;;  %v10123_v37 = vld [vmem:[%s14825_s6] ss:$0 sm:$0xff] }
0x293e   :  { %11069 = vmatmul.mubr.msk.f32.vlgmr.msra.gmra.mrb[34].mxu0 %vm767_vm3, %v5909_v36  ;;  %11675 = vmatprep.subr.bf16.mxu1 %v11674_v21 }
0x293f   :  { %11072 = vmatpush3.msra.mxu0 %v5235_v35  ;;  %11677 = vmatpush3.bf16.msra.mxu1 %v11674_v21 }
0x29c6   :  { %v6173_v24 = vpop.xlane.xlu1 %6172 }
0x29c7   :  { %v6177_v28 = vsub.f32 %v6163_v27, %v6173_v24  ;;  %v10124_v24 = vld [vmem:[%s14826_s30] ss:$0 sm:$0xff] }
0x29c9   :  { %v6179_v39 = vmul.f32 1.442695, %v6177_v28 }
0x29ca   :  { %v6176_v9 = vpop.xlane.xlu1 %6175 }
0x29cb   :  { %v6178_v38 = vsub.f32 %v6168_v10, %v6176_v9 }
0x29cd   :  { %v6181_v40 = vmul.f32 1.442695, %v6178_v38 }
0x29cf   :  { %12418 = vpow2.f32 %v6181_v40 }
0x29d0   :  { %12420 = vpow2.f32 %v6179_v39 }
0x29d9   :  { %v12419_v41 = vpop.eup %12418 }
0x29da   :  { %v6186_v23 = vsel %vm767_vm3, %v12419_v41, 0.0  ;;  %v12421_v42 = vpop.eup %12420 }
0x29db   :  { %6187 = vadd.xlane.f32.xlu1 %v6186_v23  ;;  %v6183_v43 = vsel %vm767_vm3, %v12421_v42, 0.0  ;;  %v6564_v23 = vld [vmem:[%s14827_s18] sm:$0xff] }
0x29df   :  { %6184 = vadd.xlane.f32.xlu1 %v6183_v43 }
0x29f0   :  { %12169 = vrot.lane.b32.xlu1 %v14234_v30, %s13238_s12 }
0x2a11   :  { %v11070_v44 = vpop.f32.mrb[34].mxu0 }
0x2a12   :  { %v5988_v46 = vpop.f32.mrb[35].mxu0 }
0x2a13   :  { %11073 = vmatprep.mubr.msk.f32.mxu0 %vm681_vm1, %v5988_v46  ;;  %v6567_v46 = vld [vmem:[%s14827_s18 + $0x18] sm:$0xff] }
0x2a14   :  { %11074 = vmatmul.mubr.msk.f32.vlgmr.msra.gmra.mrb[32].mxu0 %vm681_vm1, %v11070_v44  ;;  %v6566_v44 = vld [vmem:[%s14827_s18 + $0x10] sm:$0xff] }
0x2a68   :  { %v6188_v31 = vpop.xlane.xlu1 %6187 }
0x2a69   :  { %12422 = vrcp.f32 %v6188_v31  ;;  %v11682_v31 = vpack.c.bf16 %v6567_v46, %v6566_v44 }
0x2a6c   :  { %v6185_v61 = vpop.xlane.xlu1 %6184 }
0x2a6d   :  { %12424 = vrcp.f32 %v6185_v61  ;;  %v6568_v61 = vld [vmem:[%s14827_s18 + $0x20] sm:$0xff] }
0x2a70   :  { %v12170_v48 = vpop.permute.xlu1 %12169 }
0x2a71   :  { %v12172_v45 = vunpack.i.h.bf16 %v12170_v48  ;;  %v12171_v52 = vunpack.i.l.bf16 %v12170_v48  ;;  %v6569_v48 = vld [vmem:[%s14827_s18 + $0x28] sm:$0xff] }
0x2a73   :  { %v11666_v53 = vpack.c.bf16 %v12172_v45, %v12171_v52  ;;  %v12423_v16 = vpop.eup %12422  ;;  %v11686_v45 = vpack.c.bf16 %v6569_v48, %v6568_v61  ;;  %v6570_v52 = vld [vmem:[%s14827_s18 + $0x30] sm:$0xff] }
0x2a74   :  { %v6192_v50 = vmul.f32 %v12423_v16, %v12419_v41  ;;  %v6572_v16 = vld [vmem:[%s14827_s18 + $0x40] sm:$0xff] }
0x2a75   :  { %11667 = vmatprep.subr.bf16.mxu0 %v11666_v53 }
0x2a76   :  { %11669 = vmatpush3.bf16.msra.mxu0 %v11666_v53  ;;  %v6571_v53 = vld [vmem:[%s14827_s18 + $0x38] sm:$0xff] }
0x2a77   :  { %v12425_v30 = vpop.eup %12424  ;;  %11090 = vmatprep.subr.mxu0 %v5236_v14 }
0x2a78   :  { %v6190_v5 = vmul.f32 %v12425_v30, %v12421_v42  ;;  %v6565_v42 = vld [vmem:[%s14827_s18 + $0x8] sm:$0xff] }
0x2a79   :  { %v11678_v43 = vpack.c.bf16 %v6565_v42, %v6564_v23  ;;  %v6573_v30 = vld [vmem:[%s14827_s18 + $0x48] sm:$0xff] }
0x2a7a   :  { %11087 = vmatprep.mubr.msk.f32.mxu0 %vm767_vm3, %v6190_v5  ;;  %v11694_v5 = vpack.c.bf16 %v6573_v30, %v6572_v16 }
0x2a7b   :  { %11088 = vmatmul.mubr.msk.f32.vlgmr.msra.gmra.mrb[36].mxu0 %vm767_vm3, %v6192_v50  ;;  %v6574_v50 = vld [vmem:[%s14827_s18 + $0x50] sm:$0xff] }
0x2a7c   :  { %11091 = vmatpush3.msra.mxu0 %v5236_v14  ;;  %v11690_v14 = vpack.c.bf16 %v6571_v53, %v6570_v52 }
0x2a7d   :  { %11679 = vmatprep.subr.bf16.mxu0 %v11678_v43 }
0x2b4e   :  { %v11089_v56 = vpop.f32.mrb[36].mxu0 }
0x2b4f   :  { %v6271_v57 = vpop.f32.mrb[37].mxu0 }
0x2b50   :  { %11092 = vmatprep.mubr.msk.f32.mxu0 %vm681_vm1, %v6271_v57 }
0x2b51   :  { %11093 = vmatmul.mubr.msk.f32.vlgmr.msra.gmra.mrb[32].mxu0 %vm681_vm1, %v11089_v56  ;;  %v6575_v56 = vld [vmem:[%s14827_s18 + $0x58] sm:$0xff] }
0x2b52   :  { %11681 = vmatpush3.bf16.msra.mxu0 %v11678_v43  ;;  %v11698_v57 = vpack.c.bf16 %v6575_v56, %v6574_v50 }
0x2b53   :  { %11683 = vmatprep.subr.bf16.mxu0 %v11682_v31 }
0x2b56   :  { %11685 = vmatpush3.bf16.msra.mxu0 %v11682_v31 }
0x2b57   :  { %11687 = vmatprep.subr.bf16.mxu0 %v11686_v45 }
0x2b5a   :  { %11689 = vmatpush3.bf16.msra.mxu0 %v11686_v45 }
0x2b5b   :  { %11691 = vmatprep.subr.bf16.mxu0 %v11690_v14 }
0x2b5e   :  { %11693 = vmatpush3.bf16.msra.mxu0 %v11690_v14 }
0x2b5f   :  { %11695 = vmatprep.subr.bf16.mxu0 %v11694_v5 }
0x2b62   :  { %11697 = vmatpush3.bf16.msra.mxu0 %v11694_v5 }
0x2b63   :  { %11699 = vmatprep.subr.bf16.mxu0 %v11698_v57 }
0x2b66   :  { %11701 = vmatpush3.bf16.msra.mxu0 %v11698_v57 }
0x2c24   :  { %v11094_v59 = vpop.f32.mrb[32].mxu0 }
0x2c25   :  { %v6371_v51 = vadd.f32 %v11094_v59, %v10122_v60  ;;  %v6352_v62 = vpop.f32.mrb[33].mxu0  ;;  %v6577_v59 = vld [vmem:[%s14827_s18 + $0x68] sm:$0xff] }
0x2c26   :  { %v6370_v63 = vadd.f32 %v10122_v60, %v6352_v62  ;;  %v6576_v60 = vld [vmem:[%s14827_s18 + $0x60] sm:$0xff]  ;;  %v6578_v62 = vld [vmem:[%s14827_s18 + $0x70] sm:$0xff] }
0x2c27   :  { %v6373_v0 = vadd.f32 %v6371_v51, %v14228_v25  ;;  %v11702_v51 = vpack.c.bf16 %v6577_v59, %v6576_v60 }
0x2c28   :  { %v6372_v47 = vadd.f32 %v6370_v63, %v14226_v22  ;;  %v6579_v63 = vld [vmem:[%s14827_s18 + $0x78] sm:$0xff] }
0x2c29   :  { %v6377_v1 = vsel %vm587_vm0, %v6373_v0, 0.0  ;;  %11703 = vmatprep.subr.bf16.mxu0 %v11702_v51 }
0x2c2a   :  { %6378 = vadd.xlane.f32.xlu1 %v6377_v1  ;;  %v6374_v2 = vsel %vm587_vm0, %v6372_v47, 0.0  ;;  %11705 = vmatpush3.bf16.msra.mxu0 %v11702_v51 }
0x2c2b   :  { %6375 = vadd.xlane.f32.xlu0 %v6374_v2 }
0x2cb7   :  { %v6379_v11 = vpop.xlane.xlu1 %6378 }
0x2cb8   :  { %v6381_v6 = vmul.f32 0.03125, %v6379_v11  ;;  %v6376_v8 = vpop.xlane.xlu0 %6375 }
0x2cb9   :  { %v6380_v33 = vmul.f32 0.03125, %v6376_v8 }
0x2cba   :  { %v6383_v34 = vsub.f32 %v6373_v0, %v6381_v6  ;;  %v11706_v0 = vpack.c.bf16 %v6579_v63, %v6578_v62  ;;  %v10132_v63 = vld [vmem:[%s14829_s22] ss:$0 sm:$0xff] }
0x2cbb   :  { %v6382_v4 = vsub.f32 %v6372_v47, %v6380_v33  ;;  %v10125_v47 = vld [vmem:[%s14828_s4] ss:$0 sm:$0xff] }
0x2cbc   :  { %v6385_v22 = vmul.f32 %v6383_v34, %v6383_v34  ;;  %11707 = vmatprep.subr.bf16.mxu0 %v11706_v0 }
0x2cbd   :  { %v6384_v12 = vmul.f32 %v6382_v4, %v6382_v4  ;;  %11709 = vmatpush3.bf16.msra.mxu0 %v11706_v0 }
0x2cbe   :  { %v6389_v58 = vsel %vm587_vm0, %v6385_v22, 0.0 }
0x2cbf   :  { %v6386_v25 = vsel %vm587_vm0, %v6384_v12, 0.0 }
0x2cc0   :  { %6387 = vadd.xlane.f32.xlu0 %v6386_v25 }
0x2cc4   :  { %6390 = vadd.xlane.f32.xlu0 %v6389_v58 }
0x2d4d   :  { %v6388_v13 = vpop.xlane.xlu0 %6387 }
0x2d4e   :  { %v6392_v27 = vmul.f32 0.03125, %v6388_v13 }
0x2d50   :  { %v6394_v10 = vadd.f32 1e-05, %v6392_v27 }
0x2d51   :  { %v6391_v29 = vpop.xlane.xlu0 %6390 }
0x2d52   :  { %12426 = vrsqrt.f32 %v6394_v10  ;;  %v6393_v15 = vmul.f32 0.03125, %v6391_v29 }
0x2d54   :  { %v6395_v32 = vadd.f32 1e-05, %v6393_v15 }
0x2d56   :  { %12428 = vrsqrt.f32 %v6395_v32 }
0x2d5c   :  { %v12427_v36 = vpop.eup %12426 }
0x2d5d   :  { %v6398_v35 = vmul.f32 %v12427_v36, %v6382_v4 }
0x2d5f   :  { %v6407_v28 = vmul.f32 %v10123_v37, %v6398_v35 }
0x2d60   :  { %v12429_v9 = vpop.eup %12428 }
0x2d61   :  { %v6399_v38 = vmul.f32 %v12429_v9, %v6383_v34  ;;  %v14355_v39 = vadd.f32 %v10124_v24, %v6407_v28 }
0x2d63   :  { %v6408_v40 = vmul.f32 %v10123_v37, %v6399_v38  ;;  %11103 = vmatprep.mubr.msk.f32.mxu1 %vm587_vm0, %v14355_v39 }
0x2d65   :  { %v14359_v41 = vadd.f32 %v10124_v24, %v6408_v40 }
0x2d67   :  { %11104 = vmatmul.mubr.msk.f32.vlgmr.msra.gmra.mrb[52].mxu1 %vm587_vm0, %v14359_v41 }
0x2e3a   :  { %v11105_v1 = vpop.f32.mrb[52].mxu1 }
0x2e3b   :  { %v6507_v2 = vadd.f32 %v11105_v1, %v10125_v47  ;;  %v6501_v11 = vpop.f32.mrb[53].mxu1 }
0x2e3c   :  { %v6502_v6 = vadd.f32 %v10125_v47, %v6501_v11 }
0x2e3d   :  { %v6511_v8 = vmul.f32 0.70710677, %v6507_v2  ;;  %v6559_v59 = vmul.f32 0.5, %v6507_v2 }
0x2e3e   :  { %v6510_v33 = vmul.f32 0.70710677, %v6502_v6  ;;  %v6558_v57 = vmul.f32 0.5, %v6502_v6 }
0x2e3f   :  { %v6513_v34 = vand.u32 2147483647, %v6511_v8  ;;  %vm6553_vm8 = vcmp.lt.f32.partialorder %v6511_v8, 0.0 }
0x2e40   :  { %v6512_v4 = vand.u32 2147483647, %v6510_v33  ;;  %vm6552_vm9 = vcmp.lt.f32.partialorder %v6510_v33, 0.0 }
0x2e41   :  { %v6515_v12 = vmul.f32 0.3275911, %v6513_v34  ;;  %v6541_v3 = vsub.f32 0.0, %v6513_v34 }
0x2e42   :  { %v6514_v25 = vmul.f32 0.3275911, %v6512_v4  ;;  %v6540_v26 = vsub.f32 0.0, %v6512_v4 }
0x2e43   :  { %v6517_v22 = vadd.f32 1.0, %v6515_v12  ;;  %v6543_v18 = vmul.f32 %v6541_v3, %v6513_v34 }
0x2e44   :  { %v6516_v58 = vadd.f32 1.0, %v6514_v25  ;;  %v6542_v13 = vmul.f32 %v6540_v26, %v6512_v4 }
0x2e45   :  { %12430 = vrcp.f32 %v6517_v22  ;;  %v6546_v29 = vmul.f32 1.442695, %v6543_v18  ;;  %v6709_v18 = vld [vmem:[%s14830_s23 + $0x8] sm:$0xff] }
0x2e46   :  { %12432 = vrcp.f32 %v6516_v58  ;;  %v6544_v36 = vmul.f32 1.442695, %v6542_v13  ;;  %v6711_v13 = vld [vmem:[%s14830_s23 + $0x18] sm:$0xff] }
0x2e47   :  { %12434 = vpow2.f32 %v6546_v29 }
0x2e48   :  { %12436 = vpow2.f32 %v6544_v36 }
0x2e4f   :  { %v12431_v17 = vpop.eup %12430 }
0x2e50   :  { %v12433_v20 = vpop.eup %12432  ;;  %v6523_v21 = vmul.f32 1.0614054, %v12431_v17 }
0x2e51   :  { %v6522_v27 = vmul.f32 1.0614054, %v12433_v20  ;;  %v12435_v31 = vpop.eup %12434 }
0x2e52   :  { %v10129_v10 = vadd.f32 -1.4531521, %v6523_v21  ;;  %v12437_v48 = vpop.eup %12436  ;;  %v6710_v21 = vld [vmem:[%s14830_s23 + $0x10] sm:$0xff] }
0x2e53   :  { %v10128_v15 = vadd.f32 -1.4531521, %v6522_v27  ;;  %v11714_v27 = vpack.c.bf16 %v6711_v13, %v6710_v21 }
0x2e54   :  { %v6527_v32 = vmul.f32 %v12431_v17, %v10129_v10 }
0x2e55   :  { %v6526_v37 = vmul.f32 %v12433_v20, %v10128_v15 }
0x2e56   :  { %v6529_v35 = vadd.f32 1.4214138, %v6527_v32 }
0x2e57   :  { %v6528_v24 = vadd.f32 1.4214138, %v6526_v37 }
0x2e58   :  { %v6531_v28 = vmul.f32 %v12431_v17, %v6529_v35 }
0x2e59   :  { %v6530_v9 = vmul.f32 %v12433_v20, %v6528_v24  ;;  %v10133_v24 = vld [vmem:[%s14831_s26] ss:$0 sm:$0xff] }
0x2e5a   :  { %v10131_v38 = vadd.f32 -0.28449672, %v6531_v28 }
0x2e5b   :  { %v10130_v40 = vadd.f32 -0.28449672, %v6530_v9  ;;  %v10134_v9 = vld [vmem:[%s14832_s14] ss:$0 sm:$0xff] }
0x2e5c   :  { %v6535_v23 = vmul.f32 %v12431_v17, %v10131_v38 }
0x2e5d   :  { %v6534_v42 = vmul.f32 %v12433_v20, %v10130_v40 }
0x2e5e   :  { %v6537_v43 = vadd.f32 0.2548296, %v6535_v23 }
0x2e5f   :  { %v6536_v44 = vadd.f32 0.2548296, %v6534_v42 }
0x2e60   :  { %v6539_v46 = vmul.f32 %v12431_v17, %v6537_v43  ;;  %v6708_v17 = vld [vmem:[%s14830_s23] sm:$0xff] }
0x2e61   :  { %v6538_v61 = vmul.f32 %v12433_v20, %v6536_v44  ;;  %v11710_v20 = vpack.c.bf16 %v6709_v18, %v6708_v17 }
0x2e62   :  { %v6549_v45 = vmul.f32 %v12435_v31, %v6539_v46  ;;  %v10135_v46 = vld [vmem:[#allocation8] ss:$0 sm:$0xff] }
0x2e63   :  { %v6548_v52 = vmul.f32 %v12437_v48, %v6538_v61  ;;  %11711 = vmatprep.subr.bf16.mxu1 %v11710_v20 }
0x2e64   :  { %v6551_v53 = vsub.f32 1.0, %v6549_v45  ;;  %11713 = vmatpush3.bf16.msra.mxu1 %v11710_v20 }
0x2e65   :  { %v6550_v14 = vsub.f32 1.0, %v6548_v52  ;;  %11715 = vmatprep.subr.bf16.mxu1 %v11714_v27 }
0x2e66   :  { %v6555_v16 = vsub.f32 0.0, %v6551_v53 }
0x2e67   :  { %v6554_v30 = vsub.f32 0.0, %v6550_v14 }
0x2e68   :  { %v6557_v5 = vsel %vm6553_vm8, %v6555_v16, %v6551_v53  ;;  %11717 = vmatpush3.bf16.msra.mxu1 %v11714_v27 }
0x2e69   :  { %v6561_v50 = vadd.f32 1.0, %v6557_v5  ;;  %v6556_v56 = vsel %vm6552_vm9, %v6554_v30, %v6550_v14 }
0x2e6a   :  { %v6560_v60 = vadd.f32 1.0, %v6556_v56 }
0x2e6b   :  { %v6563_v62 = vmul.f32 %v6561_v50, %v6559_v59 }
0x2e6c   :  { %v6562_v51 = vmul.f32 %v6560_v60, %v6558_v57 }
0x2e6e   :  { %11138 = vmatprep.mubr.f32.mxu0 %v6562_v51 }
0x2e6f   :  { %11139 = vmatmul.mubr.f32.vlgmr.msra.gmra.mrb[38].mxu0 %v6563_v62 }
0x2f42   :  { %v11140_v0 = vpop.f32.mrb[38].mxu0 }
0x2f43   :  { %v6653_v47 = vpop.f32.mrb[39].mxu0  ;;  %v6659_v1 = vadd.f32 %v11140_v0, %v10132_v63 }
0x2f44   :  { %v6654_v11 = vadd.f32 %v10132_v63, %v6653_v47 }
0x2f45   :  { %v6663_v8 = vadd.f32 %v6659_v1, %v14359_v41 }
0x2f46   :  { %v6662_v34 = vadd.f32 %v6654_v11, %v14355_v39 }
0x2f47   :  { %v6667_v2 = vsel %vm587_vm0, %v6663_v8, 0.0 }
0x2f48   :  { %v6664_v33 = vsel %vm587_vm0, %v6662_v34, 0.0 }
0x2f49   :  { %6665 = vadd.xlane.f32.xlu0 %v6664_v33 }
0x2f4d   :  { %6668 = vadd.xlane.f32.xlu0 %v6667_v2 }
0x2fd6   :  { %v6666_v6 = vpop.xlane.xlu0 %6665 }
0x2fd7   :  { %v6670_v4 = vmul.f32 0.03125, %v6666_v6 }
0x2fd9   :  { %v6672_v12 = vsub.f32 %v6662_v34, %v6670_v4 }
0x2fda   :  { %v6669_v25 = vpop.xlane.xlu0 %6668 }
0x2fdb   :  { %v6671_v22 = vmul.f32 0.03125, %v6669_v25  ;;  %v6674_v58 = vmul.f32 %v6672_v12, %v6672_v12 }
0x2fdd   :  { %v6673_v3 = vsub.f32 %v6663_v8, %v6671_v22  ;;  %v6676_v39 = vsel %vm587_vm0, %v6674_v58, 0.0 }
0x2fde   :  { %6677 = vadd.xlane.f32.xlu0 %v6676_v39 }
0x2fdf   :  { %v6675_v41 = vmul.f32 %v6673_v3, %v6673_v3 }
0x2fe1   :  { %v6679_v26 = vsel %vm587_vm0, %v6675_v41, 0.0 }
0x2fe2   :  { %6680 = vadd.xlane.f32.xlu1 %v6679_v26 }
0x306b   :  { %v6678_v10 = vpop.xlane.xlu0 %6677 }
0x306c   :  { %v6682_v29 = vmul.f32 0.03125, %v6678_v10 }
0x306e   :  { %v6684_v15 = vadd.f32 1e-05, %v6682_v29 }
0x306f   :  { %v6681_v32 = vpop.xlane.xlu1 %6680 }
0x3070   :  { %12438 = vrsqrt.f32 %v6684_v15  ;;  %v6683_v36 = vmul.f32 0.03125, %v6681_v32 }
0x3072   :  { %v6685_v37 = vadd.f32 1e-05, %v6683_v36 }
0x3074   :  { %12440 = vrsqrt.f32 %v6685_v37 }
0x307a   :  { %v12439_v35 = vpop.eup %12438 }
0x307b   :  { %v6688_v28 = vmul.f32 %v12439_v35, %v6672_v12 }
0x307d   :  { %v6697_v38 = vmul.f32 %v10133_v24, %v6688_v28 }
0x307e   :  { %v12441_v40 = vpop.eup %12440 }
0x307f   :  { %v6689_v23 = vmul.f32 %v12441_v40, %v6673_v3  ;;  %v14393_v42 = vadd.f32 %v10134_v9, %v6697_v38 }
0x3081   :  { %v6698_v43 = vmul.f32 %v10133_v24, %v6689_v23  ;;  %11149 = vmatprep.mubr.msk.f32.mxu1 %vm587_vm0, %v14393_v42 }
0x3083   :  { %v14397_v44 = vadd.f32 %v10134_v9, %v6698_v43 }
0x3085   :  { %11150 = vmatmul.mubr.msk.f32.vlgmr.msra.gmra.mrb[54].mxu1 %vm587_vm0, %v14397_v44 }
0x3158   :  { %v11151_v31 = vpop.f32.mrb[54].mxu1 }
0x3159   :  { %v6797_v61 = vadd.f32 %v11151_v31, %v10135_v46  ;;  %v6791_v48 = vpop.f32.mrb[55].mxu1 }
0x315a   :  { %v6792_v45 = vadd.f32 %v10135_v46, %v6791_v48 }
0x315b   :  { %v14413_v14 = vmul.f32 0.35355338, %v6797_v61 }
0x315c   :  { %v14401_v52 = vpack.i.bf16 %v6797_v61, %v6792_v45  ;;  %v14403_v53 = vmul.f32 0.35355338, %v6792_v45 }
0x315e   :  { %12174 = vrot.lane.b32.xlu0 %v14401_v52, %s13232_s2  ;;  %11156 = vmatprep.mubr.msk.f32.mxu1 %vm681_vm1, %v14403_v53 }
0x3162   :  { %12184 = vrot.lane.b32.xlu0 %v14401_v52, %s13234_s7 }
0x3166   :  { %7006 = vrot.lane.b32.xlu0 %v14403_v53, %s13233_s29 }
0x316a   :  { %7008 = vrot.lane.b32.xlu0 %v14413_v14, %s13233_s29 }
0x31d0   :  { %v12175_v16 = vpop.permute.xlu0 %12174 }
0x31d1   :  { %v12177_v30 = vunpack.i.h.bf16 %v12175_v16  ;;  %v12176_v5 = vunpack.i.l.bf16 %v12175_v16 }
0x31d3   :  { %v11718_v50 = vpack.c.bf16 %v12177_v30, %v12176_v5 }
0x31d4   :  { %v12185_v25 = vpop.permute.xlu0 %12184 }
0x31d5   :  { %11720 = vmatprep.subr.msk.bf16.mxu1 %vm13740_vm2, %v11718_v50  ;;  %v12187_v58 = vunpack.i.h.bf16 %v12185_v25  ;;  %v12186_v3 = vunpack.i.l.bf16 %v12185_v25 }
0x31d6   :  { %11723 = vmatpush3.bf16.xpose.msk.msra.mxu1 %vm13740_vm2, %v11718_v50 }
0x31d7   :  { %v11728_v17 = vpack.c.bf16 %v12187_v58, %v12186_v3 }
0x31d8   :  { %v7007_v27 = vpop.permute.xlu0 %7006 }
0x31dc   :  { %v7009_v10 = vpop.permute.xlu0 %7008 }
0x31dd   :  { %11157 = vmatmul.mubr.msk.f32.vlgmr.msra.gmra.mrb[56].mxu1 %vm681_vm1, %v14413_v14 }
0x32b0   :  { %v11158_v56 = vpop.f32.mrb[56].mxu1 }
0x32b1   :  { %v6888_v57 = vpop.f32.mrb[57].mxu1  ;;  %v6894_v59 = vadd.f32 %v14273_v49, %v11158_v56 }
0x32b2   :  { %v6889_v60 = vadd.f32 %v14277_v54, %v6888_v57 }
0x32b3   :  { %v6900_v62 = vsel %vm767_vm3, %v6894_v59, -inf }
0x32b4   :  { %v6897_v51 = vsel %vm767_vm3, %v6889_v60, -inf }
0x32b5   :  { %6898 = vmax.xlane.f32.xlu1 %v6897_v51 }
0x32b9   :  { %6901 = vmax.xlane.f32.xlu1 %v6900_v62 }
0x3342   :  { %v6899_v63 = vpop.xlane.xlu1 %6898 }
0x3343   :  { %v6903_v0 = vsub.f32 %v6889_v60, %v6899_v63 }
0x3345   :  { %v6905_v11 = vmul.f32 1.442695, %v6903_v0 }
0x3346   :  { %v6902_v47 = vpop.xlane.xlu1 %6901 }
0x3347   :  { %v6904_v1 = vsub.f32 %v6894_v59, %v6902_v47 }
0x3349   :  { %v6907_v34 = vmul.f32 1.442695, %v6904_v1 }
0x334b   :  { %12442 = vpow2.f32 %v6907_v34 }
0x334c   :  { %12444 = vpow2.f32 %v6905_v11 }
0x3355   :  { %v12443_v8 = vpop.eup %12442 }
0x3356   :  { %v6912_v33 = vsel %vm767_vm3, %v12443_v8, 0.0  ;;  %v12445_v2 = vpop.eup %12444 }
0x3357   :  { %6913 = vadd.xlane.f32.xlu1 %v6912_v33  ;;  %v6909_v6 = vsel %vm767_vm3, %v12445_v2, 0.0 }
0x335b   :  { %6910 = vadd.xlane.f32.xlu1 %v6909_v6 }
0x336c   :  { %12179 = vrot.lane.b32.xlu1 %v14401_v52, %s13239_s11  ;;  %s14835_s11 = sld [smem:[#allocation79_spill]] }
0x33e4   :  { %v6914_v4 = vpop.xlane.xlu1 %6913 }
0x33e5   :  { %12446 = vrcp.f32 %v6914_v4 }
0x33e8   :  { %v6911_v12 = vpop.xlane.xlu1 %6910 }
0x33e9   :  { %12448 = vrcp.f32 %v6911_v12 }
0x33ec   :  { %v12180_v22 = vpop.permute.xlu1 %12179 }
0x33ed   :  { %v12182_v39 = vunpack.i.h.bf16 %v12180_v22  ;;  %v12181_v41 = vunpack.i.l.bf16 %v12180_v22  ;;  %v14484_v22 = vld [vmem:[%s14806_s10 + $0x8] sm:$0xff] }
0x33ef   :  { %v11724_v26 = vpack.c.bf16 %v12182_v39, %v12181_v41  ;;  %v12447_v18 = vpop.eup %12446  ;;  %v14488_v39 = vld [vmem:[%s14806_s10] sm:$0xff]  ;;  %s14834_s10 = sld [smem:[#allocation80_spill]] }
0x33f0   :  { %v6918_v13 = vmul.f32 %v12447_v18, %v12443_v8 }
0x33f1   :  { %11725 = vmatprep.subr.bf16.mxu1 %v11724_v26 }
0x33f2   :  { %11727 = vmatpush3.bf16.msra.mxu1 %v11724_v26 }
0x33f3   :  { %v12449_v20 = vpop.eup %12448  ;;  %11730 = vmatprep.subr.msk.bf16.mxu1 %vm13740_vm2, %v11728_v17 }
0x33f4   :  { %v6916_v21 = vmul.f32 %v12449_v20, %v12445_v2 }
0x33f6   :  { %11163 = vmatprep.mubr.msk.f32.mxu1 %vm767_vm3, %v6916_v21 }
0x33f7   :  { %11164 = vmatmul.mubr.msk.f32.vlgmr.msra.gmra.mrb[58].mxu1 %vm767_vm3, %v6918_v13 }
0x33f8   :  { %11170 = vmatprep.mubr.msk.f32.mxu1 %vm681_vm1, %v7007_v27 }
0x33fb   :  { %11733 = vmatpush3.bf16.xpose.msk.msra.mxu1 %vm13740_vm2, %v11728_v17 }
0x3402   :  { %11171 = vmatmul.mubr.msk.f32.vlgmr.msra.gmra.mrb[60].mxu1 %vm681_vm1, %v7009_v10 }
0x34ca   :  { %v14439_v29 = vpop.f32.mrb[58].mxu1 }
0x34cb   :  { %v14441_v15 = vpop.f32.mrb[59].mxu1 }
0x34d5   :  { %v11172_v32 = vpop.f32.mrb[60].mxu1 }
0x34d6   :  { %v7094_v36 = vadd.f32 %v14273_v49, %v11172_v32  ;;  %v7088_v37 = vpop.f32.mrb[61].mxu1 }
0x34d7   :  { %v7089_v35 = vadd.f32 %v14277_v54, %v7088_v37 }
0x34d8   :  { %v7100_v24 = vsel %vm767_vm3, %v7094_v36, -inf }
0x34d9   :  { %7101 = vmax.xlane.f32.xlu1 %v7100_v24  ;;  %v7097_v28 = vsel %vm767_vm3, %v7089_v35, -inf }
0x34da   :  { %7098 = vmax.xlane.f32.xlu0 %v7097_v28 }
0x34ea   :  { %12189 = vrot.lane.b32.xlu1 %v14401_v52, %s13237_s8  ;;  %s14833_s8 = sld [smem:[#allocation89_spill]] }
0x34ee   :  { %7368 = vrot.lane.b32.xlu1 %v14403_v53, %s13236_s17 }
0x34f0   :  { %v6801_v2 = vld [vmem:[%s14833_s8 + $0x8] sm:$0xff]  ;;  %v6800_v6 = vld [vmem:[%s14833_s8] sm:$0xff] }
0x34f1   :  { %11180 = vmatprep.subr.mxu0 %v6801_v2 }
0x34f2   :  { %7370 = vrot.lane.b32.xlu1 %v14413_v14, %s13236_s17  ;;  %11181 = vmatpush3.msra.mxu0 %v6801_v2 }
0x34f3   :  { %11185 = vmatprep.subr.mxu0 %v6800_v6 }
0x34f6   :  { %7651 = vrot.lane.b32.xlu1 %v14403_v53, %s13240_s13 }
0x3566   :  { %v7102_v49 = vpop.xlane.xlu1 %7101 }
0x3567   :  { %v7104_v54 = vsub.f32 %v7094_v36, %v7102_v49  ;;  %v7099_v9 = vpop.xlane.xlu0 %7098 }
0x3568   :  { %v7103_v38 = vsub.f32 %v7089_v35, %v7099_v9 }
0x3569   :  { %v7107_v40 = vmul.f32 1.442695, %v7104_v54 }
0x356a   :  { %v7105_v23 = vmul.f32 1.442695, %v7103_v38  ;;  %v12190_v43 = vpop.permute.xlu1 %12189 }
0x356b   :  { %12450 = vpow2.f32 %v7107_v40  ;;  %v12192_v46 = vunpack.i.h.bf16 %v12190_v43  ;;  %v12191_v31 = vunpack.i.l.bf16 %v12190_v43 }
0x356c   :  { %12452 = vpow2.f32 %v7105_v23 }
0x356d   :  { %v11734_v61 = vpack.c.bf16 %v12192_v46, %v12191_v31 }
0x356e   :  { %v7369_v63 = vpop.permute.xlu1 %7368 }
0x356f   :  { %11735 = vmatprep.subr.bf16.mxu1 %v11734_v61 }
0x3570   :  { %11737 = vmatpush3.bf16.msra.mxu1 %v11734_v61 }
0x3572   :  { %v7371_v34 = vpop.permute.xlu1 %7370 }
0x3575   :  { %v12451_v48 = vpop.eup %12450 }
0x3576   :  { %v7112_v45 = vsel %vm767_vm3, %v12451_v48, 0.0  ;;  %v12453_v16 = vpop.eup %12452  ;;  %v7652_v8 = vpop.permute.xlu1 %7651 }
0x3577   :  { %7113 = vadd.xlane.f32.xlu0 %v7112_v45  ;;  %v7109_v53 = vsel %vm767_vm3, %v12453_v16, 0.0 }
0x357b   :  { %7110 = vadd.xlane.f32.xlu0 %v7109_v53 }
0x3591   :  { %12194 = vrot.lane.b32.xlu0 %v14401_v52, %s13235_s0 }
0x3595   :  { %12199 = vrot.lane.b32.xlu0 %v14401_v52, %s13238_s12 }
0x3599   :  { %7653 = vrot.lane.b32.xlu0 %v14413_v14, %s13240_s13 }
0x3604   :  { %v7114_v30 = vpop.xlane.xlu0 %7113 }
0x3605   :  { %12454 = vrcp.f32 %v7114_v30 }
0x3608   :  { %v7111_v5 = vpop.xlane.xlu0 %7110 }
0x3609   :  { %12456 = vrcp.f32 %v7111_v5 }
0x360c   :  { %v12195_v50 = vpop.permute.xlu0 %12194 }
0x360d   :  { %v12197_v56 = vunpack.i.h.bf16 %v12195_v50  ;;  %v12196_v57 = vunpack.i.l.bf16 %v12195_v50 }
0x360f   :  { %v11738_v60 = vpack.c.bf16 %v12197_v56, %v12196_v57  ;;  %v12455_v51 = vpop.eup %12454 }
0x3610   :  { %v12200_v59 = vpop.permute.xlu0 %12199  ;;  %v7118_v14 = vmul.f32 %v12455_v51, %v12451_v48 }
0x3611   :  { %11740 = vmatprep.subr.msk.bf16.mxu1 %vm13740_vm2, %v11738_v60  ;;  %v12202_v0 = vunpack.i.h.bf16 %v12200_v59  ;;  %v12201_v47 = vunpack.i.l.bf16 %v12200_v59 }
0x3613   :  { %v12457_v62 = vpop.eup %12456  ;;  %v11748_v11 = vpack.c.bf16 %v12202_v0, %v12201_v47 }
0x3614   :  { %v7116_v1 = vmul.f32 %v12457_v62, %v12453_v16  ;;  %v7654_v33 = vpop.permute.xlu0 %7653  ;;  %v6802_v62 = vld [vmem:[%s14833_s8 + $0x10] sm:$0xff] }
0x3616   :  { %11177 = vmatprep.mubr.msk.f32.mxu1 %vm767_vm3, %v7116_v1 }
0x3617   :  { %11178 = vmatmul.mubr.msk.f32.vlgmr.msra.gmra.mrb[62].mxu1 %vm767_vm3, %v7118_v14 }
0x3618   :  { %11743 = vmatpush3.bf16.xpose.msk.msra.mxu1 %vm13740_vm2, %v11738_v60  ;;  %11194 = vmatprep.mubr.msk.f32.mxu1 %vm681_vm1, %v7369_v63 }
0x3619   :  { %11750 = vmatprep.subr.msk.bf16.mxu1 %vm13740_vm2, %v11748_v11 }
0x361f   :  { %11195 = vmatmul.mubr.msk.f32.vlgmr.msra.gmra.mrb[64].mxu1 %vm681_vm1, %v7371_v34 }
0x3620   :  { %11753 = vmatpush3.bf16.xpose.msk.msra.mxu1 %vm13740_vm2, %v11748_v11  ;;  %11213 = vmatprep.mubr.msk.f32.mxu1 %vm681_vm1, %v7652_v8 }
0x3627   :  { %11214 = vmatmul.mubr.msk.f32.vlgmr.msra.gmra.mrb[66].mxu1 %vm681_vm1, %v7654_v33 }
0x36ea   :  { %v11179_v4 = vpop.f32.mrb[62].mxu1 }
0x36eb   :  { %v7197_v12 = vpop.f32.mrb[63].mxu1 }
0x36ec   :  { %11182 = vmatprep.mubr.msk.f32.mxu0 %vm681_vm1, %v7197_v12 }
0x36ed   :  { %11183 = vmatmul.mubr.msk.f32.vlgmr.msra.gmra.mrb[40].mxu0 %vm681_vm1, %v11179_v4 }
0x36ee   :  { %11187 = vmatprep.mubr.msk.f32.mxu0 %vm681_vm1, %v14441_v15  ;;  %11186 = vmatpush3.msra.mxu0 %v6800_v6  ;;  %v6803_v6 = vld [vmem:[%s14833_s8 + $0x18] sm:$0xff] }
0x36f2   :  { %v11196_v25 = vpop.f32.mrb[64].mxu1 }
0x36f3   :  { %v7456_v58 = vadd.f32 %v14484_v22, %v11196_v25  ;;  %v7450_v3 = vpop.f32.mrb[65].mxu1 }
0x36f4   :  { %v7451_v41 = vadd.f32 %v14488_v39, %v7450_v3 }
0x36f5   :  { %11188 = vmatmul.mubr.msk.f32.vlgmr.msra.gmra.mrb[40].mxu0 %vm681_vm1, %v14439_v29  ;;  %v7462_v26 = vsel %vm767_vm3, %v7456_v58, -inf }
0x36f6   :  { %7463 = vmax.xlane.f32.xlu0 %v7462_v26  ;;  %v7459_v17 = vsel %vm767_vm3, %v7451_v41, -inf }
0x36f7   :  { %7460 = vmax.xlane.f32.xlu1 %v7459_v17 }
0x36fa   :  { %v11215_v18 = vpop.f32.mrb[66].mxu1 }
0x36fb   :  { %v7733_v20 = vpop.f32.mrb[67].mxu1  ;;  %v7739_v28 = vadd.f32 %v14484_v22, %v11215_v18 }
0x36fc   :  { %v7734_v29 = vadd.f32 %v14488_v39, %v7733_v20 }
0x36fd   :  { %v7745_v54 = vsel %vm767_vm3, %v7739_v28, -inf }
0x36fe   :  { %v7742_v49 = vsel %vm767_vm3, %v7734_v29, -inf }
0x3783   :  { %v7464_v21 = vpop.xlane.xlu0 %7463 }
0x3784   :  { %v7466_v13 = vsub.f32 %v7456_v58, %v7464_v21  ;;  %v7461_v27 = vpop.xlane.xlu1 %7460  ;;  %v10170_v58 = vld [vmem:[#allocation7] ss:$0 sm:$0xff] }
0x3785   :  { %v7465_v10 = vsub.f32 %v7451_v41, %v7461_v27  ;;  %v7991_v27 = vld [vmem:[%s14834_s10 + $0x10] sm:$0xff] }
0x3786   :  { %v7469_v15 = vmul.f32 1.442695, %v7466_v13 }
0x3787   :  { %v7467_v32 = vmul.f32 1.442695, %v7465_v10  ;;  %v7992_v10 = vld [vmem:[%s14834_s10 + $0x18] sm:$0xff] }
0x3788   :  { %12458 = vpow2.f32 %v7469_v15 }
0x3789   :  { %12460 = vpow2.f32 %v7467_v32 }
0x3792   :  { %v12459_v36 = vpop.eup %12458 }
0x3793   :  { %v12461_v37 = vpop.eup %12460  ;;  %v7474_v35 = vsel %vm767_vm3, %v12459_v36, 0.0 }
0x3794   :  { %7475 = vadd.xlane.f32.xlu1 %v7474_v35  ;;  %v7471_v24 = vsel %vm767_vm3, %v12461_v37, 0.0 }
0x3795   :  { %7472 = vadd.xlane.f32.xlu0 %v7471_v24 }
0x3798   :  { %7743 = vmax.xlane.f32.xlu1 %v7742_v49  ;;  %v7989_v49 = vld [vmem:[%s14834_s10] sm:$0xff] }
0x379c   :  { %7746 = vmax.xlane.f32.xlu1 %v7745_v54  ;;  %v7990_v54 = vld [vmem:[%s14834_s10 + $0x8] sm:$0xff] }
0x37ab   :  { %12204 = vrot.lane.b32.xlu0 %v14401_v52, %s13241_s20  ;;  %s14836_s20 = sld [smem:[#allocation86_spill]] }
0x3821   :  { %v7476_v9 = vpop.xlane.xlu1 %7475 }
0x3822   :  { %12462 = vrcp.f32 %v7476_v9  ;;  %v7473_v38 = vpop.xlane.xlu0 %7472  ;;  %v12213_v9 = vpack.i.bf16 %v7990_v54, %v7989_v49 }
0x3823   :  { %12464 = vrcp.f32 %v7473_v38  ;;  %v11758_v38 = vpack.c.bf16 %v7990_v54, %v7989_v49 }
0x3825   :  { %v7744_v40 = vpop.xlane.xlu1 %7743  ;;  %11759 = vmatprep.subr.bf16.mxu1 %v11758_v38 }
0x3826   :  { %v12205_v23 = vpop.permute.xlu0 %12204  ;;  %v7748_v31 = vsub.f32 %v7734_v29, %v7744_v40  ;;  %11761 = vmatpush3.bf16.msra.mxu1 %v11758_v38  ;;  %v11762_v40 = vpack.c.bf16 %v7992_v10, %v7991_v27 }
0x3827   :  { %v12207_v43 = vunpack.i.h.bf16 %v12205_v23  ;;  %v12206_v46 = vunpack.i.l.bf16 %v12205_v23  ;;  %v10173_v23 = vld [vmem:[%s14835_s11] ss:$0 sm:$0xff] }
0x3828   :  { %v7750_v53 = vmul.f32 1.442695, %v7748_v31  ;;  %11763 = vmatprep.subr.bf16.mxu1 %v11762_v40 }
0x3829   :  { %v11744_v61 = vpack.c.bf16 %v12207_v43, %v12206_v46  ;;  %v7747_v48 = vpop.xlane.xlu1 %7746 }
0x382a   :  { %v7749_v45 = vsub.f32 %v7739_v28, %v7747_v48  ;;  %11765 = vmatpush3.bf16.msra.mxu1 %v11762_v40 }
0x382b   :  { %11745 = vmatprep.subr.bf16.mxu0 %v11744_v61 }
0x382c   :  { %v12463_v16 = vpop.eup %12462  ;;  %v7752_v30 = vmul.f32 1.442695, %v7749_v45  ;;  %11747 = vmatpush3.bf16.msra.mxu0 %v11744_v61 }
0x382d   :  { %v12465_v5 = vpop.eup %12464  ;;  %v7480_v56 = vmul.f32 %v12463_v16, %v12459_v36  ;;  %11204 = vmatprep.subr.mxu0 %v6802_v62 }
0x382e   :  { %12466 = vpow2.f32 %v7752_v30  ;;  %v7478_v50 = vmul.f32 %v12465_v5, %v12461_v37 }
0x382f   :  { %12468 = vpow2.f32 %v7750_v53 }
0x3830   :  { %11201 = vmatprep.mubr.msk.f32.mxu0 %vm767_vm3, %v7478_v50 }
0x3831   :  { %11202 = vmatmul.mubr.msk.f32.vlgmr.msra.gmra.mrb[42].mxu0 %vm767_vm3, %v7480_v56 }
0x3832   :  { %11205 = vmatpush3.msra.mxu0 %v6802_v62  ;;  %v10171_v62 = vld [vmem:[%s14836_s20] ss:$0 sm:$0xff] }
0x3838   :  { %v12467_v57 = vpop.eup %12466 }
0x3839   :  { %v7757_v60 = vsel %vm767_vm3, %v12467_v57, 0.0  ;;  %v12469_v59 = vpop.eup %12468 }
0x383a   :  { %7758 = vadd.xlane.f32.xlu1 %v7757_v60  ;;  %v7754_v51 = vsel %vm767_vm3, %v12469_v59, 0.0 }
0x383e   :  { %7755 = vadd.xlane.f32.xlu1 %v7754_v51 }
0x384f   :  { %12209 = vrot.lane.b32.xlu1 %v14401_v52, %s13242_s15  ;;  %s14837_s15 = sld [smem:[#allocation85_spill]] }
0x38c7   :  { %v7759_v63 = vpop.xlane.xlu1 %7758 }
0x38cb   :  { %v7756_v0 = vpop.xlane.xlu1 %7755 }
0x38cc   :  { %12470 = vrcp.f32 %v7756_v0 }
0x38cd   :  { %12472 = vrcp.f32 %v7759_v63 }
0x38cf   :  { %v12210_v47 = vpop.permute.xlu1 %12209 }
0x38d0   :  { %v12212_v1 = vunpack.i.h.bf16 %v12210_v47  ;;  %v12211_v14 = vunpack.i.l.bf16 %v12210_v47 }
0x38d2   :  { %v11754_v11 = vpack.c.bf16 %v12212_v1, %v12211_v14  ;;  %v10172_v14 = vld [vmem:[%s14837_s15] ss:$0 sm:$0xff] }
0x38d4   :  { %11755 = vmatprep.subr.bf16.mxu0 %v11754_v11 }
0x38d6   :  { %v12471_v34 = vpop.eup %12470 }
0x38d7   :  { %v12473_v2 = vpop.eup %12472  ;;  %v7761_v52 = vmul.f32 %v12471_v34, %v12469_v59 }
0x38d8   :  { %v7763_v4 = vmul.f32 %v12473_v2, %v12467_v57 }
0x3904   :  { %v11203_v8 = vpop.f32.mrb[42].mxu0 }
0x3905   :  { %v7559_v33 = vpop.f32.mrb[43].mxu0 }
0x3906   :  { %11206 = vmatprep.mubr.msk.f32.mxu0 %vm681_vm1, %v7559_v33 }
0x3907   :  { %11207 = vmatmul.mubr.msk.f32.vlgmr.msra.gmra.mrb[40].mxu0 %vm681_vm1, %v11203_v8 }
0x3908   :  { %11757 = vmatpush3.bf16.msra.mxu0 %v11754_v11  ;;  %11220 = vmatprep.mubr.msk.f32.mxu0 %vm767_vm3, %v7761_v52 }
0x3909   :  { %11223 = vmatprep.subr.mxu0 %v6803_v6 }
0x390b   :  { %11221 = vmatmul.mubr.msk.f32.vlgmr.msra.gmra.mrb[44].mxu0 %vm767_vm3, %v7763_v4 }
0x390c   :  { %11224 = vmatpush3.msra.mxu0 %v6803_v6 }
0x39de   :  { %v11222_v12 = vpop.f32.mrb[44].mxu0 }
0x39df   :  { %v7842_v25 = vpop.f32.mrb[45].mxu0 }
0x39e0   :  { %11225 = vmatprep.mubr.msk.f32.mxu0 %vm681_vm1, %v7842_v25 }
0x39e1   :  { %11226 = vmatmul.mubr.msk.f32.vlgmr.msra.gmra.mrb[40].mxu0 %vm681_vm1, %v11222_v12 }
0x39e2   :  { %11247 = vmatprep.mubr.msk.f32.mxu0 %vm587_vm0, %v14212_v55  ;;  %v12218_v55 = vpack.i.bf16 %v7992_v10, %v7991_v27 }
0x3ab4   :  { %v11227_v3 = vpop.f32.mrb[40].mxu0 }
0x3ab5   :  { %v7942_v41 = vadd.f32 %v11227_v3, %v10170_v58  ;;  %v7923_v26 = vpop.f32.mrb[41].mxu0 }
0x3ab6   :  { %v7941_v17 = vadd.f32 %v10170_v58, %v7923_v26 }
0x3ab7   :  { %v7944_v18 = vadd.f32 %v7942_v41, %v14397_v44 }
0x3ab8   :  { %v7943_v20 = vadd.f32 %v7941_v17, %v14393_v42 }
0x3ab9   :  { %v7948_v21 = vsel %vm587_vm0, %v7944_v18, 0.0 }
0x3aba   :  { %7949 = vadd.xlane.f32.xlu1 %v7948_v21  ;;  %v7945_v13 = vsel %vm587_vm0, %v7943_v20, 0.0 }
0x3abb   :  { %7946 = vadd.xlane.f32.xlu0 %v7945_v13 }
0x3acb   :  { %12219 = vrot.lane.b32.xlu1 %v12218_v55, %s13232_s2 }
0x3b47   :  { %v7950_v15 = vpop.xlane.xlu1 %7949 }
0x3b48   :  { %v7952_v32 = vmul.f32 0.03125, %v7950_v15  ;;  %v7947_v36 = vpop.xlane.xlu0 %7946 }
0x3b49   :  { %v7951_v37 = vmul.f32 0.03125, %v7947_v36 }
0x3b4a   :  { %v7954_v44 = vsub.f32 %v7944_v18, %v7952_v32 }
0x3b4b   :  { %v7953_v29 = vsub.f32 %v7943_v20, %v7951_v37  ;;  %v12220_v48 = vpop.permute.xlu1 %12219 }
0x3b4c   :  { %v7956_v42 = vmul.f32 %v7954_v44, %v7954_v44  ;;  %v12222_v53 = vunpack.i.h.bf16 %v12220_v48  ;;  %v12221_v30 = vunpack.i.l.bf16 %v12220_v48 }
0x3b4d   :  { %v7955_v24 = vmul.f32 %v7953_v29, %v7953_v29 }
0x3b4e   :  { %v7960_v35 = vsel %vm587_vm0, %v7956_v42, 0.0  ;;  %v11770_v60 = vpack.c.bf16 %v12222_v53, %v12221_v30 }
0x3b4f   :  { %7961 = vadd.xlane.f32.xlu0 %v7960_v35  ;;  %v7957_v28 = vsel %vm587_vm0, %v7955_v24, 0.0 }
0x3b53   :  { %7958 = vadd.xlane.f32.xlu0 %v7957_v28 }
0x3b69   :  { %12214 = vrot.lane.b32.xlu0 %v12213_v9, %s13232_s2 }
0x3b6d   :  { %8097 = vrot.lane.b32.xlu0 %v10173_v23, %s13232_s2 }
0x3bdc   :  { %v7962_v43 = vpop.xlane.xlu0 %7961 }
0x3bdd   :  { %v7964_v46 = vmul.f32 0.03125, %v7962_v43 }
0x3bdf   :  { %v7966_v31 = vadd.f32 1e-05, %v7964_v46 }
0x3be0   :  { %v7959_v61 = vpop.xlane.xlu0 %7958 }
0x3be1   :  { %12474 = vrsqrt.f32 %v7966_v31  ;;  %v7963_v45 = vmul.f32 0.03125, %v7959_v61 }
0x3be3   :  { %v7965_v16 = vadd.f32 1e-05, %v7963_v45 }
0x3be4   :  { %v12215_v5 = vpop.permute.xlu0 %12214 }
0x3be5   :  { %12476 = vrsqrt.f32 %v7965_v16  ;;  %v12217_v50 = vunpack.i.h.bf16 %v12215_v5  ;;  %v12216_v56 = vunpack.i.l.bf16 %v12215_v5 }
0x3be7   :  { %v11766_v57 = vpack.c.bf16 %v12217_v50, %v12216_v56 }
0x3be8   :  { %v8098_v8 = vpop.permute.xlu0 %8097 }
0x3be9   :  { %11767 = vmatprep.subr.bf16.mxu0 %v11766_v57 }
0x3bea   :  { %11769 = vmatpush3.bf16.msra.mxu0 %v11766_v57 }
0x3beb   :  { %v12475_v59 = vpop.eup %12474  ;;  %11771 = vmatprep.subr.bf16.mxu0 %v11770_v60 }
0x3bec   :  { %v7970_v51 = vmul.f32 %v12475_v59, %v7954_v44 }
0x3bee   :  { %11773 = vmatpush3.bf16.msra.mxu0 %v11770_v60  ;;  %v7979_v47 = vmul.f32 %v10171_v62, %v7970_v51 }
0x3bef   :  { %v12477_v63 = vpop.eup %12476 }
0x3bf0   :  { %v7969_v0 = vmul.f32 %v12477_v63, %v7953_v29  ;;  %v14539_v34 = vadd.f32 %v10172_v14, %v7979_v47 }
0x3bf1   :  { %11248 = vmatmul.mubr.msk.f32.vlgmr.msra.gmra.mrb[46].mxu0 %vm587_vm0, %v14208_v7 }
0x3bf2   :  { %v7978_v1 = vmul.f32 %v10171_v62, %v7969_v0 }
0x3bf4   :  { %v14537_v11 = vadd.f32 %v10172_v14, %v7978_v1 }
0x3bf6   :  { %11236 = vmatprep.mubr.msk.f32.mxu1 %vm587_vm0, %v14537_v11 }
0x3bf7   :  { %11237 = vmatmul.mubr.msk.f32.vlgmr.msra.gmra.mrb[68].mxu1 %vm587_vm0, %v14539_v34 }
0x3cc4   :  { %v11249_v33 = vpop.f32.mrb[46].mxu0 }
0x3cc5   :  { %v8172_v2 = vadd.f32 %v11249_v33, %v8098_v8  ;;  %v8166_v52 = vpop.f32.mrb[47].mxu0 }
0x3cc6   :  { %v8167_v6 = vadd.f32 %v8166_v52, %v8098_v8 }
0x3cc8   :  { %v14545_v4 = vpack.i.bf16 %v8172_v2, %v8167_v6  ;;  %v11774_v7 = vpack.c.bf16 %v8172_v2, %v8167_v6 }
0x3cca   :  { %v11238_v12 = vpop.f32.mrb[68].mxu1  ;;  %12224 = vrot.lane.b32.xlu0 %v14545_v4, %s13233_s29  ;;  %11776 = vmatprep.subr.msk.bf16.mxu1 %vm13740_vm2, %v11774_v7 }
0x3ccb   :  { %v8078_v25 = vadd.f32 %v11238_v12, %v10173_v23  ;;  %v8072_v58 = vpop.f32.mrb[69].mxu1  ;;  %11779 = vmatpush3.bf16.xpose.msk.msra.mxu1 %vm13740_vm2, %v11774_v7 }
0x3ccc   :  { %v8073_v3 = vadd.f32 %v10173_v23, %v8072_v58 }
0x3ccd   :  { %v14553_v41 = vmul.f32 0.35355338, %v8078_v25 }
0x3cce   :  { %v14555_v26 = vmul.f32 0.35355338, %v8073_v3 }
0x3ccf   :  { %8379 = vrot.lane.b32.xlu0 %v14553_v41, %s13233_s29 }
0x3cd0   :  { %8377 = vrot.lane.b32.xlu1 %v14555_v26, %s13233_s29  ;;  %11254 = vmatprep.mubr.msk.f32.mxu1 %vm681_vm1, %v14555_v26  ;;  %s14839_s29 = sld [smem:[#allocation77_spill]] }
0x3cd2   :  { %11255 = vmatmul.mubr.msk.f32.vlgmr.msra.gmra.mrb[70].mxu1 %vm681_vm1, %v14553_v41 }
0x3cd3   :  { %8739 = vrot.lane.b32.xlu0 %v14555_v26, %s13236_s17 }
0x3cd4   :  { %12229 = vrot.lane.b32.xlu1 %v14545_v4, %s13236_s17 }
0x3cd8   :  { %8741 = vrot.lane.b32.xlu1 %v14553_v41, %s13236_s17  ;;  %s14842_s17 = sld [smem:[#allocation87_spill]] }
0x3d3c   :  { %v12225_v17 = vpop.permute.xlu0 %12224 }
0x3d3d   :  { %v12227_v18 = vunpack.i.h.bf16 %v12225_v17  ;;  %v12226_v20 = vunpack.i.l.bf16 %v12225_v17 }
0x3d3f   :  { %v11784_v21 = vpack.c.bf16 %v12227_v18, %v12226_v20 }
0x3d41   :  { %11786 = vmatprep.subr.msk.bf16.mxu1 %vm13740_vm2, %v11784_v21  ;;  %v8380_v27 = vpop.permute.xlu0 %8379 }
0x3d42   :  { %v8378_v13 = vpop.permute.xlu1 %8377  ;;  %11789 = vmatpush3.bf16.xpose.msk.msra.mxu1 %vm13740_vm2, %v11784_v21 }
0x3d43   :  { %11268 = vmatprep.mubr.msk.f32.mxu1 %vm681_vm1, %v8378_v13 }
0x3d45   :  { %v8740_v32 = vpop.permute.xlu0 %8739 }
0x3d46   :  { %v12230_v10 = vpop.permute.xlu1 %12229 }
0x3d47   :  { %v12232_v55 = vunpack.i.h.bf16 %v12230_v10  ;;  %v12231_v15 = vunpack.i.l.bf16 %v12230_v10 }
0x3d49   :  { %v11794_v36 = vpack.c.bf16 %v12232_v55, %v12231_v15  ;;  %11269 = vmatmul.mubr.msk.f32.vlgmr.msra.gmra.mrb[72].mxu1 %vm681_vm1, %v8380_v27 }
0x3d4a   :  { %11292 = vmatprep.mubr.msk.f32.mxu1 %vm681_vm1, %v8740_v32  ;;  %v8742_v37 = vpop.permute.xlu1 %8741 }
0x3d4b   :  { %11796 = vmatprep.subr.msk.bf16.mxu1 %vm13740_vm2, %v11794_v36 }
0x3d4c   :  { %11799 = vmatpush3.bf16.xpose.msk.msra.mxu1 %vm13740_vm2, %v11794_v36 }
0x3d53   :  { %11293 = vmatmul.mubr.msk.f32.vlgmr.msra.gmra.mrb[74].mxu1 %vm681_vm1, %v8742_v37 }
0x3da5   :  { %v11256_v44 = vpop.f32.mrb[70].mxu1 }
0x3da6   :  { %v8265_v29 = vadd.f32 %v14484_v22, %v11256_v44  ;;  %v8259_v42 = vpop.f32.mrb[71].mxu1 }
0x3da7   :  { %v8260_v35 = vadd.f32 %v14488_v39, %v8259_v42 }
0x3da8   :  { %v8271_v24 = vsel %vm767_vm3, %v8265_v29, -inf }
0x3da9   :  { %8272 = vmax.xlane.f32.xlu1 %v8271_v24  ;;  %v8268_v28 = vsel %vm767_vm3, %v8260_v35, -inf }
0x3daa   :  { %8269 = vmax.xlane.f32.xlu0 %v8268_v28 }
0x3e1c   :  { %v11270_v49 = vpop.f32.mrb[72].mxu1 }
0x3e1d   :  { %v8459_v54 = vpop.f32.mrb[73].mxu1  ;;  %v8465_v38 = vadd.f32 %v14484_v22, %v11270_v49 }
0x3e1e   :  { %v8460_v9 = vadd.f32 %v14488_v39, %v8459_v54 }
0x3e1f   :  { %v8471_v23 = vsel %vm767_vm3, %v8465_v38, -inf }
0x3e20   :  { %v8468_v40 = vsel %vm767_vm3, %v8460_v9, -inf }
0x3e21   :  { %8469 = vmax.xlane.f32.xlu0 %v8468_v40 }
0x3e25   :  { %8472 = vmax.xlane.f32.xlu0 %v8471_v23 }
0x3e26   :  { %v11294_v43 = vpop.f32.mrb[74].mxu1 }
0x3e27   :  { %v8821_v46 = vpop.f32.mrb[75].mxu1  ;;  %v8827_v52 = vadd.f32 %v14484_v22, %v11294_v43 }
0x3e28   :  { %v8822_v6 = vadd.f32 %v14488_v39, %v8821_v46 }
0x3e29   :  { %v8833_v12 = vsel %vm767_vm3, %v8827_v52, -inf }
0x3e2a   :  { %v8830_v7 = vsel %vm767_vm3, %v8822_v6, -inf }
0x3e36   :  { %v8273_v31 = vpop.xlane.xlu1 %8272 }
0x3e37   :  { %v8275_v61 = vsub.f32 %v8265_v29, %v8273_v31  ;;  %v8270_v48 = vpop.xlane.xlu0 %8269 }
0x3e38   :  { %v8274_v45 = vsub.f32 %v8260_v35, %v8270_v48 }
0x3e39   :  { %v8278_v16 = vmul.f32 1.442695, %v8275_v61 }
0x3e3a   :  { %v8276_v53 = vmul.f32 1.442695, %v8274_v45 }
0x3e3b   :  { %12478 = vpow2.f32 %v8278_v16 }
0x3e3c   :  { %12480 = vpow2.f32 %v8276_v53 }
0x3e45   :  { %v12479_v30 = vpop.eup %12478 }
0x3e46   :  { %v12481_v5 = vpop.eup %12480  ;;  %v8283_v50 = vsel %vm767_vm3, %v12479_v30, 0.0 }
0x3e47   :  { %8284 = vadd.xlane.f32.xlu0 %v8283_v50  ;;  %v8280_v56 = vsel %vm767_vm3, %v12481_v5, 0.0 }
0x3e48   :  { %8281 = vadd.xlane.f32.xlu1 %v8280_v56 }
0x3eae   :  { %v8470_v57 = vpop.xlane.xlu0 %8469 }
0x3eaf   :  { %v8474_v60 = vsub.f32 %v8460_v9, %v8470_v57 }
0x3eb1   :  { %v8476_v59 = vmul.f32 1.442695, %v8474_v60 }
0x3eb2   :  { %v8473_v51 = vpop.xlane.xlu0 %8472 }
0x3eb3   :  { %12482 = vpow2.f32 %v8476_v59  ;;  %v8475_v62 = vsub.f32 %v8465_v38, %v8473_v51 }
0x3eb5   :  { %v8478_v63 = vmul.f32 1.442695, %v8475_v62 }
0x3eb7   :  { %12484 = vpow2.f32 %v8478_v63 }
0x3ebd   :  { %v12483_v0 = vpop.eup %12482 }
0x3ebe   :  { %v8480_v47 = vsel %vm767_vm3, %v12483_v0, 0.0 }
0x3ebf   :  { %8481 = vadd.xlane.f32.xlu1 %v8480_v47 }
0x3ec1   :  { %v12485_v1 = vpop.eup %12484 }
0x3ec2   :  { %v8483_v14 = vsel %vm767_vm3, %v12485_v1, 0.0 }
0x3ec3   :  { %8484 = vadd.xlane.f32.xlu0 %v8483_v14 }
0x3ed0   :  { %12234 = vrot.lane.b32.xlu1 %v14545_v4, %s13232_s2  ;;  %s14838_s2 = sld [smem:[#allocation78_spill]] }
0x3ed4   :  { %12244 = vrot.lane.b32.xlu1 %v14545_v4, %s13240_s13  ;;  %v8285_v25 = vpop.xlane.xlu0 %8284 }
0x3ed5   :  { %v8282_v8 = vpop.xlane.xlu1 %8281 }
0x3ed6   :  { %12486 = vrcp.f32 %v8282_v8  ;;  %v8176_v61 = vld [vmem:[%s14838_s2 + $0x8] sm:$0xff]  ;;  %v8175_v48 = vld [vmem:[%s14838_s2] sm:$0xff] }
0x3ed7   :  { %12488 = vrcp.f32 %v8285_v25 }
0x3ed8   :  { %9022 = vrot.lane.b32.xlu1 %v14555_v26, %s13240_s13 }
0x3ed9   :  { %12239 = vrot.lane.b32.xlu0 %v14545_v4, %s13234_s7  ;;  %s14840_s7 = sld [smem:[#allocation82_spill]] }
0x3edd   :  { %9024 = vrot.lane.b32.xlu0 %v14553_v41, %s13240_s13  ;;  %s14844_s13 = sld [smem:[#allocation81_spill]] }
0x3ee0   :  { %v12487_v33 = vpop.eup %12486 }
0x3ee1   :  { %v8287_v2 = vmul.f32 %v12487_v33, %v12481_v5  ;;  %v12489_v20 = vpop.eup %12488 }
0x3ee2   :  { %v8289_v36 = vmul.f32 %v12489_v20, %v12479_v30 }
0x3ee3   :  { %11261 = vmatprep.mubr.msk.f32.mxu0 %vm767_vm3, %v8287_v2 }
0x3efc   :  { %8831 = vmax.xlane.f32.xlu1 %v8830_v7  ;;  %8834 = vmax.xlane.f32.xlu0 %v8833_v12 }
0x3f4c   :  { %v8482_v58 = vpop.xlane.xlu1 %8481 }
0x3f4d   :  { %12490 = vrcp.f32 %v8482_v58 }
0x3f50   :  { %v12235_v3 = vpop.permute.xlu1 %12234  ;;  %v8485_v41 = vpop.xlane.xlu0 %8484 }
0x3f51   :  { %v12237_v26 = vunpack.i.h.bf16 %v12235_v3  ;;  %v12236_v17 = vunpack.i.l.bf16 %v12235_v3  ;;  %12492 = vrcp.f32 %v8485_v41 }
0x3f53   :  { %v11780_v18 = vpack.c.bf16 %v12237_v26, %v12236_v17 }
0x3f54   :  { %v12245_v21 = vpop.permute.xlu1 %12244  ;;  %v12240_v13 = vpop.permute.xlu0 %12239 }
0x3f55   :  { %v12247_v27 = vunpack.i.h.bf16 %v12245_v21  ;;  %v12246_v10 = vunpack.i.l.bf16 %v12245_v21  ;;  %v12242_v55 = vunpack.i.h.bf16 %v12240_v13  ;;  %v12241_v15 = vunpack.i.l.bf16 %v12240_v13  ;;  %11781 = vmatprep.subr.bf16.mxu0 %v11780_v18 }
0x3f56   :  { %11783 = vmatpush3.bf16.msra.mxu0 %v11780_v18 }
0x3f57   :  { %v12491_v32 = vpop.eup %12490  ;;  %v11804_v37 = vpack.c.bf16 %v12247_v27, %v12246_v10  ;;  %v11790_v44 = vpack.c.bf16 %v12242_v55, %v12241_v15  ;;  %v8178_v15 = vld [vmem:[%s14838_s2 + $0x18] sm:$0xff] }
0x3f58   :  { %v9023_v29 = vpop.permute.xlu1 %9022  ;;  %v8487_v42 = vmul.f32 %v12491_v32, %v12483_v0  ;;  %v9025_v28 = vpop.permute.xlu0 %9024 }
0x3f59   :  { %11262 = vmatmul.mubr.msk.f32.vlgmr.msra.gmra.mrb[48].mxu0 %vm767_vm3, %v8289_v36  ;;  %11791 = vmatprep.subr.bf16.mxu0 %v11790_v44 }
0x3f5a   :  { %11806 = vmatprep.subr.msk.bf16.mxu1 %vm13740_vm2, %v11804_v37  ;;  %11311 = vmatprep.mubr.msk.f32.mxu1 %vm681_vm1, %v9023_v29 }
0x3f5b   :  { %v12493_v35 = vpop.eup %12492  ;;  %11793 = vmatpush3.bf16.msra.mxu0 %v11790_v44  ;;  %11275 = vmatprep.mubr.msk.f32.mxu0 %vm767_vm3, %v8487_v42  ;;  %v10210_v42 = vld [vmem:[%s14839_s29] ss:$0 sm:$0xff] }
0x3f5c   :  { %v8489_v24 = vmul.f32 %v12493_v35, %v12485_v1  ;;  %11809 = vmatpush3.bf16.xpose.msk.msra.mxu1 %vm13740_vm2, %v11804_v37  ;;  %11278 = vmatprep.subr.mxu0 %v8176_v61 }
0x3f5e   :  { %11276 = vmatmul.mubr.msk.f32.vlgmr.msra.gmra.mrb[50].mxu0 %vm767_vm3, %v8489_v24 }
0x3f5f   :  { %11279 = vmatpush3.msra.mxu0 %v8176_v61 }
0x3f60   :  { %11283 = vmatprep.subr.mxu0 %v8175_v48 }
0x3f63   :  { %11312 = vmatmul.mubr.msk.f32.vlgmr.msra.gmra.mrb[76].mxu1 %vm681_vm1, %v9025_v28 }
0x3f89   :  { %v8832_v49 = vpop.xlane.xlu1 %8831  ;;  %v8835_v54 = vpop.xlane.xlu0 %8834 }
0x3f8a   :  { %v8836_v9 = vsub.f32 %v8822_v6, %v8832_v49  ;;  %v8837_v38 = vsub.f32 %v8827_v52, %v8835_v54  ;;  %v8177_v52 = vld [vmem:[%s14838_s2 + $0x10] sm:$0xff] }
0x3f8c   :  { %v8838_v40 = vmul.f32 1.442695, %v8836_v9  ;;  %v8840_v23 = vmul.f32 1.442695, %v8837_v38 }
0x3f8e   :  { %12494 = vpow2.f32 %v8838_v40 }
0x3f8f   :  { %12496 = vpow2.f32 %v8840_v23 }
0x3f98   :  { %v12495_v43 = vpop.eup %12494 }
0x3f99   :  { %v12497_v46 = vpop.eup %12496  ;;  %v8842_v19 = vsel %vm767_vm3, %v12495_v43, 0.0 }
0x3f9a   :  { %8843 = vadd.xlane.f32.xlu0 %v8842_v19  ;;  %v8845_v31 = vsel %vm767_vm3, %v12497_v46, 0.0 }
0x3f9b   :  { %8846 = vadd.xlane.f32.xlu1 %v8845_v31 }
0x3fb0   :  { %12249 = vrot.lane.b32.xlu0 %v14545_v4, %s13235_s0  ;;  %s14841_s0 = sld [smem:[#allocation88_spill]] }
0x4027   :  { %v8844_v45 = vpop.xlane.xlu0 %8843 }
0x4028   :  { %v8847_v5 = vpop.xlane.xlu1 %8846  ;;  %12498 = vrcp.f32 %v8844_v45 }
0x4029   :  { %12500 = vrcp.f32 %v8847_v5  ;;  %v9362_v5 = vld [vmem:[%s14840_s7 + $0x10] sm:$0xff] }
0x402b   :  { %v12250_v53 = vpop.permute.xlu0 %12249 }
0x402c   :  { %v11263_v16 = vpop.f32.mrb[48].mxu0  ;;  %v12252_v50 = vunpack.i.h.bf16 %v12250_v53  ;;  %v12251_v56 = vunpack.i.l.bf16 %v12250_v53  ;;  %v9361_v53 = vld [vmem:[%s14840_s7 + $0x8] sm:$0xff] }
0x402d   :  { %v8368_v30 = vpop.f32.mrb[49].mxu0 }
0x402e   :  { %v11800_v59 = vpack.c.bf16 %v12252_v50, %v12251_v56  ;;  %v9363_v50 = vld [vmem:[%s14840_s7 + $0x18] sm:$0xff] }
0x402f   :  { %v11818_v56 = vpack.c.bf16 %v9363_v50, %v9362_v5 }
0x4031   :  { %v11277_v57 = vpop.f32.mrb[50].mxu0 }
0x4032   :  { %v8568_v60 = vpop.f32.mrb[51].mxu0  ;;  %v12499_v63 = vpop.eup %12498 }
0x4033   :  { %11280 = vmatprep.mubr.msk.f32.mxu0 %vm681_vm1, %v8568_v60  ;;  %v12501_v14 = vpop.eup %12500  ;;  %v8849_v8 = vmul.f32 %v12499_v63, %v12495_v43 }
0x4034   :  { %11281 = vmatmul.mubr.msk.f32.vlgmr.msra.gmra.mrb[52].mxu0 %vm681_vm1, %v11277_v57  ;;  %v8851_v33 = vmul.f32 %v12501_v14, %v12497_v46  ;;  %v10212_v14 = vld [vmem:[%s14842_s17] ss:$0 sm:$0xff] }
0x4035   :  { %11284 = vmatpush3.msra.mxu0 %v8175_v48  ;;  %11285 = vmatprep.mubr.msk.f32.mxu0 %vm681_vm1, %v8368_v30 }
0x4036   :  { %v11313_v51 = vpop.f32.mrb[76].mxu1  ;;  %11801 = vmatprep.subr.bf16.mxu0 %v11800_v59 }
0x4037   :  { %v9104_v62 = vpop.f32.mrb[77].mxu1  ;;  %v9110_v47 = vadd.f32 %v14484_v22, %v11313_v51 }
0x4038   :  { %v9105_v0 = vadd.f32 %v14488_v39, %v9104_v62 }
0x4039   :  { %v9116_v2 = vsel %vm767_vm3, %v9110_v47, -inf }
0x403a   :  { %v9113_v1 = vsel %vm767_vm3, %v9105_v0, -inf }
0x403b   :  { %9114 = vmax.xlane.f32.xlu1 %v9113_v1 }
0x403c   :  { %11286 = vmatmul.mubr.msk.f32.vlgmr.msra.gmra.mrb[52].mxu0 %vm681_vm1, %v11263_v16  ;;  %v9360_v16 = vld [vmem:[%s14840_s7] sm:$0xff] }
0x403d   :  { %11803 = vmatpush3.bf16.msra.mxu0 %v11800_v59  ;;  %11299 = vmatprep.mubr.msk.f32.mxu0 %vm767_vm3, %v8849_v8  ;;  %v11814_v30 = vpack.c.bf16 %v9361_v53, %v9360_v16 }
0x403e   :  { %11302 = vmatprep.subr.mxu0 %v8177_v52 }
0x403f   :  { %9117 = vmax.xlane.f32.xlu1 %v9116_v2  ;;  %11815 = vmatprep.subr.bf16.mxu1 %v11814_v30 }
0x4040   :  { %11300 = vmatmul.mubr.msk.f32.vlgmr.msra.gmra.mrb[54].mxu0 %vm767_vm3, %v8851_v33  ;;  %11817 = vmatpush3.bf16.msra.mxu1 %v11814_v30 }
0x4041   :  { %11303 = vmatpush3.msra.mxu0 %v8177_v52  ;;  %11819 = vmatprep.subr.bf16.mxu1 %v11818_v56 }
0x4044   :  { %11821 = vmatpush3.bf16.msra.mxu1 %v11818_v56 }
0x40c8   :  { %v9115_v22 = vpop.xlane.xlu1 %9114 }
0x40c9   :  { %v9119_v39 = vsub.f32 %v9105_v0, %v9115_v22 }
0x40cb   :  { %v9121_v12 = vmul.f32 1.442695, %v9119_v39 }
0x40cc   :  { %v9118_v6 = vpop.xlane.xlu1 %9117 }
0x40cd   :  { %v9120_v7 = vsub.f32 %v9110_v47, %v9118_v6  ;;  %v10211_v47 = vld [vmem:[%s14841_s0] ss:$0 sm:$0xff] }
0x40cf   :  { %v9123_v25 = vmul.f32 1.442695, %v9120_v7 }
0x40d1   :  { %12502 = vpow2.f32 %v9123_v25 }
0x40d2   :  { %12504 = vpow2.f32 %v9121_v12 }
0x40db   :  { %v12503_v58 = vpop.eup %12502 }
0x40dc   :  { %v9128_v3 = vsel %vm767_vm3, %v12503_v58, 0.0  ;;  %v12505_v41 = vpop.eup %12504 }
0x40dd   :  { %9129 = vadd.xlane.f32.xlu1 %v9128_v3  ;;  %v9125_v26 = vsel %vm767_vm3, %v12505_v41, 0.0 }
0x40e1   :  { %9126 = vadd.xlane.f32.xlu1 %v9125_v26 }
0x40f2   :  { %12254 = vrot.lane.b32.xlu1 %v14545_v4, %s13238_s12  ;;  %s14843_s12 = sld [smem:[#allocation84_spill]] }
0x40f8   :  { %v9506_v6 = vld [vmem:[%s14843_s12] sm:$0xff]  ;;  %v9507_v7 = vld [vmem:[%s14843_s12 + $0x8] sm:$0xff]  ;;  %v9508_v25 = vld [vmem:[%s14843_s12 + $0x10] sm:$0xff] }
0x40f9   :  { %v11822_v12 = vpack.c.bf16 %v9507_v7, %v9506_v6  ;;  %v9511_v26 = vld [vmem:[%s14843_s12 + $0x28] sm:$0xff] }
0x4113   :  { %v11301_v17 = vpop.f32.mrb[54].mxu0 }
0x4114   :  { %v8930_v18 = vpop.f32.mrb[55].mxu0 }
0x4115   :  { %11304 = vmatprep.mubr.msk.f32.mxu0 %vm681_vm1, %v8930_v18  ;;  %v9512_v18 = vld [vmem:[%s14843_s12 + $0x30] sm:$0xff] }
0x4116   :  { %11305 = vmatmul.mubr.msk.f32.vlgmr.msra.gmra.mrb[52].mxu0 %vm681_vm1, %v11301_v17 }
0x416a   :  { %v9130_v20 = vpop.xlane.xlu1 %9129 }
0x416b   :  { %12506 = vrcp.f32 %v9130_v20  ;;  %v9513_v20 = vld [vmem:[%s14843_s12 + $0x38] sm:$0xff] }
0x416e   :  { %v9127_v21 = vpop.xlane.xlu1 %9126 }
0x416f   :  { %12508 = vrcp.f32 %v9127_v21  ;;  %v11834_v21 = vpack.c.bf16 %v9513_v20, %v9512_v18 }
0x4172   :  { %v12255_v13 = vpop.permute.xlu1 %12254 }
0x4173   :  { %v12257_v27 = vunpack.i.h.bf16 %v12255_v13  ;;  %v12256_v10 = vunpack.i.l.bf16 %v12255_v13  ;;  %v9514_v13 = vld [vmem:[%s14843_s12 + $0x40] sm:$0xff] }
0x4175   :  { %v11810_v55 = vpack.c.bf16 %v12257_v27, %v12256_v10  ;;  %v12507_v32 = vpop.eup %12506  ;;  %v9515_v27 = vld [vmem:[%s14843_s12 + $0x48] sm:$0xff] }
0x4176   :  { %v9134_v37 = vmul.f32 %v12507_v32, %v12503_v58  ;;  %v9509_v58 = vld [vmem:[%s14843_s12 + $0x18] sm:$0xff]  ;;  %v11838_v10 = vpack.c.bf16 %v9515_v27, %v9514_v13 }
0x4177   :  { %11811 = vmatprep.subr.bf16.mxu0 %v11810_v55  ;;  %v11826_v3 = vpack.c.bf16 %v9509_v58, %v9508_v25 }
0x4178   :  { %11813 = vmatpush3.bf16.msra.mxu0 %v11810_v55  ;;  %v9516_v55 = vld [vmem:[%s14843_s12 + $0x50] sm:$0xff] }
0x4179   :  { %v12509_v4 = vpop.eup %12508  ;;  %11321 = vmatprep.subr.mxu0 %v8178_v15 }
0x417a   :  { %v9132_v36 = vmul.f32 %v12509_v4, %v12505_v41  ;;  %v9510_v41 = vld [vmem:[%s14843_s12 + $0x20] sm:$0xff] }
0x417b   :  { %v11830_v17 = vpack.c.bf16 %v9511_v26, %v9510_v41  ;;  %v9518_v4 = vld [vmem:[%s14843_s12 + $0x60] sm:$0xff] }
0x417c   :  { %11318 = vmatprep.mubr.msk.f32.mxu0 %vm767_vm3, %v9132_v36  ;;  %v9519_v36 = vld [vmem:[%s14843_s12 + $0x68] sm:$0xff] }
0x417d   :  { %11319 = vmatmul.mubr.msk.f32.vlgmr.msra.gmra.mrb[56].mxu0 %vm767_vm3, %v9134_v37  ;;  %v11846_v37 = vpack.c.bf16 %v9519_v36, %v9518_v4 }
0x417e   :  { %11322 = vmatpush3.msra.mxu0 %v8178_v15  ;;  %v9517_v15 = vld [vmem:[%s14843_s12 + $0x58] sm:$0xff] }
0x417f   :  { %11823 = vmatprep.subr.bf16.mxu0 %v11822_v12  ;;  %v11842_v32 = vpack.c.bf16 %v9517_v15, %v9516_v55 }
0x4250   :  { %v11320_v44 = vpop.f32.mrb[56].mxu0 }
0x4251   :  { %v9213_v29 = vpop.f32.mrb[57].mxu0 }
0x4252   :  { %11323 = vmatprep.mubr.msk.f32.mxu0 %vm681_vm1, %v9213_v29  ;;  %v9521_v29 = vld [vmem:[%s14843_s12 + $0x78] sm:$0xff] }
0x4253   :  { %11324 = vmatmul.mubr.msk.f32.vlgmr.msra.gmra.mrb[52].mxu0 %vm681_vm1, %v11320_v44  ;;  %v9520_v44 = vld [vmem:[%s14843_s12 + $0x70] sm:$0xff] }
0x4254   :  { %11825 = vmatpush3.bf16.msra.mxu0 %v11822_v12 }
0x4255   :  { %11827 = vmatprep.subr.bf16.mxu0 %v11826_v3 }
0x4258   :  { %11829 = vmatpush3.bf16.msra.mxu0 %v11826_v3 }
0x4259   :  { %11831 = vmatprep.subr.bf16.mxu0 %v11830_v17 }
0x425c   :  { %11833 = vmatpush3.bf16.msra.mxu0 %v11830_v17 }
0x425d   :  { %11835 = vmatprep.subr.bf16.mxu0 %v11834_v21 }
0x4260   :  { %11837 = vmatpush3.bf16.msra.mxu0 %v11834_v21 }
0x4261   :  { %11839 = vmatprep.subr.bf16.mxu0 %v11838_v10 }
0x4264   :  { %11841 = vmatpush3.bf16.msra.mxu0 %v11838_v10 }
0x4265   :  { %11843 = vmatprep.subr.bf16.mxu0 %v11842_v32 }
0x4268   :  { %11845 = vmatpush3.bf16.msra.mxu0 %v11842_v32  ;;  %v10220_v32 = vld [vmem:[%s14845_s28] ss:$0 sm:$0xff] }
0x4269   :  { %11847 = vmatprep.subr.bf16.mxu0 %v11846_v37 }
0x426c   :  { %11849 = vmatpush3.bf16.msra.mxu0 %v11846_v37 }
0x4326   :  { %v11325_v35 = vpop.f32.mrb[52].mxu0 }
0x4327   :  { %v9313_v24 = vadd.f32 %v11325_v35, %v10210_v42  ;;  %v9294_v28 = vpop.f32.mrb[53].mxu0  ;;  %v10213_v35 = vld [vmem:[%s14844_s13] ss:$0 sm:$0xff] }
0x4328   :  { %v9312_v49 = vadd.f32 %v10210_v42, %v9294_v28  ;;  %v11850_v42 = vpack.c.bf16 %v9521_v29, %v9520_v44 }
0x4329   :  { %v9315_v54 = vadd.f32 %v9313_v24, %v14539_v34 }
0x432a   :  { %v9314_v9 = vadd.f32 %v9312_v49, %v14537_v11  ;;  %11851 = vmatprep.subr.bf16.mxu0 %v11850_v42 }
0x432b   :  { %v9319_v38 = vsel %vm587_vm0, %v9315_v54, 0.0  ;;  %11853 = vmatpush3.bf16.msra.mxu0 %v11850_v42 }
0x432c   :  { %9320 = vadd.xlane.f32.xlu1 %v9319_v38  ;;  %v9316_v40 = vsel %vm587_vm0, %v9314_v9, 0.0 }
0x432d   :  { %9317 = vadd.xlane.f32.xlu0 %v9316_v40 }
0x43b9   :  { %v9321_v23 = vpop.xlane.xlu1 %9320 }
0x43ba   :  { %v9323_v43 = vmul.f32 0.03125, %v9321_v23  ;;  %v9318_v46 = vpop.xlane.xlu0 %9317 }
0x43bb   :  { %v9322_v19 = vmul.f32 0.03125, %v9318_v46 }
0x43bc   :  { %v9325_v31 = vsub.f32 %v9315_v54, %v9323_v43 }
0x43bd   :  { %v9324_v61 = vsub.f32 %v9314_v9, %v9322_v19 }
0x43be   :  { %v9327_v11 = vmul.f32 %v9325_v31, %v9325_v31 }
0x43bf   :  { %v9326_v48 = vmul.f32 %v9324_v61, %v9324_v61 }
0x43c0   :  { %v9331_v45 = vsel %vm587_vm0, %v9327_v11, 0.0 }
0x43c1   :  { %v9328_v34 = vsel %vm587_vm0, %v9326_v48, 0.0 }
0x43c2   :  { %9329 = vadd.xlane.f32.xlu0 %v9328_v34 }
0x43c6   :  { %9332 = vadd.xlane.f32.xlu0 %v9331_v45 }
0x444f   :  { %v9330_v57 = vpop.xlane.xlu0 %9329 }
0x4450   :  { %v9334_v60 = vmul.f32 0.03125, %v9330_v57 }
0x4452   :  { %v9336_v59 = vadd.f32 1e-05, %v9334_v60 }
0x4453   :  { %v9333_v51 = vpop.xlane.xlu0 %9332 }
0x4454   :  { %12510 = vrsqrt.f32 %v9336_v59  ;;  %v9335_v62 = vmul.f32 0.03125, %v9333_v51 }
0x4456   :  { %v9337_v63 = vadd.f32 1e-05, %v9335_v62 }
0x4458   :  { %12512 = vrsqrt.f32 %v9337_v63 }
0x445e   :  { %v12511_v0 = vpop.eup %12510 }
0x445f   :  { %v9340_v1 = vmul.f32 %v12511_v0, %v9324_v61 }
0x4461   :  { %v9349_v8 = vmul.f32 %v10211_v47, %v9340_v1 }
0x4462   :  { %v12513_v33 = vpop.eup %12512 }
0x4463   :  { %v9341_v2 = vmul.f32 %v12513_v33, %v9325_v31  ;;  %v14660_v52 = vadd.f32 %v10212_v14, %v9349_v8 }
0x4465   :  { %v9350_v22 = vmul.f32 %v10211_v47, %v9341_v2  ;;  %11334 = vmatprep.mubr.msk.f32.mxu1 %vm587_vm0, %v14660_v52 }
0x4467   :  { %v14664_v39 = vadd.f32 %v10212_v14, %v9350_v22 }
0x4469   :  { %11335 = vmatmul.mubr.msk.f32.vlgmr.msra.gmra.mrb[78].mxu1 %vm587_vm0, %v14664_v39 }
0x453c   :  { %v11336_v24 = vpop.f32.mrb[78].mxu1 }
0x453d   :  { %v9449_v28 = vadd.f32 %v11336_v24, %v10213_v35  ;;  %v9443_v49 = vpop.f32.mrb[79].mxu1 }
0x453e   :  { %v9444_v54 = vadd.f32 %v10213_v35, %v9443_v49 }
0x453f   :  { %v9453_v9 = vmul.f32 0.70710677, %v9449_v28  ;;  %v9501_v10 = vmul.f32 0.5, %v9449_v28 }
0x4540   :  { %v9452_v38 = vmul.f32 0.70710677, %v9444_v54  ;;  %v9500_v13 = vmul.f32 0.5, %v9444_v54 }
0x4541   :  { %v9455_v40 = vand.u32 2147483647, %v9453_v9  ;;  %vm9495_vm10 = vcmp.lt.f32.partialorder %v9453_v9, 0.0 }
0x4542   :  { %v9454_v23 = vand.u32 2147483647, %v9452_v38  ;;  %vm9494_vm11 = vcmp.lt.f32.partialorder %v9452_v38, 0.0 }
0x4543   :  { %v9457_v43 = vmul.f32 0.3275911, %v9455_v40  ;;  %v9483_v61 = vsub.f32 0.0, %v9455_v40 }
0x4544   :  { %v9456_v46 = vmul.f32 0.3275911, %v9454_v23  ;;  %v9482_v48 = vsub.f32 0.0, %v9454_v23 }
0x4545   :  { %v9459_v19 = vadd.f32 1.0, %v9457_v43  ;;  %v9485_v11 = vmul.f32 %v9483_v61, %v9455_v40 }
0x4546   :  { %v9458_v31 = vadd.f32 1.0, %v9456_v46  ;;  %v9484_v53 = vmul.f32 %v9482_v48, %v9454_v23 }
0x4547   :  { %12514 = vrcp.f32 %v9459_v19  ;;  %v9488_v50 = vmul.f32 1.442695, %v9485_v11 }
0x4548   :  { %12516 = vrcp.f32 %v9458_v31  ;;  %v9486_v60 = vmul.f32 1.442695, %v9484_v53  ;;  %v10222_v53 = vld [vmem:[#allocation2] ss:$0 sm:$0xff] }
0x4549   :  { %12518 = vpow2.f32 %v9488_v50 }
0x454a   :  { %12520 = vpow2.f32 %v9486_v60 }
0x4551   :  { %v12515_v34 = vpop.eup %12514 }
0x4552   :  { %v12517_v45 = vpop.eup %12516  ;;  %v9465_v16 = vmul.f32 1.0614054, %v12515_v34 }
0x4553   :  { %v9464_v30 = vmul.f32 1.0614054, %v12517_v45  ;;  %v12519_v6 = vpop.eup %12518 }
0x4554   :  { %v10217_v5 = vadd.f32 -1.4531521, %v9465_v16  ;;  %v12521_v12 = vpop.eup %12520 }
0x4555   :  { %v10216_v56 = vadd.f32 -1.4531521, %v9464_v30 }
0x4556   :  { %v9469_v57 = vmul.f32 %v12515_v34, %v10217_v5 }
0x4557   :  { %v9468_v59 = vmul.f32 %v12517_v45, %v10216_v56 }
0x4558   :  { %v9471_v51 = vadd.f32 1.4214138, %v9469_v57 }
0x4559   :  { %v9470_v62 = vadd.f32 1.4214138, %v9468_v59 }
0x455a   :  { %v9473_v63 = vmul.f32 %v12515_v34, %v9471_v51 }
0x455b   :  { %v9472_v0 = vmul.f32 %v12517_v45, %v9470_v62 }
0x455c   :  { %v10219_v47 = vadd.f32 -0.28449672, %v9473_v63 }
0x455d   :  { %v10218_v1 = vadd.f32 -0.28449672, %v9472_v0 }
0x455e   :  { %v9477_v14 = vmul.f32 %v12515_v34, %v10219_v47 }
0x455f   :  { %v9476_v8 = vmul.f32 %v12517_v45, %v10218_v1 }
0x4560   :  { %v9479_v33 = vadd.f32 0.2548296, %v9477_v14 }
0x4561   :  { %v9478_v2 = vadd.f32 0.2548296, %v9476_v8 }
0x4562   :  { %v9481_v22 = vmul.f32 %v12515_v34, %v9479_v33 }
0x4563   :  { %v9480_v7 = vmul.f32 %v12517_v45, %v9478_v2  ;;  %v10221_v45 = vld [vmem:[#allocation5] ss:$0 sm:$0xff] }
0x4564   :  { %v9491_v25 = vmul.f32 %v12519_v6, %v9481_v22  ;;  %v13243_v6 = vmov 0.0|0.0  }
0x4565   :  { %v9490_v58 = vmul.f32 %v12521_v12, %v9480_v7  ;;  %11854 = vmatprep.subr.bf16.mxu1 %v13243_v6  ;;  %v13245_v7 = vmov 0.0  }
0x4566   :  { %v9493_v3 = vsub.f32 1.0, %v9491_v25  ;;  %11376 = vmatprep.mubr.msk.f32.mxu1 %vm13244_vm12, %v13245_v7 }
0x4567   :  { %v9492_v41 = vsub.f32 1.0, %v9490_v58 }
0x4568   :  { %v9497_v26 = vsub.f32 0.0, %v9493_v3 }
0x4569   :  { %v9496_v17 = vsub.f32 0.0, %v9492_v41 }
0x456a   :  { %v9499_v18 = vsel %vm9495_vm10, %v9497_v26, %v9493_v3 }
0x456b   :  { %v9503_v20 = vadd.f32 1.0, %v9499_v18  ;;  %v9498_v21 = vsel %vm9494_vm11, %v9496_v17, %v9492_v41 }
0x456c   :  { %v9502_v27 = vadd.f32 1.0, %v9498_v21 }
0x456d   :  { %v9505_v15 = vmul.f32 %v9503_v20, %v9501_v10  ;;  %v10223_v20 = vld [vmem:[#allocation11] ss:$0 sm:$0xff]  ;;  %v10224_v10 = vld [vmem:[#allocation10] ss:$0 sm:$0xff] }
0x456e   :  { %v9504_v55 = vmul.f32 %v9502_v27, %v9500_v13 }
0x4570   :  { %11369 = vmatprep.mubr.f32.mxu0 %v9504_v55 }
0x4571   :  { %11370 = vmatmul.mubr.f32.vlgmr.msra.gmra.mrb[58].mxu0 %v9505_v15 }
0x4644   :  { %v11371_v4 = vpop.f32.mrb[58].mxu0 }
0x4645   :  { %v9595_v36 = vpop.f32.mrb[59].mxu0  ;;  %v9601_v37 = vadd.f32 %v11371_v4, %v10220_v32  ;;  %v9767_v4 = vld [vmem:[%s13595_s25] sm:$0xff] }
0x4646   :  { %v9596_v44 = vadd.f32 %v10220_v32, %v9595_v36  ;;  %v9768_v36 = vld [vmem:[%s13595_s25 + $0x8] sm:$0xff] }
0x4647   :  { %v9605_v42 = vadd.f32 %v9601_v37, %v14664_v39 }
0x4648   :  { %v9604_v29 = vadd.f32 %v9596_v44, %v14660_v52  ;;  %v575_v44 = vld [vmem:[%s14846_s5] sm:$0x3] }
0x4649   :  { %v9609_v24 = vsel %vm587_vm0, %v9605_v42, 0.0 }
0x464a   :  { %v9606_v35 = vsel %vm587_vm0, %v9604_v29, 0.0 }
0x464b   :  { %9607 = vadd.xlane.f32.xlu0 %v9606_v35  ;;  %v9770_v35 = vld [vmem:[%s13595_s25 + $0x18] sm:$0xff] }
0x464f   :  { %9610 = vadd.xlane.f32.xlu0 %v9609_v24 }
0x46d8   :  { %v9608_v28 = vpop.xlane.xlu0 %9607 }
0x46d9   :  { %v9612_v49 = vmul.f32 0.03125, %v9608_v28 }
0x46db   :  { %v9614_v54 = vsub.f32 %v9604_v29, %v9612_v49  ;;  %v11858_v29 = vpack.c.bf16 %v9768_v36, %v9767_v4 }
0x46dc   :  { %v9611_v9 = vpop.xlane.xlu0 %9610 }
0x46dd   :  { %v9613_v38 = vmul.f32 0.03125, %v9611_v9  ;;  %v9616_v40 = vmul.f32 %v9614_v54, %v9614_v54 }
0x46df   :  { %v9615_v23 = vsub.f32 %v9605_v42, %v9613_v38  ;;  %v9618_v43 = vsel %vm587_vm0, %v9616_v40, 0.0  ;;  %v9769_v42 = vld [vmem:[%s13595_s25 + $0x10] sm:$0xff]  ;;  %s13088_s25 = scalar_lea.vmem %s9860_s3, 32 }
0x46e0   :  { %9619 = vadd.xlane.f32.xlu0 %v9618_v43  ;;  %v11861_v24 = vpack.c.bf16 %v9770_v35, %v9769_v42  ;;  %p13089_p4 = scmp.ne.s32.totalorder %s9860_s3, %s13088_s25  ;;  %p13094_p6 = scmp.lt.s32.totalorder %s13088_s25, %s13088_s25 }
0x46e1   :  { %v9617_v46 = vmul.f32 %v9615_v23, %v9615_v23 }
0x46e2   :  { %p13095_p7 = por %p13094_p6, %p13093_p5 }
0x46e3   :  { %v9621_v52 = vsel %vm587_vm0, %v9617_v46, 0.0 }
0x46e4   :  { %9622 = vadd.xlane.f32.xlu1 %v9621_v52  ;;  %p13096_p8 = pnand %p13095_p7, %p13089_p4 }
0x476d   :  { %v9620_v39 = vpop.xlane.xlu0 %9619 }
0x476e   :  { %v9624_v19 = vmul.f32 0.03125, %v9620_v39 }
0x4770   :  { %v9626_v31 = vadd.f32 1e-05, %v9624_v19 }
0x4771   :  { %v9623_v61 = vpop.xlane.xlu1 %9622 }
0x4772   :  { %12522 = vrsqrt.f32 %v9626_v31  ;;  %v9625_v48 = vmul.f32 0.03125, %v9623_v61 }
0x4774   :  { %v9627_v34 = vadd.f32 1e-05, %v9625_v48 }
0x4776   :  { %12524 = vrsqrt.f32 %v9627_v34 }
0x477c   :  { %v12523_v11 = vpop.eup %12522 }
0x477d   :  { %v9630_v16 = vmul.f32 %v12523_v11, %v9614_v54  ;;  %v10226_v54 = vld [vmem:[#allocation40] ss:$0 sm:$0xff] }
0x477f   :  { %v9639_v30 = vmul.f32 %v10221_v45, %v9630_v16 }
0x4780   :  { %v12525_v5 = vpop.eup %12524 }
0x4781   :  { %v9648_v50 = vadd.f32 %v10222_v53, %v9639_v30  ;;  %v9631_v56 = vmul.f32 %v12525_v5, %v9615_v23 }
0x4783   :  { %v9650_v57 = vsel %vm587_vm0, %v9648_v50, 0.0  ;;  %v9640_v60 = vmul.f32 %v10221_v45, %v9631_v56 }
0x4784   :  { %9651 = vadd.xlane.f32.xlu0 %v9650_v57 }
0x4785   :  { %v9649_v59 = vadd.f32 %v10222_v53, %v9640_v60 }
0x4787   :  { %v9653_v51 = vsel %vm587_vm0, %v9649_v59, 0.0 }
0x4788   :  { %9654 = vadd.xlane.f32.xlu1 %v9653_v51 }
0x4811   :  { %v9652_v62 = vpop.xlane.xlu0 %9651 }
0x4812   :  { %v9656_v63 = vmul.f32 0.03125, %v9652_v62 }
0x4814   :  { %v9658_v0 = vsub.f32 %v9648_v50, %v9656_v63 }
0x4815   :  { %v9655_v47 = vpop.xlane.xlu1 %9654 }
0x4816   :  { %v9657_v1 = vmul.f32 0.03125, %v9655_v47  ;;  %v9660_v14 = vmul.f32 %v9658_v0, %v9658_v0 }
0x4818   :  { %v9659_v8 = vsub.f32 %v9649_v59, %v9657_v1  ;;  %v9662_v33 = vsel %vm587_vm0, %v9660_v14, 0.0 }
0x4819   :  { %9663 = vadd.xlane.f32.xlu0 %v9662_v33 }
0x481a   :  { %v9661_v2 = vmul.f32 %v9659_v8, %v9659_v8 }
0x481c   :  { %v9665_v22 = vsel %vm587_vm0, %v9661_v2, 0.0 }
0x481d   :  { %9666 = vadd.xlane.f32.xlu1 %v9665_v22 }
0x48a6   :  { %v9664_v12 = vpop.xlane.xlu0 %9663 }
0x48a7   :  { %v9668_v25 = vmul.f32 0.03125, %v9664_v12 }
0x48a9   :  { %v9670_v58 = vadd.f32 1e-05, %v9668_v25 }
0x48aa   :  { %v9667_v3 = vpop.xlane.xlu1 %9666 }
0x48ab   :  { %12526 = vrsqrt.f32 %v9670_v58  ;;  %v9669_v41 = vmul.f32 0.03125, %v9667_v3 }
0x48ad   :  { %v9671_v26 = vadd.f32 1e-05, %v9669_v41 }
0x48af   :  { %12528 = vrsqrt.f32 %v9671_v26 }
0x48b5   :  { %v12527_v17 = vpop.eup %12526 }
0x48b6   :  { %v9674_v18 = vmul.f32 %v12527_v17, %v9658_v0 }
0x48b8   :  { %v9683_v27 = vmul.f32 %v10223_v20, %v9674_v18 }
0x48b9   :  { %v12529_v21 = vpop.eup %12528 }
0x48ba   :  { %v9675_v13 = vmul.f32 %v12529_v21, %v9659_v8  ;;  %v9692_v15 = vadd.f32 %v10224_v10, %v9683_v27 }
0x48bc   :  { %v9684_v55 = vmul.f32 %v10223_v20, %v9675_v13 }
0x48be   :  { %v9693_v32 = vadd.f32 %v10224_v10, %v9684_v55 }
0x48c0   :  { %v11855_v37 = vpack.c.bf16 %v9693_v32, %v9692_v15 }
0x48c2   :  { %11856 = vmatpush3.bf16.msra.mxu1 %v11855_v37 }
0x48c3   :  { %11857 = vmatprep.subr.bf16.mxu1 %v13243_v6 }
0x48c5   :  { %11377 = vmatmul.mubr.msk.f32.vlgmr.msra.gmra.mrb[80].mxu1 %vm767_vm3, %v575_v44 }
0x48c6   :  { %11859 = vmatpush3.bf16.msra.mxu1 %v11858_v29  ;;  %11387 = vmatprep.mubr.msk.f32.mxu1 %vm13244_vm12, %v13245_v7 }
0x48c7   :  { %11860 = vmatprep.subr.bf16.mxu1 %v13243_v6 }
0x48ca   :  { %11862 = vmatpush3.bf16.msra.mxu1 %v11861_v24 }
0x4998   :  { %v9763_v28 = vpop.f32.mrb[80].mxu1 }
0x4999   :  { %v11378_v49 = vpop.f32.mrb[81].mxu1  ;;  %11388 = vmatmul.mubr.msk.f32.vlgmr.msra.gmra.mrb[82].mxu1 %vm587_vm0, %v9763_v28 }
0x4a6c   :  { %v9847_v9 = vpop.f32.mrb[82].mxu1 }
0x4a6d   :  { %v9848_v38 = vadd.f32 %v10226_v54, %v9847_v9  ;;  %v11389_v40 = vpop.f32.mrb[83].mxu1 }
0x4a6f   :  { %9852 = vst.msk [vmem:[#allocation41] sm:$0x3] %vm9851_vm13, %v9848_v38 }
0x4a70   :  { %13099 = shalt.err (!%p13096_p8)
}
0x4a71   :  { %s13100_s1 = scalar_lea.hbm %s13600_s9, 32 }
0x4a72   :  { %p13101_p9 = scmp.ne.s32.totalorder %s13600_s9, %s13100_s1  ;;  %p13104_p10 = scmp.lt.u32.totalorder %s13100_s1, %s13600_s9 }
0x4a74   :  { %p13106_p11 = pnand %p13104_p10, %p13101_p9 }
0x4a76   :  { %13109 = shalt.err (!%p13106_p11)
}
0x4a77   :  { %9862 = dma.vmem_to_hbm [thread:$0]  %s9860_s3, 32, %s13600_s9, [#allocation4]  }
0x4a78   :  { %13136 = dma.done.wait [#allocation4], 32  }
0x4a79   :  { %13137 = vsyncadd [#allocation4], 4294967264 }
0x4a7a   :  { %9866 = vsyncpa [#allocation3], 1 }
0x4a7b   :  { %9867 = vsyncpa [#allocation6], 1 }
0x4a7c   :  { %9868 = vsyncpa [#allocation9], 1 }
0x4a7d   :  { %9869 = vsyncpa [#allocation12], 1 }
0x4a7e   :  { %9870 = vsyncpa [#allocation15], 1 }
0x4a7f   :  { %9871 = vsyncpa [#allocation18], 1 }
0x4a80   :  { %9872 = vsyncpa [#allocation21], 1 }
0x4a81   :  { %9873 = vsyncpa [#allocation24], 1 }
0x4a82   :  { %9874 = vsyncpa [#allocation27], 1 }
0x4a83   :  { %9875 = vsyncpa [#allocation30], 1 }
0x4a84   :  { %9876 = vsyncpa [#allocation33], 1 }
0x4a85   :  { %9877 = vsyncpa [#allocation36], 1 }
0x4a86   :  { %9878 = vsyncpa [#allocation39], 1 }
0x4a87   :  { %9879 = vsyncpa [#allocation4], 1 }

</bundles_post_ra>
